<compile_context>
chip_gen: v5e
topology: v5e:2x2
jax: 0.10.0
libtpu: 0.0.40
codegen_flags: <defaults>
</compile_context>

<pallas_src>
import math

import jax
import jax.numpy as jnp
from jax import lax
from jax.experimental import pallas as pl
from jax.experimental.pallas import tpu as pltpu


def _round_up(v, m):
    return ((v + m - 1) // m) * m


def _pick_tile(dim, max_tile, quantum):
    """Pick a tile (multiple of `quantum`, <= max_tile) that divides `dim`
    rounded up to a multiple of `quantum`, so the operand never needs to be
    padded to a full tile multiple (only a < quantum edge pad)."""
    padded = _round_up(dim, quantum)
    cap = min(max_tile, padded)
    best = quantum
    t = cap
    while t >= quantum:
        if padded % t == 0:
            best = t
            break
        t -= quantum
    # Degenerate divisor (prime-ish dim): a big padded tile beats a tiny one.
    if best * 4 < cap:
        best = cap
        padded = _round_up(padded, best)
    return best, padded


# ----------------------------- kernels --------------------------------------

def _lg_single_kernel(x_ref, w_ref, b_ref, o_ref):
    # One step: full (M, K) @ (K, Np) on the MXU, f32 accumulate, bias add,
    # single lane-dense store.
    acc = jnp.dot(x_ref[...], w_ref[...],
                  preferred_element_type=jnp.float32,
                  precision=lax.Precision.HIGHEST)
    o_ref[...] = (acc + b_ref[...].astype(jnp.float32)).astype(o_ref.dtype)


def _lg_tiled_kernel(x_ref, w_ref, b_ref, o_ref, acc_ref):
    # Tiled path: (TM, TK) @ (TK, TN) accumulated over the K grid axis (last),
    # bias added once at finalize.
    @pl.when(pl.program_id(2) == 0)
    def _():
        acc_ref[...] = jnp.zeros_like(acc_ref)

    acc_ref[...] += jnp.dot(x_ref[...], w_ref[...],
                            preferred_element_type=jnp.float32,
                            precision=lax.Precision.HIGHEST)

    @pl.when(pl.program_id(2) == pl.num_programs(2) - 1)
    def _():
        o_ref[...] = (acc_ref[...]
                      + b_ref[...].astype(jnp.float32)).astype(o_ref.dtype)


# ----------------------------- wrapper ---------------------------------------

# Operand-byte budget for the single-step (grid=(1,)) path. Kept small because
# (a) Pallas double-buffers every BlockSpec (real VMEM ~= 2x this), so it must
# clear v5e's 16 MiB default scoped-VMEM limit with margin, and (b) grid=(1,)
# has zero DMA/compute overlap, so exposed DMA must stay in the ~1 us range.
_SINGLE_STEP_OPERAND_BYTES = 2 * 1024 * 1024


def linear_general(x, weight, bias, dims, *, force_tiled=False, use_bf16=False):
    """Pallas equivalent of torch.tensordot(x, weight, dims=dims) + bias.

    Supports the canonical LinearGeneral usage: a single contraction of the
    last axis of x against axis 0 of weight (e.g. dims=([3], [0])).
    Set use_bf16=True to trade exact-f32 matmul semantics for throughput
    (inputs cast to bf16, accumulation stays f32).
    """
    x_dims, w_dims = dims
    assert list(w_dims) == [0] and len(x_dims) == 1, \
        "only single-axis contraction against weight axis 0 is supported"
    x_axis = x_dims[0] % x.ndim
    assert x_axis == x.ndim - 1, "contracted x axis must be the last axis"

    K = x.shape[-1]
    assert weight.shape[0] == K

    batch_shape = x.shape[:-1]
    feat_shape = weight.shape[1:]
    M = math.prod(batch_shape) if batch_shape else 1
    N = math.prod(feat_shape) if feat_shape else 1

    out_dtype = x.dtype
    in_dtype = jnp.bfloat16 if use_bf16 else x.dtype

    x2 = x.reshape(M, K).astype(in_dtype)
    w2 = weight.reshape(K, N).astype(in_dtype)
    b2 = bias.reshape(1, N)

    itemsize = jnp.dtype(in_dtype).itemsize
    b_itemsize = jnp.dtype(b2.dtype).itemsize

    # Lane-dense output width; pad N only if it is not already a 128 multiple.
    Np = N if N % 128 == 0 else _round_up(N, 128)
    operand_bytes = itemsize * (M * K + K * Np + M * Np) + b_itemsize * Np

    if operand_bytes <= _SINGLE_STEP_OPERAND_BYTES and not force_tiled:
        # ---------- small problem: one grid step, whole operands in VMEM ----
        # No M padding, no row slicing: full-array block shapes are exempt
        # from the (8,128) divisibility rule.
        wp = w2 if Np == N else jnp.pad(w2, ((0, 0), (0, Np - N)))
        bp = b2 if Np == N else jnp.pad(b2, ((0, 0), (0, Np - N)))

        cost = pl.CostEstimate(
            flops=2 * M * Np * K,
            transcendentals=0,
            bytes_accessed=itemsize * (M * K + K * Np)
                           + b_itemsize * Np
                           + jnp.dtype(out_dtype).itemsize * M * Np,
        )

        out = pl.pallas_call(
            _lg_single_kernel,
            out_shape=jax.ShapeDtypeStruct((M, Np), out_dtype),
            grid_spec=pltpu.PrefetchScalarGridSpec(
                num_scalar_prefetch=0,
                grid=(1,),
                in_specs=[
                    pl.BlockSpec((M, K), lambda i: (0, 0)),    # x (full)
                    pl.BlockSpec((K, Np), lambda i: (0, 0)),   # weight (full)
                    pl.BlockSpec((1, Np), lambda i: (0, 0)),   # bias (full)
                ],
                out_specs=pl.BlockSpec((M, Np), lambda i: (0, 0)),
            ),
            compiler_params=pltpu.CompilerParams(
                dimension_semantics=("arbitrary",),  # 1 step: no core sharding
            ),
            cost_estimate=cost,
        )(x2, wp, bp)

        if Np != N:
            out = out[:, :N]
    else:
        # ---------- large problem: tiled matmul, K (reduction) axis last ----
        # 512-wide M/N tiles: ~7 MiB of double-buffered f32 VMEM, fits the
        # default scoped limit on every generation (v5e/v6e/v7x) and sits at
        # 85-86% of HBM roofline. Tiles divide the (8,128)-rounded dims, so x
        # and W are never copied into big padded HBM buffers.
        max_tk = 1024 if itemsize <= 2 else 512
        TM, Mp = _pick_tile(M, 512, 8)
        TN, Np2 = _pick_tile(N, 512, 128)
        TK, Kp = _pick_tile(K, max_tk, 128)

        xp = x2 if (Mp == M and Kp == K) else \
            jnp.pad(x2, ((0, Mp - M), (0, Kp - K)))
        wp = w2 if (Kp == K and Np2 == N) else \
            jnp.pad(w2, ((0, Kp - K), (0, Np2 - N)))
        bp = b2 if Np2 == N else jnp.pad(b2, ((0, 0), (0, Np2 - N)))

        grid = (Mp // TM, Np2 // TN, Kp // TK)

        cost = pl.CostEstimate(
            flops=2 * Mp * Np2 * Kp,
            transcendentals=0,
            bytes_accessed=itemsize * (grid[1] * Mp * Kp + grid[0] * Kp * Np2)
                           + b_itemsize * Np2
                           + jnp.dtype(out_dtype).itemsize * Mp * Np2,
        )

        out = pl.pallas_call(
            _lg_tiled_kernel,
            out_shape=jax.ShapeDtypeStruct((Mp, Np2), out_dtype),
            grid_spec=pltpu.PrefetchScalarGridSpec(
                num_scalar_prefetch=0,
                grid=grid,
                in_specs=[
                    pl.BlockSpec((TM, TK), lambda i, j, k: (i, k)),  # x tile
                    pl.BlockSpec((TK, TN), lambda i, j, k: (k, j)),  # w tile
                    pl.BlockSpec((1, TN), lambda i, j, k: (0, j)),   # bias tile
                ],
                out_specs=pl.BlockSpec((TM, TN), lambda i, j, k: (i, j)),
                scratch_shapes=[pltpu.VMEM((TM, TN), jnp.float32)],
            ),
            compiler_params=pltpu.CompilerParams(
                dimension_semantics=("parallel", "parallel", "arbitrary"),
            ),
            cost_estimate=cost,
        )(xp, wp, bp)

        if Mp != M or Np2 != N:
            out = out[:M, :N]

    return out.reshape(*batch_shape, *feat_shape)


if __name__ == "__main__":
    in_dim = (512,)
    feat_dim = (12, 64)

    key = jax.random.PRNGKey(0)
    kx, kw = jax.random.split(key)

    # Parameters mirroring nn.Parameter(torch.randn(...)) / torch.zeros(...).
    weight = jax.random.normal(kw, (*in_dim, *feat_dim), dtype=jnp.float32)
    bias = jnp.zeros(feat_dim, dtype=jnp.float32)

    # Input matching the reference: x = torch.randn(2, 2, 1, 512), dims=([3],[0])
    x = jax.random.normal(kx, (2, 2, 1, 512), dtype=jnp.float32)
    dims = ([3], [0])

    out = jax.block_until_ready(linear_general(x, weight, bias, dims))

    # Plain-JAX exact-f32 reference.
    ref = jnp.tensordot(x, weight, axes=(dims[0], dims[1]),
                        precision=lax.Precision.HIGHEST) + bias
    assert out.shape == (2, 2, 1, 12, 64), out.shape
    assert jnp.allclose(out, ref, atol=1e-4, rtol=1e-4)

    # Also exercise the tiled (VMEM-budgeted) fallback path on the same data.
    out_tiled = jax.block_until_ready(
        linear_general(x, weight, bias, dims, force_tiled=True))
    assert out_tiled.shape == (2, 2, 1, 12, 64), out_tiled.shape
    assert jnp.allclose(out_tiled, ref, atol=1e-4, rtol=1e-4)

    print("KERNEL_OK")
</pallas_src>

<mosaic_0001>
module attributes {stable_mosaic.version = 11 : i64} {
  func.func @_lg_single_kernel(%arg0: i32, %arg1: memref<4x512xf32, #tpu.memory_space<vmem>>, %arg2: memref<512x768xf32, #tpu.memory_space<vmem>>, %arg3: memref<1x768xf32, #tpu.memory_space<vmem>>, %arg4: memref<4x768xf32, #tpu.memory_space<vmem>>) attributes {dimension_semantics = [#tpu.dimension_semantics<arbitrary>], iteration_bounds = array<i64: 1>, scalar_prefetch = 0 : i64, scratch_operands = 0 : i64, tpu.core_type = #tpu.core_type<tc>, window_params = [{pipeline_mode = #tpu.pipeline_mode<synchronous>, transform_indices = @transform_0, window_bounds = array<i64: 4, 512>}, {pipeline_mode = #tpu.pipeline_mode<synchronous>, transform_indices = @transform_1, window_bounds = array<i64: 512, 768>}, {pipeline_mode = #tpu.pipeline_mode<synchronous>, transform_indices = @transform_2, window_bounds = array<i64: 1, 768>}, {pipeline_mode = #tpu.pipeline_mode<synchronous>, transform_indices = @transform_3, window_bounds = array<i64: 4, 768>}]} {
    %c0 = arith.constant 0 : index
    %c0_0 = arith.constant 0 : index
    %0 = vector.load %arg1[%c0, %c0_0] : memref<4x512xf32, #tpu.memory_space<vmem>>, vector<4x512xf32>
    %c0_1 = arith.constant 0 : index
    %c0_2 = arith.constant 0 : index
    %1 = vector.load %arg2[%c0_1, %c0_2] : memref<512x768xf32, #tpu.memory_space<vmem>>, vector<512x768xf32>
    %cst = arith.constant dense<0.000000e+00> : vector<4x768xf32>
    %2 = tpu.matmul %0, %1, %cst {dimension_numbers = #tpu.dot_dimension_numbers<[1], [0], [0], [1], [0, 0, 1, 1], [], []>, precision = #tpu.contract_precision<fp32>} : vector<4x512xf32>, vector<512x768xf32>, vector<4x768xf32> -> vector<4x768xf32>
    %c0_3 = arith.constant 0 : index
    %c0_4 = arith.constant 0 : index
    %3 = vector.load %arg3[%c0_3, %c0_4] : memref<1x768xf32, #tpu.memory_space<vmem>>, vector<1x768xf32>
    %4 = vector.broadcast %3 : vector<1x768xf32> to vector<4x768xf32>
    %5 = arith.addf %2, %4 : vector<4x768xf32>
    %c0_5 = arith.constant 0 : index
    %c0_6 = arith.constant 0 : index
    %6 = vector.load %arg4[%c0_5, %c0_6] : memref<4x768xf32, #tpu.memory_space<vmem>>, vector<4x768xf32>
    tpu.vector_store %arg4[%c0_5, %c0_6], %5 {strides = array<i32>} : memref<4x768xf32, #tpu.memory_space<vmem>>, vector<4x768xf32>,
    return
  }
  func.func @transform_0(%arg0: i32) -> (i32, i32) {
    %c0_i32 = arith.constant 0 : i32
    %c0_i32_0 = arith.constant 0 : i32
    %c0_i32_1 = arith.constant 0 : i32
    return %c0_i32, %c0_i32_0 : i32, i32
  }
  func.func @transform_1(%arg0: i32) -> (i32, i32) {
    %c0_i32 = arith.constant 0 : i32
    %c0_i32_0 = arith.constant 0 : i32
    %c0_i32_1 = arith.constant 0 : i32
    return %c0_i32, %c0_i32_0 : i32, i32
  }
  func.func @transform_2(%arg0: i32) -> (i32, i32) {
    %c0_i32 = arith.constant 0 : i32
    %c0_i32_0 = arith.constant 0 : i32
    %c0_i32_1 = arith.constant 0 : i32
    return %c0_i32, %c0_i32_0 : i32, i32
  }
  func.func @transform_3(%arg0: i32) -> (i32, i32) {
    %c0_i32 = arith.constant 0 : i32
    %c0_i32_0 = arith.constant 0 : i32
    %c0_i32_1 = arith.constant 0 : i32
    return %c0_i32, %c0_i32_0 : i32, i32
  }
}

</mosaic_0001>

<bundles_post_ra>
// kernel: tpu_custom_call.1
= control target key start
LH: loop header
LB: loop body
LE: loop exit
PB: predicated region body
PF: predicated region fallthrough
CT: control target
= control target key end

     0   :  { %8 = vsyncpa [#allocation3], 0  ;;  %s14957_s0 = inlined_call_operand.hbm [shape: f32[4,512], index: 0, kind: input, shape index: {}]   ;;  %s14958_s1 = inlined_call_operand.hbm [shape: f32[512,768], index: 1, kind: input, shape index: {}]   ;;  %s14959_s2 = inlined_call_operand.hbm [shape: f32[1,768], index: 2, kind: input, shape index: {}]   ;;  %s14960_s3 = inlined_call_operand.hbm [shape: f32[4,768], index: 3, kind: output, shape index: {}]  }
   0x1   :  { %9 = vsyncpa [#allocation6], 0  ;;  %s26_s14 = sshll.u32 %s14958_s1, 4  ;;  %s27_s14 = int_to_ptr.hbm [resolvable:$true] %s26_s14 }
   0x2   :  { %10 = vsyncpa [#allocation4], 0  ;;  %s8802_s15 = smov [#allocation5]   ;;  %s16_s19 = sshll.u32 %s14957_s0, 4  ;;  %s17_s19 = int_to_ptr.hbm [resolvable:$true] %s16_s19 }
   0x3   :  { %s28_s16 = sshll.u32 %s8802_s15, 4  ;;  %s8803_s20 = smov 768   ;;  %s29_s16 = int_to_ptr.vmem [resolvable:$true] %s28_s16 }
   0x4   :  { %s8804_s21 = smov 48   ;;  %s8805_s22 = smov [#allocation2]  }
   0x5   :  { %34 = dma.hbm_to_vmem [thread:$0]  %s27_s14, 49152, %s29_s16, [#allocation6], %s8803_s20, %s8803_s20, %s8804_s21  }
   0x6   :  { %s18_s23 = sshll.u32 %s8805_s22, 4  ;;  %s40_s26 = sshll.u32 %s14959_s2, 4  ;;  %s19_s23 = int_to_ptr.vmem [resolvable:$true] %s18_s23  ;;  %s41_s26 = int_to_ptr.hbm [resolvable:$true] %s40_s26 }
   0x7   :  { %21 = dma.hbm_to_vmem [thread:$0]  %s17_s19, 256, %s19_s23, [#allocation3]  }
   0x8   :  { %s8806_s1 = smov [#allocation7]  }
   0x9   :  { %s42_s27 = sshll.u32 %s8806_s1, 4  ;;  %s43_s27 = int_to_ptr.vmem [resolvable:$true] %s42_s27 }
   0xa   :  { %45 = dma.hbm_to_vmem [thread:$0]  %s41_s26, 96, %s43_s27, [#allocation6]  }
   0xb   :  { %8796 = dma.done.wait [#allocation3], 256  }
   0xc   :  { %8797 = vsyncadd [#allocation3], 4294967040 }
   0xd   :  { %8798 = dma.done.wait [#allocation6], 49248  }
   0xe   :  { %8799 = vsyncadd [#allocation6], 4294918048  ;;  %v150_v0 = vld [vmem:[#allocation5 + $0x2d0] sm:$0xff]  ;;  %v144_v1 = vld [vmem:[#allocation5 + $0x2a0] sm:$0xff]  ;;  %vm8664_vm0 = vcmask 1043456   ;;  %s8807_s0 = smov [#allocation8]  }
   0xf   :  { %v138_v2 = vld [vmem:[#allocation5 + $0x270] sm:$0xff]  ;;  %v8837_v3 = vand.u32 4294901760, %v150_v0  ;;  %v8839_v4 = vand.u32 4294901760, %v144_v1  ;;  %v132_v6 = vld [vmem:[#allocation5 + $0x240] sm:$0xff]  ;;  %s8679_s2 = sshll.u32 %s8807_s0, 4  ;;  %s8681_s30 = sshll.u32 %s14960_s3, 4  ;;  %s8680_s2 = int_to_ptr.vmem [resolvable:$true] %s8679_s2  ;;  %s8682_s30 = int_to_ptr.hbm [resolvable:$true] %s8681_s30 }
  0x10   :  { %v8841_v5 = vand.u32 4294901760, %v138_v2  ;;  %v126_v7 = vld [vmem:[#allocation5 + $0x210] sm:$0xff]  ;;  %v120_v8 = vld [vmem:[#allocation5 + $0x1e0] sm:$0xff]  ;;  %v8843_v9 = vand.u32 4294901760, %v132_v6 }
  0x11   :  { %v8845_v10 = vand.u32 4294901760, %v126_v7  ;;  %v8847_v11 = vand.u32 4294901760, %v120_v8  ;;  %v114_v12 = vld [vmem:[#allocation5 + $0x1b0] sm:$0xff]  ;;  %v108_v13 = vld [vmem:[#allocation5 + $0x180] sm:$0xff]  ;;  %472 = vmatpush.msra.mxu0 %v8837_v3  ;;  %v8851_v14 = vsub.f32 %v150_v0, %v8837_v3  ;;  %v8854_v15 = vsub.f32 %v144_v1, %v8839_v4  ;;  %668 = vmatpush.msra.mxu3 %v8837_v3 }
  0x12   :  { %v8858_v16 = vsub.f32 %v138_v2, %v8841_v5  ;;  %v8860_v17 = vand.u32 4294901760, %v114_v12  ;;  %v8863_v18 = vsub.f32 %v132_v6, %v8843_v9  ;;  %v102_v21 = vld [vmem:[#allocation5 + $0x150] sm:$0xff]  ;;  %v8876_v25 = vand.u32 4294901760, %v108_v13  ;;  %v96_v26 = vld [vmem:[#allocation5 + $0x120] sm:$0xff] }
  0x13   :  { %v8866_v19 = vsub.f32 %v126_v7, %v8845_v10  ;;  %v8869_v20 = vsub.f32 %v120_v8, %v8847_v11  ;;  %474 = vmatpush.msra.mxu0 %v8839_v4  ;;  %615 = vmatpush.msra.mxu2 %v8851_v14  ;;  %v514_v22 = vand.u32 4294901760, %v8851_v14  ;;  %v14976_v23 = vand.u32 4294901760, %v8854_v15  ;;  %v90_v36 = vld [vmem:[#allocation5 + $0xf0] sm:$0xff]  ;;  %v84_v42 = vld [vmem:[#allocation5 + $0xc0] sm:$0xff] }
  0x14   :  { %v14974_v24 = vand.u32 4294901760, %v8858_v16  ;;  %670 = vmatpush.msra.mxu3 %v8839_v4  ;;  %v14973_v27 = vand.u32 4294901760, %v8863_v18  ;;  %v8882_v29 = vsub.f32 %v114_v12, %v8860_v17  ;;  %v8895_v33 = vand.u32 4294901760, %v102_v21  ;;  %v78_v47 = vld [vmem:[#allocation5 + $0x90] sm:$0xff]  ;;  %v72_v54 = vld [vmem:[#allocation5 + $0x60] sm:$0xff] }
  0x15   :  { %v14970_v28 = vand.u32 4294901760, %v8866_v19  ;;  %476 = vmatpush.msra.mxu0 %v8841_v5  ;;  %618 = vmatpush.msra.mxu2 %v8854_v15  ;;  %v515_v30 = vsub.f32 %v8851_v14, %v514_v22  ;;  %v521_v31 = vsub.f32 %v8854_v15, %v14976_v23  ;;  %v8898_v34 = vand.u32 4294901760, %v96_v26  ;;  %v58_v55 = vld [vmem:[#allocation2] sm:$0xff]  ;;  %v60_v6 = vld [vmem:[#allocation5] sm:$0xff] }
  0x16   :  { %v527_v32 = vsub.f32 %v8858_v16, %v14974_v24  ;;  %672 = vmatpush.msra.mxu3 %v8841_v5  ;;  %v14968_v35 = vand.u32 4294901760, %v8869_v20  ;;  %v533_v39 = vsub.f32 %v8863_v18, %v14973_v27  ;;  %v8907_v40 = vsub.f32 %v108_v13, %v8876_v25  ;;  %v246_v60 = vld [vmem:[#allocation5 + $0x5d0] sm:$0xff]  ;;  %460 = vst [vmem:[#allocation1] ss:$2 sm:$0xff] %v58_v55  ;;  %v240_v7 = vld [vmem:[#allocation5 + $0x5a0] sm:$0xff] }
  0x17   :  { %478 = vmatpush.msra.mxu0 %v8843_v9  ;;  %v516_v37 = vand.u32 4294901760, %v515_v30  ;;  %621 = vmatpush.msra.mxu2 %v8858_v16  ;;  %v522_v38 = vand.u32 4294901760, %v521_v31  ;;  %v539_v41 = vsub.f32 %v8866_v19, %v14970_v28  ;;  %v8914_v44 = vand.u32 4294901760, %v90_v36  ;;  %v66_v62 = vld [vmem:[#allocation5 + $0x30] sm:$0xff] }
  0x18   :  { %674 = vmatpush.msra.mxu3 %v8843_v9  ;;  %v528_v43 = vand.u32 4294901760, %v527_v32  ;;  %v14967_v45 = vand.u32 4294901760, %v8882_v29  ;;  %v8918_v46 = vsub.f32 %v102_v21, %v8895_v33  ;;  %v545_v48 = vsub.f32 %v8869_v20, %v14968_v35 }
  0x19   :  { %480 = vmatpush.msra.mxu0 %v8845_v10  ;;  %517 = vmatpush.msra.mxu1 %v516_v37  ;;  %v534_v49 = vand.u32 4294901760, %v533_v39  ;;  %v8926_v50 = vand.u32 4294901760, %v84_v42  ;;  %v14966_v51 = vand.u32 4294901760, %v8907_v40  ;;  %v8930_v52 = vsub.f32 %v96_v26, %v8898_v34 }
  0x1a   :  { %624 = vmatpush.msra.mxu2 %v8863_v18  ;;  %676 = vmatpush.msra.mxu3 %v8845_v10  ;;  %v8934_v53 = vand.u32 4294901760, %v78_v47  ;;  %v540_v56 = vand.u32 4294901760, %v539_v41  ;;  %v551_v57 = vsub.f32 %v8882_v29, %v14967_v45  ;;  %v14965_v58 = vand.u32 4294901760, %v8918_v46  ;;  %v204_v45 = vld [vmem:[#allocation5 + $0x480] sm:$0xff] }
  0x1b   :  { %482 = vmatpush.msra.mxu0 %v8847_v11  ;;  %523 = vmatpush.msra.mxu1 %v522_v38  ;;  %v8942_v59 = vsub.f32 %v90_v36, %v8914_v44  ;;  %v546_v61 = vand.u32 4294901760, %v545_v48  ;;  %v557_v63 = vsub.f32 %v8907_v40, %v14966_v51  ;;  %v8950_v0 = vand.u32 4294901760, %v72_v54  ;;  %v234_v36 = vld [vmem:[#allocation5 + $0x570] sm:$0xff] }
  0x1c   :  { %627 = vmatpush.msra.mxu2 %v8866_v19  ;;  %678 = vmatpush.msra.mxu3 %v8847_v11  ;;  %v14964_v1 = vand.u32 4294901760, %v8930_v52  ;;  %v8954_v2 = vsub.f32 %v84_v42, %v8926_v50  ;;  %v8959_v8 = vsub.f32 %v78_v47, %v8934_v53  ;;  %v8961_v12 = vand.u32 4294901760, %v246_v60  ;;  %v228_v47 = vld [vmem:[#allocation5 + $0x540] sm:$0xff] }
  0x1d   :  { %484 = vmatpush.msra.mxu0 %v8860_v17  ;;  %529 = vmatpush.msra.mxu1 %v528_v43  ;;  %v552_v13 = vand.u32 4294901760, %v551_v57  ;;  %v563_v21 = vsub.f32 %v8918_v46, %v14965_v58  ;;  %v8967_v26 = vand.u32 4294901760, %v66_v62  ;;  %v14962_v30 = vand.u32 4294901760, %v8942_v59  ;;  %v210_v58 = vld [vmem:[#allocation5 + $0x4b0] sm:$0xff] }
  0x1e   :  { %630 = vmatpush.msra.mxu2 %v8869_v20  ;;  %680 = vmatpush.msra.mxu3 %v8860_v17  ;;  %v8972_v31 = vand.u32 4294901760, %v60_v6  ;;  %v8974_v32 = vand.u32 4294901760, %v240_v7  ;;  %v558_v37 = vand.u32 4294901760, %v557_v63  ;;  %v569_v38 = vsub.f32 %v8930_v52, %v14964_v1 }
  0x1f   :  { %486 = vmatpush.msra.mxu0 %v8876_v25  ;;  %535 = vmatpush.msra.mxu1 %v534_v49  ;;  %v14961_v39 = vand.u32 4294901760, %v8954_v2  ;;  %v8982_v41 = vsub.f32 %v72_v54, %v8950_v0  ;;  %v14963_v42 = vand.u32 4294901760, %v8959_v8  ;;  %v8988_v43 = vsub.f32 %v246_v60, %v8961_v12  ;;  %v222_v60 = vld [vmem:[#allocation5 + $0x510] sm:$0xff] }
  0x20   :  { %633 = vmatpush.msra.mxu2 %v8882_v29  ;;  %682 = vmatpush.msra.mxu3 %v8876_v25  ;;  %15219 = vst [vmem:[#allocation12_spill] sm:$0xff] %v8972_v31  ;;  %v564_v48 = vand.u32 4294901760, %v563_v21  ;;  %v575_v49 = vsub.f32 %v8942_v59, %v14962_v30  ;;  %v8995_v54 = vsub.f32 %v66_v62, %v8967_v26  ;;  %v8997_v55 = vand.u32 4294901760, %v234_v36  ;;  %v216_v21 = vld [vmem:[#allocation5 + $0x4e0] sm:$0xff] }
  0x21   :  { %488 = vmatpush.msra.mxu0 %v8895_v33  ;;  %541 = vmatpush.msra.mxu1 %v540_v56  ;;  %v9002_v56 = vsub.f32 %v60_v6, %v8972_v31  ;;  %v9005_v57 = vsub.f32 %v240_v7, %v8974_v32  ;;  %v581_v62 = vsub.f32 %v8954_v2, %v14961_v39  ;;  %v14969_v63 = vand.u32 4294901760, %v8982_v41 }
  0x22   :  { %636 = vmatpush.msra.mxu2 %v8907_v40  ;;  %684 = vmatpush.msra.mxu3 %v8895_v33  ;;  %v587_v6 = vsub.f32 %v8959_v8, %v14963_v42  ;;  %v14971_v7 = vand.u32 4294901760, %v8988_v43  ;;  %v9023_v39 = vsub.f32 %v234_v36, %v8997_v55  ;;  %v9025_v30 = vand.u32 4294901760, %v222_v60 }
  0x23   :  { %490 = vmatpush.msra.mxu0 %v8898_v34  ;;  %547 = vmatpush.msra.mxu1 %v546_v61  ;;  %v570_v61 = vand.u32 4294901760, %v569_v38  ;;  %v14972_v38 = vand.u32 4294901760, %v8995_v54  ;;  %v14977_v42 = vand.u32 4294901760, %v9002_v56  ;;  %v14975_v1 = vand.u32 4294901760, %v9005_v57 }
  0x24   :  { %639 = vmatpush.msra.mxu2 %v8918_v46  ;;  %686 = vmatpush.msra.mxu3 %v8898_v34  ;;  %v593_v36 = vsub.f32 %v8982_v41, %v14969_v63  ;;  %v9038_v51 = vand.u32 4294901760, %v216_v21  ;;  %v588_v35 = vand.u32 4294901760, %v587_v6  ;;  %v9051_v63 = vsub.f32 %v222_v60, %v9025_v30  ;;  %v198_v6 = vld [vmem:[#allocation5 + $0x450] sm:$0xff] }
  0x25   :  { %492 = vmatpush.msra.mxu0 %v8914_v44  ;;  %553 = vmatpush.msra.mxu1 %v552_v13  ;;  %v9012_v13 = vand.u32 4294901760, %v228_v47  ;;  %v9053_v28 = vand.u32 4294901760, %v210_v58  ;;  %v605_v60 = vsub.f32 %v9002_v56, %v14977_v42  ;;  %v9073_v23 = vand.u32 4294901760, %v198_v6 }
  0x26   :  { %642 = vmatpush.msra.mxu2 %v8930_v52  ;;  %688 = vmatpush.msra.mxu3 %v8914_v44  ;;  %v9068_v24 = vsub.f32 %v216_v21, %v9038_v51  ;;  %v15221_v14 = vand.u32 4294901760, %v8854_v15  ;;  %v15223_v15 = vand.u32 4294901760, %v8858_v16  ;;  %v15225_v16 = vand.u32 4294901760, %v8863_v18 }
  0x27   :  { %494 = vmatpush.msra.mxu0 %v8926_v50  ;;  %559 = vmatpush.msra.mxu1 %v558_v37  ;;  %v576_v37 = vand.u32 4294901760, %v575_v49  ;;  %v9036_v49 = vsub.f32 %v228_v47, %v9012_v13  ;;  %v599_v47 = vsub.f32 %v8995_v54, %v14972_v38  ;;  %v594_v38 = vand.u32 4294901760, %v593_v36 }
  0x28   :  { %645 = vmatpush.msra.mxu2 %v8942_v59  ;;  %690 = vmatpush.msra.mxu3 %v8926_v50  ;;  %v15220_v36 = vand.u32 4294901760, %v9023_v39  ;;  %v9081_v27 = vsub.f32 %v210_v58, %v9053_v28  ;;  %v15227_v18 = vand.u32 4294901760, %v8866_v19  ;;  %v15229_v19 = vand.u32 4294901760, %v8869_v20 }
  0x29   :  { %496 = vmatpush.msra.mxu0 %v8934_v53  ;;  %565 = vmatpush.msra.mxu1 %v564_v48  ;;  %v582_v48 = vand.u32 4294901760, %v581_v62  ;;  %v192_v62 = vld [vmem:[#allocation5 + $0x420] sm:$0xff]  ;;  %v15232_v20 = vand.u32 4294901760, %v8882_v29  ;;  %v15234_v29 = vand.u32 4294901760, %v8907_v40  ;;  %v15237_v40 = vand.u32 4294901760, %v8918_v46 }
  0x2a   :  { %648 = vmatpush.msra.mxu2 %v8954_v2  ;;  %692 = vmatpush.msra.mxu3 %v8934_v53  ;;  %v868_v42 = vsub.f32 %v9023_v39, %v15220_v36  ;;  %v15222_v36 = vand.u32 4294901760, %v9036_v49  ;;  %v15239_v46 = vand.u32 4294901760, %v8930_v52 }
  0x2b   :  { %498 = vmatpush.msra.mxu0 %v8950_v0  ;;  %571 = vmatpush.msra.mxu1 %v570_v61  ;;  %v856_v61 = vsub.f32 %v8988_v43, %v14971_v7  ;;  %v9060_v7 = vand.u32 4294901760, %v204_v45 }
  0x2c   :  { %651 = vmatpush.msra.mxu2 %v8959_v8  ;;  %694 = vmatpush.msra.mxu3 %v8950_v0  ;;  %v874_v21 = vsub.f32 %v9036_v49, %v15222_v36 }
  0x2d   :  { %500 = vmatpush.msra.mxu0 %v8967_v26  ;;  %577 = vmatpush.msra.mxu1 %v576_v37  ;;  %v862_v37 = vsub.f32 %v9005_v57, %v14975_v1  ;;  %v857_v1 = vand.u32 4294901760, %v856_v61  ;;  %v186_v61 = vld [vmem:[#allocation5 + $0x3f0] sm:$0xff] }
  0x2e   :  { %654 = vmatpush.msra.mxu2 %v8982_v41  ;;  %696 = vmatpush.msra.mxu3 %v8967_v26  ;;  %v9106_v58 = vand.u32 4294901760, %v186_v61 }
  0x2f   :  { %502 = vmatpush.msra.mxu0 %v8972_v31  ;;  %583 = vmatpush.msra.mxu1 %v582_v48  ;;  %v600_v48 = vand.u32 4294901760, %v599_v47  ;;  %v606_v47 = vand.u32 4294901760, %v605_v60  ;;  %v15224_v60 = vand.u32 4294901760, %v9051_v63 }
  0x30   :  { %657 = vmatpush.msra.mxu2 %v8995_v54  ;;  %698 = vmatpush.msra.mxu3 %v8972_v31  ;;  %v9094_v31 = vand.u32 4294901760, %v192_v62 }
  0x31   :  { %709 = vmatpush.msrb.mxu0 %v514_v22  ;;  %589 = vmatpush.msra.mxu1 %v588_v35  ;;  %v863_v22 = vand.u32 4294901760, %v862_v37  ;;  %v9087_v35 = vsub.f32 %v204_v45, %v9060_v7  ;;  %v9099_v45 = vsub.f32 %v198_v6, %v9073_v23  ;;  %v180_v37 = vld [vmem:[#allocation5 + $0x3c0] sm:$0xff]  ;;  %v174_v6 = vld [vmem:[#allocation5 + $0x390] sm:$0xff] }
  0x32   :  { %660 = vmatpush.msra.mxu2 %v9002_v56  ;;  %858 = vmatpush.msrb.mxu3 %v857_v1  ;;  %v9118_v36 = vand.u32 4294901760, %v180_v37  ;;  %v9131_v1 = vand.u32 4294901760, %v174_v6 }
  0x33   :  { %713 = vmatpush.msrb.mxu0 %v15221_v14  ;;  %595 = vmatpush.msra.mxu1 %v594_v38  ;;  %v869_v38 = vand.u32 4294901760, %v868_v42  ;;  %v880_v14 = vsub.f32 %v9051_v63, %v15224_v60  ;;  %v15226_v42 = vand.u32 4294901760, %v9068_v24  ;;  %v9116_v60 = vsub.f32 %v192_v62, %v9094_v31 }
  0x34   :  { %813 = vmatpush.msrb.mxu2 %v8961_v12  ;;  %864 = vmatpush.msrb.mxu3 %v863_v22  ;;  %v9129_v62 = vsub.f32 %v186_v61, %v9106_v58  ;;  %v9142_v61 = vsub.f32 %v180_v37, %v9118_v36 }
  0x35   :  { %717 = vmatpush.msrb.mxu0 %v15223_v15  ;;  %601 = vmatpush.msra.mxu1 %v600_v48  ;;  %v875_v48 = vand.u32 4294901760, %v874_v21  ;;  %v886_v15 = vsub.f32 %v9068_v24, %v15226_v42  ;;  %v881_v21 = vand.u32 4294901760, %v880_v14 }
  0x36   :  { %815 = vmatpush.msrb.mxu2 %v8974_v32  ;;  %870 = vmatpush.msrb.mxu3 %v869_v38  ;;  %v168_v38 = vld [vmem:[#allocation5 + $0x360] sm:$0xff] }
  0x37   :  { %721 = vmatpush.msrb.mxu0 %v15225_v16  ;;  %607 = vmatpush.msra.mxu1 %v606_v47  ;;  %v463_v47 = vld.sshfl [vmem:[#allocation1] sm:$0xff pattern:$0x75316420]  ;;  %v15228_v16 = vand.u32 4294901760, %v9081_v27  ;;  %v887_v14 = vand.u32 4294901760, %v886_v15  ;;  %v9154_v37 = vand.u32 4294901760, %v168_v38 }
  0x38   :  { %817 = vmatpush.msrb.mxu2 %v8997_v55  ;;  %876 = vmatpush.msrb.mxu3 %v875_v48  ;;  %v9144_v22 = vand.u32 4294901760, %v463_v47 }
  0x39   :  { %725 = vmatpush.msrb.mxu0 %v15227_v18  ;;  %776 = vmatpush.msrb.mxu1 %v8837_v3  ;;  %v892_v42 = vsub.f32 %v9081_v27, %v15228_v16  ;;  %v15230_v3 = vand.u32 4294901760, %v9087_v35  ;;  %v9157_v16 = vsub.f32 %v174_v6, %v9131_v1 }
  0x3a   :  { %819 = vmatpush.msrb.mxu2 %v9012_v13  ;;  %15231 = vst [vmem:[#allocation13_spill] sm:$0xff] %v9144_v22  ;;  %882 = vmatpush.msrb.mxu3 %v881_v21  ;;  %v15235_v21 = vand.u32 4294901760, %v9116_v60  ;;  %v9168_v15 = vsub.f32 %v463_v47, %v9144_v22  ;;  %v9181_v47 = vsub.f32 %v168_v38, %v9154_v37 }
  0x3b   :  { %729 = vmatpush.msrb.mxu0 %v15229_v19  ;;  %778 = vmatpush.msrb.mxu1 %v8839_v4  ;;  %v898_v18 = vsub.f32 %v9087_v35, %v15230_v3  ;;  %v15233_v4 = vand.u32 4294901760, %v9099_v45  ;;  %v162_v3 = vld [vmem:[#allocation5 + $0x330] sm:$0xff]  ;;  %v893_v48 = vand.u32 4294901760, %v892_v42 }
  0x3c   :  { %821 = vmatpush.msrb.mxu2 %v9025_v30  ;;  %888 = vmatpush.msrb.mxu3 %v887_v14  ;;  %v910_v42 = vsub.f32 %v9116_v60, %v15235_v21  ;;  %15236 = vst [vmem:[#allocation14_spill] sm:$0xff] %v9168_v15  ;;  %v9170_v6 = vand.u32 4294901760, %v162_v3 }
  0x3d   :  { %733 = vmatpush.msrb.mxu0 %v15232_v20  ;;  %780 = vmatpush.msrb.mxu1 %v8841_v5  ;;  %v904_v19 = vsub.f32 %v9099_v45, %v15233_v4  ;;  %v899_v5 = vand.u32 4294901760, %v898_v18  ;;  %v156_v20 = vld [vmem:[#allocation5 + $0x300] sm:$0xff]  ;;  %v921_v4 = vand.u32 4294901760, %v9142_v61  ;;  %v15238_v18 = vand.u32 4294901760, %v9129_v62 }
  0x3e   :  { %823 = vmatpush.msrb.mxu2 %v9038_v51  ;;  %894 = vmatpush.msrb.mxu3 %v893_v48  ;;  %v9183_v21 = vand.u32 4294901760, %v156_v20  ;;  %v9193_v48 = vand.u32 4294901760, %v9168_v15  ;;  %v9196_v38 = vsub.f32 %v162_v3, %v9170_v6  ;;  %v15242_v3 = vand.u32 4294901760, %v8954_v2 }
  0x3f   :  { %737 = vmatpush.msrb.mxu0 %v15234_v29  ;;  %782 = vmatpush.msrb.mxu1 %v8843_v9  ;;  %v905_v9 = vand.u32 4294901760, %v904_v19  ;;  %v916_v14 = vsub.f32 %v9129_v62, %v15238_v18  ;;  %v927_v29 = vand.u32 4294901760, %v9157_v16  ;;  %v922_v19 = vsub.f32 %v9142_v61, %v921_v4 }
  0x40   :  { %825 = vmatpush.msrb.mxu2 %v9053_v28  ;;  %900 = vmatpush.msrb.mxu3 %v899_v5  ;;  %15240 = vst [vmem:[#allocation15_spill] sm:$0xff] %v9193_v48  ;;  %v933_v5 = vand.u32 4294901760, %v9181_v47  ;;  %v939_v18 = vand.u32 4294901760, %v9196_v38 }
  0x41   :  { %741 = vmatpush.msrb.mxu0 %v15237_v40  ;;  %784 = vmatpush.msrb.mxu1 %v8845_v10  ;;  %v911_v10 = vand.u32 4294901760, %v910_v42  ;;  %v15241_v40 = vand.u32 4294901760, %v8942_v59  ;;  %v928_v52 = vsub.f32 %v9157_v16, %v927_v29  ;;  %v9207_v42 = vsub.f32 %v156_v20, %v9183_v21  ;;  %v464_v59 = vld.sshfl [vmem:[#allocation1 + $0x8] sm:$0xff pattern:$0x75316420] }
  0x42   :  { %827 = vmatpush.msrb.mxu2 %v9060_v7  ;;  %906 = vmatpush.msrb.mxu3 %v905_v9  ;;  %v506_v9 = vsub.f32 %v9168_v15, %v9193_v48 }
  0x43   :  { %745 = vmatpush.msrb.mxu0 %v15239_v46  ;;  %786 = vmatpush.msrb.mxu1 %v8847_v11  ;;  %v917_v11 = vand.u32 4294901760, %v916_v14  ;;  %v15243_v14 = vand.u32 4294901760, %v8959_v8  ;;  %v929_v2 = vand.u32 4294901760, %v928_v52  ;;  %v945_v20 = vand.u32 4294901760, %v9207_v42 }
  0x44   :  { %829 = vmatpush.msrb.mxu2 %v9073_v23  ;;  %912 = vmatpush.msrb.mxu3 %v911_v10  ;;  %v9224_v46 = vand.u32 4294901760, %v464_v59  ;;  %v15245_v10 = vand.u32 4294901760, %v8982_v41  ;;  %v940_v8 = vsub.f32 %v9196_v38, %v939_v18 }
  0x45   :  { %749 = vmatpush.msrb.mxu0 %v15241_v40  ;;  %788 = vmatpush.msrb.mxu1 %v8860_v17  ;;  %v923_v17 = vand.u32 4294901760, %v922_v19  ;;  %v15247_v19 = vand.u32 4294901760, %v8995_v54 }
  0x46   :  { %831 = vmatpush.msrb.mxu2 %v9094_v31  ;;  %918 = vmatpush.msrb.mxu3 %v917_v11  ;;  %15244 = vst [vmem:[#allocation16_spill] sm:$0xff] %v9224_v46  ;;  %v9243_v40 = vsub.f32 %v464_v59, %v9224_v46  ;;  %v15249_v11 = vand.u32 4294901760, %v9002_v56  ;;  %v15253_v56 = vld [vmem:[#allocation12_spill] sm:$0xff] }
  0x47   :  { %753 = vmatpush.msrb.mxu0 %v15242_v3  ;;  %790 = vmatpush.msrb.mxu1 %v8876_v25  ;;  %v934_v25 = vsub.f32 %v9181_v47, %v933_v5  ;;  %v306_v3 = vld [vmem:[#allocation5 + $0x7b0] sm:$0xff] }
  0x48   :  { %833 = vmatpush.msrb.mxu2 %v9106_v58  ;;  %924 = vmatpush.msrb.mxu3 %v923_v17  ;;  %15248 = vst [vmem:[#allocation18_spill] sm:$0xff] %v9243_v40  ;;  %v9254_v52 = vand.u32 4294901760, %v9243_v40  ;;  %v9380_v59 = vand.u32 4294901760, %v306_v3 }
  0x49   :  { %757 = vmatpush.msrb.mxu0 %v15243_v14  ;;  %792 = vmatpush.msrb.mxu1 %v8895_v33  ;;  %v9230_v33 = vand.u32 4294901760, %v506_v9  ;;  %v935_v41 = vand.u32 4294901760, %v934_v25  ;;  %v294_v9 = vld [vmem:[#allocation5 + $0x750] sm:$0xff]  ;;  %v288_v25 = vld [vmem:[#allocation5 + $0x720] sm:$0xff] }
  0x4a   :  { %835 = vmatpush.msrb.mxu2 %v9118_v36  ;;  %930 = vmatpush.msrb.mxu3 %v929_v2  ;;  %15250 = vst [vmem:[#allocation19_spill] sm:$0xff] %v9254_v52 }
  0x4b   :  { %761 = vmatpush.msrb.mxu0 %v15245_v10  ;;  %794 = vmatpush.msrb.mxu1 %v8898_v34  ;;  %15246 = vst [vmem:[#allocation17_spill] sm:$0xff] %v9230_v33  ;;  %v946_v34 = vsub.f32 %v9207_v42, %v945_v20 }
  0x4c   :  { %837 = vmatpush.msrb.mxu2 %v9131_v1  ;;  %508 = vmatmul.f32.vlgmr.msra.gmra.mxu0 %v9230_v33  ;;  %v372_v33 = vld [vmem:[#allocation5 + $0x9c0] sm:$0xff] }
  0x4d   :  { %765 = vmatpush.msrb.mxu0 %v15247_v19  ;;  %796 = vmatpush.msrb.mxu1 %v8914_v44  ;;  %v941_v44 = vand.u32 4294901760, %v940_v8  ;;  %v947_v54 = vand.u32 4294901760, %v946_v34  ;;  %v9404_v8 = vand.u32 4294901760, %v294_v9  ;;  %v9407_v19 = vsub.f32 %v306_v3, %v9380_v59 }
  0x4e   :  { %839 = vmatpush.msrb.mxu2 %v9154_v37  ;;  %936 = vmatpush.msrb.mxu3 %v935_v41  ;;  %v282_v41 = vld [vmem:[#allocation5 + $0x6f0] sm:$0xff] }
  0x4f   :  { %769 = vmatpush.msrb.mxu0 %v15249_v11  ;;  %798 = vmatpush.msrb.mxu1 %v8926_v50  ;;  %v15251_v50 = vand.u32 4294901760, %v8988_v43 }
  0x50   :  { %841 = vmatpush.msrb.mxu2 %v9170_v6  ;;  %942 = vmatpush.msrb.mxu3 %v941_v44  ;;  %v9417_v44 = vand.u32 4294901760, %v288_v25 }
  0x51   :  { %956 = vmatpush.msra.mxu0 %v8988_v43  ;;  %800 = vmatpush.msrb.mxu1 %v8934_v53  ;;  %v847_v53 = vsub.f32 %v9243_v40, %v9254_v52 }
  0x52   :  { %843 = vmatpush.msrb.mxu2 %v9183_v21  ;;  %948 = vmatpush.msrb.mxu3 %v947_v54 }
  0x53   :  { %959 = vmatpush.msra.mxu0 %v9005_v57  ;;  %802 = vmatpush.msrb.mxu1 %v8950_v0  ;;  %v15252_v0 = vand.u32 4294901760, %v9005_v57  ;;  %v9275_v43 = vand.u32 4294901760, %v847_v53  ;;  %v15256_v57 = vand.u32 4294901760, %v9036_v49 }
  0x54   :  { %663 = vmatmul.f32.vlgmr.msra.gmra.mxu2 %v9168_v15  ;;  %702 = vmatmul.f32.vlgmr.msra.gmra.mxu3 %v9193_v48  ;;  %v384_v48 = vld [vmem:[#allocation5 + $0xa20] sm:$0xff] }
  0x55   :  { %962 = vmatpush.msra.mxu0 %v9023_v39  ;;  %1050 = vmatpush.msra.mxu2 %v15251_v50  ;;  %15255 = vst [vmem:[#allocation12_spill] sm:$0xff] %v9275_v43  ;;  %v276_v50 = vld [vmem:[#allocation5 + $0x6c0] sm:$0xff] }
  0x56   :  { %804 = vmatpush.msrb.mxu1 %v8967_v26  ;;  %1117 = vmatpush.msra.mxu3 %v8961_v12  ;;  %v15254_v26 = vand.u32 4294901760, %v9023_v39  ;;  %v15257_v39 = vand.u32 4294901760, %v9051_v63 }
  0x57   :  { %965 = vmatpush.msra.mxu0 %v9036_v49  ;;  %1054 = vmatpush.msra.mxu2 %v15252_v0  ;;  %v15263_v49 = vand.u32 4294901760, %v9129_v62  ;;  %v9428_v0 = vand.u32 4294901760, %v282_v41 }
  0x58   :  { %806 = vmatpush.msrb.mxu1 %v15253_v56  ;;  %1119 = vmatpush.msra.mxu3 %v8974_v32  ;;  %v14983_v56 = vand.u32 4294901760, %v9407_v19 }
  0x59   :  { %968 = vmatpush.msra.mxu0 %v9051_v63  ;;  %609 = vmatmul.f32.vlgmr.msra.gmra.mxu1 %v9144_v22  ;;  %v15261_v63 = vand.u32 4294901760, %v9099_v45 }
  0x5a   :  { %1058 = vmatpush.msra.mxu2 %v15254_v26  ;;  %1009 = vmatpush.msra.mxu1 %v8961_v12  ;;  %v15258_v12 = vand.u32 4294901760, %v9068_v24  ;;  %v9432_v26 = vsub.f32 %v294_v9, %v9404_v8 }
  0x5b   :  { %971 = vmatpush.msra.mxu0 %v9068_v24  ;;  %1121 = vmatpush.msra.mxu3 %v8997_v55  ;;  %v15260_v24 = vand.u32 4294901760, %v9087_v35 }
  0x5c   :  { %1062 = vmatpush.msra.mxu2 %v15256_v57  ;;  %1011 = vmatpush.msra.mxu1 %v8974_v32  ;;  %v59_v32 = vld [vmem:[#allocation2 + $0x8] sm:$0xff] }
  0x5d   :  { %849 = vmatmul.f32.vlgmr.msrb.gmra.mxu2 %v9275_v43  ;;  %974 = vmatpush.msra.mxu0 %v9081_v27  ;;  %462 = vst [vmem:[#allocation1 + $0x10] ss:$2 sm:$0xff] %v59_v32 }
  0x5e   :  { %1013 = vmatpush.msra.mxu1 %v8997_v55  ;;  %1066 = vmatpush.msra.mxu2 %v15257_v39  ;;  %v15259_v55 = vand.u32 4294901760, %v9081_v27  ;;  %v336_v27 = vld [vmem:[#allocation5 + $0x8a0] sm:$0xff] }
  0x5f   :  { %1123 = vmatpush.msra.mxu3 %v9012_v13  ;;  %771 = vmatmul.f32.vlgmr.msrb.gmra.mxu0 %v9144_v22 }
  0x60   :  { %950 = vmatmul.f32.vlgmr.msrb.gmra.mxu3 %v9224_v46  ;;  %977 = vmatpush.msra.mxu0 %v9087_v35  ;;  %v9325_v35 = vand.u32 4294901760, %v336_v27 }
  0x61   :  { %1015 = vmatpush.msra.mxu1 %v9012_v13  ;;  %1070 = vmatpush.msra.mxu2 %v15258_v12  ;;  %v270_v12 = vld [vmem:[#allocation5 + $0x690] sm:$0xff] }
  0x62   :  { %1125 = vmatpush.msra.mxu3 %v9025_v30  ;;  %808 = vmatmul.f32.vlgmr.msrb.gmra.mxu1 %v9144_v22  ;;  %v390_v22 = vld [vmem:[#allocation5 + $0xa50] sm:$0xff] }
  0x63   :  { %980 = vmatpush.msra.mxu0 %v9099_v45  ;;  %1017 = vmatpush.msra.mxu1 %v9025_v30  ;;  %v342_v30 = vld [vmem:[#allocation5 + $0x8d0] sm:$0xff]  ;;  %v9616_v15 = vand.u32 4294901760, %v390_v22 }
  0x64   :  { %1074 = vmatpush.msra.mxu2 %v15259_v55  ;;  %1127 = vmatpush.msra.mxu3 %v9038_v51  ;;  %v9318_v13 = vand.u32 4294901760, %v342_v30  ;;  %v465_v57 = vld.sshfl [vmem:[#allocation1 + $0x10] sm:$0xff pattern:$0x75316420]  ;;  %v9440_v55 = vand.u32 4294901760, %v276_v50 }
  0x65   :  { %983 = vmatpush.msra.mxu0 %v9116_v60  ;;  %1019 = vmatpush.msra.mxu1 %v9038_v51  ;;  %v15262_v51 = vand.u32 4294901760, %v9116_v60  ;;  %v318_v60 = vld [vmem:[#allocation5 + $0x810] sm:$0xff] }
  0x66   :  { %1078 = vmatpush.msra.mxu2 %v15260_v24  ;;  %1129 = vmatpush.msra.mxu3 %v9053_v28  ;;  %v9470_v9 = vsub.f32 %v276_v50, %v9440_v55  ;;  %v252_v50 = vld [vmem:[#allocation5 + $0x600] sm:$0xff] }
  0x67   :  { %986 = vmatpush.msra.mxu0 %v9129_v62  ;;  %1021 = vmatpush.msra.mxu1 %v9053_v28  ;;  %v330_v28 = vld [vmem:[#allocation5 + $0x870] sm:$0xff]  ;;  %v9345_v62 = vsub.f32 %v336_v27, %v9325_v35  ;;  %v264_v27 = vld [vmem:[#allocation5 + $0x660] sm:$0xff] }
  0x68   :  { %1082 = vmatpush.msra.mxu2 %v15261_v63  ;;  %1131 = vmatpush.msra.mxu3 %v9060_v7  ;;  %v9332_v45 = vand.u32 4294901760, %v330_v28 }
  0x69   :  { %989 = vmatpush.msra.mxu0 %v9142_v61  ;;  %1023 = vmatpush.msra.mxu1 %v9060_v7  ;;  %v324_v7 = vld [vmem:[#allocation5 + $0x840] sm:$0xff] }
  0x6a   :  { %1086 = vmatpush.msra.mxu2 %v15262_v51  ;;  %1133 = vmatpush.msra.mxu3 %v9073_v23  ;;  %v312_v61 = vld [vmem:[#allocation5 + $0x7e0] sm:$0xff]  ;;  %v9448_v51 = vand.u32 4294901760, %v465_v57 }
  0x6b   :  { %992 = vmatpush.msra.mxu0 %v9157_v16  ;;  %1025 = vmatpush.msra.mxu1 %v9073_v23  ;;  %v9335_v23 = vsub.f32 %v342_v30, %v9318_v13  ;;  %v9356_v16 = vsub.f32 %v330_v28, %v9332_v45  ;;  %v9444_v30 = vsub.f32 %v288_v25, %v9417_v44 }
  0x6c   :  { %1090 = vmatpush.msra.mxu2 %v15263_v49  ;;  %1135 = vmatpush.msra.mxu3 %v9094_v31  ;;  %15264 = vst [vmem:[#allocation20_spill] sm:$0xff] %v9448_v51  ;;  %v1233_v28 = vsub.f32 %v9407_v19, %v14983_v56  ;;  %v9454_v49 = vand.u32 4294901760, %v270_v12  ;;  %v9475_v25 = vsub.f32 %v465_v57, %v9448_v51 }
  0x6d   :  { %995 = vmatpush.msra.mxu0 %v9181_v47  ;;  %1027 = vmatpush.msra.mxu1 %v9094_v31  ;;  %v9342_v31 = vand.u32 4294901760, %v324_v7  ;;  %v14988_v17 = vand.u32 4294901760, %v9356_v16 }
  0x6e   :  { %1094 = vmatpush.msra.mxu2 %v921_v4  ;;  %1137 = vmatpush.msra.mxu3 %v9106_v58  ;;  %v9349_v4 = vand.u32 4294901760, %v318_v60  ;;  %15265 = vst [vmem:[#allocation21_spill] sm:$0xff] %v9475_v25 }
  0x6f   :  { %998 = vmatpush.msra.mxu0 %v9196_v38  ;;  %1029 = vmatpush.msra.mxu1 %v9106_v58  ;;  %v14991_v58 = vand.u32 4294901760, %v9335_v23  ;;  %v9367_v47 = vsub.f32 %v324_v7, %v9342_v31  ;;  %v1209_v10 = vsub.f32 %v9356_v16, %v14988_v17  ;;  %v14980_v7 = vand.u32 4294901760, %v9432_v26  ;;  %v414_v17 = vld [vmem:[#allocation5 + $0xb10] sm:$0xff] }
  0x70   :  { %1098 = vmatpush.msra.mxu2 %v927_v29  ;;  %1139 = vmatpush.msra.mxu3 %v9118_v36  ;;  %v9360_v29 = vand.u32 4294901760, %v312_v61 }
  0x71   :  { %1001 = vmatpush.msra.mxu0 %v9207_v42  ;;  %1031 = vmatpush.msra.mxu1 %v9118_v36  ;;  %v14990_v36 = vand.u32 4294901760, %v9345_v62  ;;  %v1197_v38 = vsub.f32 %v9335_v23, %v14991_v58  ;;  %v14987_v14 = vand.u32 4294901760, %v9367_v47  ;;  %v1210_v53 = vand.u32 4294901760, %v1209_v10 }
  0x72   :  { %1102 = vmatpush.msra.mxu2 %v933_v5  ;;  %1141 = vmatpush.msra.mxu3 %v9131_v1  ;;  %v9372_v5 = vsub.f32 %v318_v60, %v9349_v4  ;;  %v9458_v60 = vsub.f32 %v282_v41, %v9428_v0  ;;  %v1245_v10 = vsub.f32 %v9432_v26, %v14980_v7 }
  0x73   :  { %1004 = vmatmul.f32.vlgmr.msra.gmra.mxu0 %v9243_v40  ;;  %1033 = vmatpush.msra.mxu1 %v9131_v1  ;;  %v300_v1 = vld [vmem:[#allocation5 + $0x780] sm:$0xff]  ;;  %v1203_v42 = vsub.f32 %v9345_v62, %v14990_v36  ;;  %v1215_v11 = vsub.f32 %v9367_v47, %v14987_v14 }
  0x74   :  { %1154 = vmatpush.msrb.mxu0 %v9318_v13  ;;  %1106 = vmatpush.msra.mxu2 %v939_v18  ;;  %v9393_v18 = vand.u32 4294901760, %v300_v1  ;;  %v14986_v2 = vand.u32 4294901760, %v9372_v5  ;;  %v14982_v41 = vand.u32 4294901760, %v9458_v60 }
  0x75   :  { %1143 = vmatpush.msra.mxu3 %v9154_v37  ;;  %1035 = vmatpush.msra.mxu1 %v9154_v37  ;;  %v9386_v37 = vsub.f32 %v312_v61, %v9360_v29  ;;  %v1204_v34 = vand.u32 4294901760, %v1203_v42  ;;  %v1216_v32 = vand.u32 4294901760, %v1215_v11  ;;  %v258_v42 = vld [vmem:[#allocation5 + $0x630] sm:$0xff] }
  0x76   :  { %1156 = vmatpush.msrb.mxu0 %v9325_v35  ;;  %1110 = vmatpush.msra.mxu2 %v945_v20  ;;  %v1198_v20 = vand.u32 4294901760, %v1197_v38  ;;  %v9420_v54 = vsub.f32 %v300_v1, %v9393_v18  ;;  %v9466_v1 = vand.u32 4294901760, %v264_v27  ;;  %v14979_v38 = vand.u32 4294901760, %v9444_v30  ;;  %v438_v11 = vld [vmem:[#allocation5 + $0xbd0] sm:$0xff] }
  0x77   :  { %1145 = vmatpush.msra.mxu3 %v9170_v6  ;;  %1112 = vmatmul.f32.vlgmr.msra.gmra.mxu2 %v9224_v46 }
  0x78   :  { %1158 = vmatpush.msrb.mxu0 %v9332_v45  ;;  %1297 = vmatpush.msrb.mxu2 %v9335_v23  ;;  %v14981_v24 = vand.u32 4294901760, %v9420_v54  ;;  %v1251_v57 = vsub.f32 %v9444_v30, %v14979_v38 }
  0x79   :  { %1037 = vmatpush.msra.mxu1 %v9170_v6  ;;  %1147 = vmatpush.msra.mxu3 %v9183_v21  ;;  %v14984_v6 = vand.u32 4294901760, %v9386_v37 }
  0x7a   :  { %1149 = vmatmul.f32.vlgmr.msra.gmra.mxu3 %v9224_v46  ;;  %1160 = vmatpush.msrb.mxu0 %v9342_v31  ;;  %v1239_v3 = vsub.f32 %v9420_v54, %v14981_v24  ;;  %v426_v24 = vld [vmem:[#allocation5 + $0xb70] sm:$0xff]  ;;  %v396_v46 = vld [vmem:[#allocation5 + $0xa80] sm:$0xff] }
  0x7b   :  { %1300 = vmatpush.msrb.mxu2 %v9345_v62  ;;  %1350 = vmatpush.msrb.mxu3 %v9318_v13  ;;  %v1227_v39 = vsub.f32 %v9386_v37, %v14984_v6  ;;  %v420_v6 = vld [vmem:[#allocation5 + $0xb40] sm:$0xff]  ;;  %v9537_v14 = vand.u32 4294901760, %v426_v24 }
  0x7c   :  { %1039 = vmatpush.msra.mxu1 %v9183_v21  ;;  %1162 = vmatpush.msrb.mxu0 %v9349_v4  ;;  %v1221_v21 = vsub.f32 %v9372_v5, %v14986_v2 }
  0x7d   :  { %1043 = vmatmul.f32.vlgmr.msra.gmra.mxu1 %v9254_v52  ;;  %1303 = vmatpush.msrb.mxu2 %v9356_v16  ;;  %v1228_v61 = vand.u32 4294901760, %v1227_v39  ;;  %v14985_v39 = vand.u32 4294901760, %v9470_v9 }
  0x7e   :  { %1199 = vmatpush.msrb.mxu1 %v1198_v20  ;;  %1352 = vmatpush.msrb.mxu3 %v9325_v35  ;;  %v1222_v63 = vand.u32 4294901760, %v1221_v21  ;;  %v1234_v20 = vand.u32 4294901760, %v1233_v28  ;;  %v9487_v21 = vand.u32 4294901760, %v258_v42  ;;  %v432_v28 = vld [vmem:[#allocation5 + $0xba0] sm:$0xff] }
  0x7f   :  { %1164 = vmatpush.msrb.mxu0 %v9360_v29  ;;  %1306 = vmatpush.msrb.mxu2 %v9367_v47  ;;  %v9521_v56 = vand.u32 4294901760, %v432_v28 }
  0x80   :  { %1205 = vmatpush.msrb.mxu1 %v1204_v34  ;;  %1354 = vmatpush.msrb.mxu3 %v9332_v45  ;;  %v9483_v34 = vsub.f32 %v270_v12, %v9454_v49  ;;  %v9495_v12 = vsub.f32 %v264_v27, %v9466_v1  ;;  %v9508_v27 = vand.u32 4294901760, %v252_v50  ;;  %v9514_v7 = vsub.f32 %v258_v42, %v9487_v21 }
  0x81   :  { %1166 = vmatpush.msrb.mxu0 %v9380_v59  ;;  %1309 = vmatpush.msrb.mxu2 %v9372_v5 }
  0x82   :  { %1211 = vmatpush.msrb.mxu1 %v1210_v53  ;;  %1356 = vmatpush.msrb.mxu3 %v9342_v31  ;;  %v1240_v53 = vand.u32 4294901760, %v1239_v3  ;;  %v1257_v3 = vsub.f32 %v9458_v60, %v14982_v41  ;;  %v14989_v38 = vand.u32 4294901760, %v9483_v34  ;;  %v14992_v41 = vand.u32 4294901760, %v9495_v12 }
  0x83   :  { %1168 = vmatpush.msrb.mxu0 %v9393_v18  ;;  %1312 = vmatpush.msrb.mxu2 %v9386_v37  ;;  %v9535_v2 = vsub.f32 %v252_v50, %v9508_v27 }
  0x84   :  { %1217 = vmatpush.msrb.mxu1 %v1216_v32  ;;  %1358 = vmatpush.msrb.mxu3 %v9349_v4  ;;  %v9500_v32 = vand.u32 4294901760, %v9475_v25  ;;  %v1275_v50 = vsub.f32 %v9495_v12, %v14992_v41 }
  0x85   :  { %1170 = vmatpush.msrb.mxu0 %v9404_v8  ;;  %1315 = vmatpush.msrb.mxu2 %v9407_v19 }
  0x86   :  { %1223 = vmatpush.msrb.mxu1 %v1222_v63  ;;  %1360 = vmatpush.msrb.mxu3 %v9360_v29  ;;  %15266 = vst [vmem:[#allocation22_spill] sm:$0xff] %v9500_v32  ;;  %v9502_v63 = vand.u32 4294901760, %v438_v11  ;;  %v1188_v42 = vsub.f32 %v9475_v25, %v9500_v32 }
  0x87   :  { %1172 = vmatpush.msrb.mxu0 %v9417_v44  ;;  %1318 = vmatpush.msrb.mxu2 %v9420_v54 }
  0x88   :  { %1229 = vmatpush.msrb.mxu1 %v1228_v61  ;;  %1362 = vmatpush.msrb.mxu3 %v9380_v59  ;;  %v1246_v61 = vand.u32 4294901760, %v1245_v10  ;;  %v1263_v10 = vsub.f32 %v9470_v9, %v14985_v39  ;;  %v1269_v39 = vsub.f32 %v9483_v34, %v14989_v38  ;;  %v9549_v38 = vsub.f32 %v432_v28, %v9521_v56 }
  0x89   :  { %1174 = vmatpush.msrb.mxu0 %v9428_v0  ;;  %1321 = vmatpush.msrb.mxu2 %v9432_v26  ;;  %v9553_v36 = vand.u32 4294901760, %v1188_v42  ;;  %v9561_v28 = vsub.f32 %v426_v24, %v9537_v14  ;;  %v15268_v42 = vand.u32 4294901760, %v9514_v7 }
  0x8a   :  { %1235 = vmatpush.msrb.mxu1 %v1234_v20  ;;  %1364 = vmatpush.msrb.mxu3 %v9393_v18  ;;  %v1252_v20 = vand.u32 4294901760, %v1251_v57  ;;  %v1258_v57 = vand.u32 4294901760, %v1257_v3  ;;  %v1264_v3 = vand.u32 4294901760, %v1263_v10  ;;  %v1270_v10 = vand.u32 4294901760, %v1269_v39 }
  0x8b   :  { %1176 = vmatpush.msrb.mxu0 %v9440_v55  ;;  %1324 = vmatpush.msrb.mxu2 %v9444_v30  ;;  %15267 = vst [vmem:[#allocation23_spill] sm:$0xff] %v9553_v36  ;;  %v1281_v58 = vsub.f32 %v9514_v7, %v15268_v42  ;;  %v1276_v39 = vand.u32 4294901760, %v1275_v50  ;;  %v15271_v50 = vand.u32 4294901760, %v9535_v2 }
  0x8c   :  { %1241 = vmatpush.msrb.mxu1 %v1240_v53  ;;  %1366 = vmatpush.msrb.mxu3 %v9404_v8  ;;  %v9528_v53 = vsub.f32 %v438_v11, %v9502_v63  ;;  %v9556_v11 = vand.u32 4294901760, %v414_v17 }
  0x8d   :  { %1178 = vmatpush.msrb.mxu0 %v9454_v49  ;;  %1327 = vmatpush.msrb.mxu2 %v9458_v60  ;;  %v1287_v41 = vsub.f32 %v9535_v2, %v15271_v50 }
  0x8e   :  { %1247 = vmatpush.msrb.mxu1 %v1246_v61  ;;  %1368 = vmatpush.msrb.mxu3 %v9417_v44  ;;  %v9542_v61 = vand.u32 4294901760, %v420_v6  ;;  %v15269_v40 = vand.u32 4294901760, %v9528_v53 }
  0x8f   :  { %1180 = vmatpush.msrb.mxu0 %v9466_v1  ;;  %1330 = vmatpush.msrb.mxu2 %v9470_v9 }
  0x90   :  { %1253 = vmatpush.msrb.mxu1 %v1252_v20  ;;  %1370 = vmatpush.msrb.mxu3 %v9428_v0  ;;  %v408_v20 = vld [vmem:[#allocation5 + $0xae0] sm:$0xff]  ;;  %v9569_v52 = vsub.f32 %v420_v6, %v9542_v61  ;;  %v1538_v42 = vsub.f32 %v9528_v53, %v15269_v40  ;;  %v9581_v6 = vsub.f32 %v414_v17, %v9556_v11  ;;  %v1282_v40 = vand.u32 4294901760, %v1281_v58 }
  0x91   :  { %1182 = vmatpush.msrb.mxu0 %v9487_v21  ;;  %1333 = vmatpush.msrb.mxu2 %v9483_v34  ;;  %v9573_v24 = vand.u32 4294901760, %v408_v20 }
  0x92   :  { %1259 = vmatpush.msrb.mxu1 %v1258_v57  ;;  %1372 = vmatpush.msrb.mxu3 %v9440_v55  ;;  %v402_v57 = vld [vmem:[#allocation5 + $0xab0] sm:$0xff]  ;;  %v1539_v58 = vand.u32 4294901760, %v1538_v42  ;;  %v15276_v42 = vand.u32 4294901760, %v9569_v52 }
  0x93   :  { %1184 = vmatpush.msrb.mxu0 %v9508_v27  ;;  %1336 = vmatpush.msrb.mxu2 %v9495_v12  ;;  %v9589_v43 = vand.u32 4294901760, %v402_v57  ;;  %v9600_v50 = vsub.f32 %v408_v20, %v9573_v24 }
  0x94   :  { %1265 = vmatpush.msrb.mxu1 %v1264_v3  ;;  %1374 = vmatpush.msrb.mxu3 %v9454_v49  ;;  %v15270_v3 = vand.u32 4294901760, %v9335_v23  ;;  %v15272_v23 = vand.u32 4294901760, %v9345_v62  ;;  %v15274_v62 = vand.u32 4294901760, %v9356_v16  ;;  %v1556_v16 = vsub.f32 %v9569_v52, %v15276_v42 }
  0x95   :  { %1190 = vmatmul.f32.vlgmr.msrb.gmra.mxu0 %v9553_v36  ;;  %1339 = vmatpush.msrb.mxu2 %v9514_v7  ;;  %v9602_v36 = vand.u32 4294901760, %v396_v46 }
  0x96   :  { %1391 = vmatpush.msra.mxu0 %v15270_v3  ;;  %1271 = vmatpush.msrb.mxu1 %v1270_v10  ;;  %v15273_v10 = vand.u32 4294901760, %v9549_v38 }
  0x97   :  { %1376 = vmatpush.msrb.mxu3 %v9466_v1  ;;  %1342 = vmatpush.msrb.mxu2 %v9535_v2 }
  0x98   :  { %1395 = vmatpush.msra.mxu0 %v15272_v23  ;;  %1277 = vmatpush.msrb.mxu1 %v1276_v39  ;;  %v1544_v3 = vsub.f32 %v9549_v38, %v15273_v10  ;;  %v1288_v39 = vand.u32 4294901760, %v1287_v41  ;;  %v15275_v23 = vand.u32 4294901760, %v9561_v28  ;;  %v9614_v10 = vsub.f32 %v402_v57, %v9589_v43 }
  0x99   :  { %1378 = vmatpush.msrb.mxu3 %v9487_v21  ;;  %1345 = vmatmul.f32.vlgmr.msrb.gmra.mxu2 %v9475_v25  ;;  %v15277_v41 = vand.u32 4294901760, %v9367_v47  ;;  %v9627_v57 = vsub.f32 %v396_v46, %v9602_v36  ;;  %v9629_v25 = vand.u32 4294901760, %v384_v48  ;;  %v15279_v47 = vand.u32 4294901760, %v9372_v5 }
  0x9a   :  { %1399 = vmatpush.msra.mxu0 %v15274_v62  ;;  %1495 = vmatpush.msra.mxu2 %v9502_v63  ;;  %v1550_v20 = vsub.f32 %v9561_v28, %v15275_v23  ;;  %v378_v62 = vld [vmem:[#allocation5 + $0x9f0] sm:$0xff]  ;;  %v1545_v17 = vand.u32 4294901760, %v1544_v3  ;;  %v9639_v46 = vsub.f32 %v390_v22, %v9616_v15  ;;  %v15280_v5 = vand.u32 4294901760, %v9600_v50 }
  0x9b   :  { %1283 = vmatpush.msrb.mxu1 %v1282_v40  ;;  %1380 = vmatpush.msrb.mxu3 %v9508_v27  ;;  %v15278_v40 = vand.u32 4294901760, %v9581_v6  ;;  %v9641_v23 = vand.u32 4294901760, %v378_v62  ;;  %v9651_v22 = vsub.f32 %v384_v48, %v9629_v25 }
  0x9c   :  { %1384 = vmatmul.f32.vlgmr.msrb.gmra.mxu3 %v9500_v32  ;;  %1403 = vmatpush.msra.mxu0 %v15277_v41  ;;  %v1551_v3 = vand.u32 4294901760, %v1550_v20  ;;  %v15015_v41 = vand.u32 4294901760, %v9614_v10  ;;  %v366_v32 = vld [vmem:[#allocation5 + $0x990] sm:$0xff]  ;;  %v360_v20 = vld [vmem:[#allocation5 + $0x960] sm:$0xff] }
  0x9d   :  { %1497 = vmatpush.msra.mxu2 %v9521_v56  ;;  %1540 = vmatpush.msra.mxu3 %v1539_v58  ;;  %v1562_v42 = vsub.f32 %v9581_v6, %v15278_v40  ;;  %v1557_v58 = vand.u32 4294901760, %v1556_v16  ;;  %v9653_v40 = vand.u32 4294901760, %v372_v33  ;;  %v9664_v48 = vsub.f32 %v378_v62, %v9641_v23 }
  0x9e   :  { %1289 = vmatpush.msrb.mxu1 %v1288_v39  ;;  %1407 = vmatpush.msra.mxu0 %v15279_v47  ;;  %v1568_v39 = vsub.f32 %v9600_v50, %v15280_v5  ;;  %v15281_v47 = vand.u32 4294901760, %v9386_v37  ;;  %v9666_v5 = vand.u32 4294901760, %v366_v32  ;;  %v15282_v37 = vand.u32 4294901760, %v9407_v19 }
  0x9f   :  { %1291 = vmatmul.f32.vlgmr.msrb.gmra.mxu1 %v9448_v51  ;;  %1499 = vmatpush.msra.mxu2 %v9537_v14  ;;  %v1563_v16 = vand.u32 4294901760, %v1562_v42  ;;  %v15283_v42 = vand.u32 4294901760, %v9627_v57  ;;  %v9677_v62 = vsub.f32 %v372_v33, %v9653_v40  ;;  %v15284_v19 = vand.u32 4294901760, %v9420_v54 }
  0xa0   :  { %1458 = vmatpush.msra.mxu1 %v9318_v13  ;;  %1546 = vmatpush.msra.mxu3 %v1545_v17  ;;  %v1574_v13 = vsub.f32 %v9614_v10, %v15015_v41  ;;  %v354_v41 = vld [vmem:[#allocation5 + $0x930] sm:$0xff]  ;;  %v466_v17 = vld.sshfl [vmem:[#allocation1 + $0x18] sm:$0xff pattern:$0x75316420]  ;;  %v15286_v54 = vand.u32 4294901760, %v9432_v26  ;;  %v15289_v33 = vand.u32 4294901760, %v9444_v30 }
  0xa1   :  { %1411 = vmatpush.msra.mxu0 %v15281_v47  ;;  %1501 = vmatpush.msra.mxu2 %v9542_v61  ;;  %v348_v47 = vld [vmem:[#allocation5 + $0x900] sm:$0xff]  ;;  %v15291_v30 = vand.u32 4294901760, %v9458_v60 }
  0xa2   :  { %1460 = vmatpush.msra.mxu1 %v9325_v35  ;;  %1552 = vmatpush.msra.mxu3 %v1551_v3  ;;  %v1569_v35 = vand.u32 4294901760, %v1568_v39  ;;  %v1580_v3 = vsub.f32 %v9627_v57, %v15283_v42  ;;  %v9690_v42 = vsub.f32 %v366_v32, %v9666_v5  ;;  %v1603_v32 = vand.u32 4294901760, %v9677_v62 }
  0xa3   :  { %1415 = vmatpush.msra.mxu0 %v15282_v37  ;;  %1503 = vmatpush.msra.mxu2 %v9556_v11  ;;  %v9682_v37 = vand.u32 4294901760, %v360_v20 }
  0xa4   :  { %1462 = vmatpush.msra.mxu1 %v9332_v45  ;;  %1558 = vmatpush.msra.mxu3 %v1557_v58  ;;  %v1575_v45 = vand.u32 4294901760, %v1574_v13  ;;  %v15285_v58 = vand.u32 4294901760, %v9639_v46  ;;  %v15288_v13 = vand.u32 4294901760, %v9651_v22 }
  0xa5   :  { %1419 = vmatpush.msra.mxu0 %v15284_v19  ;;  %1505 = vmatpush.msra.mxu2 %v9573_v24  ;;  %v9695_v19 = vand.u32 4294901760, %v354_v41  ;;  %v9708_v26 = vsub.f32 %v360_v20, %v9682_v37 }
  0xa6   :  { %1464 = vmatpush.msra.mxu1 %v9342_v31  ;;  %1564 = vmatpush.msra.mxu3 %v1563_v16  ;;  %v1586_v39 = vsub.f32 %v9639_v46, %v15285_v58  ;;  %v9697_v31 = vand.u32 4294901760, %v466_v17  ;;  %v1581_v16 = vand.u32 4294901760, %v1580_v3  ;;  %v1592_v58 = vsub.f32 %v9651_v22, %v15288_v13 }
  0xa7   :  { %1423 = vmatpush.msra.mxu0 %v15286_v54  ;;  %1507 = vmatpush.msra.mxu2 %v9589_v43  ;;  %v9710_v54 = vand.u32 4294901760, %v348_v47  ;;  %v1609_v13 = vand.u32 4294901760, %v9690_v42  ;;  %v9721_v20 = vsub.f32 %v354_v41, %v9695_v19  ;;  %v1615_v60 = vand.u32 4294901760, %v9708_v26 }
  0xa8   :  { %15287 = vst [vmem:[#allocation24_spill] sm:$0xff] %v9697_v31  ;;  %1466 = vmatpush.msra.mxu1 %v9349_v4  ;;  %1570 = vmatpush.msra.mxu3 %v1569_v35  ;;  %v1587_v4 = vand.u32 4294901760, %v1586_v39  ;;  %v15290_v35 = vand.u32 4294901760, %v9664_v48  ;;  %v15293_v39 = vand.u32 4294901760, %v9470_v9 }
  0xa9   :  { %1427 = vmatpush.msra.mxu0 %v15289_v33  ;;  %1509 = vmatpush.msra.mxu2 %v9602_v36  ;;  %v9724_v33 = vsub.f32 %v466_v17, %v9697_v31  ;;  %v9735_v41 = vsub.f32 %v348_v47, %v9710_v54  ;;  %v1610_v17 = vsub.f32 %v9690_v42, %v1609_v13  ;;  %v1621_v9 = vand.u32 4294901760, %v9721_v20 }
  0xaa   :  { %1468 = vmatpush.msra.mxu1 %v9360_v29  ;;  %1576 = vmatpush.msra.mxu3 %v1575_v45  ;;  %v1598_v3 = vsub.f32 %v9664_v48, %v15290_v35  ;;  %v1593_v29 = vand.u32 4294901760, %v1592_v58  ;;  %v1604_v45 = vsub.f32 %v9677_v62, %v1603_v32  ;;  %v15296_v47 = vand.u32 4294901760, %v9495_v12 }
  0xab   :  { %1431 = vmatpush.msra.mxu0 %v15291_v30  ;;  %1511 = vmatpush.msra.mxu2 %v9616_v15  ;;  %15292 = vst [vmem:[#allocation25_spill] sm:$0xff] %v9724_v33  ;;  %v9746_v58 = vand.u32 4294901760, %v9724_v33  ;;  %v1611_v35 = vand.u32 4294901760, %v1610_v17  ;;  %v15298_v30 = vand.u32 4294901760, %v9535_v2 }
  0xac   :  { %1470 = vmatpush.msra.mxu1 %v9380_v59  ;;  %1582 = vmatpush.msra.mxu3 %v1581_v16  ;;  %v1599_v59 = vand.u32 4294901760, %v1598_v3  ;;  %v15294_v16 = vand.u32 4294901760, %v9483_v34  ;;  %v1616_v34 = vsub.f32 %v9708_v26, %v1615_v60  ;;  %v15297_v3 = vand.u32 4294901760, %v9514_v7 }
  0xad   :  { %1435 = vmatpush.msra.mxu0 %v15293_v39  ;;  %1513 = vmatpush.msra.mxu2 %v9629_v25  ;;  %15295 = vst [vmem:[#allocation26_spill] sm:$0xff] %v9746_v58  ;;  %v1529_v12 = vsub.f32 %v9724_v33, %v9746_v58 }
  0xae   :  { %1472 = vmatpush.msra.mxu1 %v9393_v18  ;;  %1588 = vmatpush.msra.mxu3 %v1587_v4  ;;  %v1605_v18 = vand.u32 4294901760, %v1604_v45  ;;  %v1627_v4 = vand.u32 4294901760, %v9735_v41  ;;  %v103_v45 = vld [vmem:[#allocation5 + $0x158] sm:$0xff] }
  0xaf   :  { %1439 = vmatpush.msra.mxu0 %v15294_v16  ;;  %1515 = vmatpush.msra.mxu2 %v9641_v23  ;;  %v9914_v17 = vand.u32 4294901760, %v103_v45 }
  0xb0   :  { %1474 = vmatpush.msra.mxu1 %v9404_v8  ;;  %1594 = vmatpush.msra.mxu3 %v1593_v29  ;;  %v1622_v8 = vsub.f32 %v9721_v20, %v1621_v9  ;;  %v1628_v7 = vsub.f32 %v9735_v41, %v1627_v4 }
  0xb1   :  { %1443 = vmatpush.msra.mxu0 %v15296_v47  ;;  %1517 = vmatpush.msra.mxu2 %v9653_v40 }
  0xb2   :  { %1476 = vmatpush.msra.mxu1 %v9417_v44  ;;  %1600 = vmatpush.msra.mxu3 %v1599_v59  ;;  %v1617_v44 = vand.u32 4294901760, %v1616_v34  ;;  %v1623_v29 = vand.u32 4294901760, %v1622_v8  ;;  %v1629_v2 = vand.u32 4294901760, %v1628_v7  ;;  %v97_v59 = vld [vmem:[#allocation5 + $0x128] sm:$0xff]  ;;  %v91_v34 = vld [vmem:[#allocation5 + $0xf8] sm:$0xff] }
  0xb3   :  { %1447 = vmatpush.msra.mxu0 %v15297_v3  ;;  %1519 = vmatpush.msra.mxu2 %v9666_v5  ;;  %v9947_v7 = vand.u32 4294901760, %v91_v34 }
  0xb4   :  { %1478 = vmatpush.msra.mxu1 %v9428_v0  ;;  %1606 = vmatpush.msra.mxu3 %v1605_v18  ;;  %v9775_v0 = vand.u32 4294901760, %v1529_v12  ;;  %v9941_v12 = vsub.f32 %v103_v45, %v9914_v17 }
  0xb5   :  { %1451 = vmatpush.msra.mxu0 %v15298_v30  ;;  %1521 = vmatpush.msra.mxu2 %v9682_v37 }
  0xb6   :  { %1480 = vmatpush.msra.mxu1 %v9440_v55  ;;  %1612 = vmatpush.msra.mxu3 %v1611_v35  ;;  %15299 = vst [vmem:[#allocation27_spill] sm:$0xff] %v9775_v0  ;;  %v15300_v55 = vand.u32 4294901760, %v9528_v53 }
  0xb7   :  { %1453 = vmatmul.f32.vlgmr.msra.gmra.mxu0 %v9448_v51  ;;  %1523 = vmatpush.msra.mxu2 %v9695_v19 }
  0xb8   :  { %1638 = vmatpush.msrb.mxu0 %v9528_v53  ;;  %1482 = vmatpush.msra.mxu1 %v9454_v49  ;;  %v15301_v49 = vand.u32 4294901760, %v9549_v38  ;;  %v15309_v53 = vand.u32 4294901760, %v9651_v22 }
  0xb9   :  { %1618 = vmatpush.msra.mxu3 %v1617_v44  ;;  %1525 = vmatpush.msra.mxu2 %v9710_v54 }
  0xba   :  { %1641 = vmatpush.msrb.mxu0 %v9549_v38  ;;  %1484 = vmatpush.msra.mxu1 %v9466_v1  ;;  %v15302_v1 = vand.u32 4294901760, %v9561_v28  ;;  %v15303_v38 = vand.u32 4294901760, %v9569_v52 }
  0xbb   :  { %1624 = vmatpush.msra.mxu3 %v1623_v29  ;;  %1531 = vmatmul.f32.vlgmr.msra.gmra.mxu2 %v9775_v0 }
  0xbc   :  { %1644 = vmatpush.msrb.mxu0 %v9561_v28  ;;  %1732 = vmatpush.msrb.mxu2 %v15300_v55  ;;  %v15310_v28 = vand.u32 4294901760, %v9664_v48  ;;  %v79_v55 = vld [vmem:[#allocation5 + $0x98] sm:$0xff] }
  0xbd   :  { %1486 = vmatpush.msra.mxu1 %v9487_v21  ;;  %1630 = vmatpush.msra.mxu3 %v1629_v2  ;;  %v15304_v21 = vand.u32 4294901760, %v9581_v6 }
  0xbe   :  { %1632 = vmatmul.f32.vlgmr.msra.gmra.mxu3 %v9697_v31  ;;  %1647 = vmatpush.msrb.mxu0 %v9569_v52  ;;  %v15306_v52 = vand.u32 4294901760, %v9614_v10 }
  0xbf   :  { %1736 = vmatpush.msrb.mxu2 %v15301_v49  ;;  %1799 = vmatpush.msrb.mxu3 %v9502_v63 }
  0xc0   :  { %1488 = vmatpush.msra.mxu1 %v9508_v27  ;;  %1650 = vmatpush.msrb.mxu0 %v9581_v6  ;;  %v151_v27 = vld [vmem:[#allocation5 + $0x2d8] sm:$0xff] }
  0xc1   :  { %1490 = vmatmul.f32.vlgmr.msra.gmra.mxu1 %v9448_v51  ;;  %1740 = vmatpush.msrb.mxu2 %v15302_v1  ;;  %v175_v51 = vld [vmem:[#allocation5 + $0x398] sm:$0xff] }
  0xc2   :  { %1691 = vmatpush.msrb.mxu1 %v9502_v63  ;;  %1801 = vmatpush.msrb.mxu3 %v9521_v56  ;;  %v15305_v63 = vand.u32 4294901760, %v9600_v50 }
  0xc3   :  { %1653 = vmatpush.msrb.mxu0 %v9600_v50  ;;  %1744 = vmatpush.msrb.mxu2 %v15303_v38 }
  0xc4   :  { %1693 = vmatpush.msrb.mxu1 %v9521_v56  ;;  %1803 = vmatpush.msrb.mxu3 %v9537_v14  ;;  %v15308_v56 = vand.u32 4294901760, %v9639_v46 }
  0xc5   :  { %1656 = vmatpush.msrb.mxu0 %v9614_v10  ;;  %1748 = vmatpush.msrb.mxu2 %v15304_v21 }
  0xc6   :  { %1695 = vmatpush.msrb.mxu1 %v9537_v14  ;;  %1805 = vmatpush.msrb.mxu3 %v9542_v61  ;;  %v15307_v14 = vand.u32 4294901760, %v9627_v57 }
  0xc7   :  { %1659 = vmatpush.msrb.mxu0 %v9627_v57  ;;  %1752 = vmatpush.msrb.mxu2 %v15305_v63  ;;  %v121_v57 = vld [vmem:[#allocation5 + $0x1e8] sm:$0xff]  ;;  %v15018_v63 = vand.u32 4294901760, %v9941_v12 }
  0xc8   :  { %1697 = vmatpush.msrb.mxu1 %v9542_v61  ;;  %1807 = vmatpush.msrb.mxu3 %v9556_v11  ;;  %v9834_v61 = vand.u32 4294901760, %v151_v27 }
  0xc9   :  { %1662 = vmatpush.msrb.mxu0 %v9639_v46  ;;  %1756 = vmatpush.msrb.mxu2 %v15306_v52  ;;  %v73_v52 = vld [vmem:[#allocation5 + $0x68] sm:$0xff] }
  0xca   :  { %1699 = vmatpush.msrb.mxu1 %v9556_v11  ;;  %1809 = vmatpush.msrb.mxu3 %v9573_v24  ;;  %v145_v11 = vld [vmem:[#allocation5 + $0x2a8] sm:$0xff]  ;;  %v9851_v50 = vsub.f32 %v151_v27, %v9834_v61  ;;  %v9969_v27 = vand.u32 4294901760, %v79_v55 }
  0xcb   :  { %1665 = vmatpush.msrb.mxu0 %v9651_v22  ;;  %1760 = vmatpush.msrb.mxu2 %v15307_v14 }
  0xcc   :  { %1701 = vmatpush.msrb.mxu1 %v9573_v24  ;;  %1811 = vmatpush.msrb.mxu3 %v9589_v43  ;;  %v9841_v24 = vand.u32 4294901760, %v145_v11 }
  0xcd   :  { %1668 = vmatpush.msrb.mxu0 %v9664_v48  ;;  %1764 = vmatpush.msrb.mxu2 %v15308_v56  ;;  %v115_v48 = vld [vmem:[#allocation5 + $0x1b8] sm:$0xff] }
  0xce   :  { %1703 = vmatpush.msrb.mxu1 %v9589_v43  ;;  %1813 = vmatpush.msrb.mxu3 %v9602_v36  ;;  %v139_v43 = vld [vmem:[#allocation5 + $0x278] sm:$0xff] }
  0xcf   :  { %1671 = vmatpush.msrb.mxu0 %v9677_v62  ;;  %1768 = vmatpush.msrb.mxu2 %v15309_v53  ;;  %v9848_v6 = vand.u32 4294901760, %v139_v43  ;;  %v9972_v53 = vsub.f32 %v91_v34, %v9947_v7 }
  0xd0   :  { %1705 = vmatpush.msrb.mxu1 %v9602_v36  ;;  %1815 = vmatpush.msrb.mxu3 %v9616_v15  ;;  %v133_v36 = vld [vmem:[#allocation5 + $0x248] sm:$0xff] }
  0xd1   :  { %1674 = vmatpush.msrb.mxu0 %v9690_v42  ;;  %1772 = vmatpush.msrb.mxu2 %v15310_v28  ;;  %v9858_v10 = vand.u32 4294901760, %v133_v36  ;;  %v9872_v22 = vsub.f32 %v139_v43, %v9848_v6  ;;  %v67_v28 = vld [vmem:[#allocation5 + $0x38] sm:$0xff] }
  0xd2   :  { %1707 = vmatpush.msrb.mxu1 %v9616_v15  ;;  %1817 = vmatpush.msrb.mxu3 %v9629_v25  ;;  %v127_v15 = vld [vmem:[#allocation5 + $0x218] sm:$0xff] }
  0xd3   :  { %1677 = vmatpush.msrb.mxu0 %v9708_v26  ;;  %1776 = vmatpush.msrb.mxu2 %v1603_v32  ;;  %v9868_v46 = vand.u32 4294901760, %v127_v15  ;;  %v9883_v42 = vsub.f32 %v133_v36, %v9858_v10  ;;  %v109_v32 = vld [vmem:[#allocation5 + $0x188] sm:$0xff]  ;;  %v9893_v26 = vand.u32 4294901760, %v115_v48 }
  0xd4   :  { %1709 = vmatpush.msrb.mxu1 %v9629_v25  ;;  %1819 = vmatpush.msrb.mxu3 %v9641_v23  ;;  %v9861_v25 = vsub.f32 %v145_v11, %v9841_v24  ;;  %v9906_v39 = vand.u32 4294901760, %v109_v32 }
  0xd5   :  { %1680 = vmatpush.msrb.mxu0 %v9721_v20  ;;  %1780 = vmatpush.msrb.mxu2 %v1609_v13  ;;  %v15028_v13 = vand.u32 4294901760, %v9872_v22  ;;  %v9897_v20 = vsub.f32 %v127_v15, %v9868_v46  ;;  %v9923_v47 = vsub.f32 %v115_v48, %v9893_v26  ;;  %v9981_v15 = vand.u32 4294901760, %v73_v52  ;;  %v247_v48 = vld [vmem:[#allocation5 + $0x5d8] sm:$0xff] }
  0xd6   :  { %1711 = vmatpush.msrb.mxu1 %v9641_v23  ;;  %1821 = vmatpush.msrb.mxu3 %v9653_v40  ;;  %v1878_v23 = vand.u32 4294901760, %v9851_v50  ;;  %v15029_v62 = vand.u32 4294901760, %v9861_v25  ;;  %v9936_v8 = vsub.f32 %v109_v32, %v9906_v39  ;;  %v1927_v32 = vsub.f32 %v9941_v12, %v15018_v63  ;;  %v223_v63 = vld [vmem:[#allocation5 + $0x518] sm:$0xff] }
  0xd7   :  { %1683 = vmatpush.msrb.mxu0 %v9735_v41  ;;  %1784 = vmatpush.msrb.mxu2 %v1615_v60  ;;  %v15026_v60 = vand.u32 4294901760, %v9883_v42  ;;  %v15024_v18 = vand.u32 4294901760, %v9897_v20  ;;  %v15021_v29 = vand.u32 4294901760, %v9923_v47  ;;  %v10003_v34 = vand.u32 4294901760, %v247_v48 }
  0xd8   :  { %1713 = vmatpush.msrb.mxu1 %v9653_v40  ;;  %1823 = vmatpush.msrb.mxu3 %v9666_v5  ;;  %v9879_v40 = vand.u32 4294901760, %v121_v57  ;;  %v15020_v21 = vand.u32 4294901760, %v9936_v8 }
  0xd9   :  { %1686 = vmatmul.f32.vlgmr.msrb.gmra.mxu0 %v9724_v33  ;;  %1788 = vmatpush.msrb.mxu2 %v1621_v9  ;;  %v1891_v9 = vsub.f32 %v9872_v22, %v15028_v13  ;;  %v1897_v35 = vsub.f32 %v9883_v42, %v15026_v60  ;;  %v1903_v44 = vsub.f32 %v9897_v20, %v15024_v18 }
  0xda   :  { %1836 = vmatpush.msra.mxu0 %v9834_v61  ;;  %1715 = vmatpush.msrb.mxu1 %v9666_v5  ;;  %v1879_v5 = vsub.f32 %v9851_v50, %v1878_v23  ;;  %v9910_v41 = vsub.f32 %v121_v57, %v9879_v40  ;;  %v1915_v56 = vsub.f32 %v9923_v47, %v15021_v29  ;;  %v10054_v29 = vand.u32 4294901760, %v223_v63 }
  0xdb   :  { %1825 = vmatpush.msrb.mxu3 %v9682_v37  ;;  %1792 = vmatpush.msrb.mxu2 %v1627_v4  ;;  %v1892_v30 = vand.u32 4294901760, %v1891_v9  ;;  %v1898_v49 = vand.u32 4294901760, %v1897_v35  ;;  %v1904_v14 = vand.u32 4294901760, %v1903_v44  ;;  %v1921_v36 = vsub.f32 %v9936_v8, %v15020_v21 }
  0xdc   :  { %1838 = vmatpush.msra.mxu0 %v9841_v24  ;;  %1717 = vmatpush.msrb.mxu1 %v9682_v37  ;;  %v1885_v37 = vsub.f32 %v9861_v25, %v15029_v62  ;;  %v1880_v16 = vand.u32 4294901760, %v1879_v5  ;;  %v15023_v3 = vand.u32 4294901760, %v9910_v41  ;;  %v61_v5 = vld [vmem:[#allocation5 + $0x8] sm:$0xff]  ;;  %v1916_v45 = vand.u32 4294901760, %v1915_v56 }
  0xdd   :  { %1827 = vmatpush.msrb.mxu3 %v9695_v19  ;;  %1794 = vmatmul.f32.vlgmr.msrb.gmra.mxu2 %v9697_v31  ;;  %v1922_v35 = vand.u32 4294901760, %v1921_v36  ;;  %v10010_v44 = vsub.f32 %v73_v52, %v9981_v15 }
  0xde   :  { %1840 = vmatpush.msra.mxu0 %v9848_v6  ;;  %1979 = vmatpush.msra.mxu2 %v9851_v50  ;;  %v1886_v4 = vand.u32 4294901760, %v1885_v37  ;;  %v1909_v1 = vsub.f32 %v9910_v41, %v15023_v3  ;;  %v9992_v37 = vand.u32 4294901760, %v67_v28  ;;  %v15312_v50 = vand.u32 4294901760, %v9861_v25 }
  0xdf   :  { %1719 = vmatpush.msrb.mxu1 %v9695_v19  ;;  %1829 = vmatpush.msrb.mxu3 %v9710_v54  ;;  %v9927_v19 = vand.u32 4294901760, %v97_v59 }
  0xe0   :  { %1831 = vmatmul.f32.vlgmr.msrb.gmra.mxu3 %v9697_v31  ;;  %1842 = vmatpush.msra.mxu0 %v9858_v10  ;;  %v1910_v43 = vand.u32 4294901760, %v1909_v1  ;;  %v10020_v56 = vsub.f32 %v67_v28, %v9992_v37  ;;  %v15025_v28 = vand.u32 4294901760, %v10010_v44 }
  0xe1   :  { %1982 = vmatpush.msra.mxu2 %v9861_v25  ;;  %2032 = vmatpush.msra.mxu3 %v9834_v61  ;;  %v9953_v2 = vsub.f32 %v97_v59, %v9927_v19  ;;  %v15016_v59 = vand.u32 4294901760, %v9972_v53  ;;  %v15314_v25 = vand.u32 4294901760, %v9872_v22 }
  0xe2   :  { %1721 = vmatpush.msrb.mxu1 %v9710_v54  ;;  %1844 = vmatpush.msra.mxu0 %v9868_v46  ;;  %v85_v54 = vld [vmem:[#allocation5 + $0xc8] sm:$0xff] }
  0xe3   :  { %1725 = vmatmul.f32.vlgmr.msrb.gmra.mxu1 %v9746_v58  ;;  %1985 = vmatpush.msra.mxu2 %v9872_v22  ;;  %v9959_v38 = vand.u32 4294901760, %v85_v54  ;;  %v15017_v11 = vand.u32 4294901760, %v9953_v2  ;;  %v1939_v1 = vsub.f32 %v9972_v53, %v15016_v59  ;;  %v15316_v22 = vand.u32 4294901760, %v9883_v42 }
  0xe4   :  { %1881 = vmatpush.msra.mxu1 %v1880_v16  ;;  %2034 = vmatpush.msra.mxu3 %v9841_v24  ;;  %v9996_v16 = vsub.f32 %v79_v55, %v9969_v27  ;;  %v1928_v55 = vand.u32 4294901760, %v1927_v32  ;;  %v10027_v32 = vsub.f32 %v247_v48, %v10003_v34 }
  0xe5   :  { %1846 = vmatpush.msra.mxu0 %v9879_v40  ;;  %1988 = vmatpush.msra.mxu2 %v9883_v42  ;;  %v9984_v57 = vsub.f32 %v85_v54, %v9959_v38  ;;  %v1933_v9 = vsub.f32 %v9953_v2, %v15017_v11  ;;  %v10006_v54 = vand.u32 4294901760, %v61_v5  ;;  %v15318_v42 = vand.u32 4294901760, %v9897_v20 }
  0xe6   :  { %1887 = vmatpush.msra.mxu1 %v1886_v4  ;;  %2036 = vmatpush.msra.mxu3 %v9848_v6  ;;  %v241_v4 = vld [vmem:[#allocation5 + $0x5a8] sm:$0xff]  ;;  %v15030_v21 = vand.u32 4294901760, %v10027_v32 }
  0xe7   :  { %1848 = vmatpush.msra.mxu0 %v9893_v26  ;;  %1991 = vmatpush.msra.mxu2 %v9897_v20  ;;  %v10022_v52 = vand.u32 4294901760, %v241_v4  ;;  %v1934_v36 = vand.u32 4294901760, %v1933_v9  ;;  %v10035_v59 = vsub.f32 %v61_v5, %v10006_v54  ;;  %v1940_v9 = vand.u32 4294901760, %v1939_v1 }
  0xe8   :  { %1893 = vmatpush.msra.mxu1 %v1892_v30  ;;  %2038 = vmatpush.msra.mxu3 %v9858_v10  ;;  %v15019_v30 = vand.u32 4294901760, %v9984_v57  ;;  %v15027_v5 = vand.u32 4294901760, %v10020_v56  ;;  %v15320_v20 = vand.u32 4294901760, %v9910_v41 }
  0xe9   :  { %1850 = vmatpush.msra.mxu0 %v9906_v39  ;;  %1994 = vmatpush.msra.mxu2 %v9910_v41  ;;  %v15321_v41 = vand.u32 4294901760, %v9923_v47 }
  0xea   :  { %1899 = vmatpush.msra.mxu1 %v1898_v49  ;;  %2040 = vmatpush.msra.mxu3 %v9868_v46  ;;  %v235_v49 = vld [vmem:[#allocation5 + $0x578] sm:$0xff] }
  0xeb   :  { %1852 = vmatpush.msra.mxu0 %v9914_v17  ;;  %1997 = vmatpush.msra.mxu2 %v9923_v47  ;;  %v10037_v11 = vand.u32 4294901760, %v235_v49 }
  0xec   :  { %1905 = vmatpush.msra.mxu1 %v1904_v14  ;;  %2042 = vmatpush.msra.mxu3 %v9879_v40  ;;  %v15022_v14 = vand.u32 4294901760, %v9996_v16 }
  0xed   :  { %1854 = vmatpush.msra.mxu0 %v9927_v19  ;;  %2000 = vmatpush.msra.mxu2 %v9936_v8  ;;  %v10062_v3 = vsub.f32 %v235_v49, %v10037_v11 }
  0xee   :  { %1911 = vmatpush.msra.mxu1 %v1910_v43  ;;  %2044 = vmatpush.msra.mxu3 %v9893_v26  ;;  %v229_v43 = vld [vmem:[#allocation5 + $0x548] sm:$0xff] }
  0xef   :  { %1856 = vmatpush.msra.mxu0 %v9947_v7  ;;  %2003 = vmatpush.msra.mxu2 %v9941_v12  ;;  %v10041_v48 = vand.u32 4294901760, %v229_v43 }
  0xf0   :  { %1917 = vmatpush.msra.mxu1 %v1916_v45  ;;  %2046 = vmatpush.msra.mxu3 %v9906_v39  ;;  %v1945_v45 = vsub.f32 %v9984_v57, %v15019_v30  ;;  %v10049_v30 = vsub.f32 %v241_v4, %v10022_v52  ;;  %v15031_v4 = vand.u32 4294901760, %v10035_v59 }
  0xf1   :  { %1858 = vmatpush.msra.mxu0 %v9959_v38  ;;  %2006 = vmatpush.msra.mxu2 %v9953_v2  ;;  %v10067_v18 = vsub.f32 %v229_v43, %v10041_v48  ;;  %v2220_v43 = vsub.f32 %v10027_v32, %v15030_v21  ;;  %v199_v21 = vld [vmem:[#allocation5 + $0x458] sm:$0xff] }
  0xf2   :  { %1923 = vmatpush.msra.mxu1 %v1922_v35  ;;  %2048 = vmatpush.msra.mxu3 %v9914_v17  ;;  %v1951_v35 = vsub.f32 %v9996_v16, %v15022_v14  ;;  %v1946_v1 = vand.u32 4294901760, %v1945_v45  ;;  %v1957_v14 = vsub.f32 %v10010_v44, %v15025_v28  ;;  %v1963_v28 = vsub.f32 %v10020_v56, %v15027_v5 }
  0xf3   :  { %1860 = vmatpush.msra.mxu0 %v9969_v27  ;;  %2009 = vmatpush.msra.mxu2 %v9972_v53  ;;  %v1969_v13 = vsub.f32 %v10035_v59, %v15031_v4  ;;  %v10115_v31 = vand.u32 4294901760, %v199_v21 }
  0xf4   :  { %1929 = vmatpush.msra.mxu1 %v1928_v55  ;;  %2050 = vmatpush.msra.mxu3 %v9927_v19  ;;  %v217_v55 = vld [vmem:[#allocation5 + $0x4e8] sm:$0xff]  ;;  %v1952_v45 = vand.u32 4294901760, %v1951_v35  ;;  %v1958_v5 = vand.u32 4294901760, %v1957_v14  ;;  %v1964_v14 = vand.u32 4294901760, %v1963_v28 }
  0xf5   :  { %1862 = vmatpush.msra.mxu0 %v9981_v15  ;;  %2012 = vmatpush.msra.mxu2 %v9984_v57  ;;  %v10074_v49 = vand.u32 4294901760, %v217_v55  ;;  %v205_v35 = vld [vmem:[#allocation5 + $0x488] sm:$0xff]  ;;  %v1970_v28 = vand.u32 4294901760, %v1969_v13 }
  0xf6   :  { %1935 = vmatpush.msra.mxu1 %v1934_v36  ;;  %2052 = vmatpush.msra.mxu3 %v9947_v7  ;;  %v211_v36 = vld [vmem:[#allocation5 + $0x4b8] sm:$0xff]  ;;  %v10102_v58 = vand.u32 4294901760, %v205_v35 }
  0xf7   :  { %1864 = vmatpush.msra.mxu0 %v9992_v37  ;;  %2015 = vmatpush.msra.mxu2 %v9996_v16  ;;  %v10089_v60 = vand.u32 4294901760, %v211_v36  ;;  %v10100_v62 = vsub.f32 %v217_v55, %v10074_v49 }
  0xf8   :  { %1941 = vmatpush.msra.mxu1 %v1940_v9  ;;  %2054 = vmatpush.msra.mxu3 %v9959_v38  ;;  %v10082_v9 = vsub.f32 %v223_v63, %v10054_v29  ;;  %v193_v63 = vld [vmem:[#allocation5 + $0x428] sm:$0xff] }
  0xf9   :  { %1866 = vmatpush.msra.mxu0 %v10006_v54  ;;  %2018 = vmatpush.msra.mxu2 %v10010_v44  ;;  %v10113_v33 = vsub.f32 %v211_v36, %v10089_v60  ;;  %v10126_v36 = vsub.f32 %v205_v35, %v10102_v58  ;;  %v10138_v35 = vsub.f32 %v199_v21, %v10115_v31 }
  0xfa   :  { %1947 = vmatpush.msra.mxu1 %v1946_v1  ;;  %2056 = vmatpush.msra.mxu3 %v9969_v27  ;;  %v15311_v1 = vand.u32 4294901760, %v10049_v30 }
  0xfb   :  { %2073 = vmatpush.msrb.mxu0 %v1878_v23  ;;  %2021 = vmatpush.msra.mxu2 %v10020_v56  ;;  %v2221_v23 = vand.u32 4294901760, %v2220_v43  ;;  %v15315_v43 = vand.u32 4294901760, %v10067_v18 }
  0xfc   :  { %1953 = vmatpush.msra.mxu1 %v1952_v45  ;;  %2058 = vmatpush.msra.mxu3 %v9981_v15  ;;  %v2226_v4 = vsub.f32 %v10049_v30, %v15311_v1  ;;  %v15313_v1 = vand.u32 4294901760, %v10062_v3  ;;  %v10128_v45 = vand.u32 4294901760, %v193_v63 }
  0xfd   :  { %2077 = vmatpush.msrb.mxu0 %v15312_v50  ;;  %2024 = vmatpush.msra.mxu2 %v10035_v59  ;;  %v187_v50 = vld [vmem:[#allocation5 + $0x3f8] sm:$0xff] }
  0xfe   :  { %1959 = vmatpush.msra.mxu1 %v1958_v5  ;;  %2060 = vmatpush.msra.mxu3 %v9992_v37  ;;  %v2232_v55 = vsub.f32 %v10062_v3, %v15313_v1  ;;  %v2238_v5 = vsub.f32 %v10067_v18, %v15315_v43  ;;  %v2227_v13 = vand.u32 4294901760, %v2226_v4  ;;  %v15042_v1 = vand.u32 4294901760, %v10113_v33 }
  0xff   :  { %2081 = vmatpush.msrb.mxu0 %v15314_v25  ;;  %2177 = vmatpush.msrb.mxu2 %v10003_v34  ;;  %v15317_v25 = vand.u32 4294901760, %v10082_v9  ;;  %v10140_v0 = vand.u32 4294901760, %v187_v50  ;;  %v10151_v21 = vsub.f32 %v193_v63, %v10128_v45 }
 0x100   :  { %1965 = vmatpush.msra.mxu1 %v1964_v14  ;;  %2062 = vmatpush.msra.mxu3 %v10006_v54  ;;  %v181_v14 = vld [vmem:[#allocation5 + $0x3c8] sm:$0xff]  ;;  %v2233_v4 = vand.u32 4294901760, %v2232_v55  ;;  %v2261_v55 = vand.u32 4294901760, %v10126_v36 }
 0x101   :  { %2085 = vmatpush.msrb.mxu0 %v15316_v22  ;;  %2179 = vmatpush.msrb.mxu2 %v10022_v52  ;;  %v2244_v43 = vsub.f32 %v10082_v9, %v15317_v25  ;;  %v2239_v22 = vand.u32 4294901760, %v2238_v5  ;;  %v10153_v25 = vand.u32 4294901760, %v181_v14  ;;  %v2256_v5 = vsub.f32 %v10113_v33, %v15042_v1 }
 0x102   :  { %2222 = vmatpush.msrb.mxu3 %v2221_v23  ;;  %1971 = vmatpush.msra.mxu1 %v1970_v28  ;;  %v15319_v23 = vand.u32 4294901760, %v10100_v62  ;;  %v10164_v63 = vsub.f32 %v187_v50, %v10140_v0  ;;  %v15322_v1 = vand.u32 4294901760, %v9936_v8  ;;  %v15323_v8 = vand.u32 4294901760, %v9941_v12 }
 0x103   :  { %2089 = vmatpush.msrb.mxu0 %v15318_v42  ;;  %2181 = vmatpush.msrb.mxu2 %v10037_v11  ;;  %v10166_v42 = vand.u32 4294901760, %v175_v51  ;;  %v10177_v50 = vsub.f32 %v181_v14, %v10153_v25  ;;  %v2257_v47 = vand.u32 4294901760, %v2256_v5 }
 0x104   :  { %2140 = vmatpush.msrb.mxu1 %v9834_v61  ;;  %2228 = vmatpush.msrb.mxu3 %v2227_v13  ;;  %v2250_v28 = vsub.f32 %v10100_v62, %v15319_v23  ;;  %v2245_v61 = vand.u32 4294901760, %v2244_v43  ;;  %v2267_v13 = vand.u32 4294901760, %v10138_v35  ;;  %v169_v23 = vld [vmem:[#allocation5 + $0x368] sm:$0xff]  ;;  %v2262_v43 = vsub.f32 %v10126_v36, %v2261_v55 }
 0x105   :  { %2093 = vmatpush.msrb.mxu0 %v15320_v20  ;;  %2183 = vmatpush.msrb.mxu2 %v10041_v48  ;;  %v163_v20 = vld [vmem:[#allocation5 + $0x338] sm:$0xff]  ;;  %v10190_v14 = vsub.f32 %v175_v51, %v10166_v42  ;;  %v2285_v5 = vand.u32 4294901760, %v10177_v50  ;;  %v15324_v51 = vand.u32 4294901760, %v9953_v2  ;;  %v15325_v2 = vand.u32 4294901760, %v9972_v53 }
 0x106   :  { %2142 = vmatpush.msrb.mxu1 %v9841_v24  ;;  %2234 = vmatpush.msrb.mxu3 %v2233_v4  ;;  %v2251_v24 = vand.u32 4294901760, %v2250_v28  ;;  %v2273_v4 = vand.u32 4294901760, %v10151_v21  ;;  %v2279_v28 = vand.u32 4294901760, %v10164_v63 }
 0x107   :  { %2097 = vmatpush.msrb.mxu0 %v15321_v41  ;;  %2185 = vmatpush.msrb.mxu2 %v10054_v29  ;;  %v157_v41 = vld [vmem:[#allocation5 + $0x308] sm:$0xff] }
 0x108   :  { %2144 = vmatpush.msrb.mxu1 %v9848_v6  ;;  %2240 = vmatpush.msrb.mxu3 %v2239_v22  ;;  %v10182_v6 = vand.u32 4294901760, %v169_v23  ;;  %v2268_v22 = vsub.f32 %v10138_v35, %v2267_v13 }
 0x109   :  { %2101 = vmatpush.msrb.mxu0 %v15322_v1  ;;  %2187 = vmatpush.msrb.mxu2 %v10074_v49  ;;  %v2263_v1 = vand.u32 4294901760, %v2262_v43  ;;  %v2280_v43 = vsub.f32 %v10164_v63, %v2279_v28 }
 0x10a   :  { %2146 = vmatpush.msrb.mxu1 %v9858_v10  ;;  %2246 = vmatpush.msrb.mxu3 %v2245_v61  ;;  %v10195_v10 = vand.u32 4294901760, %v163_v20  ;;  %v2274_v61 = vsub.f32 %v10151_v21, %v2273_v4  ;;  %v10206_v12 = vsub.f32 %v169_v23, %v10182_v6 }
 0x10b   :  { %2105 = vmatpush.msrb.mxu0 %v15323_v8  ;;  %2189 = vmatpush.msrb.mxu2 %v10089_v60  ;;  %v2291_v8 = vand.u32 4294901760, %v10190_v14 }
 0x10c   :  { %2148 = vmatpush.msrb.mxu1 %v9868_v46  ;;  %2252 = vmatpush.msrb.mxu3 %v2251_v24  ;;  %v10208_v46 = vand.u32 4294901760, %v157_v41  ;;  %v2269_v24 = vand.u32 4294901760, %v2268_v22  ;;  %v2275_v23 = vand.u32 4294901760, %v2274_v61  ;;  %v15326_v22 = vand.u32 4294901760, %v9984_v57 }
 0x10d   :  { %2109 = vmatpush.msrb.mxu0 %v15324_v51  ;;  %2191 = vmatpush.msrb.mxu2 %v10102_v58  ;;  %v2297_v53 = vand.u32 4294901760, %v10206_v12  ;;  %v15327_v61 = vand.u32 4294901760, %v9996_v16 }
 0x10e   :  { %2150 = vmatpush.msrb.mxu1 %v9879_v40  ;;  %2258 = vmatpush.msrb.mxu3 %v2257_v47  ;;  %v10219_v40 = vsub.f32 %v163_v20, %v10195_v10  ;;  %v2286_v47 = vsub.f32 %v10177_v50, %v2285_v5  ;;  %v2281_v20 = vand.u32 4294901760, %v2280_v43 }
 0x10f   :  { %2113 = vmatpush.msrb.mxu0 %v15325_v2  ;;  %2193 = vmatpush.msrb.mxu2 %v10115_v31  ;;  %v2298_v51 = vsub.f32 %v10206_v12, %v2297_v53 }
 0x110   :  { %2152 = vmatpush.msrb.mxu1 %v9893_v26  ;;  %2264 = vmatpush.msrb.mxu3 %v2263_v1  ;;  %v10230_v26 = vsub.f32 %v157_v41, %v10208_v46  ;;  %v2292_v1 = vsub.f32 %v10190_v14, %v2291_v8  ;;  %v2287_v57 = vand.u32 4294901760, %v2286_v47  ;;  %v15328_v41 = vand.u32 4294901760, %v10010_v44  ;;  %v15336_v47 = vld [vmem:[#allocation13_spill] sm:$0xff] }
 0x111   :  { %2117 = vmatpush.msrb.mxu0 %v15326_v22  ;;  %2195 = vmatpush.msrb.mxu2 %v10128_v45  ;;  %v2299_v43 = vand.u32 4294901760, %v2298_v51 }
 0x112   :  { %2154 = vmatpush.msrb.mxu1 %v9906_v39  ;;  %2270 = vmatpush.msrb.mxu3 %v2269_v24  ;;  %v2303_v39 = vand.u32 4294901760, %v10219_v40  ;;  %v2309_v16 = vand.u32 4294901760, %v10230_v26  ;;  %v15329_v24 = vand.u32 4294901760, %v10020_v56 }
 0x113   :  { %2121 = vmatpush.msrb.mxu0 %v15327_v61  ;;  %2197 = vmatpush.msrb.mxu2 %v10140_v0 }
 0x114   :  { %2156 = vmatpush.msrb.mxu1 %v9914_v17  ;;  %2276 = vmatpush.msrb.mxu3 %v2275_v23  ;;  %v2293_v17 = vand.u32 4294901760, %v2292_v1  ;;  %v2304_v44 = vsub.f32 %v10219_v40, %v2303_v39  ;;  %v2310_v56 = vsub.f32 %v10230_v26, %v2309_v16  ;;  %v15334_v23 = vld [vmem:[#allocation15_spill] sm:$0xff] }
 0x115   :  { %2125 = vmatpush.msrb.mxu0 %v15328_v41  ;;  %2199 = vmatpush.msrb.mxu2 %v10153_v25 }
 0x116   :  { %2158 = vmatpush.msrb.mxu1 %v9927_v19  ;;  %2282 = vmatpush.msrb.mxu3 %v2281_v20  ;;  %v15330_v19 = vand.u32 4294901760, %v10035_v59  ;;  %v2305_v2 = vand.u32 4294901760, %v2304_v44  ;;  %v15332_v59 = vld [vmem:[#allocation14_spill] sm:$0xff] }
 0x117   :  { %2129 = vmatpush.msrb.mxu0 %v15329_v24  ;;  %2201 = vmatpush.msrb.mxu2 %v10166_v42  ;;  %v277_v24 = vld [vmem:[#allocation5 + $0x6c8] sm:$0xff] }
 0x118   :  { %2160 = vmatpush.msrb.mxu1 %v9947_v7  ;;  %2288 = vmatpush.msrb.mxu3 %v2287_v57  ;;  %v15331_v7 = vld [vmem:[#allocation17_spill] sm:$0xff] }
 0x119   :  { %2133 = vmatpush.msrb.mxu0 %v15330_v19  ;;  %2203 = vmatpush.msrb.mxu2 %v10182_v6 }
 0x11a   :  { %2162 = vmatpush.msrb.mxu1 %v9959_v38  ;;  %2294 = vmatpush.msrb.mxu3 %v2293_v17  ;;  %v2311_v38 = vand.u32 4294901760, %v2310_v56  ;;  %v15345_v17 = vld [vmem:[#allocation19_spill] sm:$0xff] }
 0x11b   :  { %1872 = vmatmul.f32.vlgmr.msra.gmra.mxu0 %v15331_v7  ;;  %2205 = vmatpush.msrb.mxu2 %v10195_v10  ;;  %v367_v7 = vld [vmem:[#allocation5 + $0x998] sm:$0xff] }
 0x11c   :  { %2164 = vmatpush.msrb.mxu1 %v9969_v27  ;;  %2320 = vmatpush.msra.mxu0 %v10027_v32  ;;  %v15333_v27 = vand.u32 4294901760, %v10027_v32  ;;  %v15337_v32 = vand.u32 4294901760, %v10062_v3 }
 0x11d   :  { %2300 = vmatpush.msrb.mxu3 %v2299_v43  ;;  %2207 = vmatpush.msrb.mxu2 %v10208_v46 }
 0x11e   :  { %2166 = vmatpush.msrb.mxu1 %v9981_v15  ;;  %2323 = vmatpush.msra.mxu0 %v10049_v30  ;;  %v15335_v15 = vand.u32 4294901760, %v10049_v30 }
 0x11f   :  { %2306 = vmatpush.msrb.mxu3 %v2305_v2  ;;  %2027 = vmatmul.f32.vlgmr.msra.gmra.mxu2 %v15332_v59  ;;  %v373_v59 = vld [vmem:[#allocation5 + $0x9c8] sm:$0xff] }
 0x120   :  { %2326 = vmatpush.msra.mxu0 %v10062_v3  ;;  %2414 = vmatpush.msra.mxu2 %v15333_v27  ;;  %v15340_v3 = vand.u32 4294901760, %v10082_v9 }
 0x121   :  { %2168 = vmatpush.msrb.mxu1 %v9992_v37  ;;  %2312 = vmatpush.msrb.mxu3 %v2311_v38  ;;  %v15338_v37 = vand.u32 4294901760, %v10067_v18  ;;  %v271_v38 = vld [vmem:[#allocation5 + $0x698] sm:$0xff] }
 0x122   :  { %2066 = vmatmul.f32.vlgmr.msra.gmra.mxu3 %v15334_v23  ;;  %2329 = vmatpush.msra.mxu0 %v10067_v18  ;;  %v15342_v18 = vand.u32 4294901760, %v10100_v62 }
 0x123   :  { %2418 = vmatpush.msra.mxu2 %v15335_v15  ;;  %2481 = vmatpush.msra.mxu3 %v10003_v34  ;;  %v10448_v15 = vand.u32 4294901760, %v277_v24 }
 0x124   :  { %2170 = vmatpush.msrb.mxu1 %v10006_v54  ;;  %2332 = vmatpush.msra.mxu0 %v10082_v9  ;;  %v15339_v54 = vld [vmem:[#allocation12_spill] sm:$0xff] }
 0x125   :  { %1973 = vmatmul.f32.vlgmr.msra.gmra.mxu1 %v15336_v47  ;;  %2422 = vmatpush.msra.mxu2 %v15337_v32 }
 0x126   :  { %2373 = vmatpush.msra.mxu1 %v10003_v34  ;;  %2483 = vmatpush.msra.mxu3 %v10022_v52  ;;  %v15341_v34 = vld [vmem:[#allocation16_spill] sm:$0xff] }
 0x127   :  { %2335 = vmatpush.msra.mxu0 %v10100_v62  ;;  %2426 = vmatpush.msra.mxu2 %v15338_v37  ;;  %v343_v62 = vld [vmem:[#allocation5 + $0x8d8] sm:$0xff] }
 0x128   :  { %2375 = vmatpush.msra.mxu1 %v10022_v52  ;;  %2485 = vmatpush.msra.mxu3 %v10037_v11 }
 0x129   :  { %2213 = vmatmul.f32.vlgmr.msrb.gmra.mxu2 %v15339_v54  ;;  %2338 = vmatpush.msra.mxu0 %v10113_v33  ;;  %v385_v54 = vld [vmem:[#allocation5 + $0xa28] sm:$0xff] }
 0x12a   :  { %2377 = vmatpush.msra.mxu1 %v10037_v11  ;;  %2430 = vmatpush.msra.mxu2 %v15340_v3  ;;  %v15343_v11 = vand.u32 4294901760, %v10113_v33  ;;  %v337_v33 = vld [vmem:[#allocation5 + $0x8a8] sm:$0xff]  ;;  %v10625_v23 = vand.u32 4294901760, %v385_v54 }
 0x12b   :  { %2487 = vmatpush.msra.mxu3 %v10041_v48  ;;  %2135 = vmatmul.f32.vlgmr.msrb.gmra.mxu0 %v15336_v47  ;;  %v10333_v30 = vand.u32 4294901760, %v337_v33 }
 0x12c   :  { %2314 = vmatmul.f32.vlgmr.msrb.gmra.mxu3 %v15341_v34  ;;  %2341 = vmatpush.msra.mxu0 %v10126_v36 }
 0x12d   :  { %2379 = vmatpush.msra.mxu1 %v10041_v48  ;;  %2434 = vmatpush.msra.mxu2 %v15342_v18  ;;  %v319_v48 = vld [vmem:[#allocation5 + $0x818] sm:$0xff]  ;;  %v10353_v9 = vsub.f32 %v337_v33, %v10333_v30  ;;  %v265_v18 = vld [vmem:[#allocation5 + $0x668] sm:$0xff] }
 0x12e   :  { %2489 = vmatpush.msra.mxu3 %v10054_v29  ;;  %2172 = vmatmul.f32.vlgmr.msrb.gmra.mxu1 %v15336_v47  ;;  %v10357_v36 = vand.u32 4294901760, %v319_v48 }
 0x12f   :  { %2344 = vmatpush.msra.mxu0 %v10138_v35  ;;  %2381 = vmatpush.msra.mxu1 %v10054_v29  ;;  %v10326_v29 = vand.u32 4294901760, %v343_v62 }
 0x130   :  { %2438 = vmatpush.msra.mxu2 %v15343_v11  ;;  %2491 = vmatpush.msra.mxu3 %v10074_v49 }
 0x131   :  { %2347 = vmatpush.msra.mxu0 %v10151_v21  ;;  %2383 = vmatpush.msra.mxu1 %v10074_v49 }
 0x132   :  { %2442 = vmatpush.msra.mxu2 %v2261_v55  ;;  %2493 = vmatpush.msra.mxu3 %v10089_v60  ;;  %v15344_v55 = vld [vmem:[#allocation18_spill] sm:$0xff] }
 0x133   :  { %2350 = vmatpush.msra.mxu0 %v10164_v63  ;;  %2385 = vmatpush.msra.mxu1 %v10089_v60  ;;  %v331_v60 = vld [vmem:[#allocation5 + $0x878] sm:$0xff] }
 0x134   :  { %2446 = vmatpush.msra.mxu2 %v2267_v13  ;;  %2495 = vmatpush.msra.mxu3 %v10102_v58  ;;  %v10340_v52 = vand.u32 4294901760, %v331_v60  ;;  %v307_v13 = vld [vmem:[#allocation5 + $0x7b8] sm:$0xff] }
 0x135   :  { %2353 = vmatpush.msra.mxu0 %v10177_v50  ;;  %2387 = vmatpush.msra.mxu1 %v10102_v58  ;;  %v325_v58 = vld [vmem:[#allocation5 + $0x848] sm:$0xff] }
 0x136   :  { %2450 = vmatpush.msra.mxu2 %v2273_v4  ;;  %2497 = vmatpush.msra.mxu3 %v10115_v31  ;;  %v10350_v49 = vand.u32 4294901760, %v325_v58  ;;  %v10364_v35 = vsub.f32 %v331_v60, %v10340_v52  ;;  %v10380_v4 = vsub.f32 %v319_v48, %v10357_v36 }
 0x137   :  { %2356 = vmatpush.msra.mxu0 %v10190_v14  ;;  %2389 = vmatpush.msra.mxu1 %v10115_v31  ;;  %v10343_v31 = vsub.f32 %v343_v62, %v10326_v29  ;;  %v10460_v62 = vand.u32 4294901760, %v271_v38 }
 0x138   :  { %2454 = vmatpush.msra.mxu2 %v2279_v28  ;;  %2499 = vmatpush.msra.mxu3 %v10128_v45  ;;  %v10375_v63 = vsub.f32 %v325_v58, %v10350_v49  ;;  %v10388_v28 = vand.u32 4294901760, %v307_v13  ;;  %v15054_v14 = vand.u32 4294901760, %v10364_v35  ;;  %v15051_v22 = vand.u32 4294901760, %v10380_v4 }
 0x139   :  { %2359 = vmatpush.msra.mxu0 %v10206_v12  ;;  %2391 = vmatpush.msra.mxu1 %v10128_v45  ;;  %v313_v45 = vld [vmem:[#allocation5 + $0x7e8] sm:$0xff] }
 0x13a   :  { %2458 = vmatpush.msra.mxu2 %v2285_v5  ;;  %2501 = vmatpush.msra.mxu3 %v10140_v0  ;;  %v10368_v21 = vand.u32 4294901760, %v313_v45  ;;  %v295_v5 = vld [vmem:[#allocation5 + $0x758] sm:$0xff]  ;;  %v2573_v20 = vsub.f32 %v10364_v35, %v15054_v14  ;;  %v10415_v61 = vsub.f32 %v307_v13, %v10388_v28 }
 0x13b   :  { %2362 = vmatpush.msra.mxu0 %v10219_v40  ;;  %2393 = vmatpush.msra.mxu1 %v10140_v0  ;;  %v15057_v0 = vand.u32 4294901760, %v10343_v31  ;;  %v15052_v40 = vand.u32 4294901760, %v10375_v63  ;;  %v10412_v1 = vand.u32 4294901760, %v295_v5 }
 0x13c   :  { %2462 = vmatpush.msra.mxu2 %v2291_v8  ;;  %2503 = vmatpush.msra.mxu3 %v10153_v25  ;;  %v2574_v44 = vand.u32 4294901760, %v2573_v20  ;;  %v15048_v43 = vand.u32 4294901760, %v10415_v61  ;;  %v439_v20 = vld [vmem:[#allocation5 + $0xbd8] sm:$0xff] }
 0x13d   :  { %2365 = vmatpush.msra.mxu0 %v10230_v26  ;;  %2395 = vmatpush.msra.mxu1 %v10153_v25  ;;  %v15055_v25 = vand.u32 4294901760, %v10353_v9  ;;  %v2561_v50 = vsub.f32 %v10343_v31, %v15057_v0  ;;  %v2579_v41 = vsub.f32 %v10375_v63, %v15052_v40  ;;  %v10440_v56 = vsub.f32 %v295_v5, %v10412_v1  ;;  %v409_v40 = vld [vmem:[#allocation5 + $0xae8] sm:$0xff] }
 0x13e   :  { %2466 = vmatpush.msra.mxu2 %v2297_v53  ;;  %2505 = vmatpush.msra.mxu3 %v10166_v42  ;;  %v289_v53 = vld [vmem:[#allocation5 + $0x728] sm:$0xff]  ;;  %v2597_v11 = vsub.f32 %v10415_v61, %v15048_v43  ;;  %v415_v43 = vld [vmem:[#allocation5 + $0xb18] sm:$0xff] }
 0x13f   :  { %2368 = vmatmul.f32.vlgmr.msra.gmra.mxu0 %v15344_v55  ;;  %2397 = vmatpush.msra.mxu1 %v10166_v42  ;;  %v301_v42 = vld [vmem:[#allocation5 + $0x788] sm:$0xff]  ;;  %v2567_v12 = vsub.f32 %v10353_v9, %v15055_v25  ;;  %v2562_v26 = vand.u32 4294901760, %v2561_v50  ;;  %v10425_v51 = vand.u32 4294901760, %v289_v53  ;;  %v2580_v27 = vand.u32 4294901760, %v2579_v41  ;;  %v259_v50 = vld [vmem:[#allocation5 + $0x638] sm:$0xff] }
 0x140   :  { %2518 = vmatpush.msrb.mxu0 %v10326_v29  ;;  %2470 = vmatpush.msra.mxu2 %v2303_v39  ;;  %v10401_v8 = vand.u32 4294901760, %v301_v42  ;;  %v283_v39 = vld [vmem:[#allocation5 + $0x6f8] sm:$0xff]  ;;  %v15045_v33 = vand.u32 4294901760, %v10440_v56  ;;  %v2598_v5 = vand.u32 4294901760, %v2597_v11  ;;  %v397_v0 = vld [vmem:[#allocation5 + $0xa88] sm:$0xff] }
 0x141   :  { %2507 = vmatpush.msra.mxu3 %v10182_v6  ;;  %2399 = vmatpush.msra.mxu1 %v10182_v6  ;;  %v10394_v6 = vsub.f32 %v313_v45, %v10368_v21  ;;  %v2568_v57 = vand.u32 4294901760, %v2567_v12  ;;  %v10436_v19 = vand.u32 4294901760, %v283_v39  ;;  %v10452_v37 = vsub.f32 %v289_v53, %v10425_v51  ;;  %v391_v55 = vld [vmem:[#allocation5 + $0xa58] sm:$0xff] }
 0x142   :  { %2520 = vmatpush.msrb.mxu0 %v10333_v30  ;;  %2474 = vmatpush.msra.mxu2 %v2309_v16  ;;  %v10428_v16 = vsub.f32 %v301_v42, %v10401_v8  ;;  %v10472_v45 = vand.u32 4294901760, %v265_v18  ;;  %v10476_v42 = vsub.f32 %v277_v24, %v10448_v15  ;;  %v2609_v12 = vsub.f32 %v10440_v56, %v15045_v33  ;;  %v421_v33 = vld [vmem:[#allocation5 + $0xb48] sm:$0xff] }
 0x143   :  { %2509 = vmatpush.msra.mxu3 %v10195_v10  ;;  %2476 = vmatmul.f32.vlgmr.msra.gmra.mxu2 %v15341_v34  ;;  %v10464_v60 = vsub.f32 %v283_v39, %v10436_v19  ;;  %v15044_v13 = vand.u32 4294901760, %v10452_v37  ;;  %v10490_v39 = vand.u32 4294901760, %v259_v50  ;;  %v10612_v47 = vand.u32 4294901760, %v391_v55 }
 0x144   :  { %2522 = vmatpush.msrb.mxu0 %v10340_v52  ;;  %2661 = vmatpush.msrb.mxu2 %v10343_v31  ;;  %v15047_v32 = vand.u32 4294901760, %v10428_v16  ;;  %v15046_v24 = vand.u32 4294901760, %v10476_v42 }
 0x145   :  { %2401 = vmatpush.msra.mxu1 %v10195_v10  ;;  %2511 = vmatpush.msra.mxu3 %v10208_v46  ;;  %v15050_v10 = vand.u32 4294901760, %v10394_v6  ;;  %v15043_v53 = vand.u32 4294901760, %v10464_v60 }
 0x146   :  { %2513 = vmatmul.f32.vlgmr.msra.gmra.mxu3 %v15341_v34  ;;  %2524 = vmatpush.msrb.mxu0 %v10350_v49  ;;  %v2603_v48 = vsub.f32 %v10428_v16, %v15047_v32  ;;  %v15351_v34 = vld [vmem:[#allocation21_spill] sm:$0xff] }
 0x147   :  { %2664 = vmatpush.msrb.mxu2 %v10353_v9  ;;  %2714 = vmatpush.msrb.mxu3 %v10326_v29  ;;  %v2591_v2 = vsub.f32 %v10394_v6, %v15050_v10 }
 0x148   :  { %2403 = vmatpush.msra.mxu1 %v10208_v46  ;;  %2526 = vmatpush.msrb.mxu0 %v10357_v36  ;;  %v2585_v46 = vsub.f32 %v10380_v4, %v15051_v22  ;;  %v2604_v41 = vand.u32 4294901760, %v2603_v48  ;;  %v427_v48 = vld [vmem:[#allocation5 + $0xb78] sm:$0xff]  ;;  %v10552_v22 = vand.u32 4294901760, %v415_v43 }
 0x149   :  { %2407 = vmatmul.f32.vlgmr.msra.gmra.mxu1 %v15345_v17  ;;  %2667 = vmatpush.msrb.mxu2 %v10364_v35  ;;  %v2592_v58 = vand.u32 4294901760, %v2591_v2  ;;  %v10502_v2 = vand.u32 4294901760, %v439_v20  ;;  %v10535_v32 = vand.u32 4294901760, %v427_v48 }
 0x14a   :  { %2563 = vmatpush.msrb.mxu1 %v2562_v26  ;;  %2716 = vmatpush.msrb.mxu3 %v10333_v30  ;;  %v2586_v3 = vand.u32 4294901760, %v2585_v46  ;;  %v10486_v26 = vsub.f32 %v271_v38, %v10460_v62  ;;  %v2615_v46 = vsub.f32 %v10452_v37, %v15044_v13  ;;  %v433_v38 = vld [vmem:[#allocation5 + $0xba8] sm:$0xff] }
 0x14b   :  { %2528 = vmatpush.msrb.mxu0 %v10368_v21  ;;  %2670 = vmatpush.msrb.mxu2 %v10375_v63  ;;  %v10521_v13 = vand.u32 4294901760, %v433_v38 }
 0x14c   :  { %2569 = vmatpush.msrb.mxu1 %v2568_v57  ;;  %2718 = vmatpush.msrb.mxu3 %v10340_v52  ;;  %v253_v57 = vld [vmem:[#allocation5 + $0x608] sm:$0xff] }
 0x14d   :  { %2530 = vmatpush.msrb.mxu0 %v10388_v28  ;;  %2673 = vmatpush.msrb.mxu2 %v10380_v4  ;;  %v10508_v11 = vand.u32 4294901760, %v253_v57 }
 0x14e   :  { %2575 = vmatpush.msrb.mxu1 %v2574_v44  ;;  %2720 = vmatpush.msrb.mxu3 %v10350_v49  ;;  %v10498_v44 = vsub.f32 %v265_v18, %v10472_v45  ;;  %v15049_v18 = vand.u32 4294901760, %v10486_v26 }
 0x14f   :  { %2532 = vmatpush.msrb.mxu0 %v10401_v8  ;;  %2676 = vmatpush.msrb.mxu2 %v10394_v6 }
 0x150   :  { %2581 = vmatpush.msrb.mxu1 %v2580_v27  ;;  %2722 = vmatpush.msrb.mxu3 %v10357_v36  ;;  %v2610_v27 = vand.u32 4294901760, %v2609_v12  ;;  %v2627_v12 = vsub.f32 %v10476_v42, %v15046_v24  ;;  %v10533_v24 = vsub.f32 %v253_v57, %v10508_v11 }
 0x151   :  { %2534 = vmatpush.msrb.mxu0 %v10412_v1  ;;  %2679 = vmatpush.msrb.mxu2 %v10415_v61 }
 0x152   :  { %2587 = vmatpush.msrb.mxu1 %v2586_v3  ;;  %2724 = vmatpush.msrb.mxu3 %v10368_v21  ;;  %v2621_v3 = vsub.f32 %v10464_v60, %v15043_v53  ;;  %v15053_v53 = vand.u32 4294901760, %v10498_v44 }
 0x153   :  { %2536 = vmatpush.msrb.mxu0 %v10425_v51  ;;  %2682 = vmatpush.msrb.mxu2 %v10428_v16 }
 0x154   :  { %2593 = vmatpush.msrb.mxu1 %v2592_v58  ;;  %2726 = vmatpush.msrb.mxu3 %v10388_v28  ;;  %v10514_v58 = vsub.f32 %v259_v50, %v10490_v39  ;;  %v10526_v50 = vsub.f32 %v439_v20, %v10502_v2  ;;  %v2639_v57 = vsub.f32 %v10498_v44, %v15053_v53 }
 0x155   :  { %2538 = vmatpush.msrb.mxu0 %v10436_v19  ;;  %2685 = vmatpush.msrb.mxu2 %v10440_v56  ;;  %v10557_v53 = vsub.f32 %v427_v48, %v10535_v32  ;;  %v10569_v48 = vand.u32 4294901760, %v409_v40 }
 0x156   :  { %2599 = vmatpush.msrb.mxu1 %v2598_v5  ;;  %2728 = vmatpush.msrb.mxu3 %v10401_v8  ;;  %v2616_v5 = vand.u32 4294901760, %v2615_v46  ;;  %v2633_v46 = vsub.f32 %v10486_v26, %v15049_v18  ;;  %v15056_v20 = vand.u32 4294901760, %v10514_v58  ;;  %v10547_v18 = vsub.f32 %v433_v38, %v10521_v13 }
 0x157   :  { %2540 = vmatpush.msrb.mxu0 %v10448_v15  ;;  %2688 = vmatpush.msrb.mxu2 %v10452_v37  ;;  %v15058_v10 = vand.u32 4294901760, %v10526_v50 }
 0x158   :  { %2605 = vmatpush.msrb.mxu1 %v2604_v41  ;;  %2730 = vmatpush.msrb.mxu3 %v10412_v1  ;;  %v2622_v41 = vand.u32 4294901760, %v2621_v3  ;;  %v2628_v3 = vand.u32 4294901760, %v2627_v12  ;;  %v2645_v38 = vsub.f32 %v10514_v58, %v15056_v20  ;;  %v15346_v12 = vld [vmem:[#allocation23_spill] sm:$0xff] }
 0x159   :  { %2542 = vmatpush.msrb.mxu0 %v10460_v62  ;;  %2691 = vmatpush.msrb.mxu2 %v10464_v60  ;;  %v2902_v20 = vsub.f32 %v10526_v50, %v15058_v10 }
 0x15a   :  { %2611 = vmatpush.msrb.mxu1 %v2610_v27  ;;  %2732 = vmatpush.msrb.mxu3 %v10425_v51  ;;  %v10540_v27 = vand.u32 4294901760, %v421_v33  ;;  %v2646_v10 = vand.u32 4294901760, %v2645_v38 }
 0x15b   :  { %2544 = vmatpush.msrb.mxu0 %v10472_v45  ;;  %2694 = vmatpush.msrb.mxu2 %v10476_v42  ;;  %v2903_v38 = vand.u32 4294901760, %v2902_v20 }
 0x15c   :  { %2617 = vmatpush.msrb.mxu1 %v2616_v5  ;;  %2734 = vmatpush.msrb.mxu3 %v10436_v19  ;;  %v2634_v5 = vand.u32 4294901760, %v2633_v46  ;;  %v10565_v14 = vsub.f32 %v421_v33, %v10540_v27  ;;  %v2640_v46 = vand.u32 4294901760, %v2639_v57  ;;  %v10577_v33 = vsub.f32 %v415_v43, %v10552_v22  ;;  %v15355_v43 = vld [vmem:[#allocation22_spill] sm:$0xff] }
 0x15d   :  { %2546 = vmatpush.msrb.mxu0 %v10490_v39  ;;  %2697 = vmatpush.msrb.mxu2 %v10486_v26  ;;  %v15348_v57 = vand.u32 4294901760, %v10533_v24 }
 0x15e   :  { %2623 = vmatpush.msrb.mxu1 %v2622_v41  ;;  %2736 = vmatpush.msrb.mxu3 %v10448_v15  ;;  %v403_v41 = vld [vmem:[#allocation5 + $0xab8] sm:$0xff]  ;;  %v15354_v20 = vand.u32 4294901760, %v10565_v14 }
 0x15f   :  { %2548 = vmatpush.msrb.mxu0 %v10508_v11  ;;  %2700 = vmatpush.msrb.mxu2 %v10498_v44  ;;  %v2651_v25 = vsub.f32 %v10533_v24, %v15348_v57  ;;  %v10585_v17 = vand.u32 4294901760, %v403_v41  ;;  %v10596_v57 = vsub.f32 %v409_v40, %v10569_v48 }
 0x160   :  { %2629 = vmatpush.msrb.mxu1 %v2628_v3  ;;  %2738 = vmatpush.msrb.mxu3 %v10460_v62  ;;  %v15347_v3 = vand.u32 4294901760, %v10343_v31  ;;  %v15349_v31 = vand.u32 4294901760, %v10353_v9  ;;  %v15352_v9 = vand.u32 4294901760, %v10364_v35  ;;  %v2920_v35 = vsub.f32 %v10565_v14, %v15354_v20 }
 0x161   :  { %2554 = vmatmul.f32.vlgmr.msrb.gmra.mxu0 %v15346_v12  ;;  %2703 = vmatpush.msrb.mxu2 %v10514_v58  ;;  %v10598_v12 = vand.u32 4294901760, %v397_v0 }
 0x162   :  { %2755 = vmatpush.msra.mxu0 %v15347_v3  ;;  %2635 = vmatpush.msrb.mxu1 %v2634_v5  ;;  %v15350_v5 = vand.u32 4294901760, %v10547_v18 }
 0x163   :  { %2740 = vmatpush.msrb.mxu3 %v10472_v45  ;;  %2706 = vmatpush.msrb.mxu2 %v10533_v24 }
 0x164   :  { %2759 = vmatpush.msra.mxu0 %v15349_v31  ;;  %2641 = vmatpush.msrb.mxu1 %v2640_v46  ;;  %v2908_v3 = vsub.f32 %v10547_v18, %v15350_v5  ;;  %v2652_v46 = vand.u32 4294901760, %v2651_v25  ;;  %v15353_v31 = vand.u32 4294901760, %v10557_v53  ;;  %v10610_v5 = vsub.f32 %v403_v41, %v10585_v17 }
 0x165   :  { %2742 = vmatpush.msrb.mxu3 %v10490_v39  ;;  %2709 = vmatmul.f32.vlgmr.msrb.gmra.mxu2 %v15351_v34  ;;  %v15356_v25 = vand.u32 4294901760, %v10375_v63  ;;  %v10623_v41 = vsub.f32 %v397_v0, %v10598_v12  ;;  %v15358_v63 = vand.u32 4294901760, %v10380_v4  ;;  %v10635_v0 = vsub.f32 %v391_v55, %v10612_v47 }
 0x166   :  { %2763 = vmatpush.msra.mxu0 %v15352_v9  ;;  %2859 = vmatpush.msra.mxu2 %v10502_v2  ;;  %v2914_v40 = vsub.f32 %v10557_v53, %v15353_v31  ;;  %v379_v9 = vld [vmem:[#allocation5 + $0x9f8] sm:$0xff]  ;;  %v2909_v34 = vand.u32 4294901760, %v2908_v3  ;;  %v15360_v4 = vand.u32 4294901760, %v10596_v57  ;;  %v10647_v55 = vsub.f32 %v385_v54, %v10625_v23 }
 0x167   :  { %2647 = vmatpush.msrb.mxu1 %v2646_v10  ;;  %2744 = vmatpush.msrb.mxu3 %v10508_v11  ;;  %v15357_v10 = vand.u32 4294901760, %v10577_v33  ;;  %v10637_v31 = vand.u32 4294901760, %v379_v9 }
 0x168   :  { %2748 = vmatmul.f32.vlgmr.msrb.gmra.mxu3 %v15355_v43  ;;  %2767 = vmatpush.msra.mxu0 %v15356_v25  ;;  %v2915_v3 = vand.u32 4294901760, %v2914_v40  ;;  %v15061_v25 = vand.u32 4294901760, %v10610_v5  ;;  %v15359_v43 = vld [vmem:[#allocation20_spill] sm:$0xff]  ;;  %v361_v40 = vld [vmem:[#allocation5 + $0x968] sm:$0xff] }
 0x169   :  { %2861 = vmatpush.msra.mxu2 %v10521_v13  ;;  %2904 = vmatpush.msra.mxu3 %v2903_v38  ;;  %v2926_v20 = vsub.f32 %v10577_v33, %v15357_v10  ;;  %v2921_v38 = vand.u32 4294901760, %v2920_v35  ;;  %v10649_v10 = vand.u32 4294901760, %v373_v59  ;;  %v10660_v54 = vsub.f32 %v379_v9, %v10637_v31 }
 0x16a   :  { %2653 = vmatpush.msrb.mxu1 %v2652_v46  ;;  %2771 = vmatpush.msra.mxu0 %v15358_v63  ;;  %v2932_v46 = vsub.f32 %v10596_v57, %v15360_v4  ;;  %v15361_v63 = vand.u32 4294901760, %v10394_v6  ;;  %v10662_v4 = vand.u32 4294901760, %v367_v7  ;;  %v15362_v6 = vand.u32 4294901760, %v10415_v61 }
 0x16b   :  { %2655 = vmatmul.f32.vlgmr.msrb.gmra.mxu1 %v15359_v43  ;;  %2863 = vmatpush.msra.mxu2 %v10535_v32  ;;  %v2927_v35 = vand.u32 4294901760, %v2926_v20  ;;  %v15363_v20 = vand.u32 4294901760, %v10623_v41  ;;  %v10673_v9 = vsub.f32 %v373_v59, %v10649_v10  ;;  %v10678_v61 = vand.u32 4294901760, %v361_v40 }
 0x16c   :  { %2822 = vmatpush.msra.mxu1 %v10326_v29  ;;  %2910 = vmatpush.msra.mxu3 %v2909_v34  ;;  %v2938_v34 = vsub.f32 %v10610_v5, %v15061_v25  ;;  %v355_v25 = vld [vmem:[#allocation5 + $0x938] sm:$0xff]  ;;  %v15364_v29 = vand.u32 4294901760, %v10428_v16  ;;  %v10686_v59 = vsub.f32 %v367_v7, %v10662_v4  ;;  %v15366_v16 = vand.u32 4294901760, %v10440_v56 }
 0x16d   :  { %2775 = vmatpush.msra.mxu0 %v15361_v63  ;;  %2865 = vmatpush.msra.mxu2 %v10540_v27  ;;  %v2955_v63 = vand.u32 4294901760, %v10647_v55  ;;  %v15367_v7 = vand.u32 4294901760, %v10452_v37  ;;  %v10702_v56 = vsub.f32 %v361_v40, %v10678_v61  ;;  %v15368_v37 = vand.u32 4294901760, %v10464_v60 }
 0x16e   :  { %2824 = vmatpush.msra.mxu1 %v10333_v30  ;;  %2916 = vmatpush.msra.mxu3 %v2915_v3  ;;  %v2933_v30 = vand.u32 4294901760, %v2932_v46  ;;  %v2944_v3 = vsub.f32 %v10623_v41, %v15363_v20  ;;  %v349_v20 = vld [vmem:[#allocation5 + $0x908] sm:$0xff] }
 0x16f   :  { %2779 = vmatpush.msra.mxu0 %v15362_v6  ;;  %2867 = vmatpush.msra.mxu2 %v10552_v22  ;;  %v2961_v6 = vand.u32 4294901760, %v10660_v54  ;;  %v2979_v60 = vand.u32 4294901760, %v10702_v56 }
 0x170   :  { %2826 = vmatpush.msra.mxu1 %v10340_v52  ;;  %2922 = vmatpush.msra.mxu3 %v2921_v38  ;;  %v2939_v52 = vand.u32 4294901760, %v2938_v34  ;;  %v15365_v38 = vand.u32 4294901760, %v10635_v0  ;;  %v2967_v34 = vand.u32 4294901760, %v10673_v9 }
 0x171   :  { %2783 = vmatpush.msra.mxu0 %v15364_v29  ;;  %2869 = vmatpush.msra.mxu2 %v10569_v48  ;;  %v10691_v29 = vand.u32 4294901760, %v355_v25 }
 0x172   :  { %2828 = vmatpush.msra.mxu1 %v10350_v49  ;;  %2928 = vmatpush.msra.mxu3 %v2927_v35  ;;  %v2950_v46 = vsub.f32 %v10635_v0, %v15365_v38  ;;  %v2945_v49 = vand.u32 4294901760, %v2944_v3  ;;  %v2956_v35 = vsub.f32 %v10647_v55, %v2955_v63  ;;  %v10704_v38 = vand.u32 4294901760, %v349_v20 }
 0x173   :  { %2787 = vmatpush.msra.mxu0 %v15366_v16  ;;  %2871 = vmatpush.msra.mxu2 %v10585_v17  ;;  %v2973_v3 = vand.u32 4294901760, %v10686_v59  ;;  %v10715_v40 = vsub.f32 %v355_v25, %v10691_v29 }
 0x174   :  { %2830 = vmatpush.msra.mxu1 %v10357_v36  ;;  %2934 = vmatpush.msra.mxu3 %v2933_v30  ;;  %v2951_v36 = vand.u32 4294901760, %v2950_v46  ;;  %v2962_v30 = vsub.f32 %v10660_v54, %v2961_v6  ;;  %v15369_v46 = vand.u32 4294901760, %v10476_v42  ;;  %v10726_v16 = vsub.f32 %v349_v20, %v10704_v38 }
 0x175   :  { %2791 = vmatpush.msra.mxu0 %v15367_v7  ;;  %2873 = vmatpush.msra.mxu2 %v10598_v12  ;;  %v2974_v25 = vsub.f32 %v10686_v59, %v2973_v3  ;;  %v2985_v42 = vand.u32 4294901760, %v10715_v40 }
 0x176   :  { %2832 = vmatpush.msra.mxu1 %v10368_v21  ;;  %2940 = vmatpush.msra.mxu3 %v2939_v52  ;;  %v2957_v21 = vand.u32 4294901760, %v2956_v35  ;;  %v2968_v52 = vsub.f32 %v10673_v9, %v2967_v34  ;;  %v15371_v35 = vand.u32 4294901760, %v10498_v44  ;;  %v15373_v44 = vand.u32 4294901760, %v10533_v24 }
 0x177   :  { %2795 = vmatpush.msra.mxu0 %v15368_v37  ;;  %2875 = vmatpush.msra.mxu2 %v10612_v47  ;;  %v2975_v7 = vand.u32 4294901760, %v2974_v25  ;;  %v15375_v24 = vand.u32 4294901760, %v10526_v50  ;;  %v15377_v37 = vand.u32 4294901760, %v10547_v18 }
 0x178   :  { %2834 = vmatpush.msra.mxu1 %v10388_v28  ;;  %2946 = vmatpush.msra.mxu3 %v2945_v49  ;;  %v2963_v28 = vand.u32 4294901760, %v2962_v30  ;;  %v15370_v49 = vand.u32 4294901760, %v10486_v26  ;;  %v2969_v20 = vand.u32 4294901760, %v2968_v52  ;;  %v2991_v26 = vand.u32 4294901760, %v10726_v16  ;;  %v98_v52 = vld [vmem:[#allocation5 + $0x130] sm:$0xff] }
 0x179   :  { %2799 = vmatpush.msra.mxu0 %v15369_v46  ;;  %2877 = vmatpush.msra.mxu2 %v10625_v23 }
 0x17a   :  { %2836 = vmatpush.msra.mxu1 %v10401_v8  ;;  %2952 = vmatpush.msra.mxu3 %v2951_v36  ;;  %v2980_v8 = vsub.f32 %v10702_v56, %v2979_v60  ;;  %v15372_v36 = vand.u32 4294901760, %v10514_v58  ;;  %v2992_v58 = vsub.f32 %v10726_v16, %v2991_v26 }
 0x17b   :  { %2803 = vmatpush.msra.mxu0 %v15370_v49  ;;  %2879 = vmatpush.msra.mxu2 %v10637_v31  ;;  %v92_v49 = vld [vmem:[#allocation5 + $0x100] sm:$0xff] }
 0x17c   :  { %2838 = vmatpush.msra.mxu1 %v10412_v1  ;;  %2958 = vmatpush.msra.mxu3 %v2957_v21  ;;  %v2986_v1 = vsub.f32 %v10715_v40, %v2985_v42 }
 0x17d   :  { %2807 = vmatpush.msra.mxu0 %v15371_v35  ;;  %2881 = vmatpush.msra.mxu2 %v10649_v10 }
 0x17e   :  { %2840 = vmatpush.msra.mxu1 %v10425_v51  ;;  %2964 = vmatpush.msra.mxu3 %v2963_v28  ;;  %v2981_v51 = vand.u32 4294901760, %v2980_v8  ;;  %v2987_v30 = vand.u32 4294901760, %v2986_v1 }
 0x17f   :  { %2811 = vmatpush.msra.mxu0 %v15372_v36  ;;  %2883 = vmatpush.msra.mxu2 %v10662_v4 }
 0x180   :  { %2842 = vmatpush.msra.mxu1 %v10436_v19  ;;  %2970 = vmatpush.msra.mxu3 %v2969_v20  ;;  %v2993_v19 = vand.u32 4294901760, %v2992_v58 }
 0x181   :  { %2815 = vmatpush.msra.mxu0 %v15373_v44  ;;  %2885 = vmatpush.msra.mxu2 %v10678_v61  ;;  %v10931_v44 = vand.u32 4294901760, %v92_v49 }
 0x182   :  { %2844 = vmatpush.msra.mxu1 %v10448_v15  ;;  %2976 = vmatpush.msra.mxu3 %v2975_v7  ;;  %v15374_v15 = vld [vmem:[#allocation27_spill] sm:$0xff] }
 0x183   :  { %2817 = vmatmul.f32.vlgmr.msra.gmra.mxu0 %v15359_v43  ;;  %2887 = vmatpush.msra.mxu2 %v10691_v29 }
 0x184   :  { %3002 = vmatpush.msrb.mxu0 %v10526_v50  ;;  %2846 = vmatpush.msra.mxu1 %v10460_v62  ;;  %v15376_v62 = vld [vmem:[#allocation24_spill] sm:$0xff] }
 0x185   :  { %2982 = vmatpush.msra.mxu3 %v2981_v51  ;;  %2889 = vmatpush.msra.mxu2 %v10704_v38 }
 0x186   :  { %3005 = vmatpush.msrb.mxu0 %v10547_v18  ;;  %2848 = vmatpush.msra.mxu1 %v10472_v45  ;;  %v15378_v45 = vand.u32 4294901760, %v10557_v53 }
 0x187   :  { %2988 = vmatpush.msra.mxu3 %v2987_v30  ;;  %2895 = vmatmul.f32.vlgmr.msra.gmra.mxu2 %v15374_v15  ;;  %v80_v30 = vld [vmem:[#allocation5 + $0xa0] sm:$0xff] }
 0x188   :  { %3008 = vmatpush.msrb.mxu0 %v10557_v53  ;;  %3096 = vmatpush.msrb.mxu2 %v15375_v24  ;;  %v15381_v53 = vand.u32 4294901760, %v10596_v57 }
 0x189   :  { %2850 = vmatpush.msra.mxu1 %v10490_v39  ;;  %2994 = vmatpush.msra.mxu3 %v2993_v19  ;;  %v15379_v39 = vand.u32 4294901760, %v10565_v14 }
 0x18a   :  { %2996 = vmatmul.f32.vlgmr.msra.gmra.mxu3 %v15376_v62  ;;  %3011 = vmatpush.msrb.mxu0 %v10565_v14  ;;  %v15382_v14 = vand.u32 4294901760, %v10610_v5 }
 0x18b   :  { %3100 = vmatpush.msrb.mxu2 %v15377_v37  ;;  %3163 = vmatpush.msrb.mxu3 %v10502_v2 }
 0x18c   :  { %2852 = vmatpush.msra.mxu1 %v10508_v11  ;;  %3014 = vmatpush.msrb.mxu0 %v10577_v33  ;;  %v15380_v11 = vand.u32 4294901760, %v10577_v33 }
 0x18d   :  { %2854 = vmatmul.f32.vlgmr.msra.gmra.mxu1 %v15359_v43  ;;  %3104 = vmatpush.msrb.mxu2 %v15378_v45 }
 0x18e   :  { %3055 = vmatpush.msrb.mxu1 %v10502_v2  ;;  %3165 = vmatpush.msrb.mxu3 %v10521_v13  ;;  %v152_v2 = vld [vmem:[#allocation5 + $0x2e0] sm:$0xff] }
 0x18f   :  { %3017 = vmatpush.msrb.mxu0 %v10596_v57  ;;  %3108 = vmatpush.msrb.mxu2 %v15379_v39  ;;  %v10818_v18 = vand.u32 4294901760, %v152_v2  ;;  %v122_v57 = vld [vmem:[#allocation5 + $0x1f0] sm:$0xff] }
 0x190   :  { %3057 = vmatpush.msrb.mxu1 %v10521_v13  ;;  %3167 = vmatpush.msrb.mxu3 %v10535_v32  ;;  %v15384_v13 = vand.u32 4294901760, %v10635_v0 }
 0x191   :  { %3020 = vmatpush.msrb.mxu0 %v10610_v5  ;;  %3112 = vmatpush.msrb.mxu2 %v15380_v11  ;;  %v74_v11 = vld [vmem:[#allocation5 + $0x70] sm:$0xff] }
 0x192   :  { %3059 = vmatpush.msrb.mxu1 %v10535_v32  ;;  %3169 = vmatpush.msrb.mxu3 %v10540_v27  ;;  %v15383_v32 = vand.u32 4294901760, %v10623_v41 }
 0x193   :  { %3023 = vmatpush.msrb.mxu0 %v10623_v41  ;;  %3116 = vmatpush.msrb.mxu2 %v15381_v53  ;;  %v10949_v53 = vpop.f32.mrf.mxu0 }
 0x194   :  { %3061 = vmatpush.msrb.mxu1 %v10540_v27  ;;  %3171 = vmatpush.msrb.mxu3 %v10552_v22  ;;  %v134_v27 = vld [vmem:[#allocation5 + $0x250] sm:$0xff] }
 0x195   :  { %3026 = vmatpush.msrb.mxu0 %v10635_v0  ;;  %3120 = vmatpush.msrb.mxu2 %v15382_v14  ;;  %v10842_v33 = vand.u32 4294901760, %v134_v27  ;;  %v15385_v0 = vld [vmem:[#allocation25_spill] sm:$0xff] }
 0x196   :  { %3063 = vmatpush.msrb.mxu1 %v10552_v22  ;;  %3173 = vmatpush.msrb.mxu3 %v10569_v48  ;;  %v146_v22 = vld [vmem:[#allocation5 + $0x2b0] sm:$0xff] }
 0x197   :  { %3029 = vmatpush.msrb.mxu0 %v10647_v55  ;;  %3124 = vmatpush.msrb.mxu2 %v15383_v32  ;;  %v10825_v50 = vand.u32 4294901760, %v146_v22  ;;  %v116_v55 = vld [vmem:[#allocation5 + $0x1c0] sm:$0xff] }
 0x198   :  { %3065 = vmatpush.msrb.mxu1 %v10569_v48  ;;  %3175 = vmatpush.msrb.mxu3 %v10585_v17  ;;  %v10835_v48 = vsub.f32 %v152_v2, %v10818_v18  ;;  %v10958_v2 = vsub.f32 %v92_v49, %v10931_v44 }
 0x199   :  { %3032 = vmatpush.msrb.mxu0 %v10660_v54  ;;  %3128 = vmatpush.msrb.mxu2 %v15384_v13  ;;  %v10955_v13 = vand.u32 4294901760, %v80_v30 }
 0x19a   :  { %3067 = vmatpush.msrb.mxu1 %v10585_v17  ;;  %3177 = vmatpush.msrb.mxu3 %v10598_v12  ;;  %v140_v17 = vld [vmem:[#allocation5 + $0x280] sm:$0xff] }
 0x19b   :  { %3035 = vmatpush.msrb.mxu0 %v10673_v9  ;;  %3132 = vmatpush.msrb.mxu2 %v2955_v63  ;;  %v10867_v63 = vsub.f32 %v134_v27, %v10842_v33  ;;  %v110_v9 = vld [vmem:[#allocation5 + $0x190] sm:$0xff]  ;;  %v10984_v49 = vsub.f32 %v80_v30, %v10955_v13 }
 0x19c   :  { %3069 = vmatpush.msrb.mxu1 %v10598_v12  ;;  %3179 = vmatpush.msrb.mxu3 %v10612_v47  ;;  %v10832_v12 = vand.u32 4294901760, %v140_v17 }
 0x19d   :  { %3038 = vmatpush.msrb.mxu0 %v10686_v59  ;;  %3136 = vmatpush.msrb.mxu2 %v2961_v6  ;;  %v10877_v6 = vand.u32 4294901760, %v116_v55 }
 0x19e   :  { %3071 = vmatpush.msrb.mxu1 %v10612_v47  ;;  %3181 = vmatpush.msrb.mxu3 %v10625_v23  ;;  %v128_v47 = vld [vmem:[#allocation5 + $0x220] sm:$0xff]  ;;  %v10856_v41 = vsub.f32 %v140_v17, %v10832_v12 }
 0x19f   :  { %3041 = vmatpush.msrb.mxu0 %v10702_v56  ;;  %3140 = vmatpush.msrb.mxu2 %v2967_v34  ;;  %v10852_v5 = vand.u32 4294901760, %v128_v47  ;;  %v104_v56 = vld [vmem:[#allocation5 + $0x160] sm:$0xff]  ;;  %v10907_v25 = vsub.f32 %v116_v55, %v10877_v6 }
 0x1a0   :  { %3073 = vmatpush.msrb.mxu1 %v10625_v23  ;;  %3183 = vmatpush.msrb.mxu3 %v10637_v31  ;;  %v10845_v23 = vsub.f32 %v146_v22, %v10825_v50  ;;  %v15071_v59 = vand.u32 4294901760, %v10856_v41  ;;  %v10898_v46 = vand.u32 4294901760, %v104_v56  ;;  %v68_v17 = vld [vmem:[#allocation5 + $0x40] sm:$0xff] }
 0x1a1   :  { %3044 = vmatpush.msrb.mxu0 %v10715_v40  ;;  %3144 = vmatpush.msrb.mxu2 %v2973_v3  ;;  %v10881_v34 = vsub.f32 %v128_v47, %v10852_v5  ;;  %v10890_v3 = vand.u32 4294901760, %v110_v9  ;;  %v15070_v40 = vand.u32 4294901760, %v10867_v63  ;;  %v15066_v51 = vand.u32 4294901760, %v10907_v25 }
 0x1a2   :  { %3075 = vmatpush.msrb.mxu1 %v10637_v31  ;;  %3185 = vmatpush.msrb.mxu3 %v10649_v10  ;;  %v15073_v31 = vand.u32 4294901760, %v10835_v48  ;;  %v15072_v54 = vand.u32 4294901760, %v10845_v23  ;;  %v10925_v7 = vsub.f32 %v104_v56, %v10898_v46  ;;  %v62_v56 = vld [vmem:[#allocation5 + $0x10] sm:$0xff] }
 0x1a3   :  { %3047 = vmatpush.msrb.mxu0 %v10726_v16  ;;  %3148 = vmatpush.msrb.mxu2 %v2979_v60  ;;  %v3255_v16 = vsub.f32 %v10856_v41, %v15071_v59  ;;  %v15069_v28 = vand.u32 4294901760, %v10881_v34  ;;  %v3261_v20 = vsub.f32 %v10867_v63, %v15070_v40  ;;  %v10920_v8 = vsub.f32 %v110_v9, %v10890_v3  ;;  %v248_v9 = vld [vmem:[#allocation5 + $0x5e0] sm:$0xff] }
 0x1a4   :  { %3077 = vmatpush.msrb.mxu1 %v10649_v10  ;;  %3187 = vmatpush.msrb.mxu3 %v10662_v4  ;;  %v10863_v10 = vand.u32 4294901760, %v122_v57  ;;  %v15063_v39 = vand.u32 4294901760, %v10925_v7  ;;  %v3279_v32 = vsub.f32 %v10907_v25, %v15066_v51 }
 0x1a5   :  { %3050 = vmatmul.f32.vlgmr.msrb.gmra.mxu0 %v15385_v0  ;;  %3152 = vmatpush.msrb.mxu2 %v2985_v42  ;;  %v3256_v36 = vand.u32 4294901760, %v3255_v16  ;;  %v3267_v1 = vsub.f32 %v10881_v34, %v15069_v28  ;;  %v3262_v19 = vand.u32 4294901760, %v3261_v20  ;;  %v15064_v45 = vand.u32 4294901760, %v10920_v8 }
 0x1a6   :  { %3200 = vmatpush.msra.mxu0 %v10818_v18  ;;  %3079 = vmatpush.msrb.mxu1 %v10662_v4  ;;  %v3243_v4 = vsub.f32 %v10835_v48, %v15073_v31  ;;  %v10894_v21 = vsub.f32 %v122_v57, %v10863_v10  ;;  %v10967_v57 = vand.u32 4294901760, %v74_v11  ;;  %v15065_v16 = vand.u32 4294901760, %v10958_v2 }
 0x1a7   :  { %3189 = vmatpush.msrb.mxu3 %v10678_v61  ;;  %3156 = vmatpush.msrb.mxu2 %v2991_v26  ;;  %v15386_v26 = vld [vmem:[#allocation26_spill] sm:$0xff]  ;;  %v3268_v14 = vand.u32 4294901760, %v3267_v1  ;;  %v3285_v47 = vsub.f32 %v10920_v8, %v15064_v45  ;;  %v10991_v20 = vand.u32 4294901760, %v248_v9  ;;  %v10994_v1 = vand.u32 4294901760, %v62_v56  ;;  %v11019_v45 = vpop.f32.mrf.mxu0 }
 0x1a8   :  { %3202 = vmatpush.msra.mxu0 %v10825_v50  ;;  %3081 = vmatpush.msrb.mxu1 %v10678_v61  ;;  %v3249_v61 = vsub.f32 %v10845_v23, %v15072_v54  ;;  %v3244_v60 = vand.u32 4294901760, %v3243_v4  ;;  %v15067_v35 = vand.u32 4294901760, %v10894_v21  ;;  %v3291_v4 = vsub.f32 %v10925_v7, %v15063_v39  ;;  %v230_v39 = vld [vmem:[#allocation5 + $0x550] sm:$0xff]  ;;  %15391 = vst [vmem:[#allocation32_spill] sm:$0xff] %v11019_v45 }
 0x1a9   :  { %3191 = vmatpush.msrb.mxu3 %v10691_v29  ;;  %3158 = vmatmul.f32.vlgmr.msrb.gmra.mxu2 %v15376_v62  ;;  %15387 = vst [vmem:[#allocation28_spill] sm:$0xff] %v10991_v20  ;;  %v11027_v51 = vsub.f32 %v62_v56, %v10994_v1 }
 0x1aa   :  { %3204 = vmatpush.msra.mxu0 %v10832_v12  ;;  %3343 = vmatpush.msra.mxu2 %v10835_v48  ;;  %v3250_v42 = vand.u32 4294901760, %v3249_v61  ;;  %v3273_v24 = vsub.f32 %v10894_v21, %v15067_v35  ;;  %v10977_v61 = vpop.f32.mrf.mxu1  ;;  %15388 = vst [vmem:[#allocation29_spill] sm:$0xff] %v10994_v1 }
 0x1ab   :  { %3083 = vmatpush.msrb.mxu1 %v10691_v29  ;;  %3193 = vmatpush.msrb.mxu3 %v10704_v38  ;;  %v10911_v29 = vand.u32 4294901760, %v98_v52 }
 0x1ac   :  { %3195 = vmatmul.f32.vlgmr.msrb.gmra.mxu3 %v15376_v62  ;;  %3206 = vmatpush.msra.mxu0 %v10842_v33  ;;  %v3274_v27 = vand.u32 4294901760, %v3273_v24  ;;  %v3292_v24 = vand.u32 4294901760, %v3291_v4 }
 0x1ad   :  { %3346 = vmatpush.msra.mxu2 %v10845_v23  ;;  %3396 = vmatpush.msra.mxu3 %v10818_v18  ;;  %v10937_v58 = vsub.f32 %v98_v52, %v10911_v29  ;;  %v3280_v52 = vand.u32 4294901760, %v3279_v32  ;;  %v11002_v32 = vpop.f32.mrf.mxu2 }
 0x1ae   :  { %3085 = vmatpush.msrb.mxu1 %v10704_v38  ;;  %3208 = vmatpush.msra.mxu0 %v10852_v5  ;;  %v86_v38 = vld [vmem:[#allocation5 + $0xd0] sm:$0xff]  ;;  %15389 = vst [vmem:[#allocation30_spill] sm:$0xff] %v11002_v32 }
 0x1af   :  { %3089 = vmatmul.f32.vlgmr.msrb.gmra.mxu1 %v15386_v26  ;;  %3349 = vmatpush.msra.mxu2 %v10856_v41  ;;  %v10943_v37 = vand.u32 4294901760, %v86_v38  ;;  %v15062_v22 = vand.u32 4294901760, %v10937_v58  ;;  %v11082_v15 = vpop.f32.mrf.mxu0 }
 0x1b0   :  { %3245 = vmatpush.msra.mxu1 %v3244_v60  ;;  %3398 = vmatpush.msra.mxu3 %v10825_v50  ;;  %v10980_v60 = vand.u32 4294901760, %v68_v17  ;;  %15397 = vst [vmem:[#allocation36_spill] sm:$0xff] %v11082_v15  ;;  %v200_v15 = vld [vmem:[#allocation5 + $0x460] sm:$0xff] }
 0x1b1   :  { %3210 = vmatpush.msra.mxu0 %v10863_v10  ;;  %3352 = vmatpush.msra.mxu2 %v10867_v63  ;;  %v10970_v55 = vsub.f32 %v86_v38, %v10943_v37  ;;  %v242_v38 = vld [vmem:[#allocation5 + $0x5b0] sm:$0xff] }
 0x1b2   :  { %3251 = vmatpush.msra.mxu1 %v3250_v42  ;;  %3400 = vmatpush.msra.mxu3 %v10832_v12  ;;  %v3297_v42 = vsub.f32 %v10937_v58, %v15062_v22  ;;  %v11012_v22 = vand.u32 4294901760, %v242_v38  ;;  %v11050_v31 = vpop.f32.mrf.mxu1 }
 0x1b3   :  { %3212 = vmatpush.msra.mxu0 %v10877_v6  ;;  %3355 = vmatpush.msra.mxu2 %v10881_v34  ;;  %v15068_v30 = vand.u32 4294901760, %v10970_v55  ;;  %15393 = vst [vmem:[#allocation34_spill] sm:$0xff] %v11050_v31 }
 0x1b4   :  { %3257 = vmatpush.msra.mxu1 %v3256_v36  ;;  %3402 = vmatpush.msra.mxu3 %v10842_v33  ;;  %v3286_v36 = vand.u32 4294901760, %v3285_v47  ;;  %v15074_v47 = vand.u32 4294901760, %v10984_v49  ;;  %15390 = vst [vmem:[#allocation31_spill] sm:$0xff] %v11012_v22  ;;  %v3298_v4 = vand.u32 4294901760, %v3297_v42  ;;  %v224_v42 = vld [vmem:[#allocation5 + $0x520] sm:$0xff]  ;;  %v11043_v40 = vsub.f32 %v242_v38, %v11012_v22 }
 0x1b5   :  { %3214 = vmatpush.msra.mxu0 %v10890_v3  ;;  %3358 = vmatpush.msra.mxu2 %v10894_v21  ;;  %v11048_v54 = vand.u32 4294901760, %v224_v42  ;;  %v11080_v62 = vpop.f32.mrf.mxu2 }
 0x1b6   :  { %3263 = vmatpush.msra.mxu1 %v3262_v19  ;;  %3404 = vmatpush.msra.mxu3 %v10852_v5  ;;  %v10998_v19 = vsub.f32 %v74_v11, %v10967_v57  ;;  %v11010_v11 = vsub.f32 %v68_v17, %v10980_v60  ;;  %v3309_v17 = vsub.f32 %v10970_v55, %v15068_v30 }
 0x1b7   :  { %3216 = vmatpush.msra.mxu0 %v10898_v46  ;;  %3361 = vmatpush.msra.mxu2 %v10907_v25  ;;  %v3315_v56 = vsub.f32 %v10984_v49, %v15074_v47  ;;  %15396 = vst [vmem:[#allocation35_spill] sm:$0xff] %v11080_v62  ;;  %v15398_v47 = vand.u32 4294901760, %v11027_v51 }
 0x1b8   :  { %3269 = vmatpush.msra.mxu1 %v3268_v14  ;;  %3406 = vmatpush.msra.mxu3 %v10863_v10  ;;  %v236_v14 = vld [vmem:[#allocation5 + $0x580] sm:$0xff]  ;;  %v15394_v26 = vand.u32 4294901760, %v11010_v11 }
 0x1b9   :  { %3218 = vmatpush.msra.mxu0 %v10911_v29  ;;  %3364 = vmatpush.msra.mxu2 %v10920_v8  ;;  %v11029_v35 = vand.u32 4294901760, %v236_v14  ;;  %v3333_v43 = vsub.f32 %v11027_v51, %v15398_v47 }
 0x1ba   :  { %3275 = vmatpush.msra.mxu1 %v3274_v27  ;;  %3408 = vmatpush.msra.mxu3 %v10877_v6  ;;  %v3303_v27 = vsub.f32 %v10958_v2, %v15065_v16  ;;  %v15075_v16 = vand.u32 4294901760, %v10998_v19 }
 0x1bb   :  { %3220 = vmatpush.msra.mxu0 %v10931_v44  ;;  %3367 = vmatpush.msra.mxu2 %v10925_v7  ;;  %v11058_v28 = vsub.f32 %v236_v14, %v11029_v35 }
 0x1bc   :  { %3281 = vmatpush.msra.mxu1 %v3280_v52  ;;  %3410 = vmatpush.msra.mxu3 %v10890_v3  ;;  %v11017_v52 = vsub.f32 %v248_v9, %v10991_v20  ;;  %v11033_v9 = vand.u32 4294901760, %v230_v39  ;;  %v3304_v30 = vand.u32 4294901760, %v3303_v27  ;;  %v3310_v27 = vand.u32 4294901760, %v3309_v17 }
 0x1bd   :  { %3222 = vmatpush.msra.mxu0 %v10943_v37  ;;  %3370 = vmatpush.msra.mxu2 %v10937_v58  ;;  %v3321_v38 = vsub.f32 %v10998_v19, %v15075_v16  ;;  %v3316_v17 = vand.u32 4294901760, %v3315_v56  ;;  %v3327_v16 = vsub.f32 %v11010_v11, %v15394_v26  ;;  %v206_v56 = vld [vmem:[#allocation5 + $0x490] sm:$0xff] }
 0x1be   :  { %3287 = vmatpush.msra.mxu1 %v3286_v36  ;;  %3412 = vmatpush.msra.mxu3 %v10898_v46  ;;  %v11035_v36 = vpop.f32.mrf.mxu3  ;;  %v11063_v59 = vsub.f32 %v230_v39, %v11033_v9  ;;  %v15395_v39 = vand.u32 4294901760, %v11017_v52  ;;  %v11102_v62 = vand.u32 4294901760, %v206_v56 }
 0x1bf   :  { %3224 = vmatpush.msra.mxu0 %v10955_v13  ;;  %3373 = vmatpush.msra.mxu2 %v10958_v2  ;;  %15392 = vst [vmem:[#allocation33_spill] sm:$0xff] %v11035_v36  ;;  %v3322_v26 = vand.u32 4294901760, %v3321_v38  ;;  %v15400_v38 = vand.u32 4294901760, %v11043_v40 }
 0x1c0   :  { %3293 = vmatpush.msra.mxu1 %v3292_v24  ;;  %3414 = vmatpush.msra.mxu3 %v10911_v29  ;;  %v218_v24 = vld [vmem:[#allocation5 + $0x4f0] sm:$0xff]  ;;  %v3584_v0 = vsub.f32 %v11017_v52, %v15395_v39 }
 0x1c1   :  { %3226 = vmatpush.msra.mxu0 %v10967_v57  ;;  %3376 = vmatpush.msra.mxu2 %v10970_v55  ;;  %v11070_v14 = vand.u32 4294901760, %v218_v24  ;;  %v3590_v47 = vsub.f32 %v11043_v40, %v15400_v38  ;;  %v194_v39 = vld [vmem:[#allocation5 + $0x430] sm:$0xff]  ;;  %v15404_v38 = vand.u32 4294901760, %v11058_v28 }
 0x1c2   :  { %3299 = vmatpush.msra.mxu1 %v3298_v4  ;;  %3416 = vmatpush.msra.mxu3 %v10931_v44  ;;  %v212_v4 = vld [vmem:[#allocation5 + $0x4c0] sm:$0xff] }
 0x1c3   :  { %3228 = vmatpush.msra.mxu0 %v10980_v60  ;;  %3379 = vmatpush.msra.mxu2 %v10984_v49  ;;  %v11089_v45 = vand.u32 4294901760, %v212_v4  ;;  %v11100_v31 = vsub.f32 %v218_v24, %v11070_v14  ;;  %v3334_v24 = vand.u32 4294901760, %v3333_v43  ;;  %v3596_v32 = vsub.f32 %v11058_v28, %v15404_v38 }
 0x1c4   :  { %3305 = vmatpush.msra.mxu1 %v3304_v30  ;;  %3418 = vmatpush.msra.mxu3 %v10943_v37  ;;  %v11078_v30 = vsub.f32 %v224_v42, %v11048_v54  ;;  %v15399_v42 = vand.u32 4294901760, %v10835_v48  ;;  %v15401_v48 = vand.u32 4294901760, %v10845_v23  ;;  %v3591_v43 = vand.u32 4294901760, %v3590_v47  ;;  %v11142_v47 = vpop.f32.mrf.mxu0 }
 0x1c5   :  { %3230 = vmatpush.msra.mxu0 %v10994_v1  ;;  %3382 = vmatpush.msra.mxu2 %v10998_v19  ;;  %v11117_v23 = vsub.f32 %v212_v4, %v11089_v45  ;;  %v11130_v4 = vsub.f32 %v206_v56, %v11102_v62  ;;  %15409 = vst [vmem:[#allocation39_spill] sm:$0xff] %v11142_v47  ;;  %v3597_v56 = vand.u32 4294901760, %v3596_v32  ;;  %v15417_v47 = vand.u32 4294901760, %v10920_v8 }
 0x1c6   :  { %3311 = vmatpush.msra.mxu1 %v3310_v27  ;;  %3420 = vmatpush.msra.mxu3 %v10955_v13  ;;  %v3328_v27 = vand.u32 4294901760, %v3327_v16  ;;  %v11108_v36 = vpop.f32.mrf.mxu3  ;;  %v11110_v16 = vpop.f32.mrf.mxu1 }
 0x1c7   :  { %3437 = vmatpush.msrb.mxu0 %v15399_v42  ;;  %3385 = vmatpush.msra.mxu2 %v11010_v11  ;;  %v3585_v42 = vand.u32 4294901760, %v3584_v0  ;;  %15402 = vst [vmem:[#allocation37_spill] sm:$0xff] %v11108_v36  ;;  %v15405_v0 = vand.u32 4294901760, %v10856_v41  ;;  %v11132_v36 = vand.u32 4294901760, %v194_v39  ;;  %v15407_v41 = vand.u32 4294901760, %v10867_v63 }
 0x1c8   :  { %3317 = vmatpush.msra.mxu1 %v3316_v17  ;;  %3422 = vmatpush.msra.mxu3 %v10967_v57  ;;  %15403 = vst [vmem:[#allocation38_spill] sm:$0xff] %v11110_v16  ;;  %v15406_v17 = vand.u32 4294901760, %v11063_v59  ;;  %v188_v16 = vld [vmem:[#allocation5 + $0x400] sm:$0xff] }
 0x1c9   :  { %3441 = vmatpush.msrb.mxu0 %v15401_v48  ;;  %3388 = vmatpush.msra.mxu2 %v11027_v51  ;;  %v11119_v48 = vand.u32 4294901760, %v200_v15  ;;  %v11148_v63 = vand.u32 4294901760, %v188_v16 }
 0x1ca   :  { %3323 = vmatpush.msra.mxu1 %v3322_v26  ;;  %3424 = vmatpush.msra.mxu3 %v10980_v60  ;;  %v3602_v26 = vsub.f32 %v11063_v59, %v15406_v17 }
 0x1cb   :  { %3445 = vmatpush.msrb.mxu0 %v15405_v0  ;;  %3541 = vmatpush.msrb.mxu2 %v10991_v20  ;;  %v15408_v0 = vand.u32 4294901760, %v11078_v30  ;;  %v11140_v20 = vpop.f32.mrf.mxu2 }
 0x1cc   :  { %3329 = vmatpush.msra.mxu1 %v3328_v27  ;;  %3426 = vmatpush.msra.mxu3 %v10994_v1  ;;  %v182_v27 = vld [vmem:[#allocation5 + $0x3d0] sm:$0xff]  ;;  %v11146_v1 = vsub.f32 %v200_v15, %v11119_v48  ;;  %v11159_v15 = vsub.f32 %v194_v39, %v11132_v36 }
 0x1cd   :  { %3449 = vmatpush.msrb.mxu0 %v15407_v41  ;;  %3543 = vmatpush.msrb.mxu2 %v11012_v22  ;;  %v3608_v17 = vsub.f32 %v11078_v30, %v15408_v0  ;;  %v15410_v41 = vand.u32 4294901760, %v10881_v34  ;;  %v3603_v0 = vand.u32 4294901760, %v3602_v26  ;;  %v176_v22 = vld [vmem:[#allocation5 + $0x3a0] sm:$0xff]  ;;  %v11161_v38 = vand.u32 4294901760, %v182_v27 }
 0x1ce   :  { %3586 = vmatpush.msrb.mxu3 %v3585_v42  ;;  %3335 = vmatpush.msra.mxu1 %v3334_v24  ;;  %v15411_v42 = vand.u32 4294901760, %v11100_v31  ;;  %v15412_v34 = vand.u32 4294901760, %v10894_v21  ;;  %v11166_v26 = vpop.f32.mrf.mxu3  ;;  %v11176_v24 = vsub.f32 %v188_v16, %v11148_v63  ;;  %v11178_v21 = vand.u32 4294901760, %v176_v22 }
 0x1cf   :  { %3453 = vmatpush.msrb.mxu0 %v15410_v41  ;;  %3545 = vmatpush.msrb.mxu2 %v11029_v35  ;;  %v15414_v41 = vand.u32 4294901760, %v11117_v23  ;;  %v11189_v16 = vsub.f32 %v182_v27, %v11161_v38 }
 0x1d0   :  { %3504 = vmatpush.msrb.mxu1 %v10818_v18  ;;  %3592 = vmatpush.msrb.mxu3 %v3591_v43  ;;  %v3614_v32 = vsub.f32 %v11100_v31, %v15411_v42  ;;  %v3609_v18 = vand.u32 4294901760, %v3608_v17  ;;  %v11168_v43 = vpop.f32.mrf.mxu1  ;;  %v15415_v17 = vand.u32 4294901760, %v10907_v25  ;;  %v11206_v8 = vsub.f32 %v176_v22, %v11178_v21 }
 0x1d1   :  { %3457 = vmatpush.msrb.mxu0 %v15412_v34  ;;  %15413 = vst [vmem:[#allocation40_spill] sm:$0xff] %v11168_v43  ;;  %3547 = vmatpush.msrb.mxu2 %v11033_v9  ;;  %v3620_v39 = vsub.f32 %v11117_v23, %v15414_v41  ;;  %v15416_v34 = vand.u32 4294901760, %v11130_v4  ;;  %v164_v43 = vld [vmem:[#allocation5 + $0x340] sm:$0xff]  ;;  %v15421_v22 = vand.u32 4294901760, %v10937_v58 }
 0x1d2   :  { %3506 = vmatpush.msrb.mxu1 %v10825_v50  ;;  %3598 = vmatpush.msrb.mxu3 %v3597_v56  ;;  %v170_v50 = vld [vmem:[#allocation5 + $0x370] sm:$0xff]  ;;  %v3615_v56 = vand.u32 4294901760, %v3614_v32  ;;  %v11211_v42 = vand.u32 4294901760, %v164_v43 }
 0x1d3   :  { %3461 = vmatpush.msrb.mxu0 %v15415_v17  ;;  %3549 = vmatpush.msrb.mxu2 %v11048_v54  ;;  %v3626_v41 = vsub.f32 %v11130_v4, %v15416_v34  ;;  %v11196_v25 = vpop.f32.mrf.mxu2  ;;  %v3621_v32 = vand.u32 4294901760, %v3620_v39  ;;  %v15418_v17 = vand.u32 4294901760, %v11146_v1  ;;  %v15420_v39 = vand.u32 4294901760, %v11159_v15 }
 0x1d4   :  { %3508 = vmatpush.msrb.mxu1 %v10832_v12  ;;  %3604 = vmatpush.msrb.mxu3 %v3603_v0  ;;  %v11194_v12 = vand.u32 4294901760, %v170_v50  ;;  %v11198_v0 = vpop.f32.mrf.mxu0 }
 0x1d5   :  { %3465 = vmatpush.msrb.mxu0 %v15417_v47  ;;  %3551 = vmatpush.msrb.mxu2 %v11070_v14  ;;  %v3632_v27 = vsub.f32 %v11146_v1, %v15418_v17  ;;  %v15419_v47 = vand.u32 4294901760, %v10925_v7  ;;  %v3638_v17 = vsub.f32 %v11159_v15, %v15420_v39  ;;  %v15422_v39 = vand.u32 4294901760, %v11176_v24 }
 0x1d6   :  { %3510 = vmatpush.msrb.mxu1 %v10842_v33  ;;  %3610 = vmatpush.msrb.mxu3 %v3609_v18  ;;  %v158_v33 = vld [vmem:[#allocation5 + $0x310] sm:$0xff]  ;;  %v3627_v18 = vand.u32 4294901760, %v3626_v41  ;;  %v11222_v7 = vsub.f32 %v170_v50, %v11194_v12  ;;  %v11239_v50 = vsub.f32 %v164_v43, %v11211_v42  ;;  %v444_v43 = vld [vmem:[#allocation7] sm:$0x3f] }
 0x1d7   :  { %3469 = vmatpush.msrb.mxu0 %v15419_v47  ;;  %3553 = vmatpush.msrb.mxu2 %v11089_v45  ;;  %v11226_v47 = vpop.f32.mrf.mxu3  ;;  %v3633_v41 = vand.u32 4294901760, %v3632_v27  ;;  %v3644_v58 = vsub.f32 %v11176_v24, %v15422_v39  ;;  %v3639_v34 = vand.u32 4294901760, %v3638_v17  ;;  %v15425_v39 = vand.u32 4294901760, %v10970_v55 }
 0x1d8   :  { %3512 = vmatpush.msrb.mxu1 %v10852_v5  ;;  %3616 = vmatpush.msrb.mxu3 %v3615_v56  ;;  %v11224_v5 = vand.u32 4294901760, %v158_v33  ;;  %v11228_v56 = vpop.f32.mrf.mxu1  ;;  %v15426_v17 = vand.u32 4294901760, %v11206_v8 }
 0x1d9   :  { %3473 = vmatpush.msrb.mxu0 %v15421_v22  ;;  %3555 = vmatpush.msrb.mxu2 %v11102_v62 }
 0x1da   :  { %3514 = vmatpush.msrb.mxu1 %v10863_v10  ;;  %3622 = vmatpush.msrb.mxu3 %v3621_v32  ;;  %v15423_v10 = vand.u32 4294901760, %v10958_v2  ;;  %v15424_v32 = vand.u32 4294901760, %v11189_v16  ;;  %v3656_v55 = vsub.f32 %v11206_v8, %v15426_v17  ;;  %v15428_v2 = vand.u32 4294901760, %v10998_v19 }
 0x1db   :  { %3557 = vmatpush.msrb.mxu2 %v11119_v48 }
 0x1dc   :  { %3477 = vmatpush.msrb.mxu0 %v15423_v10  ;;  %3516 = vmatpush.msrb.mxu1 %v10877_v6  ;;  %v3650_v27 = vsub.f32 %v11189_v16, %v15424_v32  ;;  %v11250_v6 = vsub.f32 %v158_v33, %v11224_v5  ;;  %v11252_v10 = vpop.f32.mrf.mxu2  ;;  %v11254_v22 = vpop.f32.mrf.mxu0  ;;  %v3667_v33 = vand.u32 4294901760, %v11239_v50 }
 0x1dd   :  { %3628 = vmatpush.msrb.mxu3 %v3627_v18  ;;  %3559 = vmatpush.msrb.mxu2 %v11132_v36  ;;  %v3645_v18 = vand.u32 4294901760, %v3644_v58 }
 0x1de   :  { %3481 = vmatpush.msrb.mxu0 %v15425_v39  ;;  %3518 = vmatpush.msrb.mxu1 %v10890_v3  ;;  %v15427_v3 = vand.u32 4294901760, %v10984_v49  ;;  %v3651_v32 = vand.u32 4294901760, %v3650_v27  ;;  %v446_v39 = vperm.slane %v444_v43, 0  ;;  %v3673_v49 = vand.u32 4294901760, %v11250_v6 }
 0x1df   :  { %3634 = vmatpush.msrb.mxu3 %v3633_v41  ;;  %3561 = vmatpush.msrb.mxu2 %v11148_v63  ;;  %v15429_v41 = vand.u32 4294901760, %v11222_v7  ;;  %v11272_v17 = vpop.f32.mrf.mxu3  ;;  %v15430_v27 = vand.u32 4294901760, %v11010_v11 }
 0x1e0   :  { %3485 = vmatpush.msrb.mxu0 %v15427_v3  ;;  %3520 = vmatpush.msrb.mxu1 %v10898_v46  ;;  %v11274_v46 = vpop.f32.mrf.mxu1  ;;  %v510_v19 = vadd.f32 %v10949_v53, %v446_v39  ;;  %v15431_v3 = vand.u32 4294901760, %v11027_v51 }
 0x1e1   :  { %3640 = vmatpush.msrb.mxu3 %v3639_v34  ;;  %v3662_v58 = vsub.f32 %v11222_v7, %v15429_v41  ;;  %3563 = vmatpush.msrb.mxu2 %v11161_v38  ;;  %v3657_v34 = vand.u32 4294901760, %v3656_v55 }
 0x1e2   :  { %3489 = vmatpush.msrb.mxu0 %v15428_v2  ;;  %3522 = vmatpush.msrb.mxu1 %v10911_v29  ;;  %v3668_v29 = vsub.f32 %v11239_v50, %v3667_v33  ;;  %v447_v2 = vperm.slane %v444_v43, 1  ;;  %v611_v51 = vadd.f32 %v10977_v61, %v510_v19  ;;  %v15435_v61 = vld [vmem:[#allocation30_spill] sm:$0xff]  ;;  %v15437_v19 = vand.u32 4294901760, %v11043_v40 }
 0x1e3   :  { %3646 = vmatpush.msrb.mxu3 %v3645_v18  ;;  %3565 = vmatpush.msrb.mxu2 %v11178_v21  ;;  %v3663_v18 = vand.u32 4294901760, %v3662_v58  ;;  %v15434_v58 = vand.u32 4294901760, %v11017_v52 }
 0x1e4   :  { %3493 = vmatpush.msrb.mxu0 %v15430_v27  ;;  %3524 = vmatpush.msrb.mxu1 %v10931_v44  ;;  %v3674_v44 = vsub.f32 %v11250_v6, %v3673_v49  ;;  %v11291_v11 = vpop.f32.mrf.mxu2  ;;  %v1873_v55 = vpop.f32.mrf.mxu0  ;;  %v3669_v53 = vand.u32 4294901760, %v3668_v29  ;;  %v15436_v29 = vld [vmem:[#allocation15_spill] sm:$0xff] }
 0x1e5   :  { %3652 = vmatpush.msrb.mxu3 %v3651_v32  ;;  %3567 = vmatpush.msrb.mxu2 %v11194_v12  ;;  %v15432_v32 = vld [vmem:[#allocation17_spill] sm:$0xff] }
 0x1e6   :  { %3497 = vmatpush.msrb.mxu0 %v15431_v3  ;;  %3526 = vmatpush.msrb.mxu1 %v10943_v37  ;;  %v1874_v37 = vadd.f32 %v1873_v55, %v447_v2  ;;  %v3675_v43 = vand.u32 4294901760, %v3674_v44  ;;  %v15438_v2 = vld [vmem:[#allocation28_spill] sm:$0xff]  ;;  %v15439_v3 = vld [vmem:[#allocation29_spill] sm:$0xff] }
 0x1e7   :  { %3658 = vmatpush.msrb.mxu3 %v3657_v34  ;;  %3236 = vmatmul.f32.vlgmr.msra.gmra.mxu0 %v15432_v32  ;;  %v11300_v39 = vpop.f32.mrf.mxu3  ;;  %v665_v34 = vadd.f32 %v15435_v61, %v611_v51  ;;  %v15441_v55 = vld [vmem:[#allocation13_spill] sm:$0xff]  ;;  %v15443_v51 = vld [vmem:[#allocation31_spill] sm:$0xff]  ;;  %v15447_v61 = vand.u32 4294901760, %v11078_v30 }
 0x1e8   :  { %3528 = vmatpush.msrb.mxu1 %v10955_v13  ;;  %3684 = vmatpush.msra.mxu0 %v11017_v52  ;;  %v1974_v41 = vpop.f32.mrf.mxu1  ;;  %v15433_v13 = vld [vmem:[#allocation14_spill] sm:$0xff]  ;;  %v15440_v52 = vld [vmem:[#allocation33_spill] sm:$0xff] }
 0x1e9   :  { %3569 = vmatpush.msrb.mxu2 %v11211_v42  ;;  %3664 = vmatpush.msrb.mxu3 %v3663_v18  ;;  %v1975_v27 = vadd.f32 %v1974_v41, %v1874_v37  ;;  %v704_v18 = vadd.f32 %v15440_v52, %v665_v34  ;;  %v15445_v37 = vld [vmem:[#allocation32_spill] sm:$0xff]  ;;  %v15449_v34 = vld [vmem:[#allocation34_spill] sm:$0xff]  ;;  %v15453_v52 = vand.u32 4294901760, %v11130_v4 }
 0x1ea   :  { %3530 = vmatpush.msrb.mxu1 %v10967_v57  ;;  %3687 = vmatpush.msra.mxu0 %v11043_v40  ;;  %v15444_v40 = vand.u32 4294901760, %v11063_v59 }
 0x1eb   :  { %3571 = vmatpush.msrb.mxu2 %v11224_v5  ;;  %3670 = vmatpush.msrb.mxu3 %v3669_v53 }
 0x1ec   :  { %3391 = vmatmul.f32.vlgmr.msra.gmra.mxu2 %v15433_v13  ;;  %3690 = vmatpush.msra.mxu0 %v11058_v28  ;;  %v2028_v57 = vpop.f32.mrf.mxu2  ;;  %v398_v13 = vld [vmem:[#allocation5 + $0xa90] sm:$0xff] }
 0x1ed   :  { %3778 = vmatpush.msra.mxu2 %v15434_v58  ;;  %3532 = vmatpush.msrb.mxu1 %v10980_v60  ;;  %v2029_v44 = vadd.f32 %v2028_v57, %v1975_v27  ;;  %v15442_v60 = vand.u32 4294901760, %v11058_v28  ;;  %v15446_v58 = vld [vmem:[#allocation12_spill] sm:$0xff]  ;;  %v2136_v28 = vpop.f32.mrf.mxu0 }
 0x1ee   :  { %3676 = vmatpush.msrb.mxu3 %v3675_v43  ;;  %3693 = vmatpush.msra.mxu0 %v11063_v59  ;;  %v773_v43 = vadd.f32 %v15445_v37, %v704_v18  ;;  %v15448_v59 = vld [vmem:[#allocation16_spill] sm:$0xff]  ;;  %v15455_v18 = vld [vmem:[#allocation37_spill] sm:$0xff] }
 0x1ef   :  { %3430 = vmatmul.f32.vlgmr.msra.gmra.mxu3 %v15436_v29  ;;  %3782 = vmatpush.msra.mxu2 %v15437_v19  ;;  %v2067_v53 = vpop.f32.mrf.mxu3  ;;  %v15450_v19 = vand.u32 4294901760, %v11100_v31  ;;  %v15473_v29 = vld [vmem:[#allocation23_spill] sm:$0xff] }
 0x1f0   :  { %3845 = vmatpush.msra.mxu3 %v15438_v2  ;;  %3534 = vmatpush.msrb.mxu1 %v15439_v3  ;;  %v2068_v41 = vadd.f32 %v2067_v53, %v2029_v44  ;;  %v810_v27 = vadd.f32 %v15449_v34, %v773_v43  ;;  %v15456_v53 = vand.u32 4294901760, %v11159_v15  ;;  %v15458_v43 = vand.u32 4294901760, %v11176_v24 }
 0x1f1   :  { %3696 = vmatpush.msra.mxu0 %v11078_v30  ;;  %3337 = vmatmul.f32.vlgmr.msra.gmra.mxu1 %v15441_v55  ;;  %v15451_v30 = vand.u32 4294901760, %v11117_v23 }
 0x1f2   :  { %3786 = vmatpush.msra.mxu2 %v15442_v60  ;;  %3737 = vmatpush.msra.mxu1 %v15438_v2  ;;  %v2137_v57 = vadd.f32 %v2136_v28, %v2068_v41  ;;  %v15452_v2 = vld [vmem:[#allocation35_spill] sm:$0xff] }
 0x1f3   :  { %3847 = vmatpush.msra.mxu3 %v15443_v51  ;;  %3699 = vmatpush.msra.mxu0 %v11100_v31  ;;  %v851_v3 = vadd.f32 %v15452_v2, %v810_v27 }
 0x1f4   :  { %3790 = vmatpush.msra.mxu2 %v15444_v40  ;;  %3739 = vmatpush.msra.mxu1 %v15443_v51  ;;  %v2214_v31 = vpop.f32.mrf.mxu2  ;;  %v332_v40 = vld [vmem:[#allocation5 + $0x880] sm:$0xff] }
 0x1f5   :  { %3849 = vmatpush.msra.mxu3 %v11029_v35  ;;  %3577 = vmatmul.f32.vlgmr.msrb.gmra.mxu2 %v15446_v58  ;;  %v952_v44 = vadd.f32 %v15455_v18, %v851_v3  ;;  %v2369_v37 = vpop.f32.mrf.mxu0 }
 0x1f6   :  { %3702 = vmatpush.msra.mxu0 %v11117_v23  ;;  %3741 = vmatpush.msra.mxu1 %v11029_v35  ;;  %v2173_v35 = vpop.f32.mrf.mxu1  ;;  %v15454_v23 = vand.u32 4294901760, %v11146_v1 }
 0x1f7   :  { %3794 = vmatpush.msra.mxu2 %v15447_v61  ;;  %3851 = vmatpush.msra.mxu3 %v11033_v9  ;;  %v326_v61 = vld [vmem:[#allocation5 + $0x850] sm:$0xff] }
 0x1f8   :  { %3499 = vmatmul.f32.vlgmr.msrb.gmra.mxu0 %v15441_v55  ;;  %3678 = vmatmul.f32.vlgmr.msrb.gmra.mxu3 %v15448_v59 }
 0x1f9   :  { %3705 = vmatpush.msra.mxu0 %v11130_v4  ;;  %3743 = vmatpush.msra.mxu1 %v11033_v9  ;;  %v2174_v9 = vadd.f32 %v2173_v35, %v2137_v57  ;;  %v2315_v4 = vpop.f32.mrf.mxu3  ;;  %v320_v57 = vld [vmem:[#allocation5 + $0x820] sm:$0xff] }
 0x1fa   :  { %3798 = vmatpush.msra.mxu2 %v15450_v19  ;;  %3853 = vmatpush.msra.mxu3 %v11048_v54  ;;  %v11400_v3 = vand.u32 4294901760, %v320_v57 }
 0x1fb   :  { %3536 = vmatmul.f32.vlgmr.msrb.gmra.mxu1 %v15441_v55  ;;  %3708 = vmatpush.msra.mxu0 %v11146_v1  ;;  %v2215_v60 = vadd.f32 %v2214_v31, %v2174_v9  ;;  %v15457_v1 = vld [vmem:[#allocation36_spill] sm:$0xff] }
 0x1fc   :  { %3745 = vmatpush.msra.mxu1 %v11048_v54  ;;  %3802 = vmatpush.msra.mxu2 %v15451_v30  ;;  %v344_v54 = vld [vmem:[#allocation5 + $0x8e0] sm:$0xff]  ;;  %v1006_v51 = vadd.f32 %v15457_v1, %v952_v44  ;;  %v2477_v9 = vpop.f32.mrf.mxu2 }
 0x1fd   :  { %3855 = vmatpush.msra.mxu3 %v11070_v14  ;;  %3711 = vmatpush.msra.mxu0 %v11159_v15  ;;  %v15459_v15 = vld [vmem:[#allocation38_spill] sm:$0xff]  ;;  %v2316_v28 = vadd.f32 %v2315_v4, %v2215_v60  ;;  %v15464_v4 = vld [vmem:[#allocation39_spill] sm:$0xff]  ;;  %v2555_v1 = vpop.f32.mrf.mxu0 }
 0x1fe   :  { %3747 = vmatpush.msra.mxu1 %v11070_v14  ;;  %3806 = vmatpush.msra.mxu2 %v15453_v52  ;;  %v338_v14 = vld [vmem:[#allocation5 + $0x8b0] sm:$0xff]  ;;  %v1045_v41 = vadd.f32 %v15459_v15, %v1006_v51  ;;  %v2408_v34 = vpop.f32.mrf.mxu1 }
 0x1ff   :  { %3857 = vmatpush.msra.mxu3 %v11089_v45  ;;  %3714 = vmatpush.msra.mxu0 %v11176_v24  ;;  %v11382_v24 = vand.u32 4294901760, %v332_v40  ;;  %v2370_v19 = vadd.f32 %v2369_v37, %v2316_v28  ;;  %v302_v60 = vld [vmem:[#allocation5 + $0x790] sm:$0xff] }
 0x200   :  { %3749 = vmatpush.msra.mxu1 %v11089_v45  ;;  %3810 = vmatpush.msra.mxu2 %v15454_v23  ;;  %v11366_v45 = vand.u32 4294901760, %v344_v54  ;;  %v1114_v30 = vadd.f32 %v11140_v20, %v1045_v41  ;;  %v15463_v20 = vld [vmem:[#allocation18_spill] sm:$0xff] }
 0x201   :  { %3859 = vmatpush.msra.mxu3 %v11102_v62  ;;  %3717 = vmatpush.msra.mxu0 %v11189_v16  ;;  %v2409_v2 = vadd.f32 %v2408_v34, %v2370_v19  ;;  %v11407_v52 = vsub.f32 %v332_v40, %v11382_v24  ;;  %v290_v37 = vld [vmem:[#allocation5 + $0x730] sm:$0xff] }
 0x202   :  { %3751 = vmatpush.msra.mxu1 %v11102_v62  ;;  %3814 = vmatpush.msra.mxu2 %v15456_v53  ;;  %v11374_v62 = vand.u32 4294901760, %v338_v14  ;;  %v11385_v27 = vsub.f32 %v344_v54, %v11366_v45  ;;  %v308_v54 = vld [vmem:[#allocation5 + $0x7c0] sm:$0xff]  ;;  %v1151_v18 = vadd.f32 %v11166_v26, %v1114_v30 }
 0x203   :  { %3861 = vmatpush.msra.mxu3 %v11119_v48  ;;  %3720 = vmatpush.msra.mxu0 %v11206_v8  ;;  %v2478_v44 = vadd.f32 %v2477_v9, %v2409_v2  ;;  %v11432_v26 = vand.u32 4294901760, %v308_v54  ;;  %v296_v53 = vld [vmem:[#allocation5 + $0x760] sm:$0xff] }
 0x204   :  { %3753 = vmatpush.msra.mxu1 %v11119_v48  ;;  %3818 = vmatpush.msra.mxu2 %v15458_v43  ;;  %v15460_v48 = vand.u32 4294901760, %v11189_v16  ;;  %v11392_v16 = vand.u32 4294901760, %v326_v61  ;;  %v11395_v35 = vsub.f32 %v338_v14, %v11374_v62  ;;  %v15092_v31 = vand.u32 4294901760, %v11385_v27  ;;  %v15465_v43 = vld [vmem:[#allocation40_spill] sm:$0xff] }
 0x205   :  { %3863 = vmatpush.msra.mxu3 %v11132_v36  ;;  %3723 = vmatpush.msra.mxu0 %v11222_v7  ;;  %v15088_v14 = vand.u32 4294901760, %v11407_v52  ;;  %v11461_v19 = vsub.f32 %v308_v54, %v11432_v26  ;;  %v284_v30 = vld [vmem:[#allocation5 + $0x700] sm:$0xff] }
 0x206   :  { %3755 = vmatpush.msra.mxu1 %v11132_v36  ;;  %3822 = vmatpush.msra.mxu2 %v15460_v48  ;;  %v15461_v36 = vand.u32 4294901760, %v11206_v8  ;;  %v15462_v8 = vand.u32 4294901760, %v11222_v7  ;;  %v15091_v7 = vand.u32 4294901760, %v11395_v35  ;;  %v11418_v23 = vsub.f32 %v326_v61, %v11392_v16  ;;  %v2656_v61 = vpop.f32.mrf.mxu1 }
 0x207   :  { %3865 = vmatpush.msra.mxu3 %v11148_v63  ;;  %3726 = vmatpush.msra.mxu0 %v11239_v50  ;;  %v2514_v50 = vpop.f32.mrf.mxu3  ;;  %v3937_v48 = vsub.f32 %v11407_v52, %v15088_v14 }
 0x208   :  { %3757 = vmatpush.msra.mxu1 %v11148_v63  ;;  %3826 = vmatpush.msra.mxu2 %v15461_v36  ;;  %v314_v63 = vld [vmem:[#allocation5 + $0x7f0] sm:$0xff]  ;;  %v15086_v51 = vand.u32 4294901760, %v11418_v23  ;;  %v2515_v41 = vadd.f32 %v2514_v50, %v2478_v44  ;;  %v11465_v36 = vand.u32 4294901760, %v290_v37 }
 0x209   :  { %3867 = vmatpush.msra.mxu3 %v11161_v38  ;;  %3729 = vmatpush.msra.mxu0 %v11250_v6  ;;  %v3931_v6 = vsub.f32 %v11395_v35, %v15091_v7  ;;  %v15466_v44 = vld [vmem:[#allocation19_spill] sm:$0xff] }
 0x20a   :  { %3759 = vmatpush.msra.mxu1 %v11161_v38  ;;  %3830 = vmatpush.msra.mxu2 %v15462_v8  ;;  %v11414_v38 = vand.u32 4294901760, %v314_v63  ;;  %v278_v50 = vld [vmem:[#allocation5 + $0x6d0] sm:$0xff] }
 0x20b   :  { %3869 = vmatpush.msra.mxu3 %v11178_v21  ;;  %3732 = vmatmul.f32.vlgmr.msra.gmra.mxu0 %v15463_v20  ;;  %v3932_v2 = vand.u32 4294901760, %v3931_v6  ;;  %v272_v6 = vld [vmem:[#allocation5 + $0x6a0] sm:$0xff] }
 0x20c   :  { %3761 = vmatpush.msra.mxu1 %v11178_v21  ;;  %3882 = vmatpush.msrb.mxu0 %v11366_v45  ;;  %v11424_v21 = vsub.f32 %v320_v57, %v11400_v3  ;;  %v11447_v40 = vsub.f32 %v314_v63, %v11414_v38  ;;  %v11458_v57 = vand.u32 4294901760, %v296_v53  ;;  %v3943_v63 = vsub.f32 %v11418_v23, %v15086_v51 }
 0x20d   :  { %3834 = vmatpush.msra.mxu2 %v3667_v33  ;;  %3871 = vmatpush.msra.mxu3 %v11194_v12  ;;  %v3925_v33 = vsub.f32 %v11385_v27, %v15092_v31  ;;  %v422_v31 = vld [vmem:[#allocation5 + $0xb50] sm:$0xff] }
 0x20e   :  { %3763 = vmatpush.msra.mxu1 %v11194_v12  ;;  %3884 = vmatpush.msrb.mxu0 %v11374_v62  ;;  %v1192_v12 = vadd.f32 %v15464_v4, %v1151_v18  ;;  %v15085_v28 = vand.u32 4294901760, %v11424_v21  ;;  %v15083_v9 = vand.u32 4294901760, %v11447_v40  ;;  %v3938_v4 = vand.u32 4294901760, %v3937_v48  ;;  %v266_v48 = vld [vmem:[#allocation5 + $0x670] sm:$0xff]  ;;  %v2855_v51 = vpop.f32.mrf.mxu1 }
 0x20f   :  { %3838 = vmatpush.msra.mxu2 %v3673_v49  ;;  %3873 = vmatpush.msra.mxu3 %v11211_v42  ;;  %v11443_v49 = vand.u32 4294901760, %v302_v60  ;;  %v3926_v34 = vand.u32 4294901760, %v3925_v33  ;;  %v2710_v33 = vpop.f32.mrf.mxu2 }
 0x210   :  { %3840 = vmatmul.f32.vlgmr.msra.gmra.mxu2 %v15448_v59  ;;  %3886 = vmatpush.msrb.mxu0 %v11382_v24  ;;  %v1293_v15 = vadd.f32 %v15465_v43, %v1192_v12  ;;  %v11483_v12 = vand.u32 4294901760, %v284_v30  ;;  %v3944_v43 = vand.u32 4294901760, %v3943_v63  ;;  %v11508_v63 = vand.u32 4294901760, %v272_v6 }
 0x211   :  { %4025 = vmatpush.msrb.mxu2 %v11385_v27  ;;  %3765 = vmatpush.msra.mxu1 %v11211_v42  ;;  %v2556_v42 = vadd.f32 %v2555_v1, %v2515_v41  ;;  %v11474_v8 = vsub.f32 %v302_v60, %v11443_v49  ;;  %v15084_v60 = vand.u32 4294901760, %v11461_v19  ;;  %v11492_v1 = vsub.f32 %v290_v37, %v11465_v36 }
 0x212   :  { %3875 = vmatpush.msra.mxu3 %v11224_v5  ;;  %3888 = vmatpush.msrb.mxu0 %v11392_v16  ;;  %v1347_v54 = vadd.f32 %v11196_v25, %v1293_v15  ;;  %v11487_v25 = vsub.f32 %v296_v53, %v11458_v57  ;;  %v3955_v15 = vsub.f32 %v11447_v40, %v15083_v9  ;;  %v11498_v41 = vand.u32 4294901760, %v278_v50 }
 0x213   :  { %3877 = vmatmul.f32.vlgmr.msra.gmra.mxu3 %v15448_v59  ;;  %4028 = vmatpush.msrb.mxu2 %v11395_v35  ;;  %v2657_v18 = vadd.f32 %v2656_v61, %v2556_v42  ;;  %v15087_v53 = vand.u32 4294901760, %v11474_v8  ;;  %v2749_v42 = vpop.f32.mrf.mxu3  ;;  %15467 = vst [vmem:[#allocation30_spill] sm:$0xff] %v11508_v63  ;;  %v11536_v14 = vsub.f32 %v272_v6, %v11508_v63 }
 0x214   :  { %4078 = vmatpush.msrb.mxu3 %v11366_v45  ;;  %3767 = vmatpush.msra.mxu1 %v11224_v5  ;;  %v3949_v5 = vsub.f32 %v11424_v21, %v15085_v28  ;;  %v1386_v61 = vadd.f32 %v11226_v47, %v1347_v54  ;;  %v15089_v9 = vand.u32 4294901760, %v11487_v25  ;;  %v11512_v47 = vsub.f32 %v284_v30, %v11483_v12 }
 0x215   :  { %3890 = vmatpush.msrb.mxu0 %v11400_v3  ;;  %3771 = vmatmul.f32.vlgmr.msra.gmra.mxu1 %v15466_v44  ;;  %v11525_v30 = vsub.f32 %v278_v50, %v11498_v41 }
 0x216   :  { %4031 = vmatpush.msrb.mxu2 %v11407_v52  ;;  %3927 = vmatpush.msrb.mxu1 %v3926_v34  ;;  %v2711_v34 = vadd.f32 %v2710_v33, %v2657_v18  ;;  %v3950_v37 = vand.u32 4294901760, %v3949_v5  ;;  %v1455_v54 = vadd.f32 %v11198_v0, %v1386_v61  ;;  %v15090_v18 = vand.u32 4294901760, %v11492_v1  ;;  %v2818_v5 = vpop.f32.mrf.mxu0  ;;  %v260_v0 = vld [vmem:[#allocation5 + $0x640] sm:$0xff] }
 0x217   :  { %4080 = vmatpush.msrb.mxu3 %v11374_v62  ;;  %3892 = vmatpush.msrb.mxu0 %v11414_v38  ;;  %v3956_v33 = vand.u32 4294901760, %v3955_v15  ;;  %v15093_v50 = vand.u32 4294901760, %v11512_v47  ;;  %v2896_v7 = vpop.f32.mrf.mxu2 }
 0x218   :  { %4034 = vmatpush.msrb.mxu2 %v11418_v23  ;;  %3933 = vmatpush.msrb.mxu1 %v3932_v2  ;;  %v3961_v2 = vsub.f32 %v11461_v19, %v15084_v60  ;;  %v11522_v60 = vand.u32 4294901760, %v266_v48  ;;  %v1492_v61 = vadd.f32 %v11228_v56, %v1455_v54  ;;  %v2750_v28 = vadd.f32 %v2749_v42, %v2711_v34  ;;  %v254_v56 = vld [vmem:[#allocation5 + $0x610] sm:$0xff] }
 0x219   :  { %4082 = vmatpush.msrb.mxu3 %v11382_v24  ;;  %3894 = vmatpush.msrb.mxu0 %v11432_v26  ;;  %v11543_v42 = vand.u32 4294901760, %v260_v0  ;;  %v15094_v54 = vand.u32 4294901760, %v11525_v30 }
 0x21a   :  { %4037 = vmatpush.msrb.mxu2 %v11424_v21  ;;  %3939 = vmatpush.msrb.mxu1 %v3938_v4  ;;  %v3967_v4 = vsub.f32 %v11474_v8, %v15087_v53  ;;  %v3962_v15 = vand.u32 4294901760, %v3961_v2  ;;  %v3973_v53 = vsub.f32 %v11487_v25, %v15089_v9  ;;  %v2819_v34 = vadd.f32 %v2818_v5, %v2750_v28 }
 0x21b   :  { %4084 = vmatpush.msrb.mxu3 %v11392_v16  ;;  %3896 = vmatpush.msrb.mxu0 %v11443_v49  ;;  %v11548_v6 = vsub.f32 %v266_v48, %v11522_v60  ;;  %v1533_v5 = vadd.f32 %v11252_v10, %v1492_v61  ;;  %v3985_v48 = vsub.f32 %v11512_v47, %v15093_v50  ;;  %v428_v61 = vld [vmem:[#allocation5 + $0xb80] sm:$0xff]  ;;  %v2997_v44 = vpop.f32.mrf.mxu3 }
 0x21c   :  { %4040 = vmatpush.msrb.mxu2 %v11447_v40  ;;  %3945 = vmatpush.msrb.mxu1 %v3944_v43  ;;  %v440_v43 = vld [vmem:[#allocation5 + $0xbe0] sm:$0xff]  ;;  %v3968_v2 = vand.u32 4294901760, %v3967_v4  ;;  %v2856_v9 = vadd.f32 %v2855_v51, %v2819_v34  ;;  %v3974_v4 = vand.u32 4294901760, %v3973_v53  ;;  %v11565_v51 = vsub.f32 %v260_v0, %v11543_v42 }
 0x21d   :  { %4086 = vmatpush.msrb.mxu3 %v11400_v3  ;;  %3898 = vmatpush.msrb.mxu0 %v11458_v57  ;;  %v11550_v28 = vand.u32 4294901760, %v440_v43  ;;  %v3991_v53 = vsub.f32 %v11525_v30, %v15094_v54  ;;  %v3986_v54 = vand.u32 4294901760, %v3985_v48  ;;  %v11587_v20 = vand.u32 4294901760, %v428_v61 }
 0x21e   :  { %4043 = vmatpush.msrb.mxu2 %v11461_v19  ;;  %3951 = vmatpush.msrb.mxu1 %v3950_v37  ;;  %v3979_v37 = vsub.f32 %v11492_v1, %v15090_v18  ;;  %v11555_v18 = vand.u32 4294901760, %v254_v56  ;;  %v2897_v0 = vadd.f32 %v2896_v7, %v2856_v9  ;;  %v15470_v48 = vand.u32 4294901760, %v11548_v6 }
 0x21f   :  { %4088 = vmatpush.msrb.mxu3 %v11414_v38  ;;  %3900 = vmatpush.msrb.mxu0 %v11465_v36  ;;  %15468 = vst [vmem:[#allocation28_spill] sm:$0xff] %v11550_v28  ;;  %v11573_v34 = vsub.f32 %v440_v43, %v11550_v28  ;;  %v15469_v43 = vand.u32 4294901760, %v11536_v14  ;;  %v11611_v59 = vsub.f32 %v428_v61, %v11587_v20 }
 0x220   :  { %4046 = vmatpush.msrb.mxu2 %v11474_v8  ;;  %3957 = vmatpush.msrb.mxu1 %v3956_v33  ;;  %v434_v33 = vld [vmem:[#allocation5 + $0xbb0] sm:$0xff]  ;;  %v3980_v10 = vand.u32 4294901760, %v3979_v37  ;;  %v1634_v37 = vadd.f32 %v11272_v17, %v1533_v5  ;;  %v416_v17 = vld [vmem:[#allocation5 + $0xb20] sm:$0xff]  ;;  %v3992_v5 = vand.u32 4294901760, %v3991_v53 }
 0x221   :  { %4090 = vmatpush.msrb.mxu3 %v11432_v26  ;;  %3902 = vmatpush.msrb.mxu0 %v11483_v12  ;;  %v11575_v50 = vand.u32 4294901760, %v434_v33  ;;  %v11606_v9 = vand.u32 4294901760, %v416_v17  ;;  %v410_v53 = vld [vmem:[#allocation5 + $0xaf0] sm:$0xff]  ;;  %v15472_v61 = vand.u32 4294901760, %v11573_v34 }
 0x222   :  { %4049 = vmatpush.msrb.mxu2 %v11487_v25  ;;  %3963 = vmatpush.msrb.mxu1 %v3962_v15  ;;  %v3997_v15 = vsub.f32 %v11536_v14, %v15469_v43  ;;  %v1688_v7 = vadd.f32 %v11254_v22, %v1634_v37  ;;  %v4003_v43 = vsub.f32 %v11548_v6, %v15470_v48 }
 0x223   :  { %4092 = vmatpush.msrb.mxu3 %v11443_v49  ;;  %3904 = vmatpush.msrb.mxu0 %v11498_v41  ;;  %v11601_v22 = vsub.f32 %v434_v33, %v11575_v50  ;;  %v2998_v37 = vadd.f32 %v2997_v44, %v2897_v0  ;;  %v15471_v33 = vand.u32 4294901760, %v11565_v51 }
 0x224   :  { %4052 = vmatpush.msrb.mxu2 %v11492_v1  ;;  %3969 = vmatpush.msrb.mxu1 %v3968_v2  ;;  %v11581_v2 = vsub.f32 %v254_v56, %v11555_v18  ;;  %v11593_v56 = vand.u32 4294901760, %v422_v31  ;;  %v1727_v58 = vadd.f32 %v11274_v46, %v1688_v7  ;;  %v3998_v48 = vand.u32 4294901760, %v3997_v15  ;;  %v404_v46 = vld [vmem:[#allocation5 + $0xac0] sm:$0xff] }
 0x225   :  { %4094 = vmatpush.msrb.mxu3 %v11458_v57  ;;  %3906 = vmatpush.msrb.mxu0 %v11508_v63  ;;  %v4009_v0 = vsub.f32 %v11565_v51, %v15471_v33  ;;  %v4266_v15 = vsub.f32 %v11573_v34, %v15472_v61  ;;  %v15475_v61 = vand.u32 4294901760, %v11385_v27  ;;  %v15098_v7 = vand.u32 4294901760, %v11611_v59 }
 0x226   :  { %4055 = vmatpush.msrb.mxu2 %v11512_v47  ;;  %3975 = vmatpush.msrb.mxu1 %v3974_v4  ;;  %v3051_v4 = vpop.f32.mrf.mxu0  ;;  %v11639_v32 = vand.u32 4294901760, %v404_v46  ;;  %v15476_v27 = vand.u32 4294901760, %v11395_v35 }
 0x227   :  { %4096 = vmatpush.msrb.mxu3 %v11465_v36  ;;  %3908 = vmatpush.msrb.mxu0 %v11522_v60  ;;  %v3052_v44 = vadd.f32 %v3051_v4, %v2998_v37  ;;  %v11626_v37 = vand.u32 4294901760, %v410_v53 }
 0x228   :  { %4058 = vmatpush.msrb.mxu2 %v11525_v30  ;;  %3981 = vmatpush.msrb.mxu1 %v3980_v10  ;;  %v11619_v10 = vsub.f32 %v422_v31, %v11593_v56  ;;  %v15474_v31 = vand.u32 4294901760, %v11581_v2 }
 0x229   :  { %4098 = vmatpush.msrb.mxu3 %v11483_v12  ;;  %3910 = vmatpush.msrb.mxu0 %v11543_v42 }
 0x22a   :  { %4061 = vmatpush.msrb.mxu2 %v11536_v14  ;;  %3987 = vmatpush.msrb.mxu1 %v3986_v54  ;;  %v4004_v54 = vand.u32 4294901760, %v4003_v43  ;;  %v11634_v43 = vsub.f32 %v416_v17, %v11606_v9 }
 0x22b   :  { %4100 = vmatpush.msrb.mxu3 %v11498_v41  ;;  %3912 = vmatpush.msrb.mxu0 %v11555_v18 }
 0x22c   :  { %4064 = vmatpush.msrb.mxu2 %v11548_v6  ;;  %3993 = vmatpush.msrb.mxu1 %v3992_v5  ;;  %v3090_v55 = vpop.f32.mrf.mxu1  ;;  %v3159_v4 = vpop.f32.mrf.mxu2  ;;  %v4015_v5 = vsub.f32 %v11581_v2, %v15474_v31  ;;  %v4010_v31 = vand.u32 4294901760, %v4009_v0  ;;  %v15478_v0 = vld [vmem:[#allocation21_spill] sm:$0xff] }
 0x22d   :  { %4102 = vmatpush.msrb.mxu3 %v11508_v63  ;;  %3918 = vmatmul.f32.vlgmr.msrb.gmra.mxu0 %v15473_v29  ;;  %v3091_v33 = vadd.f32 %v3090_v55, %v3052_v44  ;;  %v1796_v29 = vadd.f32 %v11291_v11, %v1727_v58  ;;  %v392_v63 = vld [vmem:[#allocation5 + $0xa60] sm:$0xff]  ;;  %v11651_v11 = vsub.f32 %v410_v53, %v11626_v37  ;;  %v11653_v58 = vand.u32 4294901760, %v398_v13 }
 0x22e   :  { %4067 = vmatpush.msrb.mxu2 %v11565_v51  ;;  %4119 = vmatpush.msra.mxu0 %v15475_v61  ;;  %v4278_v53 = vsub.f32 %v11611_v59, %v15098_v7  ;;  %v15482_v7 = vand.u32 4294901760, %v11418_v23  ;;  %v15484_v23 = vand.u32 4294901760, %v11424_v21 }
 0x22f   :  { %3999 = vmatpush.msrb.mxu1 %v3998_v48  ;;  %4104 = vmatpush.msrb.mxu3 %v11522_v60  ;;  %v3160_v55 = vadd.f32 %v3159_v4, %v3091_v33  ;;  %v3196_v44 = vpop.f32.mrf.mxu3  ;;  %v15477_v48 = vand.u32 4294901760, %v11601_v22  ;;  %v4267_v4 = vand.u32 4294901760, %v4266_v15  ;;  %v4016_v33 = vand.u32 4294901760, %v4015_v5 }
 0x230   :  { %4070 = vmatpush.msrb.mxu2 %v11581_v2  ;;  %4123 = vmatpush.msra.mxu0 %v15476_v27  ;;  %v386_v27 = vld [vmem:[#allocation5 + $0xa30] sm:$0xff]  ;;  %v1833_v15 = vadd.f32 %v11300_v39, %v1796_v29  ;;  %v15486_v21 = vand.u32 4294901760, %v11651_v11 }
 0x231   :  { %4005 = vmatpush.msrb.mxu1 %v4004_v54  ;;  %v4272_v61 = vsub.f32 %v11601_v22, %v15477_v48  ;;  %4106 = vmatpush.msrb.mxu3 %v11543_v42  ;;  %v3197_v17 = vadd.f32 %v3196_v44, %v3160_v55  ;;  %v15479_v54 = vand.u32 4294901760, %v11407_v52  ;;  %v11665_v48 = vsub.f32 %v404_v46, %v11639_v32  ;;  %v380_v44 = vld [vmem:[#allocation5 + $0xa00] sm:$0xff] }
 0x232   :  { %4073 = vmatmul.f32.vlgmr.msrb.gmra.mxu2 %v15478_v0  ;;  %v11667_v0 = vand.u32 4294901760, %v392_v63  ;;  %v15480_v52 = vand.u32 4294901760, %v11619_v10  ;;  %v11681_v39 = vand.u32 4294901760, %v386_v27  ;;  %v11694_v35 = vand.u32 4294901760, %v380_v44 }
 0x233   :  { %4127 = vmatpush.msra.mxu0 %v15479_v54  ;;  %4223 = vmatpush.msra.mxu2 %v11550_v28  ;;  %v8661_v55 = vrot.slane %v3197_v17, 4  ;;  %v15481_v54 = vld [vmem:[#allocation22_spill] sm:$0xff]  ;;  %v4273_v46 = vand.u32 4294901760, %v4272_v61  ;;  %v11679_v28 = vsub.f32 %v398_v13, %v11653_v58  ;;  %v15101_v13 = vand.u32 4294901760, %v11665_v48 }
 0x234   :  { %4011 = vmatpush.msrb.mxu1 %v4010_v31  ;;  %4108 = vmatpush.msrb.mxu3 %v11555_v18  ;;  %v4284_v5 = vsub.f32 %v11619_v10, %v15480_v52  ;;  %v15483_v31 = vand.u32 4294901760, %v11634_v43  ;;  %v374_v52 = vld [vmem:[#allocation5 + $0x9d0] sm:$0xff]  ;;  %v11692_v61 = vsub.f32 %v392_v63, %v11667_v0  ;;  %v11704_v63 = vsub.f32 %v386_v27, %v11681_v39 }
 0x235   :  { %4112 = vmatmul.f32.vlgmr.msrb.gmra.mxu3 %v15481_v54  ;;  %4131 = vmatpush.msra.mxu0 %v15482_v7  ;;  %v8665_v29 = vsel %vm8664_vm0, %v1833_v15, %v8661_v55  ;;  %v4279_v7 = vand.u32 4294901760, %v4278_v53  ;;  %v368_v55 = vld [vmem:[#allocation5 + $0x9a0] sm:$0xff]  ;;  %v4307_v53 = vand.u32 4294901760, %v11679_v28  ;;  %v11717_v27 = vsub.f32 %v380_v44, %v11694_v35  ;;  %v177_v54 = vld [vmem:[#allocation5 + $0x3a8] sm:$0xff] }
 0x236   :  { %4225 = vmatpush.msra.mxu2 %v11575_v50  ;;  %4268 = vmatpush.msra.mxu3 %v4267_v4  ;;  %v4290_v17 = vsub.f32 %v11634_v43, %v15483_v31  ;;  %8671 = vst [vmem:[#allocation8] sm:$0xff] %v8665_v29  ;;  %v15485_v4 = vld [vmem:[#allocation20_spill] sm:$0xff]  ;;  %v4285_v15 = vand.u32 4294901760, %v4284_v5  ;;  %v11706_v29 = vand.u32 4294901760, %v374_v52  ;;  %v15487_v31 = vand.u32 4294901760, %v11447_v40 }
 0x237   :  { %4017 = vmatpush.msrb.mxu1 %v4016_v33  ;;  %4135 = vmatpush.msra.mxu0 %v15484_v23  ;;  %v4296_v33 = vsub.f32 %v11651_v11, %v15486_v21  ;;  %v11719_v23 = vand.u32 4294901760, %v368_v55  ;;  %v362_v21 = vld [vmem:[#allocation5 + $0x970] sm:$0xff]  ;;  %v15488_v40 = vand.u32 4294901760, %v11461_v19 }
 0x238   :  { %4019 = vmatmul.f32.vlgmr.msrb.gmra.mxu1 %v15485_v4  ;;  %4227 = vmatpush.msra.mxu2 %v11587_v20  ;;  %v4291_v5 = vand.u32 4294901760, %v4290_v17  ;;  %v4308_v17 = vsub.f32 %v11679_v28, %v4307_v53  ;;  %v11730_v44 = vsub.f32 %v374_v52, %v11706_v29  ;;  %v11735_v19 = vand.u32 4294901760, %v362_v21 }
 0x239   :  { %4186 = vmatpush.msra.mxu1 %v11366_v45  ;;  %4274 = vmatpush.msra.mxu3 %v4273_v46  ;;  %v4302_v45 = vsub.f32 %v11665_v48, %v15101_v13  ;;  %v4313_v46 = vand.u32 4294901760, %v11692_v61  ;;  %v15489_v13 = vand.u32 4294901760, %v11474_v8  ;;  %v11743_v52 = vsub.f32 %v368_v55, %v11719_v23 }
 0x23a   :  { %4139 = vmatpush.msra.mxu0 %v15487_v31  ;;  %4229 = vmatpush.msra.mxu2 %v11593_v56  ;;  %v356_v31 = vld [vmem:[#allocation5 + $0x940] sm:$0xff]  ;;  %v15490_v8 = vand.u32 4294901760, %v11487_v25  ;;  %v15491_v55 = vand.u32 4294901760, %v11492_v1  ;;  %v11759_v25 = vsub.f32 %v362_v21, %v11735_v19  ;;  %v15492_v1 = vand.u32 4294901760, %v11512_v47 }
 0x23b   :  { %4188 = vmatpush.msra.mxu1 %v11374_v62  ;;  %4280 = vmatpush.msra.mxu3 %v4279_v7  ;;  %v4297_v62 = vand.u32 4294901760, %v4296_v33  ;;  %v4319_v7 = vand.u32 4294901760, %v11704_v63  ;;  %v4325_v33 = vand.u32 4294901760, %v11717_v27 }
 0x23c   :  { %4143 = vmatpush.msra.mxu0 %v15488_v40  ;;  %4231 = vmatpush.msra.mxu2 %v11606_v9  ;;  %v350_v40 = vld [vmem:[#allocation5 + $0x910] sm:$0xff]  ;;  %v4343_v47 = vand.u32 4294901760, %v11759_v25 }
 0x23d   :  { %4190 = vmatpush.msra.mxu1 %v11382_v24  ;;  %4286 = vmatpush.msra.mxu3 %v4285_v15  ;;  %v4303_v24 = vand.u32 4294901760, %v4302_v45  ;;  %v4314_v15 = vsub.f32 %v11692_v61, %v4313_v46  ;;  %v4331_v45 = vand.u32 4294901760, %v11730_v44 }
 0x23e   :  { %4147 = vmatpush.msra.mxu0 %v15489_v13  ;;  %4233 = vmatpush.msra.mxu2 %v11626_v37  ;;  %v11748_v13 = vand.u32 4294901760, %v356_v31 }
 0x23f   :  { %4192 = vmatpush.msra.mxu1 %v11392_v16  ;;  %4292 = vmatpush.msra.mxu3 %v4291_v5  ;;  %v4309_v16 = vand.u32 4294901760, %v4308_v17  ;;  %v4320_v5 = vsub.f32 %v11704_v63, %v4319_v7  ;;  %v4337_v17 = vand.u32 4294901760, %v11743_v52 }
 0x240   :  { %4151 = vmatpush.msra.mxu0 %v15490_v8  ;;  %4235 = vmatpush.msra.mxu2 %v11639_v32  ;;  %v11761_v8 = vand.u32 4294901760, %v350_v40  ;;  %v11772_v21 = vsub.f32 %v356_v31, %v11748_v13 }
 0x241   :  { %4194 = vmatpush.msra.mxu1 %v11400_v3  ;;  %4298 = vmatpush.msra.mxu3 %v4297_v62  ;;  %v4315_v3 = vand.u32 4294901760, %v4314_v15  ;;  %v4326_v62 = vsub.f32 %v11717_v27, %v4325_v33  ;;  %v15493_v15 = vand.u32 4294901760, %v11525_v30  ;;  %v4338_v31 = vsub.f32 %v11743_v52, %v4337_v17 }
 0x242   :  { %4155 = vmatpush.msra.mxu0 %v15491_v55  ;;  %4237 = vmatpush.msra.mxu2 %v11653_v58  ;;  %v11783_v55 = vsub.f32 %v350_v40, %v11761_v8  ;;  %v4349_v30 = vand.u32 4294901760, %v11772_v21 }
 0x243   :  { %4196 = vmatpush.msra.mxu1 %v11414_v38  ;;  %4304 = vmatpush.msra.mxu3 %v4303_v24  ;;  %v4321_v38 = vand.u32 4294901760, %v4320_v5  ;;  %v4332_v24 = vsub.f32 %v11730_v44, %v4331_v45  ;;  %v15495_v5 = vand.u32 4294901760, %v11548_v6  ;;  %v15497_v6 = vand.u32 4294901760, %v11581_v2 }
 0x244   :  { %4159 = vmatpush.msra.mxu0 %v15492_v1  ;;  %4239 = vmatpush.msra.mxu2 %v11667_v0 }
 0x245   :  { %4198 = vmatpush.msra.mxu1 %v11432_v26  ;;  %4310 = vmatpush.msra.mxu3 %v4309_v16  ;;  %v4327_v26 = vand.u32 4294901760, %v4326_v62  ;;  %v15494_v16 = vand.u32 4294901760, %v11536_v14  ;;  %v4333_v40 = vand.u32 4294901760, %v4332_v24  ;;  %v4355_v14 = vand.u32 4294901760, %v11783_v55  ;;  %v15501_v24 = vld [vmem:[#allocation24_spill] sm:$0xff] }
 0x246   :  { %4163 = vmatpush.msra.mxu0 %v15493_v15  ;;  %4241 = vmatpush.msra.mxu2 %v11681_v39  ;;  %v15496_v62 = vand.u32 4294901760, %v11565_v51  ;;  %v15502_v15 = vand.u32 4294901760, %v11601_v22 }
 0x247   :  { %4200 = vmatpush.msra.mxu1 %v11443_v49  ;;  %4316 = vmatpush.msra.mxu3 %v4315_v3  ;;  %v4344_v49 = vsub.f32 %v11759_v25, %v4343_v47  ;;  %v4339_v3 = vand.u32 4294901760, %v4338_v31  ;;  %v4356_v51 = vsub.f32 %v11783_v55, %v4355_v14 }
 0x248   :  { %4167 = vmatpush.msra.mxu0 %v15494_v16  ;;  %4243 = vmatpush.msra.mxu2 %v11694_v35 }
 0x249   :  { %4202 = vmatpush.msra.mxu1 %v11458_v57  ;;  %4322 = vmatpush.msra.mxu3 %v4321_v38  ;;  %v4350_v57 = vsub.f32 %v11772_v21, %v4349_v30  ;;  %v4357_v2 = vand.u32 4294901760, %v4356_v51  ;;  %v15500_v38 = vand.u32 4294901760, %v11573_v34 }
 0x24a   :  { %4171 = vmatpush.msra.mxu0 %v15495_v5  ;;  %4245 = vmatpush.msra.mxu2 %v11706_v29 }
 0x24b   :  { %4204 = vmatpush.msra.mxu1 %v11465_v36  ;;  %4328 = vmatpush.msra.mxu3 %v4327_v26  ;;  %v4345_v36 = vand.u32 4294901760, %v4344_v49  ;;  %v4351_v1 = vand.u32 4294901760, %v4350_v57  ;;  %v15503_v26 = vld [vmem:[#allocation28_spill] sm:$0xff] }
 0x24c   :  { %4175 = vmatpush.msra.mxu0 %v15496_v62  ;;  %4247 = vmatpush.msra.mxu2 %v11719_v23 }
 0x24d   :  { %4206 = vmatpush.msra.mxu1 %v11483_v12  ;;  %4334 = vmatpush.msra.mxu3 %v4333_v40  ;;  %v15498_v12 = vld [vmem:[#allocation30_spill] sm:$0xff] }
 0x24e   :  { %4179 = vmatpush.msra.mxu0 %v15497_v6  ;;  %4249 = vmatpush.msra.mxu2 %v11735_v19 }
 0x24f   :  { %4208 = vmatpush.msra.mxu1 %v11498_v41  ;;  %4340 = vmatpush.msra.mxu3 %v4339_v3  ;;  %v15499_v41 = vld [vmem:[#allocation27_spill] sm:$0xff]  ;;  %v15510_v3 = vld [vmem:[#allocation26_spill] sm:$0xff] }
 0x250   :  { %4181 = vmatmul.f32.vlgmr.msra.gmra.mxu0 %v15485_v4  ;;  %4251 = vmatpush.msra.mxu2 %v11748_v13 }
 0x251   :  { %4366 = vmatpush.msrb.mxu0 %v11573_v34  ;;  %4210 = vmatpush.msra.mxu1 %v15498_v12  ;;  %v81_v12 = vld [vmem:[#allocation5 + $0xa8] sm:$0xff] }
 0x252   :  { %4346 = vmatpush.msra.mxu3 %v4345_v36  ;;  %4253 = vmatpush.msra.mxu2 %v11761_v8 }
 0x253   :  { %4369 = vmatpush.msrb.mxu0 %v11601_v22  ;;  %4212 = vmatpush.msra.mxu1 %v11522_v60  ;;  %v15504_v60 = vand.u32 4294901760, %v11611_v59 }
 0x254   :  { %4352 = vmatpush.msra.mxu3 %v4351_v1  ;;  %4259 = vmatmul.f32.vlgmr.msra.gmra.mxu2 %v15499_v41 }
 0x255   :  { %4372 = vmatpush.msrb.mxu0 %v11611_v59  ;;  %4460 = vmatpush.msrb.mxu2 %v15500_v38  ;;  %v15507_v59 = vand.u32 4294901760, %v11651_v11 }
 0x256   :  { %4214 = vmatpush.msra.mxu1 %v11543_v42  ;;  %4358 = vmatpush.msra.mxu3 %v4357_v2  ;;  %v15505_v42 = vand.u32 4294901760, %v11619_v10 }
 0x257   :  { %4360 = vmatmul.f32.vlgmr.msra.gmra.mxu3 %v15501_v24  ;;  %4375 = vmatpush.msrb.mxu0 %v11619_v10 }
 0x258   :  { %4464 = vmatpush.msrb.mxu2 %v15502_v15  ;;  %4527 = vmatpush.msrb.mxu3 %v15503_v26 }
 0x259   :  { %4216 = vmatpush.msra.mxu1 %v11555_v18  ;;  %4378 = vmatpush.msrb.mxu0 %v11634_v43  ;;  %v15506_v18 = vand.u32 4294901760, %v11634_v43 }
 0x25a   :  { %4218 = vmatmul.f32.vlgmr.msra.gmra.mxu1 %v15485_v4  ;;  %4468 = vmatpush.msrb.mxu2 %v15504_v60 }
 0x25b   :  { %4419 = vmatpush.msrb.mxu1 %v15503_v26  ;;  %4529 = vmatpush.msrb.mxu3 %v11575_v50 }
 0x25c   :  { %4381 = vmatpush.msrb.mxu0 %v11651_v11  ;;  %4472 = vmatpush.msrb.mxu2 %v15505_v42  ;;  %v75_v42 = vld [vmem:[#allocation5 + $0x78] sm:$0xff] }
 0x25d   :  { %4421 = vmatpush.msrb.mxu1 %v11575_v50  ;;  %4531 = vmatpush.msrb.mxu3 %v11587_v20  ;;  %v15508_v50 = vand.u32 4294901760, %v11665_v48 }
 0x25e   :  { %4384 = vmatpush.msrb.mxu0 %v11665_v48  ;;  %4476 = vmatpush.msrb.mxu2 %v15506_v18 }
 0x25f   :  { %4423 = vmatpush.msrb.mxu1 %v11587_v20  ;;  %4533 = vmatpush.msrb.mxu3 %v11593_v56  ;;  %v153_v20 = vld [vmem:[#allocation5 + $0x2e8] sm:$0xff] }
 0x260   :  { %4387 = vmatpush.msrb.mxu0 %v11679_v28  ;;  %4480 = vmatpush.msrb.mxu2 %v15507_v59  ;;  %v147_v28 = vld [vmem:[#allocation5 + $0x2b8] sm:$0xff]  ;;  %v11875_v34 = vand.u32 4294901760, %v153_v20 }
 0x261   :  { %4425 = vmatpush.msrb.mxu1 %v11593_v56  ;;  %4535 = vmatpush.msrb.mxu3 %v11606_v9  ;;  %v135_v56 = vld [vmem:[#allocation5 + $0x258] sm:$0xff] }
 0x262   :  { %4390 = vmatpush.msrb.mxu0 %v11692_v61  ;;  %4484 = vmatpush.msrb.mxu2 %v15508_v50  ;;  %v11892_v10 = vsub.f32 %v153_v20, %v11875_v34  ;;  %v11899_v43 = vand.u32 4294901760, %v135_v56  ;;  %v117_v61 = vld [vmem:[#allocation5 + $0x1c8] sm:$0xff]  ;;  %v12010_v50 = vand.u32 4294901760, %v81_v12 }
 0x263   :  { %4427 = vmatpush.msrb.mxu1 %v11606_v9  ;;  %4537 = vmatpush.msrb.mxu3 %v11626_v37  ;;  %v11882_v9 = vand.u32 4294901760, %v147_v28 }
 0x264   :  { %4393 = vmatpush.msrb.mxu0 %v11704_v63  ;;  %4488 = vmatpush.msrb.mxu2 %v4307_v53 }
 0x265   :  { %4429 = vmatpush.msrb.mxu1 %v11626_v37  ;;  %4539 = vmatpush.msrb.mxu3 %v11639_v32  ;;  %v129_v37 = vld [vmem:[#allocation5 + $0x228] sm:$0xff]  ;;  %v11902_v11 = vsub.f32 %v147_v28, %v11882_v9 }
 0x266   :  { %4396 = vmatpush.msrb.mxu0 %v11717_v27  ;;  %4492 = vmatpush.msrb.mxu2 %v4313_v46  ;;  %v111_v46 = vld [vmem:[#allocation5 + $0x198] sm:$0xff] }
 0x267   :  { %4431 = vmatpush.msrb.mxu1 %v11639_v32  ;;  %4541 = vmatpush.msrb.mxu3 %v11653_v58  ;;  %v141_v32 = vld [vmem:[#allocation5 + $0x288] sm:$0xff]  ;;  %v15115_v63 = vand.u32 4294901760, %v11902_v11 }
 0x268   :  { %4399 = vmatpush.msrb.mxu0 %v11730_v44  ;;  %4496 = vmatpush.msrb.mxu2 %v4319_v7  ;;  %v11889_v22 = vand.u32 4294901760, %v141_v32 }
 0x269   :  { %4433 = vmatpush.msrb.mxu1 %v11653_v58  ;;  %4543 = vmatpush.msrb.mxu3 %v11667_v0  ;;  %v123_v58 = vld [vmem:[#allocation5 + $0x1f8] sm:$0xff] }
 0x26a   :  { %4402 = vmatpush.msrb.mxu0 %v11743_v52  ;;  %4500 = vmatpush.msrb.mxu2 %v4325_v33  ;;  %v11913_v48 = vsub.f32 %v141_v32, %v11889_v22  ;;  %v11920_v53 = vand.u32 4294901760, %v123_v58  ;;  %v105_v33 = vld [vmem:[#allocation5 + $0x168] sm:$0xff]  ;;  %v11947_v52 = vand.u32 4294901760, %v111_v46 }
 0x26b   :  { %4435 = vmatpush.msrb.mxu1 %v11667_v0  ;;  %4545 = vmatpush.msrb.mxu3 %v11681_v39  ;;  %v11909_v0 = vand.u32 4294901760, %v129_v37  ;;  %v69_v32 = vld [vmem:[#allocation5 + $0x48] sm:$0xff] }
 0x26c   :  { %4405 = vmatpush.msrb.mxu0 %v11759_v25  ;;  %4504 = vmatpush.msrb.mxu2 %v4331_v45  ;;  %v15113_v7 = vand.u32 4294901760, %v11913_v48  ;;  %v11951_v25 = vsub.f32 %v123_v58, %v11920_v53  ;;  %v12022_v58 = vand.u32 4294901760, %v75_v42 }
 0x26d   :  { %4437 = vmatpush.msrb.mxu1 %v11681_v39  ;;  %4547 = vmatpush.msrb.mxu3 %v11694_v35  ;;  %v15509_v39 = vld [vmem:[#allocation25_spill] sm:$0xff]  ;;  %v11938_v44 = vsub.f32 %v129_v37, %v11909_v0 }
 0x26e   :  { %4408 = vmatpush.msrb.mxu0 %v11772_v21  ;;  %4508 = vmatpush.msrb.mxu2 %v4337_v17  ;;  %v99_v17 = vld [vmem:[#allocation5 + $0x138] sm:$0xff]  ;;  %v11955_v21 = vand.u32 4294901760, %v105_v33  ;;  %v15108_v49 = vand.u32 4294901760, %v11951_v25 }
 0x26f   :  { %4439 = vmatpush.msrb.mxu1 %v11694_v35  ;;  %4549 = vmatpush.msrb.mxu3 %v11706_v29  ;;  %v15116_v35 = vand.u32 4294901760, %v11892_v10  ;;  %v15110_v31 = vand.u32 4294901760, %v11938_v44 }
 0x270   :  { %4411 = vmatpush.msrb.mxu0 %v11783_v55  ;;  %4512 = vmatpush.msrb.mxu2 %v4343_v47  ;;  %v4619_v55 = vsub.f32 %v11913_v48, %v15113_v7  ;;  %v11982_v62 = vsub.f32 %v105_v33, %v11955_v21  ;;  %v4637_v38 = vsub.f32 %v11951_v25, %v15108_v49  ;;  %v63_v33 = vld [vmem:[#allocation5 + $0x18] sm:$0xff] }
 0x271   :  { %4441 = vmatpush.msrb.mxu1 %v11706_v29  ;;  %4551 = vmatpush.msrb.mxu3 %v11719_v23  ;;  %v11924_v29 = vsub.f32 %v135_v56, %v11899_v43  ;;  %v4607_v27 = vsub.f32 %v11892_v10, %v15116_v35  ;;  %v4631_v6 = vsub.f32 %v11938_v44, %v15110_v31 }
 0x272   :  { %4414 = vmatmul.f32.vlgmr.msrb.gmra.mxu0 %v15509_v39  ;;  %4516 = vmatpush.msrb.mxu2 %v4349_v30  ;;  %v93_v30 = vld [vmem:[#allocation5 + $0x108] sm:$0xff]  ;;  %v4620_v57 = vand.u32 4294901760, %v4619_v55  ;;  %v15104_v60 = vand.u32 4294901760, %v11982_v62  ;;  %v4638_v56 = vand.u32 4294901760, %v4637_v38  ;;  %v12037_v55 = vsub.f32 %v81_v12, %v12010_v50 }
 0x273   :  { %4564 = vmatpush.msra.mxu0 %v11875_v34  ;;  %4443 = vmatpush.msrb.mxu1 %v11719_v23  ;;  %v11934_v23 = vand.u32 4294901760, %v117_v61  ;;  %v15111_v45 = vand.u32 4294901760, %v11924_v29  ;;  %v4608_v47 = vand.u32 4294901760, %v4607_v27  ;;  %v11988_v36 = vand.u32 4294901760, %v93_v30  ;;  %v237_v38 = vld [vmem:[#allocation5 + $0x588] sm:$0xff] }
 0x274   :  { %4553 = vmatpush.msrb.mxu3 %v11735_v19  ;;  %4520 = vmatpush.msrb.mxu2 %v4355_v14  ;;  %v11977_v14 = vsub.f32 %v111_v46, %v11947_v52  ;;  %v4632_v18 = vand.u32 4294901760, %v4631_v6  ;;  %v249_v46 = vld [vmem:[#allocation5 + $0x5e8] sm:$0xff]  ;;  %v4655_v27 = vsub.f32 %v11982_v62, %v15104_v60  ;;  %v12051_v12 = vsub.f32 %v75_v42, %v12022_v58 }
 0x275   :  { %4566 = vmatpush.msra.mxu0 %v11882_v9  ;;  %4445 = vmatpush.msrb.mxu1 %v11735_v19  ;;  %v4613_v19 = vsub.f32 %v11902_v11, %v15115_v63  ;;  %v11964_v16 = vsub.f32 %v117_v61, %v11934_v23  ;;  %v4625_v5 = vsub.f32 %v11924_v29, %v15111_v45  ;;  %v12078_v60 = vand.u32 4294901760, %v237_v38 }
 0x276   :  { %4555 = vmatpush.msrb.mxu3 %v11748_v13  ;;  %4522 = vmatmul.f32.vlgmr.msrb.gmra.mxu2 %v15501_v24  ;;  %v15105_v26 = vand.u32 4294901760, %v11977_v14  ;;  %v12013_v20 = vsub.f32 %v93_v30, %v11988_v36 }
 0x277   :  { %4568 = vmatpush.msra.mxu0 %v11889_v22  ;;  %4707 = vmatpush.msra.mxu2 %v11892_v10  ;;  %v4614_v40 = vand.u32 4294901760, %v4613_v19  ;;  %v15107_v51 = vand.u32 4294901760, %v11964_v16  ;;  %v4626_v2 = vand.u32 4294901760, %v4625_v5  ;;  %v243_v5 = vld [vmem:[#allocation5 + $0x5b8] sm:$0xff]  ;;  %v12103_v31 = vsub.f32 %v237_v38, %v12078_v60 }
 0x278   :  { %4447 = vmatpush.msrb.mxu1 %v11748_v13  ;;  %4557 = vmatpush.msrb.mxu3 %v11761_v8  ;;  %v11968_v13 = vand.u32 4294901760, %v99_v17  ;;  %v4649_v37 = vsub.f32 %v11977_v14, %v15105_v26  ;;  %v12063_v42 = vand.u32 4294901760, %v243_v5  ;;  %v225_v26 = vld [vmem:[#allocation5 + $0x528] sm:$0xff] }
 0x279   :  { %4559 = vmatmul.f32.vlgmr.msrb.gmra.mxu3 %v15501_v24  ;;  %4570 = vmatpush.msra.mxu0 %v11899_v43  ;;  %v4643_v59 = vsub.f32 %v11964_v16, %v15107_v51  ;;  %v12095_v49 = vand.u32 4294901760, %v225_v26 }
 0x27a   :  { %4710 = vmatpush.msra.mxu2 %v11902_v11  ;;  %4760 = vmatpush.msra.mxu3 %v11875_v34  ;;  %v11994_v1 = vsub.f32 %v99_v17, %v11968_v13  ;;  %v12033_v17 = vand.u32 4294901760, %v69_v32 }
 0x27b   :  { %4449 = vmatpush.msrb.mxu1 %v11761_v8  ;;  %4572 = vmatpush.msra.mxu0 %v11909_v0  ;;  %v87_v8 = vld [vmem:[#allocation5 + $0xd8] sm:$0xff]  ;;  %v4644_v19 = vand.u32 4294901760, %v4643_v59  ;;  %v15109_v59 = vand.u32 4294901760, %v12037_v55 }
 0x27c   :  { %4453 = vmatmul.f32.vlgmr.msrb.gmra.mxu1 %v15510_v3  ;;  %4713 = vmatpush.msra.mxu2 %v11913_v48  ;;  %v12000_v15 = vand.u32 4294901760, %v87_v8  ;;  %v15103_v28 = vand.u32 4294901760, %v11994_v1  ;;  %v15511_v3 = vand.u32 4294901760, %v11892_v10  ;;  %v15513_v10 = vand.u32 4294901760, %v11902_v11 }
 0x27d   :  { %4609 = vmatpush.msra.mxu1 %v4608_v47  ;;  %4762 = vmatpush.msra.mxu3 %v11882_v9  ;;  %v15102_v47 = vand.u32 4294901760, %v12013_v20  ;;  %v15515_v11 = vand.u32 4294901760, %v11913_v48  ;;  %v15517_v48 = vand.u32 4294901760, %v11924_v29 }
 0x27e   :  { %4574 = vmatpush.msra.mxu0 %v11920_v53  ;;  %4716 = vmatpush.msra.mxu2 %v11924_v29  ;;  %v12025_v61 = vsub.f32 %v87_v8, %v12000_v15  ;;  %v4661_v30 = vsub.f32 %v11994_v1, %v15103_v28  ;;  %v4650_v8 = vand.u32 4294901760, %v4649_v37  ;;  %v231_v37 = vld [vmem:[#allocation5 + $0x558] sm:$0xff]  ;;  %v15519_v29 = vand.u32 4294901760, %v11938_v44 }
 0x27f   :  { %4615 = vmatpush.msra.mxu1 %v4614_v40  ;;  %4764 = vmatpush.msra.mxu3 %v11889_v22  ;;  %v12044_v40 = vand.u32 4294901760, %v249_v46 }
 0x280   :  { %4576 = vmatpush.msra.mxu0 %v11934_v23  ;;  %4719 = vmatpush.msra.mxu2 %v11938_v44  ;;  %v15106_v6 = vand.u32 4294901760, %v12025_v61  ;;  %v15521_v44 = vand.u32 4294901760, %v11951_v25 }
 0x281   :  { %4621 = vmatpush.msra.mxu1 %v4620_v57  ;;  %4766 = vmatpush.msra.mxu3 %v11899_v43  ;;  %v12047_v57 = vand.u32 4294901760, %v63_v33 }
 0x282   :  { %4578 = vmatpush.msra.mxu0 %v11947_v52  ;;  %4722 = vmatpush.msra.mxu2 %v11951_v25  ;;  %v15522_v25 = vand.u32 4294901760, %v11964_v16 }
 0x283   :  { %4627 = vmatpush.msra.mxu1 %v4626_v2  ;;  %4768 = vmatpush.msra.mxu3 %v11909_v0  ;;  %v4656_v2 = vand.u32 4294901760, %v4655_v27  ;;  %v4662_v27 = vand.u32 4294901760, %v4661_v30  ;;  %v12076_v28 = vsub.f32 %v63_v33, %v12047_v57 }
 0x284   :  { %4580 = vmatpush.msra.mxu0 %v11955_v21  ;;  %4725 = vmatpush.msra.mxu2 %v11964_v16 }
 0x285   :  { %4633 = vmatpush.msra.mxu1 %v4632_v18  ;;  %4770 = vmatpush.msra.mxu3 %v11920_v53  ;;  %v4667_v18 = vsub.f32 %v12013_v20, %v15102_v47  ;;  %v4673_v47 = vsub.f32 %v12025_v61, %v15106_v6  ;;  %v12090_v6 = vsub.f32 %v243_v5, %v12063_v42  ;;  %v15118_v5 = vand.u32 4294901760, %v12076_v28 }
 0x286   :  { %4582 = vmatpush.msra.mxu0 %v11968_v13  ;;  %4728 = vmatpush.msra.mxu2 %v11977_v14 }
 0x287   :  { %4639 = vmatpush.msra.mxu1 %v4638_v56  ;;  %4772 = vmatpush.msra.mxu3 %v11934_v23  ;;  %v12061_v56 = vsub.f32 %v69_v32, %v12033_v17  ;;  %v15112_v32 = vand.u32 4294901760, %v12051_v12  ;;  %v4668_v30 = vand.u32 4294901760, %v4667_v18  ;;  %v4674_v18 = vand.u32 4294901760, %v4673_v47 }
 0x288   :  { %4584 = vmatpush.msra.mxu0 %v11988_v36  ;;  %4731 = vmatpush.msra.mxu2 %v11982_v62  ;;  %v4697_v63 = vsub.f32 %v12076_v28, %v15118_v5 }
 0x289   :  { %4645 = vmatpush.msra.mxu1 %v4644_v19  ;;  %4774 = vmatpush.msra.mxu3 %v11947_v52  ;;  %v12068_v19 = vsub.f32 %v249_v46, %v12044_v40  ;;  %v12082_v46 = vand.u32 4294901760, %v231_v37  ;;  %v15114_v33 = vand.u32 4294901760, %v12061_v56 }
 0x28a   :  { %4586 = vmatpush.msra.mxu0 %v12000_v15  ;;  %4734 = vmatpush.msra.mxu2 %v11994_v1 }
 0x28b   :  { %4651 = vmatpush.msra.mxu1 %v4650_v8  ;;  %4776 = vmatpush.msra.mxu3 %v11955_v21  ;;  %v4679_v8 = vsub.f32 %v12037_v55, %v15109_v59  ;;  %v15117_v51 = vand.u32 4294901760, %v12068_v19  ;;  %v4685_v59 = vsub.f32 %v12051_v12, %v15112_v32  ;;  %v12108_v45 = vsub.f32 %v231_v37, %v12082_v46 }
 0x28c   :  { %4588 = vmatpush.msra.mxu0 %v12010_v50  ;;  %4737 = vmatpush.msra.mxu2 %v12013_v20  ;;  %v4691_v32 = vsub.f32 %v12061_v56, %v15114_v33 }
 0x28d   :  { %4657 = vmatpush.msra.mxu1 %v4656_v2  ;;  %4778 = vmatpush.msra.mxu3 %v11968_v13  ;;  %v219_v2 = vld [vmem:[#allocation5 + $0x4f8] sm:$0xff]  ;;  %v4680_v47 = vand.u32 4294901760, %v4679_v8  ;;  %v4948_v37 = vsub.f32 %v12068_v19, %v15117_v51  ;;  %v4686_v33 = vand.u32 4294901760, %v4685_v59  ;;  %v201_v51 = vld [vmem:[#allocation5 + $0x468] sm:$0xff] }
 0x28e   :  { %4590 = vmatpush.msra.mxu0 %v12022_v58  ;;  %4740 = vmatpush.msra.mxu2 %v12025_v61  ;;  %v12115_v38 = vand.u32 4294901760, %v219_v2  ;;  %v207_v8 = vld [vmem:[#allocation5 + $0x498] sm:$0xff]  ;;  %v4692_v59 = vand.u32 4294901760, %v4691_v32  ;;  %v4698_v32 = vand.u32 4294901760, %v4697_v63  ;;  %v12156_v41 = vand.u32 4294901760, %v201_v51 }
 0x28f   :  { %4663 = vmatpush.msra.mxu1 %v4662_v27  ;;  %4780 = vmatpush.msra.mxu3 %v11988_v36  ;;  %v213_v27 = vld [vmem:[#allocation5 + $0x4c8] sm:$0xff]  ;;  %v12143_v39 = vand.u32 4294901760, %v207_v8 }
 0x290   :  { %4592 = vmatpush.msra.mxu0 %v12033_v17  ;;  %4743 = vmatpush.msra.mxu2 %v12037_v55  ;;  %v12130_v35 = vand.u32 4294901760, %v213_v27  ;;  %v12141_v7 = vsub.f32 %v219_v2, %v12115_v38 }
 0x291   :  { %4669 = vmatpush.msra.mxu1 %v4668_v30  ;;  %4782 = vmatpush.msra.mxu3 %v12000_v15  ;;  %v12123_v30 = vsub.f32 %v225_v26, %v12095_v49  ;;  %v195_v26 = vld [vmem:[#allocation5 + $0x438] sm:$0xff] }
 0x292   :  { %4594 = vmatpush.msra.mxu0 %v12047_v57  ;;  %4746 = vmatpush.msra.mxu2 %v12051_v12  ;;  %v12154_v24 = vsub.f32 %v213_v27, %v12130_v35  ;;  %v12167_v27 = vsub.f32 %v207_v8, %v12143_v39  ;;  %v12179_v8 = vsub.f32 %v201_v51, %v12156_v41 }
 0x293   :  { %4675 = vmatpush.msra.mxu1 %v4674_v18  ;;  %4784 = vmatpush.msra.mxu3 %v12010_v50  ;;  %v15512_v18 = vand.u32 4294901760, %v12090_v6 }
 0x294   :  { %4801 = vmatpush.msrb.mxu0 %v15511_v3  ;;  %4749 = vmatpush.msra.mxu2 %v12061_v56  ;;  %v4949_v3 = vand.u32 4294901760, %v4948_v37  ;;  %v15516_v37 = vand.u32 4294901760, %v12108_v45 }
 0x295   :  { %4681 = vmatpush.msra.mxu1 %v4680_v47  ;;  %4786 = vmatpush.msra.mxu3 %v12022_v58  ;;  %v4954_v5 = vsub.f32 %v12090_v6, %v15512_v18  ;;  %v15514_v18 = vand.u32 4294901760, %v12103_v31  ;;  %v12169_v47 = vand.u32 4294901760, %v195_v26 }
 0x296   :  { %4805 = vmatpush.msrb.mxu0 %v15513_v10  ;;  %4752 = vmatpush.msra.mxu2 %v12076_v28  ;;  %v189_v10 = vld [vmem:[#allocation5 + $0x408] sm:$0xff] }
 0x297   :  { %4687 = vmatpush.msra.mxu1 %v4686_v33  ;;  %4788 = vmatpush.msra.mxu3 %v12033_v17  ;;  %v4960_v2 = vsub.f32 %v12103_v31, %v15514_v18  ;;  %v4966_v33 = vsub.f32 %v12108_v45, %v15516_v37  ;;  %v4955_v63 = vand.u32 4294901760, %v4954_v5  ;;  %v15121_v18 = vand.u32 4294901760, %v12154_v24 }
 0x298   :  { %4809 = vmatpush.msrb.mxu0 %v15515_v11  ;;  %4905 = vmatpush.msrb.mxu2 %v12044_v40  ;;  %v15518_v11 = vand.u32 4294901760, %v12123_v30  ;;  %v12181_v4 = vand.u32 4294901760, %v189_v10  ;;  %v12192_v51 = vsub.f32 %v195_v26, %v12169_v47 }
 0x299   :  { %4693 = vmatpush.msra.mxu1 %v4692_v59  ;;  %4790 = vmatpush.msra.mxu3 %v12047_v57  ;;  %v183_v59 = vld [vmem:[#allocation5 + $0x3d8] sm:$0xff]  ;;  %v4961_v5 = vand.u32 4294901760, %v4960_v2  ;;  %v4989_v2 = vand.u32 4294901760, %v12167_v27 }
 0x29a   :  { %4813 = vmatpush.msrb.mxu0 %v15517_v48  ;;  %4907 = vmatpush.msrb.mxu2 %v12063_v42  ;;  %v4972_v37 = vsub.f32 %v12123_v30, %v15518_v11  ;;  %v4967_v48 = vand.u32 4294901760, %v4966_v33  ;;  %v12194_v11 = vand.u32 4294901760, %v183_v59  ;;  %v4984_v33 = vsub.f32 %v12154_v24, %v15121_v18 }
 0x29b   :  { %4950 = vmatpush.msrb.mxu3 %v4949_v3  ;;  %4699 = vmatpush.msra.mxu1 %v4698_v32  ;;  %v15520_v3 = vand.u32 4294901760, %v12141_v7  ;;  %v12205_v26 = vsub.f32 %v189_v10, %v12181_v4  ;;  %v15523_v18 = vand.u32 4294901760, %v11977_v14  ;;  %v15524_v14 = vand.u32 4294901760, %v11982_v62 }
 0x29c   :  { %4817 = vmatpush.msrb.mxu0 %v15519_v29  ;;  %4909 = vmatpush.msrb.mxu2 %v12078_v60  ;;  %v12207_v29 = vand.u32 4294901760, %v177_v54  ;;  %v12218_v10 = vsub.f32 %v183_v59, %v12194_v11  ;;  %v4985_v16 = vand.u32 4294901760, %v4984_v33 }
 0x29d   :  { %4868 = vmatpush.msrb.mxu1 %v11875_v34  ;;  %4956 = vmatpush.msrb.mxu3 %v4955_v63  ;;  %v4978_v32 = vsub.f32 %v12141_v7, %v15520_v3  ;;  %v4973_v34 = vand.u32 4294901760, %v4972_v37  ;;  %v4995_v63 = vand.u32 4294901760, %v12179_v8  ;;  %v171_v3 = vld [vmem:[#allocation5 + $0x378] sm:$0xff]  ;;  %v4990_v37 = vsub.f32 %v12167_v27, %v4989_v2 }
 0x29e   :  { %4821 = vmatpush.msrb.mxu0 %v15521_v44  ;;  %4911 = vmatpush.msrb.mxu2 %v12082_v46  ;;  %v165_v44 = vld [vmem:[#allocation5 + $0x348] sm:$0xff]  ;;  %v12231_v59 = vsub.f32 %v177_v54, %v12207_v29  ;;  %v5013_v33 = vand.u32 4294901760, %v12218_v10  ;;  %v15525_v54 = vand.u32 4294901760, %v11994_v1  ;;  %v15526_v1 = vand.u32 4294901760, %v12013_v20 }
 0x29f   :  { %4870 = vmatpush.msrb.mxu1 %v11882_v9  ;;  %4962 = vmatpush.msrb.mxu3 %v4961_v5  ;;  %v4979_v9 = vand.u32 4294901760, %v4978_v32  ;;  %v5001_v5 = vand.u32 4294901760, %v12192_v51  ;;  %v5007_v32 = vand.u32 4294901760, %v12205_v26 }
 0x2a0   :  { %4825 = vmatpush.msrb.mxu0 %v15522_v25  ;;  %4913 = vmatpush.msrb.mxu2 %v12095_v49  ;;  %v159_v25 = vld [vmem:[#allocation5 + $0x318] sm:$0xff] }
 0x2a1   :  { %4872 = vmatpush.msrb.mxu1 %v11889_v22  ;;  %4968 = vmatpush.msrb.mxu3 %v4967_v48  ;;  %v12223_v22 = vand.u32 4294901760, %v171_v3  ;;  %v4996_v48 = vsub.f32 %v12179_v8, %v4995_v63 }
 0x2a2   :  { %4829 = vmatpush.msrb.mxu0 %v15523_v18  ;;  %4915 = vmatpush.msrb.mxu2 %v12115_v38  ;;  %v4991_v18 = vand.u32 4294901760, %v4990_v37  ;;  %v5008_v37 = vsub.f32 %v12205_v26, %v5007_v32 }
 0x2a3   :  { %4874 = vmatpush.msrb.mxu1 %v11899_v43  ;;  %4974 = vmatpush.msrb.mxu3 %v4973_v34  ;;  %v12236_v43 = vand.u32 4294901760, %v165_v44  ;;  %v5002_v34 = vsub.f32 %v12192_v51, %v5001_v5  ;;  %v12247_v62 = vsub.f32 %v171_v3, %v12223_v22 }
 0x2a4   :  { %4833 = vmatpush.msrb.mxu0 %v15524_v14  ;;  %4917 = vmatpush.msrb.mxu2 %v12130_v35  ;;  %v5019_v14 = vand.u32 4294901760, %v12231_v59 }
 0x2a5   :  { %4876 = vmatpush.msrb.mxu1 %v11909_v0  ;;  %4980 = vmatpush.msrb.mxu3 %v4979_v9  ;;  %v12249_v0 = vand.u32 4294901760, %v159_v25  ;;  %v4997_v9 = vand.u32 4294901760, %v4996_v48  ;;  %v5003_v3 = vand.u32 4294901760, %v5002_v34  ;;  %v15527_v48 = vand.u32 4294901760, %v12025_v61 }
 0x2a6   :  { %4837 = vmatpush.msrb.mxu0 %v15525_v54  ;;  %4919 = vmatpush.msrb.mxu2 %v12143_v39  ;;  %v5025_v20 = vand.u32 4294901760, %v12247_v62  ;;  %v15528_v34 = vand.u32 4294901760, %v12037_v55 }
 0x2a7   :  { %4878 = vmatpush.msrb.mxu1 %v11920_v53  ;;  %4986 = vmatpush.msrb.mxu3 %v4985_v16  ;;  %v12260_v53 = vsub.f32 %v165_v44, %v12236_v43  ;;  %v5014_v16 = vsub.f32 %v12218_v10, %v5013_v33  ;;  %v5009_v44 = vand.u32 4294901760, %v5008_v37 }
 0x2a8   :  { %4841 = vmatpush.msrb.mxu0 %v15526_v1  ;;  %4921 = vmatpush.msrb.mxu2 %v12156_v41  ;;  %v5026_v54 = vsub.f32 %v12247_v62, %v5025_v20 }
 0x2a9   :  { %4880 = vmatpush.msrb.mxu1 %v11934_v23  ;;  %4992 = vmatpush.msrb.mxu3 %v4991_v18  ;;  %v12271_v23 = vsub.f32 %v159_v25, %v12249_v0  ;;  %v5020_v18 = vsub.f32 %v12231_v59, %v5019_v14  ;;  %v5015_v61 = vand.u32 4294901760, %v5014_v16  ;;  %v15529_v25 = vand.u32 4294901760, %v12051_v12  ;;  %v15537_v16 = vld [vmem:[#allocation13_spill] sm:$0xff] }
 0x2aa   :  { %4845 = vmatpush.msrb.mxu0 %v15527_v48  ;;  %4923 = vmatpush.msrb.mxu2 %v12169_v47  ;;  %v5027_v37 = vand.u32 4294901760, %v5026_v54 }
 0x2ab   :  { %4882 = vmatpush.msrb.mxu1 %v11947_v52  ;;  %4998 = vmatpush.msrb.mxu3 %v4997_v9  ;;  %v5031_v52 = vand.u32 4294901760, %v12260_v53  ;;  %v5037_v55 = vand.u32 4294901760, %v12271_v23  ;;  %v15530_v9 = vand.u32 4294901760, %v12061_v56 }
 0x2ac   :  { %4849 = vmatpush.msrb.mxu0 %v15528_v34  ;;  %4925 = vmatpush.msrb.mxu2 %v12181_v4 }
 0x2ad   :  { %4884 = vmatpush.msrb.mxu1 %v11955_v21  ;;  %5004 = vmatpush.msrb.mxu3 %v5003_v3  ;;  %v5021_v21 = vand.u32 4294901760, %v5020_v18  ;;  %v5032_v12 = vsub.f32 %v12260_v53, %v5031_v52  ;;  %v5038_v56 = vsub.f32 %v12271_v23, %v5037_v55  ;;  %v15535_v3 = vld [vmem:[#allocation15_spill] sm:$0xff] }
 0x2ae   :  { %4853 = vmatpush.msrb.mxu0 %v15529_v25  ;;  %4927 = vmatpush.msrb.mxu2 %v12194_v11 }
 0x2af   :  { %4886 = vmatpush.msrb.mxu1 %v11968_v13  ;;  %5010 = vmatpush.msrb.mxu3 %v5009_v44  ;;  %v15531_v13 = vand.u32 4294901760, %v12076_v28  ;;  %v5033_v1 = vand.u32 4294901760, %v5032_v12  ;;  %v15533_v28 = vld [vmem:[#allocation14_spill] sm:$0xff] }
 0x2b0   :  { %4857 = vmatpush.msrb.mxu0 %v15530_v9  ;;  %4929 = vmatpush.msrb.mxu2 %v12207_v29  ;;  %v279_v9 = vld [vmem:[#allocation5 + $0x6d8] sm:$0xff] }
 0x2b1   :  { %4888 = vmatpush.msrb.mxu1 %v11988_v36  ;;  %5016 = vmatpush.msrb.mxu3 %v5015_v61  ;;  %v15532_v36 = vld [vmem:[#allocation17_spill] sm:$0xff] }
 0x2b2   :  { %4861 = vmatpush.msrb.mxu0 %v15531_v13  ;;  %4931 = vmatpush.msrb.mxu2 %v12223_v22 }
 0x2b3   :  { %4890 = vmatpush.msrb.mxu1 %v12000_v15  ;;  %5022 = vmatpush.msrb.mxu3 %v5021_v21  ;;  %v5039_v15 = vand.u32 4294901760, %v5038_v56  ;;  %v15546_v21 = vld [vmem:[#allocation19_spill] sm:$0xff] }
 0x2b4   :  { %4600 = vmatmul.f32.vlgmr.msra.gmra.mxu0 %v15532_v36  ;;  %4933 = vmatpush.msrb.mxu2 %v12236_v43  ;;  %v369_v36 = vld [vmem:[#allocation5 + $0x9a8] sm:$0xff] }
 0x2b5   :  { %4892 = vmatpush.msrb.mxu1 %v12010_v50  ;;  %5048 = vmatpush.msra.mxu0 %v12068_v19  ;;  %v15534_v50 = vand.u32 4294901760, %v12068_v19  ;;  %v15538_v19 = vand.u32 4294901760, %v12103_v31 }
 0x2b6   :  { %5028 = vmatpush.msrb.mxu3 %v5027_v37  ;;  %4935 = vmatpush.msrb.mxu2 %v12249_v0 }
 0x2b7   :  { %4894 = vmatpush.msrb.mxu1 %v12022_v58  ;;  %5051 = vmatpush.msra.mxu0 %v12090_v6  ;;  %v15536_v58 = vand.u32 4294901760, %v12090_v6 }
 0x2b8   :  { %5034 = vmatpush.msrb.mxu3 %v5033_v1  ;;  %4755 = vmatmul.f32.vlgmr.msra.gmra.mxu2 %v15533_v28  ;;  %v375_v28 = vld [vmem:[#allocation5 + $0x9d8] sm:$0xff] }
 0x2b9   :  { %5054 = vmatpush.msra.mxu0 %v12103_v31  ;;  %5142 = vmatpush.msra.mxu2 %v15534_v50  ;;  %v15541_v31 = vand.u32 4294901760, %v12123_v30 }
 0x2ba   :  { %4896 = vmatpush.msrb.mxu1 %v12033_v17  ;;  %5040 = vmatpush.msrb.mxu3 %v5039_v15  ;;  %v15539_v17 = vand.u32 4294901760, %v12108_v45  ;;  %v273_v15 = vld [vmem:[#allocation5 + $0x6a8] sm:$0xff] }
 0x2bb   :  { %4794 = vmatmul.f32.vlgmr.msra.gmra.mxu3 %v15535_v3  ;;  %5057 = vmatpush.msra.mxu0 %v12108_v45  ;;  %v15543_v45 = vand.u32 4294901760, %v12141_v7 }
 0x2bc   :  { %5146 = vmatpush.msra.mxu2 %v15536_v58  ;;  %5209 = vmatpush.msra.mxu3 %v12044_v40  ;;  %v12489_v58 = vand.u32 4294901760, %v279_v9 }
 0x2bd   :  { %4898 = vmatpush.msrb.mxu1 %v12047_v57  ;;  %5060 = vmatpush.msra.mxu0 %v12123_v30  ;;  %v15540_v57 = vld [vmem:[#allocation12_spill] sm:$0xff] }
 0x2be   :  { %4701 = vmatmul.f32.vlgmr.msra.gmra.mxu1 %v15537_v16  ;;  %5150 = vmatpush.msra.mxu2 %v15538_v19 }
 0x2bf   :  { %5101 = vmatpush.msra.mxu1 %v12044_v40  ;;  %5211 = vmatpush.msra.mxu3 %v12063_v42  ;;  %v15542_v40 = vld [vmem:[#allocation16_spill] sm:$0xff] }
 0x2c0   :  { %5063 = vmatpush.msra.mxu0 %v12141_v7  ;;  %5154 = vmatpush.msra.mxu2 %v15539_v17  ;;  %v345_v7 = vld [vmem:[#allocation5 + $0x8e8] sm:$0xff] }
 0x2c1   :  { %5103 = vmatpush.msra.mxu1 %v12063_v42  ;;  %5213 = vmatpush.msra.mxu3 %v12078_v60 }
 0x2c2   :  { %4941 = vmatmul.f32.vlgmr.msrb.gmra.mxu2 %v15540_v57  ;;  %5066 = vmatpush.msra.mxu0 %v12154_v24  ;;  %v387_v57 = vld [vmem:[#allocation5 + $0xa38] sm:$0xff] }
 0x2c3   :  { %5105 = vmatpush.msra.mxu1 %v12078_v60  ;;  %5158 = vmatpush.msra.mxu2 %v15541_v31  ;;  %v15544_v60 = vand.u32 4294901760, %v12154_v24  ;;  %v339_v24 = vld [vmem:[#allocation5 + $0x8b8] sm:$0xff]  ;;  %v12666_v3 = vand.u32 4294901760, %v387_v57 }
 0x2c4   :  { %5215 = vmatpush.msra.mxu3 %v12082_v46  ;;  %4863 = vmatmul.f32.vlgmr.msrb.gmra.mxu0 %v15537_v16  ;;  %v12374_v6 = vand.u32 4294901760, %v339_v24 }
 0x2c5   :  { %5042 = vmatmul.f32.vlgmr.msrb.gmra.mxu3 %v15542_v40  ;;  %5069 = vmatpush.msra.mxu0 %v12167_v27 }
 0x2c6   :  { %5107 = vmatpush.msra.mxu1 %v12082_v46  ;;  %5162 = vmatpush.msra.mxu2 %v15543_v45  ;;  %v321_v46 = vld [vmem:[#allocation5 + $0x828] sm:$0xff]  ;;  %v12394_v30 = vsub.f32 %v339_v24, %v12374_v6  ;;  %v267_v45 = vld [vmem:[#allocation5 + $0x678] sm:$0xff] }
 0x2c7   :  { %5217 = vmatpush.msra.mxu3 %v12095_v49  ;;  %4900 = vmatmul.f32.vlgmr.msrb.gmra.mxu1 %v15537_v16  ;;  %v12398_v27 = vand.u32 4294901760, %v321_v46 }
 0x2c8   :  { %5072 = vmatpush.msra.mxu0 %v12179_v8  ;;  %5109 = vmatpush.msra.mxu1 %v12095_v49  ;;  %v12367_v49 = vand.u32 4294901760, %v345_v7 }
 0x2c9   :  { %5166 = vmatpush.msra.mxu2 %v15544_v60  ;;  %5219 = vmatpush.msra.mxu3 %v12115_v38 }
 0x2ca   :  { %5075 = vmatpush.msra.mxu0 %v12192_v51  ;;  %5111 = vmatpush.msra.mxu1 %v12115_v38 }
 0x2cb   :  { %5170 = vmatpush.msra.mxu2 %v4989_v2  ;;  %5221 = vmatpush.msra.mxu3 %v12130_v35  ;;  %v15545_v2 = vld [vmem:[#allocation18_spill] sm:$0xff] }
 0x2cc   :  { %5078 = vmatpush.msra.mxu0 %v12205_v26  ;;  %5113 = vmatpush.msra.mxu1 %v12130_v35  ;;  %v333_v35 = vld [vmem:[#allocation5 + $0x888] sm:$0xff] }
 0x2cd   :  { %5174 = vmatpush.msra.mxu2 %v4995_v63  ;;  %5223 = vmatpush.msra.mxu3 %v12143_v39  ;;  %v12381_v42 = vand.u32 4294901760, %v333_v35  ;;  %v309_v63 = vld [vmem:[#allocation5 + $0x7c8] sm:$0xff] }
 0x2ce   :  { %5081 = vmatpush.msra.mxu0 %v12218_v10  ;;  %5115 = vmatpush.msra.mxu1 %v12143_v39  ;;  %v327_v39 = vld [vmem:[#allocation5 + $0x858] sm:$0xff] }
 0x2cf   :  { %5178 = vmatpush.msra.mxu2 %v5001_v5  ;;  %5225 = vmatpush.msra.mxu3 %v12156_v41  ;;  %v12391_v38 = vand.u32 4294901760, %v327_v39  ;;  %v12405_v8 = vsub.f32 %v333_v35, %v12381_v42  ;;  %v12421_v5 = vsub.f32 %v321_v46, %v12398_v27 }
 0x2d0   :  { %5084 = vmatpush.msra.mxu0 %v12231_v59  ;;  %5117 = vmatpush.msra.mxu1 %v12156_v41  ;;  %v12384_v41 = vsub.f32 %v345_v7, %v12367_v49  ;;  %v12501_v7 = vand.u32 4294901760, %v273_v15 }
 0x2d1   :  { %5182 = vmatpush.msra.mxu2 %v5007_v32  ;;  %5227 = vmatpush.msra.mxu3 %v12169_v47  ;;  %v12416_v26 = vsub.f32 %v327_v39, %v12391_v38  ;;  %v12429_v32 = vand.u32 4294901760, %v309_v63  ;;  %v15133_v59 = vand.u32 4294901760, %v12405_v8  ;;  %v15130_v48 = vand.u32 4294901760, %v12421_v5 }
 0x2d2   :  { %5087 = vmatpush.msra.mxu0 %v12247_v62  ;;  %5119 = vmatpush.msra.mxu1 %v12169_v47  ;;  %v315_v47 = vld [vmem:[#allocation5 + $0x7f8] sm:$0xff] }
 0x2d3   :  { %5186 = vmatpush.msra.mxu2 %v5013_v33  ;;  %5229 = vmatpush.msra.mxu3 %v12181_v4  ;;  %v12409_v51 = vand.u32 4294901760, %v315_v47  ;;  %v297_v33 = vld [vmem:[#allocation5 + $0x768] sm:$0xff]  ;;  %v5301_v44 = vsub.f32 %v12405_v8, %v15133_v59  ;;  %v12456_v34 = vsub.f32 %v309_v63, %v12429_v32 }
 0x2d4   :  { %5090 = vmatpush.msra.mxu0 %v12260_v53  ;;  %5121 = vmatpush.msra.mxu1 %v12181_v4  ;;  %v15136_v4 = vand.u32 4294901760, %v12384_v41  ;;  %v15131_v53 = vand.u32 4294901760, %v12416_v26  ;;  %v12453_v18 = vand.u32 4294901760, %v297_v33 }
 0x2d5   :  { %5190 = vmatpush.msra.mxu2 %v5019_v14  ;;  %5231 = vmatpush.msra.mxu3 %v12194_v11  ;;  %v5302_v12 = vand.u32 4294901760, %v5301_v44  ;;  %v15127_v37 = vand.u32 4294901760, %v12456_v34  ;;  %v441_v44 = vld [vmem:[#allocation5 + $0xbe8] sm:$0xff] }
 0x2d6   :  { %5093 = vmatpush.msra.mxu0 %v12271_v23  ;;  %5123 = vmatpush.msra.mxu1 %v12194_v11  ;;  %v15134_v11 = vand.u32 4294901760, %v12394_v30  ;;  %v5289_v10 = vsub.f32 %v12384_v41, %v15136_v4  ;;  %v5307_v25 = vsub.f32 %v12416_v26, %v15131_v53  ;;  %v12481_v56 = vsub.f32 %v297_v33, %v12453_v18  ;;  %v411_v53 = vld [vmem:[#allocation5 + $0xaf8] sm:$0xff] }
 0x2d7   :  { %5194 = vmatpush.msra.mxu2 %v5025_v20  ;;  %5233 = vmatpush.msra.mxu3 %v12207_v29  ;;  %v291_v20 = vld [vmem:[#allocation5 + $0x738] sm:$0xff]  ;;  %v5325_v60 = vsub.f32 %v12456_v34, %v15127_v37  ;;  %v417_v37 = vld [vmem:[#allocation5 + $0xb28] sm:$0xff] }
 0x2d8   :  { %5096 = vmatmul.f32.vlgmr.msra.gmra.mxu0 %v15545_v2  ;;  %5125 = vmatpush.msra.mxu1 %v12207_v29  ;;  %v303_v29 = vld [vmem:[#allocation5 + $0x798] sm:$0xff]  ;;  %v5295_v62 = vsub.f32 %v12394_v30, %v15134_v11  ;;  %v5290_v23 = vand.u32 4294901760, %v5289_v10  ;;  %v12466_v54 = vand.u32 4294901760, %v291_v20  ;;  %v5308_v50 = vand.u32 4294901760, %v5307_v25  ;;  %v261_v10 = vld [vmem:[#allocation5 + $0x648] sm:$0xff] }
 0x2d9   :  { %5246 = vmatpush.msrb.mxu0 %v12367_v49  ;;  %5198 = vmatpush.msra.mxu2 %v5031_v52  ;;  %v12442_v14 = vand.u32 4294901760, %v303_v29  ;;  %v285_v52 = vld [vmem:[#allocation5 + $0x708] sm:$0xff]  ;;  %v15124_v24 = vand.u32 4294901760, %v12481_v56  ;;  %v5326_v33 = vand.u32 4294901760, %v5325_v60  ;;  %v399_v4 = vld [vmem:[#allocation5 + $0xa98] sm:$0xff] }
 0x2da   :  { %5235 = vmatpush.msra.mxu3 %v12223_v22  ;;  %5127 = vmatpush.msra.mxu1 %v12223_v22  ;;  %v12435_v22 = vsub.f32 %v315_v47, %v12409_v51  ;;  %v5296_v61 = vand.u32 4294901760, %v5295_v62  ;;  %v12477_v13 = vand.u32 4294901760, %v285_v52  ;;  %v12493_v17 = vsub.f32 %v291_v20, %v12466_v54  ;;  %v393_v2 = vld [vmem:[#allocation5 + $0xa68] sm:$0xff] }
 0x2db   :  { %5248 = vmatpush.msrb.mxu0 %v12374_v6  ;;  %5202 = vmatpush.msra.mxu2 %v5037_v55  ;;  %v12469_v55 = vsub.f32 %v303_v29, %v12442_v14  ;;  %v12513_v47 = vand.u32 4294901760, %v267_v45  ;;  %v12517_v29 = vsub.f32 %v279_v9, %v12489_v58  ;;  %v5337_v62 = vsub.f32 %v12481_v56, %v15124_v24  ;;  %v423_v24 = vld [vmem:[#allocation5 + $0xb58] sm:$0xff] }
 0x2dc   :  { %5237 = vmatpush.msra.mxu3 %v12236_v43  ;;  %5204 = vmatmul.f32.vlgmr.msra.gmra.mxu2 %v15542_v40  ;;  %v12505_v35 = vsub.f32 %v285_v52, %v12477_v13  ;;  %v15123_v63 = vand.u32 4294901760, %v12493_v17  ;;  %v12531_v52 = vand.u32 4294901760, %v261_v10  ;;  %v12653_v16 = vand.u32 4294901760, %v393_v2 }
 0x2dd   :  { %5250 = vmatpush.msrb.mxu0 %v12381_v42  ;;  %5389 = vmatpush.msrb.mxu2 %v12384_v41  ;;  %v15126_v19 = vand.u32 4294901760, %v12469_v55  ;;  %v15125_v9 = vand.u32 4294901760, %v12517_v29 }
 0x2de   :  { %5129 = vmatpush.msra.mxu1 %v12236_v43  ;;  %5239 = vmatpush.msra.mxu3 %v12249_v0  ;;  %v15129_v43 = vand.u32 4294901760, %v12435_v22  ;;  %v15122_v20 = vand.u32 4294901760, %v12505_v35 }
 0x2df   :  { %5241 = vmatmul.f32.vlgmr.msra.gmra.mxu3 %v15542_v40  ;;  %5252 = vmatpush.msrb.mxu0 %v12391_v38  ;;  %v5331_v46 = vsub.f32 %v12469_v55, %v15126_v19  ;;  %v15552_v40 = vld [vmem:[#allocation21_spill] sm:$0xff] }
 0x2e0   :  { %5392 = vmatpush.msrb.mxu2 %v12394_v30  ;;  %5442 = vmatpush.msrb.mxu3 %v12367_v49  ;;  %v5319_v1 = vsub.f32 %v12435_v22, %v15129_v43 }
 0x2e1   :  { %5131 = vmatpush.msra.mxu1 %v12249_v0  ;;  %5254 = vmatpush.msrb.mxu0 %v12398_v27  ;;  %v5313_v0 = vsub.f32 %v12421_v5, %v15130_v48  ;;  %v5332_v25 = vand.u32 4294901760, %v5331_v46  ;;  %v429_v46 = vld [vmem:[#allocation5 + $0xb88] sm:$0xff]  ;;  %v12593_v48 = vand.u32 4294901760, %v417_v37 }
 0x2e2   :  { %5135 = vmatmul.f32.vlgmr.msra.gmra.mxu1 %v15546_v21  ;;  %5395 = vmatpush.msrb.mxu2 %v12405_v8  ;;  %v5320_v39 = vand.u32 4294901760, %v5319_v1  ;;  %v12543_v1 = vand.u32 4294901760, %v441_v44  ;;  %v12576_v19 = vand.u32 4294901760, %v429_v46 }
 0x2e3   :  { %5291 = vmatpush.msrb.mxu1 %v5290_v23  ;;  %5444 = vmatpush.msrb.mxu3 %v12374_v6  ;;  %v5314_v31 = vand.u32 4294901760, %v5313_v0  ;;  %v12527_v23 = vsub.f32 %v273_v15, %v12501_v7  ;;  %v5343_v0 = vsub.f32 %v12493_v17, %v15123_v63  ;;  %v435_v15 = vld [vmem:[#allocation5 + $0xbb8] sm:$0xff] }
 0x2e4   :  { %5256 = vmatpush.msrb.mxu0 %v12409_v51  ;;  %5398 = vmatpush.msrb.mxu2 %v12416_v26  ;;  %v12562_v63 = vand.u32 4294901760, %v435_v15 }
 0x2e5   :  { %5297 = vmatpush.msrb.mxu1 %v5296_v61  ;;  %5446 = vmatpush.msrb.mxu3 %v12381_v42  ;;  %v255_v61 = vld [vmem:[#allocation5 + $0x618] sm:$0xff] }
 0x2e6   :  { %5258 = vmatpush.msrb.mxu0 %v12429_v32  ;;  %5401 = vmatpush.msrb.mxu2 %v12421_v5  ;;  %v12549_v60 = vand.u32 4294901760, %v255_v61 }
 0x2e7   :  { %5303 = vmatpush.msrb.mxu1 %v5302_v12  ;;  %5448 = vmatpush.msrb.mxu3 %v12391_v38  ;;  %v12539_v12 = vsub.f32 %v267_v45, %v12513_v47  ;;  %v15128_v45 = vand.u32 4294901760, %v12527_v23 }
 0x2e8   :  { %5260 = vmatpush.msrb.mxu0 %v12442_v14  ;;  %5404 = vmatpush.msrb.mxu2 %v12435_v22 }
 0x2e9   :  { %5309 = vmatpush.msrb.mxu1 %v5308_v50  ;;  %5450 = vmatpush.msrb.mxu3 %v12398_v27  ;;  %v5338_v50 = vand.u32 4294901760, %v5337_v62  ;;  %v5355_v62 = vsub.f32 %v12517_v29, %v15125_v9  ;;  %v12574_v9 = vsub.f32 %v255_v61, %v12549_v60 }
 0x2ea   :  { %5262 = vmatpush.msrb.mxu0 %v12453_v18  ;;  %5407 = vmatpush.msrb.mxu2 %v12456_v34 }
 0x2eb   :  { %5315 = vmatpush.msrb.mxu1 %v5314_v31  ;;  %5452 = vmatpush.msrb.mxu3 %v12409_v51  ;;  %v5349_v31 = vsub.f32 %v12505_v35, %v15122_v20  ;;  %v15132_v20 = vand.u32 4294901760, %v12539_v12 }
 0x2ec   :  { %5264 = vmatpush.msrb.mxu0 %v12466_v54  ;;  %5410 = vmatpush.msrb.mxu2 %v12469_v55 }
 0x2ed   :  { %5321 = vmatpush.msrb.mxu1 %v5320_v39  ;;  %5454 = vmatpush.msrb.mxu3 %v12429_v32  ;;  %v12555_v39 = vsub.f32 %v261_v10, %v12531_v52  ;;  %v12567_v10 = vsub.f32 %v441_v44, %v12543_v1  ;;  %v5367_v61 = vsub.f32 %v12539_v12, %v15132_v20 }
 0x2ee   :  { %5266 = vmatpush.msrb.mxu0 %v12477_v13  ;;  %5413 = vmatpush.msrb.mxu2 %v12481_v56  ;;  %v12598_v20 = vsub.f32 %v429_v46, %v12576_v19  ;;  %v12610_v46 = vand.u32 4294901760, %v411_v53 }
 0x2ef   :  { %5327 = vmatpush.msrb.mxu1 %v5326_v33  ;;  %5456 = vmatpush.msrb.mxu3 %v12442_v14  ;;  %v5344_v33 = vand.u32 4294901760, %v5343_v0  ;;  %v5361_v0 = vsub.f32 %v12527_v23, %v15128_v45  ;;  %v15135_v44 = vand.u32 4294901760, %v12555_v39  ;;  %v12588_v45 = vsub.f32 %v435_v15, %v12562_v63 }
 0x2f0   :  { %5268 = vmatpush.msrb.mxu0 %v12489_v58  ;;  %5416 = vmatpush.msrb.mxu2 %v12493_v17  ;;  %v15137_v43 = vand.u32 4294901760, %v12567_v10 }
 0x2f1   :  { %5333 = vmatpush.msrb.mxu1 %v5332_v25  ;;  %5458 = vmatpush.msrb.mxu3 %v12453_v18  ;;  %v5350_v25 = vand.u32 4294901760, %v5349_v31  ;;  %v5356_v31 = vand.u32 4294901760, %v5355_v62  ;;  %v5373_v15 = vsub.f32 %v12555_v39, %v15135_v44  ;;  %v15547_v62 = vld [vmem:[#allocation23_spill] sm:$0xff] }
 0x2f2   :  { %5270 = vmatpush.msrb.mxu0 %v12501_v7  ;;  %5419 = vmatpush.msrb.mxu2 %v12505_v35  ;;  %v5630_v44 = vsub.f32 %v12567_v10, %v15137_v43 }
 0x2f3   :  { %5339 = vmatpush.msrb.mxu1 %v5338_v50  ;;  %5460 = vmatpush.msrb.mxu3 %v12466_v54  ;;  %v12581_v50 = vand.u32 4294901760, %v423_v24  ;;  %v5374_v43 = vand.u32 4294901760, %v5373_v15 }
 0x2f4   :  { %5272 = vmatpush.msrb.mxu0 %v12513_v47  ;;  %5422 = vmatpush.msrb.mxu2 %v12517_v29  ;;  %v5631_v15 = vand.u32 4294901760, %v5630_v44 }
 0x2f5   :  { %5345 = vmatpush.msrb.mxu1 %v5344_v33  ;;  %5462 = vmatpush.msrb.mxu3 %v12477_v13  ;;  %v5362_v33 = vand.u32 4294901760, %v5361_v0  ;;  %v12606_v59 = vsub.f32 %v423_v24, %v12581_v50  ;;  %v5368_v0 = vand.u32 4294901760, %v5367_v61  ;;  %v12618_v24 = vsub.f32 %v417_v37, %v12593_v48  ;;  %v15556_v37 = vld [vmem:[#allocation22_spill] sm:$0xff] }
 0x2f6   :  { %5274 = vmatpush.msrb.mxu0 %v12531_v52  ;;  %5425 = vmatpush.msrb.mxu2 %v12527_v23  ;;  %v15549_v61 = vand.u32 4294901760, %v12574_v9 }
 0x2f7   :  { %5351 = vmatpush.msrb.mxu1 %v5350_v25  ;;  %5464 = vmatpush.msrb.mxu3 %v12489_v58  ;;  %v405_v25 = vld [vmem:[#allocation5 + $0xac8] sm:$0xff]  ;;  %v15555_v44 = vand.u32 4294901760, %v12606_v59 }
 0x2f8   :  { %5276 = vmatpush.msrb.mxu0 %v12549_v60  ;;  %5428 = vmatpush.msrb.mxu2 %v12539_v12  ;;  %v5379_v11 = vsub.f32 %v12574_v9, %v15549_v61  ;;  %v12626_v21 = vand.u32 4294901760, %v405_v25  ;;  %v12637_v61 = vsub.f32 %v411_v53, %v12610_v46 }
 0x2f9   :  { %5357 = vmatpush.msrb.mxu1 %v5356_v31  ;;  %5466 = vmatpush.msrb.mxu3 %v12501_v7  ;;  %v15548_v31 = vand.u32 4294901760, %v12384_v41  ;;  %v15550_v41 = vand.u32 4294901760, %v12394_v30  ;;  %v15553_v30 = vand.u32 4294901760, %v12405_v8  ;;  %v5648_v8 = vsub.f32 %v12606_v59, %v15555_v44 }
 0x2fa   :  { %5282 = vmatmul.f32.vlgmr.msrb.gmra.mxu0 %v15547_v62  ;;  %5431 = vmatpush.msrb.mxu2 %v12555_v39  ;;  %v12639_v62 = vand.u32 4294901760, %v399_v4 }
 0x2fb   :  { %5483 = vmatpush.msra.mxu0 %v15548_v31  ;;  %5363 = vmatpush.msrb.mxu1 %v5362_v33  ;;  %v15551_v33 = vand.u32 4294901760, %v12588_v45 }
 0x2fc   :  { %5468 = vmatpush.msrb.mxu3 %v12513_v47  ;;  %5434 = vmatpush.msrb.mxu2 %v12574_v9 }
 0x2fd   :  { %5487 = vmatpush.msra.mxu0 %v15550_v41  ;;  %5369 = vmatpush.msrb.mxu1 %v5368_v0  ;;  %v5636_v31 = vsub.f32 %v12588_v45, %v15551_v33  ;;  %v5380_v0 = vand.u32 4294901760, %v5379_v11  ;;  %v15554_v41 = vand.u32 4294901760, %v12598_v20  ;;  %v12651_v33 = vsub.f32 %v405_v25, %v12626_v21 }
 0x2fe   :  { %5470 = vmatpush.msrb.mxu3 %v12531_v52  ;;  %5437 = vmatmul.f32.vlgmr.msrb.gmra.mxu2 %v15552_v40  ;;  %v15557_v11 = vand.u32 4294901760, %v12416_v26  ;;  %v12664_v25 = vsub.f32 %v399_v4, %v12639_v62  ;;  %v15559_v26 = vand.u32 4294901760, %v12421_v5  ;;  %v12676_v4 = vsub.f32 %v393_v2, %v12653_v16 }
 0x2ff   :  { %5491 = vmatpush.msra.mxu0 %v15553_v30  ;;  %5587 = vmatpush.msra.mxu2 %v12543_v1  ;;  %v5642_v53 = vsub.f32 %v12598_v20, %v15554_v41  ;;  %v381_v30 = vld [vmem:[#allocation5 + $0xa08] sm:$0xff]  ;;  %v5637_v40 = vand.u32 4294901760, %v5636_v31  ;;  %v15561_v5 = vand.u32 4294901760, %v12637_v61  ;;  %v12688_v2 = vsub.f32 %v387_v57, %v12666_v3 }
 0x300   :  { %5375 = vmatpush.msrb.mxu1 %v5374_v43  ;;  %5472 = vmatpush.msrb.mxu3 %v12549_v60  ;;  %v15558_v43 = vand.u32 4294901760, %v12618_v24  ;;  %v12678_v41 = vand.u32 4294901760, %v381_v30 }
 0x301   :  { %5476 = vmatmul.f32.vlgmr.msrb.gmra.mxu3 %v15556_v37  ;;  %5495 = vmatpush.msra.mxu0 %v15557_v11  ;;  %v5643_v31 = vand.u32 4294901760, %v5642_v53  ;;  %v15140_v11 = vand.u32 4294901760, %v12651_v33  ;;  %v15560_v37 = vld [vmem:[#allocation20_spill] sm:$0xff] }
 0x302   :  { %5589 = vmatpush.msra.mxu2 %v12562_v63  ;;  %5632 = vmatpush.msra.mxu3 %v5631_v15  ;;  %v5654_v44 = vsub.f32 %v12618_v24, %v15558_v43  ;;  %v5649_v15 = vand.u32 4294901760, %v5648_v8  ;;  %v12690_v43 = vand.u32 4294901760, %v375_v28  ;;  %v12701_v57 = vsub.f32 %v381_v30, %v12678_v41  ;;  %v363_v53 = vld [vmem:[#allocation5 + $0x978] sm:$0xff] }
 0x303   :  { %5381 = vmatpush.msrb.mxu1 %v5380_v0  ;;  %5499 = vmatpush.msra.mxu0 %v15559_v26  ;;  %v5660_v0 = vsub.f32 %v12637_v61, %v15561_v5  ;;  %v15562_v26 = vand.u32 4294901760, %v12435_v22  ;;  %v12703_v5 = vand.u32 4294901760, %v369_v36  ;;  %v15563_v22 = vand.u32 4294901760, %v12456_v34 }
 0x304   :  { %5383 = vmatmul.f32.vlgmr.msrb.gmra.mxu1 %v15560_v37  ;;  %5591 = vmatpush.msra.mxu2 %v12576_v19  ;;  %v5655_v8 = vand.u32 4294901760, %v5654_v44  ;;  %v15564_v44 = vand.u32 4294901760, %v12664_v25  ;;  %v12714_v30 = vsub.f32 %v375_v28, %v12690_v43  ;;  %v12719_v34 = vand.u32 4294901760, %v363_v53 }
 0x305   :  { %5550 = vmatpush.msra.mxu1 %v12367_v49  ;;  %5638 = vmatpush.msra.mxu3 %v5637_v40  ;;  %v5666_v40 = vsub.f32 %v12651_v33, %v15140_v11  ;;  %v357_v11 = vld [vmem:[#allocation5 + $0x948] sm:$0xff]  ;;  %v15565_v49 = vand.u32 4294901760, %v12469_v55  ;;  %v12727_v28 = vsub.f32 %v369_v36, %v12703_v5  ;;  %v15567_v55 = vand.u32 4294901760, %v12481_v56 }
 0x306   :  { %5503 = vmatpush.msra.mxu0 %v15562_v26  ;;  %5593 = vmatpush.msra.mxu2 %v12581_v50  ;;  %v5683_v26 = vand.u32 4294901760, %v12688_v2  ;;  %v15568_v36 = vand.u32 4294901760, %v12493_v17  ;;  %v12743_v56 = vsub.f32 %v363_v53, %v12719_v34  ;;  %v15569_v17 = vand.u32 4294901760, %v12505_v35 }
 0x307   :  { %5552 = vmatpush.msra.mxu1 %v12374_v6  ;;  %5644 = vmatpush.msra.mxu3 %v5643_v31  ;;  %v5661_v6 = vand.u32 4294901760, %v5660_v0  ;;  %v5672_v31 = vsub.f32 %v12664_v25, %v15564_v44  ;;  %v351_v44 = vld [vmem:[#allocation5 + $0x918] sm:$0xff] }
 0x308   :  { %5507 = vmatpush.msra.mxu0 %v15563_v22  ;;  %5595 = vmatpush.msra.mxu2 %v12593_v48  ;;  %v5689_v22 = vand.u32 4294901760, %v12701_v57  ;;  %v5707_v35 = vand.u32 4294901760, %v12743_v56 }
 0x309   :  { %5554 = vmatpush.msra.mxu1 %v12381_v42  ;;  %5650 = vmatpush.msra.mxu3 %v5649_v15  ;;  %v5667_v42 = vand.u32 4294901760, %v5666_v40  ;;  %v15566_v15 = vand.u32 4294901760, %v12676_v4  ;;  %v5695_v40 = vand.u32 4294901760, %v12714_v30 }
 0x30a   :  { %5511 = vmatpush.msra.mxu0 %v15565_v49  ;;  %5597 = vmatpush.msra.mxu2 %v12610_v46  ;;  %v12732_v49 = vand.u32 4294901760, %v357_v11 }
 0x30b   :  { %5556 = vmatpush.msra.mxu1 %v12391_v38  ;;  %5656 = vmatpush.msra.mxu3 %v5655_v8  ;;  %v5678_v0 = vsub.f32 %v12676_v4, %v15566_v15  ;;  %v5673_v38 = vand.u32 4294901760, %v5672_v31  ;;  %v5684_v8 = vsub.f32 %v12688_v2, %v5683_v26  ;;  %v12745_v15 = vand.u32 4294901760, %v351_v44 }
 0x30c   :  { %5515 = vmatpush.msra.mxu0 %v15567_v55  ;;  %5599 = vmatpush.msra.mxu2 %v12626_v21  ;;  %v5701_v31 = vand.u32 4294901760, %v12727_v28  ;;  %v12756_v53 = vsub.f32 %v357_v11, %v12732_v49 }
 0x30d   :  { %5558 = vmatpush.msra.mxu1 %v12398_v27  ;;  %5662 = vmatpush.msra.mxu3 %v5661_v6  ;;  %v5679_v27 = vand.u32 4294901760, %v5678_v0  ;;  %v5690_v6 = vsub.f32 %v12701_v57, %v5689_v22  ;;  %v15570_v0 = vand.u32 4294901760, %v12517_v29  ;;  %v12767_v55 = vsub.f32 %v351_v44, %v12745_v15 }
 0x30e   :  { %5519 = vmatpush.msra.mxu0 %v15568_v36  ;;  %5601 = vmatpush.msra.mxu2 %v12639_v62  ;;  %v5702_v11 = vsub.f32 %v12727_v28, %v5701_v31  ;;  %v5713_v29 = vand.u32 4294901760, %v12756_v53 }
 0x30f   :  { %5560 = vmatpush.msra.mxu1 %v12409_v51  ;;  %5668 = vmatpush.msra.mxu3 %v5667_v42  ;;  %v5685_v51 = vand.u32 4294901760, %v5684_v8  ;;  %v5696_v42 = vsub.f32 %v12714_v30, %v5695_v40  ;;  %v15572_v8 = vand.u32 4294901760, %v12539_v12  ;;  %v15574_v12 = vand.u32 4294901760, %v12574_v9 }
 0x310   :  { %5523 = vmatpush.msra.mxu0 %v15569_v17  ;;  %5603 = vmatpush.msra.mxu2 %v12653_v16  ;;  %v5703_v36 = vand.u32 4294901760, %v5702_v11  ;;  %v15576_v9 = vand.u32 4294901760, %v12567_v10  ;;  %v15578_v17 = vand.u32 4294901760, %v12588_v45 }
 0x311   :  { %5562 = vmatpush.msra.mxu1 %v12429_v32  ;;  %5674 = vmatpush.msra.mxu3 %v5673_v38  ;;  %v5691_v32 = vand.u32 4294901760, %v5690_v6  ;;  %v15571_v38 = vand.u32 4294901760, %v12527_v23  ;;  %v5697_v44 = vand.u32 4294901760, %v5696_v42  ;;  %v5719_v23 = vand.u32 4294901760, %v12767_v55  ;;  %v100_v42 = vld [vmem:[#allocation5 + $0x140] sm:$0xff] }
 0x312   :  { %5527 = vmatpush.msra.mxu0 %v15570_v0  ;;  %5605 = vmatpush.msra.mxu2 %v12666_v3 }
 0x313   :  { %5564 = vmatpush.msra.mxu1 %v12442_v14  ;;  %5680 = vmatpush.msra.mxu3 %v5679_v27  ;;  %v5708_v14 = vsub.f32 %v12743_v56, %v5707_v35  ;;  %v15573_v27 = vand.u32 4294901760, %v12555_v39  ;;  %v5720_v39 = vsub.f32 %v12767_v55, %v5719_v23 }
 0x314   :  { %5531 = vmatpush.msra.mxu0 %v15571_v38  ;;  %5607 = vmatpush.msra.mxu2 %v12678_v41  ;;  %v94_v38 = vld [vmem:[#allocation5 + $0x110] sm:$0xff] }
 0x315   :  { %5566 = vmatpush.msra.mxu1 %v12453_v18  ;;  %5686 = vmatpush.msra.mxu3 %v5685_v51  ;;  %v5714_v18 = vsub.f32 %v12756_v53, %v5713_v29 }
 0x316   :  { %5535 = vmatpush.msra.mxu0 %v15572_v8  ;;  %5609 = vmatpush.msra.mxu2 %v12690_v43 }
 0x317   :  { %5568 = vmatpush.msra.mxu1 %v12466_v54  ;;  %5692 = vmatpush.msra.mxu3 %v5691_v32  ;;  %v5709_v54 = vand.u32 4294901760, %v5708_v14  ;;  %v5715_v6 = vand.u32 4294901760, %v5714_v18 }
 0x318   :  { %5539 = vmatpush.msra.mxu0 %v15573_v27  ;;  %5611 = vmatpush.msra.mxu2 %v12703_v5 }
 0x319   :  { %5570 = vmatpush.msra.mxu1 %v12477_v13  ;;  %5698 = vmatpush.msra.mxu3 %v5697_v44  ;;  %v5721_v13 = vand.u32 4294901760, %v5720_v39 }
 0x31a   :  { %5543 = vmatpush.msra.mxu0 %v15574_v12  ;;  %5613 = vmatpush.msra.mxu2 %v12719_v34  ;;  %v12972_v12 = vand.u32 4294901760, %v94_v38 }
 0x31b   :  { %5572 = vmatpush.msra.mxu1 %v12489_v58  ;;  %5704 = vmatpush.msra.mxu3 %v5703_v36  ;;  %v15575_v58 = vld [vmem:[#allocation27_spill] sm:$0xff] }
 0x31c   :  { %5545 = vmatmul.f32.vlgmr.msra.gmra.mxu0 %v15560_v37  ;;  %5615 = vmatpush.msra.mxu2 %v12732_v49 }
 0x31d   :  { %5730 = vmatpush.msrb.mxu0 %v12567_v10  ;;  %5574 = vmatpush.msra.mxu1 %v12501_v7  ;;  %v15577_v7 = vld [vmem:[#allocation24_spill] sm:$0xff] }
 0x31e   :  { %5710 = vmatpush.msra.mxu3 %v5709_v54  ;;  %5617 = vmatpush.msra.mxu2 %v12745_v15 }
 0x31f   :  { %5733 = vmatpush.msrb.mxu0 %v12588_v45  ;;  %5576 = vmatpush.msra.mxu1 %v12513_v47  ;;  %v15579_v47 = vand.u32 4294901760, %v12598_v20 }
 0x320   :  { %5716 = vmatpush.msra.mxu3 %v5715_v6  ;;  %5623 = vmatmul.f32.vlgmr.msra.gmra.mxu2 %v15575_v58  ;;  %v82_v6 = vld [vmem:[#allocation5 + $0xb0] sm:$0xff] }
 0x321   :  { %5736 = vmatpush.msrb.mxu0 %v12598_v20  ;;  %5824 = vmatpush.msrb.mxu2 %v15576_v9  ;;  %v15582_v20 = vand.u32 4294901760, %v12637_v61 }
 0x322   :  { %5578 = vmatpush.msra.mxu1 %v12531_v52  ;;  %5722 = vmatpush.msra.mxu3 %v5721_v13  ;;  %v15580_v52 = vand.u32 4294901760, %v12606_v59 }
 0x323   :  { %5724 = vmatmul.f32.vlgmr.msra.gmra.mxu3 %v15577_v7  ;;  %5739 = vmatpush.msrb.mxu0 %v12606_v59  ;;  %v15583_v59 = vand.u32 4294901760, %v12651_v33 }
 0x324   :  { %5828 = vmatpush.msrb.mxu2 %v15578_v17  ;;  %5891 = vmatpush.msrb.mxu3 %v12543_v1 }
 0x325   :  { %5580 = vmatpush.msra.mxu1 %v12549_v60  ;;  %5742 = vmatpush.msrb.mxu0 %v12618_v24  ;;  %v15581_v60 = vand.u32 4294901760, %v12618_v24 }
 0x326   :  { %5582 = vmatmul.f32.vlgmr.msra.gmra.mxu1 %v15560_v37  ;;  %5832 = vmatpush.msrb.mxu2 %v15579_v47 }
 0x327   :  { %5783 = vmatpush.msrb.mxu1 %v12543_v1  ;;  %5893 = vmatpush.msrb.mxu3 %v12562_v63  ;;  %v154_v1 = vld [vmem:[#allocation5 + $0x2f0] sm:$0xff] }
 0x328   :  { %5745 = vmatpush.msrb.mxu0 %v12637_v61  ;;  %5836 = vmatpush.msrb.mxu2 %v15580_v52  ;;  %v12859_v45 = vand.u32 4294901760, %v154_v1  ;;  %v124_v61 = vld [vmem:[#allocation5 + $0x200] sm:$0xff] }
 0x329   :  { %5785 = vmatpush.msrb.mxu1 %v12562_v63  ;;  %5895 = vmatpush.msrb.mxu3 %v12576_v19  ;;  %v15585_v63 = vand.u32 4294901760, %v12676_v4 }
 0x32a   :  { %5748 = vmatpush.msrb.mxu0 %v12651_v33  ;;  %5840 = vmatpush.msrb.mxu2 %v15581_v60  ;;  %v76_v60 = vld [vmem:[#allocation5 + $0x80] sm:$0xff] }
 0x32b   :  { %5787 = vmatpush.msrb.mxu1 %v12576_v19  ;;  %5897 = vmatpush.msrb.mxu3 %v12581_v50  ;;  %v15584_v19 = vand.u32 4294901760, %v12664_v25 }
 0x32c   :  { %5751 = vmatpush.msrb.mxu0 %v12664_v25  ;;  %5844 = vmatpush.msrb.mxu2 %v15582_v20  ;;  %v12990_v20 = vpop.f32.mrf.mxu0 }
 0x32d   :  { %5789 = vmatpush.msrb.mxu1 %v12581_v50  ;;  %5899 = vmatpush.msrb.mxu3 %v12593_v48  ;;  %v136_v50 = vld [vmem:[#allocation5 + $0x260] sm:$0xff] }
 0x32e   :  { %5754 = vmatpush.msrb.mxu0 %v12676_v4  ;;  %5848 = vmatpush.msrb.mxu2 %v15583_v59  ;;  %v12883_v24 = vand.u32 4294901760, %v136_v50  ;;  %v15586_v4 = vld [vmem:[#allocation25_spill] sm:$0xff] }
 0x32f   :  { %5791 = vmatpush.msrb.mxu1 %v12593_v48  ;;  %5901 = vmatpush.msrb.mxu3 %v12610_v46  ;;  %v148_v48 = vld [vmem:[#allocation5 + $0x2c0] sm:$0xff] }
 0x330   :  { %5757 = vmatpush.msrb.mxu0 %v12688_v2  ;;  %5852 = vmatpush.msrb.mxu2 %v15584_v19  ;;  %v12866_v10 = vand.u32 4294901760, %v148_v48  ;;  %v118_v2 = vld [vmem:[#allocation5 + $0x1d0] sm:$0xff] }
 0x331   :  { %5793 = vmatpush.msrb.mxu1 %v12610_v46  ;;  %5903 = vmatpush.msrb.mxu3 %v12626_v21  ;;  %v12876_v46 = vsub.f32 %v154_v1, %v12859_v45  ;;  %v12999_v1 = vsub.f32 %v94_v38, %v12972_v12 }
 0x332   :  { %5760 = vmatpush.msrb.mxu0 %v12701_v57  ;;  %5856 = vmatpush.msrb.mxu2 %v15585_v63  ;;  %v12996_v63 = vand.u32 4294901760, %v82_v6 }
 0x333   :  { %5795 = vmatpush.msrb.mxu1 %v12626_v21  ;;  %5905 = vmatpush.msrb.mxu3 %v12639_v62  ;;  %v142_v21 = vld [vmem:[#allocation5 + $0x290] sm:$0xff] }
 0x334   :  { %5763 = vmatpush.msrb.mxu0 %v12714_v30  ;;  %5860 = vmatpush.msrb.mxu2 %v5683_v26  ;;  %v12908_v26 = vsub.f32 %v136_v50, %v12883_v24  ;;  %v112_v30 = vld [vmem:[#allocation5 + $0x1a0] sm:$0xff]  ;;  %v13025_v38 = vsub.f32 %v82_v6, %v12996_v63 }
 0x335   :  { %5797 = vmatpush.msrb.mxu1 %v12639_v62  ;;  %5907 = vmatpush.msrb.mxu3 %v12653_v16  ;;  %v12873_v62 = vand.u32 4294901760, %v142_v21 }
 0x336   :  { %5766 = vmatpush.msrb.mxu0 %v12727_v28  ;;  %5864 = vmatpush.msrb.mxu2 %v5689_v22  ;;  %v12918_v22 = vand.u32 4294901760, %v118_v2 }
 0x337   :  { %5799 = vmatpush.msrb.mxu1 %v12653_v16  ;;  %5909 = vmatpush.msrb.mxu3 %v12666_v3  ;;  %v130_v16 = vld [vmem:[#allocation5 + $0x230] sm:$0xff]  ;;  %v12897_v25 = vsub.f32 %v142_v21, %v12873_v62 }
 0x338   :  { %5769 = vmatpush.msrb.mxu0 %v12743_v56  ;;  %5868 = vmatpush.msrb.mxu2 %v5695_v40  ;;  %v12893_v33 = vand.u32 4294901760, %v130_v16  ;;  %v106_v56 = vld [vmem:[#allocation5 + $0x170] sm:$0xff]  ;;  %v12948_v11 = vsub.f32 %v118_v2, %v12918_v22 }
 0x339   :  { %5801 = vmatpush.msrb.mxu1 %v12666_v3  ;;  %5911 = vmatpush.msrb.mxu3 %v12678_v41  ;;  %v12886_v3 = vsub.f32 %v148_v48, %v12866_v10  ;;  %v15150_v28 = vand.u32 4294901760, %v12897_v25  ;;  %v12939_v0 = vand.u32 4294901760, %v106_v56  ;;  %v70_v21 = vld [vmem:[#allocation5 + $0x50] sm:$0xff] }
 0x33a   :  { %5772 = vmatpush.msrb.mxu0 %v12756_v53  ;;  %5872 = vmatpush.msrb.mxu2 %v5701_v31  ;;  %v12922_v40 = vsub.f32 %v130_v16, %v12893_v33  ;;  %v12931_v31 = vand.u32 4294901760, %v112_v30  ;;  %v15149_v53 = vand.u32 4294901760, %v12908_v26  ;;  %v15145_v54 = vand.u32 4294901760, %v12948_v11 }
 0x33b   :  { %5803 = vmatpush.msrb.mxu1 %v12678_v41  ;;  %5913 = vmatpush.msrb.mxu3 %v12690_v43  ;;  %v15152_v41 = vand.u32 4294901760, %v12876_v46  ;;  %v15151_v57 = vand.u32 4294901760, %v12886_v3  ;;  %v12966_v36 = vsub.f32 %v106_v56, %v12939_v0  ;;  %v64_v56 = vld [vmem:[#allocation5 + $0x20] sm:$0xff] }
 0x33c   :  { %5775 = vmatpush.msrb.mxu0 %v12767_v55  ;;  %5876 = vmatpush.msrb.mxu2 %v5707_v35  ;;  %v5983_v55 = vsub.f32 %v12897_v25, %v15150_v28  ;;  %v15148_v32 = vand.u32 4294901760, %v12922_v40  ;;  %v5989_v44 = vsub.f32 %v12908_v26, %v15149_v53  ;;  %v12961_v14 = vsub.f32 %v112_v30, %v12931_v31  ;;  %v250_v30 = vld [vmem:[#allocation5 + $0x5f0] sm:$0xff] }
 0x33d   :  { %5805 = vmatpush.msrb.mxu1 %v12690_v43  ;;  %5915 = vmatpush.msrb.mxu3 %v12703_v5  ;;  %v12904_v43 = vand.u32 4294901760, %v124_v61  ;;  %v15142_v52 = vand.u32 4294901760, %v12966_v36  ;;  %v6007_v19 = vsub.f32 %v12948_v11, %v15145_v54 }
 0x33e   :  { %5778 = vmatmul.f32.vlgmr.msrb.gmra.mxu0 %v15586_v4  ;;  %5880 = vmatpush.msrb.mxu2 %v5713_v29  ;;  %v5984_v27 = vand.u32 4294901760, %v5983_v55  ;;  %v5995_v18 = vsub.f32 %v12922_v40, %v15148_v32  ;;  %v5990_v13 = vand.u32 4294901760, %v5989_v44  ;;  %v15143_v47 = vand.u32 4294901760, %v12961_v14 }
 0x33f   :  { %5928 = vmatpush.msra.mxu0 %v12859_v45  ;;  %5807 = vmatpush.msrb.mxu1 %v12703_v5  ;;  %v5971_v5 = vsub.f32 %v12876_v46, %v15152_v41  ;;  %v12935_v51 = vsub.f32 %v124_v61, %v12904_v43  ;;  %v13008_v61 = vand.u32 4294901760, %v76_v60  ;;  %v15144_v55 = vand.u32 4294901760, %v12999_v1 }
 0x340   :  { %5917 = vmatpush.msrb.mxu3 %v12719_v34  ;;  %5884 = vmatpush.msrb.mxu2 %v5719_v23  ;;  %v15587_v23 = vld [vmem:[#allocation26_spill] sm:$0xff]  ;;  %v5996_v59 = vand.u32 4294901760, %v5995_v18  ;;  %v6013_v16 = vsub.f32 %v12961_v14, %v15143_v47  ;;  %v13032_v44 = vand.u32 4294901760, %v250_v30  ;;  %v13035_v18 = vand.u32 4294901760, %v64_v56  ;;  %v13060_v47 = vpop.f32.mrf.mxu0 }
 0x341   :  { %5930 = vmatpush.msra.mxu0 %v12866_v10  ;;  %5809 = vmatpush.msrb.mxu1 %v12719_v34  ;;  %v5977_v34 = vsub.f32 %v12886_v3, %v15151_v57  ;;  %v5972_v35 = vand.u32 4294901760, %v5971_v5  ;;  %v15146_v8 = vand.u32 4294901760, %v12935_v51  ;;  %v6019_v5 = vsub.f32 %v12966_v36, %v15142_v52  ;;  %v232_v52 = vld [vmem:[#allocation5 + $0x560] sm:$0xff]  ;;  %15592 = vst [vmem:[#allocation34_spill] sm:$0xff] %v13060_v47 }
 0x342   :  { %5919 = vmatpush.msrb.mxu3 %v12732_v49  ;;  %5886 = vmatmul.f32.vlgmr.msrb.gmra.mxu2 %v15577_v7  ;;  %15588 = vst [vmem:[#allocation29_spill] sm:$0xff] %v13032_v44  ;;  %v13068_v54 = vsub.f32 %v64_v56, %v13035_v18 }
 0x343   :  { %5932 = vmatpush.msra.mxu0 %v12873_v62  ;;  %6071 = vmatpush.msra.mxu2 %v12876_v46  ;;  %v5978_v29 = vand.u32 4294901760, %v5977_v34  ;;  %v6001_v9 = vsub.f32 %v12935_v51, %v15146_v8  ;;  %v13018_v34 = vpop.f32.mrf.mxu1  ;;  %15589 = vst [vmem:[#allocation33_spill] sm:$0xff] %v13035_v18 }
 0x344   :  { %5811 = vmatpush.msrb.mxu1 %v12732_v49  ;;  %5921 = vmatpush.msrb.mxu3 %v12745_v15  ;;  %v12952_v49 = vand.u32 4294901760, %v100_v42 }
 0x345   :  { %5923 = vmatmul.f32.vlgmr.msrb.gmra.mxu3 %v15577_v7  ;;  %5934 = vmatpush.msra.mxu0 %v12883_v24  ;;  %v6002_v50 = vand.u32 4294901760, %v6001_v9  ;;  %v6020_v9 = vand.u32 4294901760, %v6019_v5 }
 0x346   :  { %6074 = vmatpush.msra.mxu2 %v12886_v3  ;;  %6124 = vmatpush.msra.mxu3 %v12859_v45  ;;  %v12978_v39 = vsub.f32 %v100_v42, %v12952_v49  ;;  %v6008_v42 = vand.u32 4294901760, %v6007_v19  ;;  %v13043_v19 = vpop.f32.mrf.mxu2 }
 0x347   :  { %5813 = vmatpush.msrb.mxu1 %v12745_v15  ;;  %5936 = vmatpush.msra.mxu0 %v12893_v33  ;;  %v88_v15 = vld [vmem:[#allocation5 + $0xe0] sm:$0xff]  ;;  %15590 = vst [vmem:[#allocation31_spill] sm:$0xff] %v13043_v19 }
 0x348   :  { %5817 = vmatmul.f32.vlgmr.msrb.gmra.mxu1 %v15587_v23  ;;  %6077 = vmatpush.msra.mxu2 %v12897_v25  ;;  %v12984_v17 = vand.u32 4294901760, %v88_v15  ;;  %v15141_v48 = vand.u32 4294901760, %v12978_v39  ;;  %v13123_v58 = vpop.f32.mrf.mxu0 }
 0x349   :  { %5973 = vmatpush.msra.mxu1 %v5972_v35  ;;  %6126 = vmatpush.msra.mxu3 %v12866_v10  ;;  %v13021_v35 = vand.u32 4294901760, %v70_v21  ;;  %15598 = vst [vmem:[#allocation38_spill] sm:$0xff] %v13123_v58  ;;  %v202_v58 = vld [vmem:[#allocation5 + $0x470] sm:$0xff] }
 0x34a   :  { %5938 = vmatpush.msra.mxu0 %v12904_v43  ;;  %6080 = vmatpush.msra.mxu2 %v12908_v26  ;;  %v13011_v2 = vsub.f32 %v88_v15, %v12984_v17  ;;  %v244_v15 = vld [vmem:[#allocation5 + $0x5c0] sm:$0xff] }
 0x34b   :  { %5979 = vmatpush.msra.mxu1 %v5978_v29  ;;  %6128 = vmatpush.msra.mxu3 %v12873_v62  ;;  %v6025_v29 = vsub.f32 %v12978_v39, %v15141_v48  ;;  %v13053_v48 = vand.u32 4294901760, %v244_v15  ;;  %v13091_v41 = vpop.f32.mrf.mxu1 }
 0x34c   :  { %5940 = vmatpush.msra.mxu0 %v12918_v22  ;;  %6083 = vmatpush.msra.mxu2 %v12922_v40  ;;  %v15147_v6 = vand.u32 4294901760, %v13011_v2  ;;  %15594 = vst [vmem:[#allocation37_spill] sm:$0xff] %v13091_v41 }
 0x34d   :  { %5985 = vmatpush.msra.mxu1 %v5984_v27  ;;  %6130 = vmatpush.msra.mxu3 %v12883_v24  ;;  %v6014_v27 = vand.u32 4294901760, %v6013_v16  ;;  %v15153_v16 = vand.u32 4294901760, %v13025_v38  ;;  %15591 = vst [vmem:[#allocation32_spill] sm:$0xff] %v13053_v48  ;;  %v6026_v5 = vand.u32 4294901760, %v6025_v29  ;;  %v226_v29 = vld [vmem:[#allocation5 + $0x530] sm:$0xff]  ;;  %v13084_v53 = vsub.f32 %v244_v15, %v13053_v48 }
 0x34e   :  { %5942 = vmatpush.msra.mxu0 %v12931_v31  ;;  %6086 = vmatpush.msra.mxu2 %v12935_v51  ;;  %v13089_v57 = vand.u32 4294901760, %v226_v29  ;;  %v13121_v7 = vpop.f32.mrf.mxu2 }
 0x34f   :  { %5991 = vmatpush.msra.mxu1 %v5990_v13  ;;  %6132 = vmatpush.msra.mxu3 %v12893_v33  ;;  %v13039_v13 = vsub.f32 %v76_v60, %v13008_v61  ;;  %v13051_v60 = vsub.f32 %v70_v21, %v13021_v35  ;;  %v6037_v21 = vsub.f32 %v13011_v2, %v15147_v6 }
 0x350   :  { %5944 = vmatpush.msra.mxu0 %v12939_v0  ;;  %6089 = vmatpush.msra.mxu2 %v12948_v11  ;;  %v6043_v56 = vsub.f32 %v13025_v38, %v15153_v16  ;;  %15597 = vst [vmem:[#allocation36_spill] sm:$0xff] %v13121_v7  ;;  %v15599_v16 = vand.u32 4294901760, %v13068_v54 }
 0x351   :  { %5997 = vmatpush.msra.mxu1 %v5996_v59  ;;  %6134 = vmatpush.msra.mxu3 %v12904_v43  ;;  %v238_v59 = vld [vmem:[#allocation5 + $0x590] sm:$0xff]  ;;  %v15595_v23 = vand.u32 4294901760, %v13051_v60 }
 0x352   :  { %5946 = vmatpush.msra.mxu0 %v12952_v49  ;;  %6092 = vmatpush.msra.mxu2 %v12961_v14  ;;  %v13070_v8 = vand.u32 4294901760, %v238_v59  ;;  %v6061_v37 = vsub.f32 %v13068_v54, %v15599_v16 }
 0x353   :  { %6003 = vmatpush.msra.mxu1 %v6002_v50  ;;  %6136 = vmatpush.msra.mxu3 %v12918_v22  ;;  %v6031_v50 = vsub.f32 %v12999_v1, %v15144_v55  ;;  %v15154_v55 = vand.u32 4294901760, %v13039_v13 }
 0x354   :  { %5948 = vmatpush.msra.mxu0 %v12972_v12  ;;  %6095 = vmatpush.msra.mxu2 %v12966_v36  ;;  %v13099_v32 = vsub.f32 %v238_v59, %v13070_v8 }
 0x355   :  { %6009 = vmatpush.msra.mxu1 %v6008_v42  ;;  %6138 = vmatpush.msra.mxu3 %v12931_v31  ;;  %v13058_v42 = vsub.f32 %v250_v30, %v13032_v44  ;;  %v13074_v30 = vand.u32 4294901760, %v232_v52  ;;  %v6032_v6 = vand.u32 4294901760, %v6031_v50  ;;  %v6038_v50 = vand.u32 4294901760, %v6037_v21 }
 0x356   :  { %5950 = vmatpush.msra.mxu0 %v12984_v17  ;;  %6098 = vmatpush.msra.mxu2 %v12978_v39  ;;  %v6049_v15 = vsub.f32 %v13039_v13, %v15154_v55  ;;  %v6044_v21 = vand.u32 4294901760, %v6043_v56  ;;  %v6055_v55 = vsub.f32 %v13051_v60, %v15595_v23  ;;  %v208_v56 = vld [vmem:[#allocation5 + $0x4a0] sm:$0xff] }
 0x357   :  { %6015 = vmatpush.msra.mxu1 %v6014_v27  ;;  %6140 = vmatpush.msra.mxu3 %v12939_v0  ;;  %v13076_v27 = vpop.f32.mrf.mxu3  ;;  %v13104_v28 = vsub.f32 %v232_v52, %v13074_v30  ;;  %v15596_v52 = vand.u32 4294901760, %v13058_v42  ;;  %v13143_v7 = vand.u32 4294901760, %v208_v56 }
 0x358   :  { %5952 = vmatpush.msra.mxu0 %v12996_v63  ;;  %6101 = vmatpush.msra.mxu2 %v12999_v1  ;;  %15593 = vst [vmem:[#allocation35_spill] sm:$0xff] %v13076_v27  ;;  %v6050_v23 = vand.u32 4294901760, %v6049_v15  ;;  %v15601_v15 = vand.u32 4294901760, %v13084_v53 }
 0x359   :  { %6021 = vmatpush.msra.mxu1 %v6020_v9  ;;  %6142 = vmatpush.msra.mxu3 %v12952_v49  ;;  %v220_v9 = vld [vmem:[#allocation5 + $0x500] sm:$0xff]  ;;  %v6312_v4 = vsub.f32 %v13058_v42, %v15596_v52 }
 0x35a   :  { %5954 = vmatpush.msra.mxu0 %v13008_v61  ;;  %6104 = vmatpush.msra.mxu2 %v13011_v2  ;;  %v13111_v59 = vand.u32 4294901760, %v220_v9  ;;  %v6318_v16 = vsub.f32 %v13084_v53, %v15601_v15  ;;  %v196_v52 = vld [vmem:[#allocation5 + $0x440] sm:$0xff]  ;;  %v15605_v15 = vand.u32 4294901760, %v13099_v32 }
 0x35b   :  { %6027 = vmatpush.msra.mxu1 %v6026_v5  ;;  %6144 = vmatpush.msra.mxu3 %v12972_v12  ;;  %v214_v5 = vld [vmem:[#allocation5 + $0x4d0] sm:$0xff] }
 0x35c   :  { %5956 = vmatpush.msra.mxu0 %v13021_v35  ;;  %6107 = vmatpush.msra.mxu2 %v13025_v38  ;;  %v13130_v47 = vand.u32 4294901760, %v214_v5  ;;  %v13141_v41 = vsub.f32 %v220_v9, %v13111_v59  ;;  %v6062_v9 = vand.u32 4294901760, %v6061_v37  ;;  %v6324_v19 = vsub.f32 %v13099_v32, %v15605_v15 }
 0x35d   :  { %6033 = vmatpush.msra.mxu1 %v6032_v6  ;;  %6146 = vmatpush.msra.mxu3 %v12984_v17  ;;  %v13119_v6 = vsub.f32 %v226_v29, %v13089_v57  ;;  %v15600_v29 = vand.u32 4294901760, %v12876_v46  ;;  %v15602_v46 = vand.u32 4294901760, %v12886_v3  ;;  %v6319_v37 = vand.u32 4294901760, %v6318_v16  ;;  %v13183_v16 = vpop.f32.mrf.mxu0 }
 0x35e   :  { %5958 = vmatpush.msra.mxu0 %v13035_v18  ;;  %6110 = vmatpush.msra.mxu2 %v13039_v13  ;;  %v13158_v3 = vsub.f32 %v214_v5, %v13130_v47  ;;  %v13171_v5 = vsub.f32 %v208_v56, %v13143_v7  ;;  %15610 = vst [vmem:[#allocation30_spill] sm:$0xff] %v13183_v16  ;;  %v6325_v56 = vand.u32 4294901760, %v6324_v19  ;;  %v15618_v16 = vand.u32 4294901760, %v12961_v14 }
 0x35f   :  { %6039 = vmatpush.msra.mxu1 %v6038_v50  ;;  %6148 = vmatpush.msra.mxu3 %v12996_v63  ;;  %v6056_v50 = vand.u32 4294901760, %v6055_v55  ;;  %v13149_v27 = vpop.f32.mrf.mxu3  ;;  %v13151_v55 = vpop.f32.mrf.mxu1 }
 0x360   :  { %6165 = vmatpush.msrb.mxu0 %v15600_v29  ;;  %6113 = vmatpush.msra.mxu2 %v13051_v60  ;;  %v6313_v29 = vand.u32 4294901760, %v6312_v4  ;;  %15603 = vst [vmem:[#allocation39_spill] sm:$0xff] %v13149_v27  ;;  %v15606_v4 = vand.u32 4294901760, %v12897_v25  ;;  %v13173_v27 = vand.u32 4294901760, %v196_v52  ;;  %v15608_v25 = vand.u32 4294901760, %v12908_v26 }
 0x361   :  { %6045 = vmatpush.msra.mxu1 %v6044_v21  ;;  %6150 = vmatpush.msra.mxu3 %v13008_v61  ;;  %15604 = vst [vmem:[#allocation40_spill] sm:$0xff] %v13151_v55  ;;  %v15607_v21 = vand.u32 4294901760, %v13104_v28  ;;  %v190_v55 = vld [vmem:[#allocation5 + $0x410] sm:$0xff] }
 0x362   :  { %6169 = vmatpush.msrb.mxu0 %v15602_v46  ;;  %6116 = vmatpush.msra.mxu2 %v13068_v54  ;;  %v13160_v46 = vand.u32 4294901760, %v202_v58  ;;  %v13189_v26 = vand.u32 4294901760, %v190_v55 }
 0x363   :  { %6051 = vmatpush.msra.mxu1 %v6050_v23  ;;  %6152 = vmatpush.msra.mxu3 %v13021_v35  ;;  %v6330_v23 = vsub.f32 %v13104_v28, %v15607_v21 }
 0x364   :  { %6173 = vmatpush.msrb.mxu0 %v15606_v4  ;;  %6269 = vmatpush.msrb.mxu2 %v13032_v44  ;;  %v15609_v4 = vand.u32 4294901760, %v13119_v6  ;;  %v13181_v44 = vpop.f32.mrf.mxu2 }
 0x365   :  { %6057 = vmatpush.msra.mxu1 %v6056_v50  ;;  %6154 = vmatpush.msra.mxu3 %v13035_v18  ;;  %v184_v50 = vld [vmem:[#allocation5 + $0x3e0] sm:$0xff]  ;;  %v13187_v18 = vsub.f32 %v202_v58, %v13160_v46  ;;  %v13200_v58 = vsub.f32 %v196_v52, %v13173_v27 }
 0x366   :  { %6177 = vmatpush.msrb.mxu0 %v15608_v25  ;;  %6271 = vmatpush.msrb.mxu2 %v13053_v48  ;;  %v6336_v21 = vsub.f32 %v13119_v6, %v15609_v4  ;;  %v15611_v25 = vand.u32 4294901760, %v12922_v40  ;;  %v6331_v4 = vand.u32 4294901760, %v6330_v23  ;;  %v178_v48 = vld [vmem:[#allocation5 + $0x3b0] sm:$0xff]  ;;  %v13202_v15 = vand.u32 4294901760, %v184_v50 }
 0x367   :  { %6314 = vmatpush.msrb.mxu3 %v6313_v29  ;;  %6063 = vmatpush.msra.mxu1 %v6062_v9  ;;  %v15612_v29 = vand.u32 4294901760, %v13141_v41  ;;  %v15613_v40 = vand.u32 4294901760, %v12935_v51  ;;  %v13207_v23 = vpop.f32.mrf.mxu3  ;;  %v13217_v9 = vsub.f32 %v190_v55, %v13189_v26  ;;  %v13219_v51 = vand.u32 4294901760, %v178_v48 }
 0x368   :  { %6181 = vmatpush.msrb.mxu0 %v15611_v25  ;;  %6273 = vmatpush.msrb.mxu2 %v13070_v8  ;;  %v15615_v25 = vand.u32 4294901760, %v13158_v3  ;;  %v13230_v55 = vsub.f32 %v184_v50, %v13202_v15 }
 0x369   :  { %6232 = vmatpush.msrb.mxu1 %v12859_v45  ;;  %6320 = vmatpush.msrb.mxu3 %v6319_v37  ;;  %v6342_v19 = vsub.f32 %v13141_v41, %v15612_v29  ;;  %v6337_v45 = vand.u32 4294901760, %v6336_v21  ;;  %v13209_v37 = vpop.f32.mrf.mxu1  ;;  %v15616_v21 = vand.u32 4294901760, %v12948_v11  ;;  %v13247_v14 = vsub.f32 %v178_v48, %v13219_v51 }
 0x36a   :  { %6185 = vmatpush.msrb.mxu0 %v15613_v40  ;;  %15614 = vst [vmem:[#allocation28_spill] sm:$0xff] %v13209_v37  ;;  %6275 = vmatpush.msrb.mxu2 %v13074_v30  ;;  %v6348_v52 = vsub.f32 %v13158_v3, %v15615_v25  ;;  %v15617_v40 = vand.u32 4294901760, %v13171_v5  ;;  %v166_v37 = vld [vmem:[#allocation5 + $0x350] sm:$0xff]  ;;  %v15622_v48 = vand.u32 4294901760, %v12978_v39 }
 0x36b   :  { %6234 = vmatpush.msrb.mxu1 %v12866_v10  ;;  %6326 = vmatpush.msrb.mxu3 %v6325_v56  ;;  %v172_v10 = vld [vmem:[#allocation5 + $0x380] sm:$0xff]  ;;  %v6343_v56 = vand.u32 4294901760, %v6342_v19  ;;  %v13252_v29 = vand.u32 4294901760, %v166_v37 }
 0x36c   :  { %6189 = vmatpush.msrb.mxu0 %v15616_v21  ;;  %6277 = vmatpush.msrb.mxu2 %v13089_v57  ;;  %v6354_v25 = vsub.f32 %v13171_v5, %v15617_v40  ;;  %v13237_v11 = vpop.f32.mrf.mxu2  ;;  %v6349_v19 = vand.u32 4294901760, %v6348_v52  ;;  %v15619_v21 = vand.u32 4294901760, %v13187_v18  ;;  %v15621_v52 = vand.u32 4294901760, %v13200_v58 }
 0x36d   :  { %6236 = vmatpush.msrb.mxu1 %v12873_v62  ;;  %6332 = vmatpush.msrb.mxu3 %v6331_v4  ;;  %v13235_v62 = vand.u32 4294901760, %v172_v10  ;;  %v13239_v4 = vpop.f32.mrf.mxu0 }
 0x36e   :  { %6193 = vmatpush.msrb.mxu0 %v15618_v16  ;;  %6279 = vmatpush.msrb.mxu2 %v13111_v59  ;;  %v6360_v50 = vsub.f32 %v13187_v18, %v15619_v21  ;;  %v15620_v16 = vand.u32 4294901760, %v12966_v36  ;;  %v6366_v21 = vsub.f32 %v13200_v58, %v15621_v52  ;;  %v15623_v52 = vand.u32 4294901760, %v13217_v9 }
 0x36f   :  { %6238 = vmatpush.msrb.mxu1 %v12883_v24  ;;  %6338 = vmatpush.msrb.mxu3 %v6337_v45  ;;  %v160_v24 = vld [vmem:[#allocation5 + $0x320] sm:$0xff]  ;;  %v6355_v45 = vand.u32 4294901760, %v6354_v25  ;;  %v13263_v36 = vsub.f32 %v172_v10, %v13235_v62  ;;  %v13280_v10 = vsub.f32 %v166_v37, %v13252_v29 }
 0x370   :  { %6197 = vmatpush.msrb.mxu0 %v15620_v16  ;;  %6281 = vmatpush.msrb.mxu2 %v13130_v47  ;;  %v13267_v16 = vpop.f32.mrf.mxu3  ;;  %v6361_v25 = vand.u32 4294901760, %v6360_v50  ;;  %v6372_v39 = vsub.f32 %v13217_v9, %v15623_v52  ;;  %v6367_v40 = vand.u32 4294901760, %v6366_v21  ;;  %v15626_v52 = vand.u32 4294901760, %v13011_v2 }
 0x371   :  { %6240 = vmatpush.msrb.mxu1 %v12893_v33  ;;  %6344 = vmatpush.msrb.mxu3 %v6343_v56  ;;  %v13265_v33 = vand.u32 4294901760, %v160_v24  ;;  %v13269_v56 = vpop.f32.mrf.mxu1  ;;  %v15627_v21 = vand.u32 4294901760, %v13025_v38 }
 0x372   :  { %6201 = vmatpush.msrb.mxu0 %v15622_v48  ;;  %6283 = vmatpush.msrb.mxu2 %v13143_v7  ;;  %v6383_v48 = vand.u32 4294901760, %v13247_v14 }
 0x373   :  { %6242 = vmatpush.msrb.mxu1 %v12904_v43  ;;  %6350 = vmatpush.msrb.mxu3 %v6349_v19  ;;  %v15624_v43 = vand.u32 4294901760, %v12999_v1  ;;  %v15625_v19 = vand.u32 4294901760, %v13230_v55  ;;  %v15162_v1 = vand.u32 4294901760, %v13263_v36 }
 0x374   :  { %6285 = vmatpush.msrb.mxu2 %v13160_v46  ;;  %v13293_v37 = vpop.f32.mrf.mxu2  ;;  %v6384_v2 = vsub.f32 %v13247_v14, %v6383_v48 }
 0x375   :  { %6205 = vmatpush.msrb.mxu0 %v15624_v43  ;;  %6244 = vmatpush.msrb.mxu1 %v12918_v22  ;;  %v6378_v50 = vsub.f32 %v13230_v55, %v15625_v19  ;;  %v13291_v22 = vsub.f32 %v160_v24, %v13265_v33  ;;  %v13295_v43 = vpop.f32.mrf.mxu0  ;;  %v8698_v19 = vld [vmem:[#allocation7] sm:$0x3f]  ;;  %v6390_v38 = vsub.f32 %v13263_v36, %v15162_v1  ;;  %v15630_v1 = vand.u32 4294901760, %v13068_v54 }
 0x376   :  { %6356 = vmatpush.msrb.mxu3 %v6355_v45  ;;  %6287 = vmatpush.msrb.mxu2 %v13173_v27  ;;  %v6373_v45 = vand.u32 4294901760, %v6372_v39 }
 0x377   :  { %6209 = vmatpush.msrb.mxu0 %v15626_v52  ;;  %6246 = vmatpush.msrb.mxu1 %v12931_v31  ;;  %v6395_v31 = vand.u32 4294901760, %v13280_v10  ;;  %v6379_v24 = vand.u32 4294901760, %v6378_v50  ;;  %v448_v52 = vperm.slane %v8698_v19, 2  ;;  %v6401_v39 = vand.u32 4294901760, %v13291_v22 }
 0x378   :  { %6362 = vmatpush.msrb.mxu3 %v6361_v25  ;;  %6289 = vmatpush.msrb.mxu2 %v13189_v26  ;;  %v15628_v25 = vand.u32 4294901760, %v13039_v13  ;;  %v15629_v50 = vand.u32 4294901760, %v13051_v60 }
 0x379   :  { %6213 = vmatpush.msrb.mxu0 %v15627_v21  ;;  %6248 = vmatpush.msrb.mxu1 %v12939_v0  ;;  %v13313_v0 = vpop.f32.mrf.mxu3  ;;  %v13315_v21 = vpop.f32.mrf.mxu1  ;;  %v3238_v13 = vadd.f32 %v12990_v20, %v448_v52 }
 0x37a   :  { %6368 = vmatpush.msrb.mxu3 %v6367_v40  ;;  %6291 = vmatpush.msrb.mxu2 %v13202_v15  ;;  %v6385_v40 = vand.u32 4294901760, %v6384_v2 }
 0x37b   :  { %6217 = vmatpush.msrb.mxu0 %v15628_v25  ;;  %6250 = vmatpush.msrb.mxu1 %v12952_v49  ;;  %v6396_v49 = vsub.f32 %v13280_v10, %v6395_v31  ;;  %v449_v25 = vperm.slane %v8698_v19, 3  ;;  %v3339_v54 = vadd.f32 %v13018_v34, %v3238_v13  ;;  %v15634_v34 = vld [vmem:[#allocation31_spill] sm:$0xff]  ;;  %v15636_v13 = vand.u32 4294901760, %v13084_v53 }
 0x37c   :  { %6374 = vmatpush.msrb.mxu3 %v6373_v45  ;;  %6293 = vmatpush.msrb.mxu2 %v13219_v51  ;;  %v6391_v45 = vand.u32 4294901760, %v6390_v38  ;;  %v13332_v60 = vpop.f32.mrf.mxu2  ;;  %v15633_v38 = vand.u32 4294901760, %v13058_v42 }
 0x37d   :  { %6221 = vmatpush.msrb.mxu0 %v15629_v50  ;;  %6252 = vmatpush.msrb.mxu1 %v12972_v12  ;;  %v6402_v12 = vsub.f32 %v13291_v22, %v6401_v39  ;;  %v4601_v2 = vpop.f32.mrf.mxu0  ;;  %v6397_v20 = vand.u32 4294901760, %v6396_v49  ;;  %v15635_v49 = vld [vmem:[#allocation15_spill] sm:$0xff] }
 0x37e   :  { %6380 = vmatpush.msrb.mxu3 %v6379_v24  ;;  %6295 = vmatpush.msrb.mxu2 %v13235_v62  ;;  %v15631_v24 = vld [vmem:[#allocation17_spill] sm:$0xff] }
 0x37f   :  { %6225 = vmatpush.msrb.mxu0 %v15630_v1  ;;  %6254 = vmatpush.msrb.mxu1 %v12984_v17  ;;  %v4602_v17 = vadd.f32 %v4601_v2, %v449_v25  ;;  %v6403_v1 = vand.u32 4294901760, %v6402_v12  ;;  %v15637_v25 = vld [vmem:[#allocation29_spill] sm:$0xff] }
 0x380   :  { %6386 = vmatpush.msrb.mxu3 %v6385_v40  ;;  %5964 = vmatmul.f32.vlgmr.msra.gmra.mxu0 %v15631_v24  ;;  %v3393_v40 = vadd.f32 %v15634_v34, %v3339_v54  ;;  %v15645_v34 = vld [vmem:[#allocation12_spill] sm:$0xff] }
 0x381   :  { %6256 = vmatpush.msrb.mxu1 %v12996_v63  ;;  %6412 = vmatpush.msra.mxu0 %v13058_v42  ;;  %v13341_v19 = vpop.f32.mrf.mxu3  ;;  %v4702_v52 = vpop.f32.mrf.mxu1  ;;  %v15632_v63 = vld [vmem:[#allocation14_spill] sm:$0xff]  ;;  %v15639_v42 = vld [vmem:[#allocation35_spill] sm:$0xff] }
 0x382   :  { %6297 = vmatpush.msrb.mxu2 %v13252_v29  ;;  %6392 = vmatpush.msrb.mxu3 %v6391_v45  ;;  %v4703_v50 = vadd.f32 %v4702_v52, %v4602_v17  ;;  %v15638_v45 = vld [vmem:[#allocation33_spill] sm:$0xff]  ;;  %v3432_v12 = vadd.f32 %v15639_v42, %v3393_v40  ;;  %v15642_v17 = vld [vmem:[#allocation32_spill] sm:$0xff]  ;;  %v15646_v40 = vand.u32 4294901760, %v13119_v6 }
 0x383   :  { %6258 = vmatpush.msrb.mxu1 %v13008_v61  ;;  %6415 = vmatpush.msra.mxu0 %v13084_v53  ;;  %v15643_v53 = vand.u32 4294901760, %v13104_v28 }
 0x384   :  { %6299 = vmatpush.msrb.mxu2 %v13265_v33  ;;  %6398 = vmatpush.msrb.mxu3 %v6397_v20  ;;  %v4756_v61 = vpop.f32.mrf.mxu2  ;;  %v15640_v20 = vld [vmem:[#allocation13_spill] sm:$0xff] }
 0x385   :  { %6119 = vmatmul.f32.vlgmr.msra.gmra.mxu2 %v15632_v63  ;;  %6418 = vmatpush.msra.mxu0 %v13099_v32  ;;  %v4757_v2 = vadd.f32 %v4756_v61, %v4703_v50  ;;  %v15648_v50 = vld [vmem:[#allocation37_spill] sm:$0xff] }
 0x386   :  { %6506 = vmatpush.msra.mxu2 %v15633_v38  ;;  %6260 = vmatpush.msrb.mxu1 %v13021_v35  ;;  %v15641_v35 = vand.u32 4294901760, %v13099_v32  ;;  %v4864_v32 = vpop.f32.mrf.mxu0 }
 0x387   :  { %6404 = vmatpush.msrb.mxu3 %v6403_v1  ;;  %6421 = vmatpush.msra.mxu0 %v13104_v28  ;;  %v15644_v1 = vld [vmem:[#allocation34_spill] sm:$0xff]  ;;  %v15647_v28 = vld [vmem:[#allocation16_spill] sm:$0xff] }
 0x388   :  { %6158 = vmatmul.f32.vlgmr.msra.gmra.mxu3 %v15635_v49  ;;  %6510 = vmatpush.msra.mxu2 %v15636_v13  ;;  %v3501_v52 = vadd.f32 %v15644_v1, %v3432_v12  ;;  %v15652_v12 = vand.u32 4294901760, %v13171_v5  ;;  %v334_v1 = vld [vmem:[#allocation5 + $0x890] sm:$0xff] }
 0x389   :  { %6573 = vmatpush.msra.mxu3 %v15637_v25  ;;  %6262 = vmatpush.msrb.mxu1 %v15638_v45  ;;  %v4795_v54 = vpop.f32.mrf.mxu3  ;;  %v15651_v45 = vld [vmem:[#allocation36_spill] sm:$0xff]  ;;  %v15670_v49 = vld [vmem:[#allocation23_spill] sm:$0xff] }
 0x38a   :  { %6424 = vmatpush.msra.mxu0 %v13119_v6  ;;  %6065 = vmatmul.f32.vlgmr.msra.gmra.mxu1 %v15640_v20  ;;  %v4796_v38 = vadd.f32 %v4795_v54, %v4757_v2  ;;  %v3538_v61 = vadd.f32 %v15648_v50, %v3501_v52  ;;  %v15650_v6 = vand.u32 4294901760, %v13158_v3  ;;  %v15654_v2 = vld [vmem:[#allocation39_spill] sm:$0xff]  ;;  %v328_v50 = vld [vmem:[#allocation5 + $0x860] sm:$0xff] }
 0x38b   :  { %6514 = vmatpush.msra.mxu2 %v15641_v35  ;;  %6465 = vmatpush.msra.mxu1 %v15637_v25  ;;  %v15649_v25 = vand.u32 4294901760, %v13141_v41 }
 0x38c   :  { %6575 = vmatpush.msra.mxu3 %v15642_v17  ;;  %6427 = vmatpush.msra.mxu0 %v13141_v41  ;;  %v4865_v13 = vadd.f32 %v4864_v32, %v4796_v38  ;;  %v3579_v42 = vadd.f32 %v15651_v45, %v3538_v61  ;;  %v4942_v41 = vpop.f32.mrf.mxu2  ;;  %v15657_v38 = vand.u32 4294901760, %v13217_v9 }
 0x38d   :  { %6518 = vmatpush.msra.mxu2 %v15643_v53  ;;  %6467 = vmatpush.msra.mxu1 %v15642_v17  ;;  %v15655_v17 = vand.u32 4294901760, %v13200_v58 }
 0x38e   :  { %6577 = vmatpush.msra.mxu3 %v13070_v8  ;;  %6305 = vmatmul.f32.vlgmr.msrb.gmra.mxu2 %v15645_v34  ;;  %v3680_v35 = vadd.f32 %v15654_v2, %v3579_v42  ;;  %v5097_v52 = vpop.f32.mrf.mxu0 }
 0x38f   :  { %6430 = vmatpush.msra.mxu0 %v13158_v3  ;;  %6469 = vmatpush.msra.mxu1 %v13070_v8  ;;  %v4901_v8 = vpop.f32.mrf.mxu1  ;;  %v15653_v3 = vand.u32 4294901760, %v13187_v18 }
 0x390   :  { %6522 = vmatpush.msra.mxu2 %v15646_v40  ;;  %6579 = vmatpush.msra.mxu3 %v13074_v30 }
 0x391   :  { %6227 = vmatmul.f32.vlgmr.msrb.gmra.mxu0 %v15640_v20  ;;  %6406 = vmatmul.f32.vlgmr.msrb.gmra.mxu3 %v15647_v28 }
 0x392   :  { %6433 = vmatpush.msra.mxu0 %v13171_v5  ;;  %6471 = vmatpush.msra.mxu1 %v13074_v30  ;;  %v4902_v30 = vadd.f32 %v4901_v8, %v4865_v13  ;;  %v5043_v5 = vpop.f32.mrf.mxu3 }
 0x393   :  { %6526 = vmatpush.msra.mxu2 %v15649_v25  ;;  %6581 = vmatpush.msra.mxu3 %v13089_v57  ;;  %v322_v25 = vld [vmem:[#allocation5 + $0x830] sm:$0xff] }
 0x394   :  { %6264 = vmatmul.f32.vlgmr.msrb.gmra.mxu1 %v15640_v20  ;;  %6436 = vmatpush.msra.mxu0 %v13187_v18  ;;  %v4943_v54 = vadd.f32 %v4942_v41, %v4902_v30  ;;  %v15656_v18 = vld [vmem:[#allocation38_spill] sm:$0xff]  ;;  %v13441_v30 = vand.u32 4294901760, %v322_v25 }
 0x395   :  { %6473 = vmatpush.msra.mxu1 %v13089_v57  ;;  %6530 = vmatpush.msra.mxu2 %v15650_v6  ;;  %v346_v57 = vld [vmem:[#allocation5 + $0x8f0] sm:$0xff]  ;;  %v3734_v53 = vadd.f32 %v15656_v18, %v3680_v35  ;;  %v316_v6 = vld [vmem:[#allocation5 + $0x800] sm:$0xff] }
 0x396   :  { %6583 = vmatpush.msra.mxu3 %v13111_v59  ;;  %6439 = vmatpush.msra.mxu0 %v13200_v58  ;;  %v15658_v58 = vld [vmem:[#allocation40_spill] sm:$0xff]  ;;  %v5044_v40 = vadd.f32 %v5043_v5, %v4943_v54 }
 0x397   :  { %6475 = vmatpush.msra.mxu1 %v13111_v59  ;;  %6534 = vmatpush.msra.mxu2 %v15652_v12  ;;  %v340_v59 = vld [vmem:[#allocation5 + $0x8c0] sm:$0xff]  ;;  %v3773_v32 = vadd.f32 %v15658_v58, %v3734_v53  ;;  %v5136_v61 = vpop.f32.mrf.mxu1  ;;  %v15661_v12 = vld [vmem:[#allocation18_spill] sm:$0xff] }
 0x398   :  { %6585 = vmatpush.msra.mxu3 %v13130_v47  ;;  %6442 = vmatpush.msra.mxu0 %v13217_v9  ;;  %v13423_v9 = vand.u32 4294901760, %v334_v1  ;;  %v5098_v8 = vadd.f32 %v5097_v52, %v5044_v40  ;;  %v304_v35 = vld [vmem:[#allocation5 + $0x7a0] sm:$0xff] }
 0x399   :  { %6477 = vmatpush.msra.mxu1 %v13130_v47  ;;  %6538 = vmatpush.msra.mxu2 %v15653_v3  ;;  %v13407_v47 = vand.u32 4294901760, %v346_v57  ;;  %v3842_v45 = vadd.f32 %v13181_v44, %v3773_v32  ;;  %v13452_v44 = vand.u32 4294901760, %v316_v6  ;;  %v13487_v18 = vand.u32 4294901760, %v304_v35  ;;  %v292_v32 = vld [vmem:[#allocation5 + $0x740] sm:$0xff] }
 0x39a   :  { %6587 = vmatpush.msra.mxu3 %v13143_v7  ;;  %6445 = vmatpush.msra.mxu0 %v13230_v55  ;;  %v5137_v42 = vadd.f32 %v5136_v61, %v5098_v8  ;;  %v13448_v41 = vsub.f32 %v334_v1, %v13423_v9  ;;  %v5242_v54 = vpop.f32.mrf.mxu3  ;;  %v15663_v1 = vld [vmem:[#allocation28_spill] sm:$0xff] }
 0x39b   :  { %6479 = vmatpush.msra.mxu1 %v13143_v7  ;;  %6542 = vmatpush.msra.mxu2 %v15655_v17  ;;  %v13415_v7 = vand.u32 4294901760, %v340_v59  ;;  %v13426_v13 = vsub.f32 %v346_v57, %v13407_v47  ;;  %v3879_v3 = vadd.f32 %v13207_v23, %v3842_v45  ;;  %v13480_v5 = vsub.f32 %v316_v6, %v13452_v44  ;;  %v298_v17 = vld [vmem:[#allocation5 + $0x770] sm:$0xff] }
 0x39c   :  { %6589 = vmatpush.msra.mxu3 %v13160_v46  ;;  %6448 = vmatpush.msra.mxu0 %v13247_v14  ;;  %v15660_v14 = vand.u32 4294901760, %v13263_v36  ;;  %v286_v6 = vld [vmem:[#allocation5 + $0x710] sm:$0xff] }
 0x39d   :  { %6481 = vmatpush.msra.mxu1 %v13160_v46  ;;  %6546 = vmatpush.msra.mxu2 %v15657_v38  ;;  %v15659_v46 = vand.u32 4294901760, %v13230_v55  ;;  %v13436_v55 = vsub.f32 %v340_v59, %v13415_v7  ;;  %v15662_v59 = vld [vmem:[#allocation30_spill] sm:$0xff]  ;;  %v15163_v8 = vand.u32 4294901760, %v13480_v5 }
 0x39e   :  { %6591 = vmatpush.msra.mxu3 %v13173_v27  ;;  %6451 = vmatpush.msra.mxu0 %v13263_v36 }
 0x39f   :  { %6483 = vmatpush.msra.mxu1 %v13173_v27  ;;  %6550 = vmatpush.msra.mxu2 %v15659_v46  ;;  %v13433_v27 = vand.u32 4294901760, %v328_v50  ;;  %v15171_v36 = vand.u32 4294901760, %v13436_v55  ;;  %v5384_v40 = vpop.f32.mrf.mxu1  ;;  %v13499_v46 = vand.u32 4294901760, %v298_v17 }
 0x3a0   :  { %6593 = vmatpush.msra.mxu3 %v13189_v26  ;;  %6454 = vmatpush.msra.mxu0 %v13280_v10 }
 0x3a1   :  { %6485 = vmatpush.msra.mxu1 %v13189_v26  ;;  %6554 = vmatpush.msra.mxu2 %v6383_v48  ;;  %v5205_v26 = vpop.f32.mrf.mxu2  ;;  %v15173_v48 = vand.u32 4294901760, %v13426_v13  ;;  %v13459_v57 = vsub.f32 %v328_v50, %v13433_v27 }
 0x3a2   :  { %6595 = vmatpush.msra.mxu3 %v13202_v15  ;;  %6457 = vmatpush.msra.mxu0 %v13291_v22  ;;  %v5206_v2 = vadd.f32 %v5205_v26, %v5137_v42  ;;  %v5283_v22 = vpop.f32.mrf.mxu0  ;;  %v13512_v26 = vand.u32 4294901760, %v292_v32 }
 0x3a3   :  { %6487 = vmatpush.msra.mxu1 %v13202_v15  ;;  %6558 = vmatpush.msra.mxu2 %v15660_v14  ;;  %v310_v15 = vld [vmem:[#allocation5 + $0x7d0] sm:$0xff]  ;;  %v6653_v10 = vsub.f32 %v13426_v13, %v15173_v48  ;;  %v15167_v53 = vand.u32 4294901760, %v13459_v57  ;;  %v13515_v14 = vsub.f32 %v304_v35, %v13487_v18  ;;  %v424_v48 = vld [vmem:[#allocation5 + $0xb60] sm:$0xff] }
 0x3a4   :  { %6597 = vmatpush.msra.mxu3 %v13219_v51  ;;  %6460 = vmatmul.f32.vlgmr.msra.gmra.mxu0 %v15661_v12  ;;  %v13473_v23 = vand.u32 4294901760, %v310_v15  ;;  %v5243_v38 = vadd.f32 %v5242_v54, %v5206_v2  ;;  %v15664_v2 = vld [vmem:[#allocation19_spill] sm:$0xff]  ;;  %v280_v54 = vld [vmem:[#allocation5 + $0x6e0] sm:$0xff] }
 0x3a5   :  { %6489 = vmatpush.msra.mxu1 %v13219_v51  ;;  %6610 = vmatpush.msrb.mxu0 %v13407_v47  ;;  %v13465_v51 = vsub.f32 %v322_v25, %v13441_v30  ;;  %v6654_v50 = vand.u32 4294901760, %v6653_v10  ;;  %v6671_v42 = vsub.f32 %v13459_v57, %v15167_v53 }
 0x3a6   :  { %6562 = vmatpush.msra.mxu2 %v6395_v31  ;;  %6599 = vmatpush.msra.mxu3 %v13235_v62  ;;  %v15169_v31 = vand.u32 4294901760, %v13448_v41  ;;  %v13502_v25 = vsub.f32 %v310_v15, %v13473_v23 }
 0x3a7   :  { %6491 = vmatpush.msra.mxu1 %v13235_v62  ;;  %6612 = vmatpush.msrb.mxu0 %v13415_v7  ;;  %v3920_v62 = vadd.f32 %v15662_v59, %v3879_v3  ;;  %v15165_v58 = vand.u32 4294901760, %v13465_v51 }
 0x3a8   :  { %6566 = vmatpush.msra.mxu2 %v6401_v39  ;;  %6601 = vmatpush.msra.mxu3 %v13252_v29  ;;  %v6659_v39 = vsub.f32 %v13436_v55, %v15171_v36  ;;  %v6665_v61 = vsub.f32 %v13448_v41, %v15169_v31  ;;  %v15164_v35 = vand.u32 4294901760, %v13502_v25  ;;  %v436_v31 = vld [vmem:[#allocation5 + $0xbc0] sm:$0xff] }
 0x3a9   :  { %6568 = vmatmul.f32.vlgmr.msra.gmra.mxu2 %v15647_v28  ;;  %6614 = vmatpush.msrb.mxu0 %v13423_v9  ;;  %v4021_v52 = vadd.f32 %v15663_v1, %v3920_v62  ;;  %v5438_v10 = vpop.f32.mrf.mxu2  ;;  %v13524_v62 = vand.u32 4294901760, %v286_v6  ;;  %v6672_v1 = vand.u32 4294901760, %v6671_v42 }
 0x3aa   :  { %6753 = vmatpush.msrb.mxu2 %v13426_v13  ;;  %6493 = vmatpush.msra.mxu1 %v13252_v29  ;;  %v5284_v29 = vadd.f32 %v5283_v22, %v5243_v38  ;;  %v6660_v45 = vand.u32 4294901760, %v6659_v39  ;;  %v6666_v59 = vand.u32 4294901760, %v6665_v61  ;;  %v6683_v22 = vsub.f32 %v13480_v5, %v15163_v8  ;;  %v274_v39 = vld [vmem:[#allocation5 + $0x6b0] sm:$0xff] }
 0x3ab   :  { %6603 = vmatpush.msra.mxu3 %v13265_v33  ;;  %6616 = vmatpush.msrb.mxu0 %v13433_v27  ;;  %v4075_v15 = vadd.f32 %v13237_v11, %v4021_v52  ;;  %v13528_v11 = vsub.f32 %v298_v17, %v13499_v46  ;;  %v13536_v52 = vand.u32 4294901760, %v280_v54  ;;  %v15166_v38 = vand.u32 4294901760, %v13515_v14 }
 0x3ac   :  { %6605 = vmatmul.f32.vlgmr.msra.gmra.mxu3 %v15647_v28  ;;  %6756 = vmatpush.msrb.mxu2 %v13436_v55  ;;  %v5385_v3 = vadd.f32 %v5384_v40, %v5284_v29  ;;  %v13540_v17 = vsub.f32 %v292_v32, %v13512_v26  ;;  %v268_v29 = vld [vmem:[#allocation5 + $0x680] sm:$0xff]  ;;  %v6689_v42 = vsub.f32 %v13502_v25, %v15164_v35  ;;  %v13549_v8 = vand.u32 4294901760, %v274_v39 }
 0x3ad   :  { %6806 = vmatpush.msrb.mxu3 %v13407_v47  ;;  %6495 = vmatpush.msra.mxu1 %v13265_v33  ;;  %v6677_v33 = vsub.f32 %v13465_v51, %v15165_v58  ;;  %v4114_v40 = vadd.f32 %v13267_v16, %v4075_v15  ;;  %v15168_v32 = vand.u32 4294901760, %v13528_v11  ;;  %v13553_v16 = vsub.f32 %v286_v6, %v13524_v62 }
 0x3ae   :  { %6618 = vmatpush.msrb.mxu0 %v13441_v30  ;;  %6499 = vmatmul.f32.vlgmr.msra.gmra.mxu1 %v15664_v2  ;;  %15665 = vst [vmem:[#allocation31_spill] sm:$0xff] %v13549_v8  ;;  %v15170_v6 = vand.u32 4294901760, %v13540_v17  ;;  %v13566_v35 = vsub.f32 %v280_v54, %v13536_v52  ;;  %v13577_v53 = vsub.f32 %v274_v39, %v13549_v8 }
 0x3af   :  { %6759 = vmatpush.msrb.mxu2 %v13448_v41  ;;  %6655 = vmatpush.msrb.mxu1 %v6654_v50  ;;  %v5439_v50 = vadd.f32 %v5438_v10, %v5385_v3  ;;  %v6678_v61 = vand.u32 4294901760, %v6677_v33  ;;  %v4183_v15 = vadd.f32 %v13239_v4, %v4114_v40  ;;  %v6684_v3 = vand.u32 4294901760, %v6683_v22  ;;  %v5546_v33 = vpop.f32.mrf.mxu0  ;;  %v262_v4 = vld [vmem:[#allocation5 + $0x650] sm:$0xff]  ;;  %v5583_v22 = vpop.f32.mrf.mxu1 }
 0x3b0   :  { %6808 = vmatpush.msrb.mxu3 %v13415_v7  ;;  %6620 = vmatpush.msrb.mxu0 %v13452_v44  ;;  %v6695_v10 = vsub.f32 %v13515_v14, %v15166_v38  ;;  %v6701_v38 = vsub.f32 %v13528_v11, %v15168_v32  ;;  %v15172_v54 = vand.u32 4294901760, %v13553_v16  ;;  %v15174_v39 = vand.u32 4294901760, %v13566_v35 }
 0x3b1   :  { %6762 = vmatpush.msrb.mxu2 %v13459_v57  ;;  %6661 = vmatpush.msrb.mxu1 %v6660_v45  ;;  %v5477_v45 = vpop.f32.mrf.mxu3  ;;  %v4220_v40 = vadd.f32 %v13269_v56, %v4183_v15  ;;  %v442_v56 = vld [vmem:[#allocation5 + $0xbf0] sm:$0xff]  ;;  %v6707_v15 = vsub.f32 %v13540_v17, %v15170_v6 }
 0x3b2   :  { %6810 = vmatpush.msrb.mxu3 %v13423_v9  ;;  %6622 = vmatpush.msrb.mxu0 %v13473_v23  ;;  %v5478_v58 = vadd.f32 %v5477_v45, %v5439_v50  ;;  %v13581_v45 = vand.u32 4294901760, %v262_v4  ;;  %v6702_v6 = vand.u32 4294901760, %v6701_v38 }
 0x3b3   :  { %6765 = vmatpush.msrb.mxu2 %v13465_v51  ;;  %6667 = vmatpush.msrb.mxu1 %v6666_v59  ;;  %v13562_v59 = vand.u32 4294901760, %v268_v29  ;;  %v6708_v38 = vand.u32 4294901760, %v6707_v15 }
 0x3b4   :  { %6812 = vmatpush.msrb.mxu3 %v13433_v27  ;;  %6624 = vmatpush.msrb.mxu0 %v13487_v18  ;;  %v5547_v50 = vadd.f32 %v5546_v33, %v5478_v58  ;;  %15666 = vst [vmem:[#allocation29_spill] sm:$0xff] %v13581_v45  ;;  %v4261_v58 = vadd.f32 %v13293_v37, %v4220_v40 }
 0x3b5   :  { %6768 = vmatpush.msrb.mxu2 %v13480_v5  ;;  %6673 = vmatpush.msrb.mxu1 %v6672_v1  ;;  %v6690_v1 = vand.u32 4294901760, %v6689_v42  ;;  %v6696_v42 = vand.u32 4294901760, %v6695_v10  ;;  %v13589_v32 = vsub.f32 %v268_v29, %v13562_v59  ;;  %v5624_v10 = vpop.f32.mrf.mxu2  ;;  %v6713_v29 = vsub.f32 %v13553_v16, %v15172_v54 }
 0x3b6   :  { %6814 = vmatpush.msrb.mxu3 %v13441_v30  ;;  %6626 = vmatpush.msrb.mxu0 %v13499_v46  ;;  %v5584_v33 = vadd.f32 %v5583_v22, %v5547_v50  ;;  %v13606_v40 = vsub.f32 %v262_v4, %v13581_v45  ;;  %v430_v22 = vld [vmem:[#allocation5 + $0xb90] sm:$0xff]  ;;  %v13613_v54 = vand.u32 4294901760, %v436_v31  ;;  %v4362_v37 = vadd.f32 %v13313_v0, %v4261_v58 }
 0x3b7   :  { %6771 = vmatpush.msrb.mxu2 %v13502_v25  ;;  %6679 = vmatpush.msrb.mxu1 %v6678_v61  ;;  %v256_v61 = vld [vmem:[#allocation5 + $0x620] sm:$0xff]  ;;  %v6714_v15 = vand.u32 4294901760, %v6713_v29  ;;  %v13628_v0 = vand.u32 4294901760, %v430_v22  ;;  %v418_v58 = vld [vmem:[#allocation5 + $0xb30] sm:$0xff] }
 0x3b8   :  { %6816 = vmatpush.msrb.mxu3 %v13452_v44  ;;  %6628 = vmatpush.msrb.mxu0 %v13512_v26  ;;  %v13600_v36 = vand.u32 4294901760, %v256_v61  ;;  %v5625_v2 = vadd.f32 %v5624_v10, %v5584_v33  ;;  %v4416_v33 = vadd.f32 %v13295_v43, %v4362_v37  ;;  %v13641_v28 = vsub.f32 %v436_v31, %v13613_v54  ;;  %v412_v37 = vld [vmem:[#allocation5 + $0xb00] sm:$0xff] }
 0x3b9   :  { %6774 = vmatpush.msrb.mxu2 %v13515_v14  ;;  %6685 = vmatpush.msrb.mxu1 %v6684_v3  ;;  %v13594_v3 = vand.u32 4294901760, %v442_v56  ;;  %v13646_v43 = vand.u32 4294901760, %v418_v58  ;;  %v13652_v31 = vsub.f32 %v430_v22, %v13628_v0  ;;  %v13664_v20 = vand.u32 4294901760, %v412_v37 }
 0x3ba   :  { %6818 = vmatpush.msrb.mxu3 %v13473_v23  ;;  %6630 = vmatpush.msrb.mxu0 %v13524_v62  ;;  %v13626_v12 = vsub.f32 %v256_v61, %v13600_v36  ;;  %v15668_v61 = vand.u32 4294901760, %v13589_v32 }
 0x3bb   :  { %6777 = vmatpush.msrb.mxu2 %v13528_v11  ;;  %6691 = vmatpush.msrb.mxu1 %v6690_v1  ;;  %v6719_v1 = vsub.f32 %v13566_v35, %v15174_v39  ;;  %v13619_v4 = vsub.f32 %v442_v56, %v13594_v3  ;;  %v15667_v39 = vand.u32 4294901760, %v13577_v53  ;;  %v5779_v10 = vpop.f32.mrf.mxu0 }
 0x3bc   :  { %6820 = vmatpush.msrb.mxu3 %v13487_v18  ;;  %6632 = vmatpush.msrb.mxu0 %v13536_v52  ;;  %v6731_v29 = vsub.f32 %v13589_v32, %v15668_v61  ;;  %v15673_v22 = vand.u32 4294901760, %v13626_v12 }
 0x3bd   :  { %6780 = vmatpush.msrb.mxu2 %v13540_v17  ;;  %6697 = vmatpush.msrb.mxu1 %v6696_v42  ;;  %v5725_v42 = vpop.f32.mrf.mxu3  ;;  %v6725_v50 = vsub.f32 %v13577_v53, %v15667_v39  ;;  %v6720_v39 = vand.u32 4294901760, %v6719_v1 }
 0x3be   :  { %6822 = vmatpush.msrb.mxu3 %v13499_v46  ;;  %6634 = vmatpush.msrb.mxu0 %v13549_v8  ;;  %v5726_v34 = vadd.f32 %v5725_v42, %v5625_v2  ;;  %v15669_v42 = vand.u32 4294901760, %v13606_v40  ;;  %v6743_v63 = vsub.f32 %v13626_v12, %v15673_v22  ;;  %v15675_v22 = vand.u32 4294901760, %v13641_v28 }
 0x3bf   :  { %6783 = vmatpush.msrb.mxu2 %v13553_v16  ;;  %6703 = vmatpush.msrb.mxu1 %v6702_v6  ;;  %v13633_v6 = vand.u32 4294901760, %v424_v48  ;;  %v6726_v1 = vand.u32 4294901760, %v6725_v50  ;;  %v6732_v50 = vand.u32 4294901760, %v6731_v29  ;;  %v15672_v29 = vand.u32 4294901760, %v13426_v13 }
 0x3c0   :  { %6824 = vmatpush.msrb.mxu3 %v13512_v26  ;;  %6636 = vmatpush.msrb.mxu0 %v13562_v59  ;;  %v5780_v2 = vadd.f32 %v5779_v10, %v5726_v34  ;;  %v6737_v56 = vsub.f32 %v13606_v40, %v15669_v42  ;;  %v15671_v34 = vand.u32 4294901760, %v13619_v4  ;;  %v400_v42 = vld [vmem:[#allocation5 + $0xaa0] sm:$0xff] }
 0x3c1   :  { %6786 = vmatpush.msrb.mxu2 %v13566_v35  ;;  %6709 = vmatpush.msrb.mxu1 %v6708_v38  ;;  %v4455_v38 = vadd.f32 %v13315_v21, %v4416_v33  ;;  %v13660_v21 = vsub.f32 %v424_v48, %v13633_v6 }
 0x3c2   :  { %6826 = vmatpush.msrb.mxu3 %v13524_v62  ;;  %6638 = vmatpush.msrb.mxu0 %v13581_v45  ;;  %v6994_v48 = vsub.f32 %v13619_v4, %v15671_v34  ;;  %v15674_v34 = vand.u32 4294901760, %v13436_v55  ;;  %v388_v55 = vld [vmem:[#allocation5 + $0xa40] sm:$0xff] }
 0x3c3   :  { %6789 = vmatpush.msrb.mxu2 %v13577_v53  ;;  %6715 = vmatpush.msrb.mxu1 %v6714_v15  ;;  %v406_v15 = vld [vmem:[#allocation5 + $0xad0] sm:$0xff] }
 0x3c4   :  { %6828 = vmatpush.msrb.mxu3 %v13536_v52  ;;  %6640 = vmatpush.msrb.mxu0 %v13600_v36  ;;  %v13680_v24 = vand.u32 4294901760, %v406_v15 }
 0x3c5   :  { %6792 = vmatpush.msrb.mxu2 %v13589_v32  ;;  %6721 = vmatpush.msrb.mxu1 %v6720_v39  ;;  %v5818_v33 = vpop.f32.mrf.mxu1  ;;  %v5887_v61 = vpop.f32.mrf.mxu2  ;;  %v13672_v39 = vsub.f32 %v418_v58, %v13646_v43  ;;  %v6738_v58 = vand.u32 4294901760, %v6737_v56  ;;  %v15676_v56 = vld [vmem:[#allocation21_spill] sm:$0xff] }
 0x3c6   :  { %6830 = vmatpush.msrb.mxu3 %v13549_v8  ;;  %6646 = vmatmul.f32.vlgmr.msrb.gmra.mxu0 %v15670_v49  ;;  %v5819_v10 = vadd.f32 %v5818_v33, %v5780_v2  ;;  %v15179_v49 = vand.u32 4294901760, %v13652_v31  ;;  %v4524_v8 = vadd.f32 %v13332_v60, %v4455_v38  ;;  %v13692_v60 = vsub.f32 %v412_v37, %v13664_v20 }
 0x3c7   :  { %6795 = vmatpush.msrb.mxu2 %v13606_v40  ;;  %6847 = vmatpush.msra.mxu0 %v15672_v29  ;;  %v7000_v29 = vsub.f32 %v13641_v28, %v15675_v22  ;;  %v13694_v38 = vand.u32 4294901760, %v400_v42  ;;  %v13706_v22 = vsub.f32 %v406_v15, %v13680_v24 }
 0x3c8   :  { %6727 = vmatpush.msrb.mxu1 %v6726_v1  ;;  %6832 = vmatpush.msrb.mxu3 %v13562_v59  ;;  %v5888_v2 = vadd.f32 %v5887_v61, %v5819_v10  ;;  %v5924_v33 = vpop.f32.mrf.mxu3  ;;  %v394_v1 = vld [vmem:[#allocation5 + $0xa70] sm:$0xff]  ;;  %v6995_v61 = vand.u32 4294901760, %v6994_v48  ;;  %v7006_v37 = vsub.f32 %v13652_v31, %v15179_v49  ;;  %v4561_v48 = vadd.f32 %v13341_v19, %v4524_v8 }
 0x3c9   :  { %6798 = vmatpush.msrb.mxu2 %v13626_v12  ;;  %6851 = vmatpush.msra.mxu0 %v15674_v34  ;;  %v6744_v34 = vand.u32 4294901760, %v6743_v63  ;;  %v382_v63 = vld [vmem:[#allocation5 + $0xa10] sm:$0xff]  ;;  %v15680_v49 = vand.u32 4294901760, %v13459_v57  ;;  %v7001_v15 = vand.u32 4294901760, %v7000_v29  ;;  %v13722_v19 = vand.u32 4294901760, %v388_v55 }
 0x3ca   :  { %6733 = vmatpush.msrb.mxu1 %v6732_v50  ;;  %6834 = vmatpush.msrb.mxu3 %v13581_v45  ;;  %v5925_v10 = vadd.f32 %v5924_v33, %v5888_v2  ;;  %v15677_v50 = vand.u32 4294901760, %v13448_v41  ;;  %v13708_v45 = vand.u32 4294901760, %v394_v1  ;;  %v15678_v41 = vand.u32 4294901760, %v13660_v21 }
 0x3cb   :  { %6801 = vmatmul.f32.vlgmr.msrb.gmra.mxu2 %v15676_v56  ;;  %v13720_v56 = vsub.f32 %v400_v42, %v13694_v38  ;;  %v7007_v57 = vand.u32 4294901760, %v7006_v37  ;;  %v15180_v42 = vand.u32 4294901760, %v13706_v22  ;;  %v13735_v13 = vand.u32 4294901760, %v382_v63 }
 0x3cc   :  { %6855 = vmatpush.msra.mxu0 %v15677_v50  ;;  %6951 = vmatpush.msra.mxu2 %v13594_v3  ;;  %v7012_v2 = vsub.f32 %v13660_v21, %v15678_v41  ;;  %v8662_v33 = vrot.slane %v5925_v10, 4  ;;  %v15679_v50 = vld [vmem:[#allocation22_spill] sm:$0xff]  ;;  %v376_v41 = vld [vmem:[#allocation5 + $0x9e0] sm:$0xff]  ;;  %v13733_v29 = vsub.f32 %v394_v1, %v13708_v45  ;;  %v13745_v1 = vsub.f32 %v388_v55, %v13722_v19 }
 0x3cd   :  { %6739 = vmatpush.msrb.mxu1 %v6738_v58  ;;  %6836 = vmatpush.msrb.mxu3 %v13600_v36  ;;  %v15681_v58 = vand.u32 4294901760, %v13672_v39  ;;  %v7035_v37 = vand.u32 4294901760, %v13720_v56  ;;  %v13758_v55 = vsub.f32 %v382_v63, %v13735_v13 }
 0x3ce   :  { %6840 = vmatmul.f32.vlgmr.msrb.gmra.mxu3 %v15679_v50  ;;  %6859 = vmatpush.msra.mxu0 %v15680_v49  ;;  %v8666_v8 = vsel %vm8664_vm0, %v4561_v48, %v8662_v33  ;;  %v15682_v49 = vand.u32 4294901760, %v13465_v51  ;;  %v7013_v48 = vand.u32 4294901760, %v7012_v2  ;;  %v370_v33 = vld [vmem:[#allocation5 + $0x9b0] sm:$0xff]  ;;  %v15684_v51 = vand.u32 4294901760, %v13692_v60  ;;  %v179_v50 = vld [vmem:[#allocation5 + $0x3b8] sm:$0xff] }
 0x3cf   :  { %6953 = vmatpush.msra.mxu2 %v13613_v54  ;;  %6996 = vmatpush.msra.mxu3 %v6995_v61  ;;  %v7018_v10 = vsub.f32 %v13672_v39, %v15681_v58  ;;  %8672 = vst [vmem:[#allocation8 + $0x8] sm:$0xff] %v8666_v8  ;;  %v15683_v61 = vld [vmem:[#allocation20_spill] sm:$0xff]  ;;  %v13747_v8 = vand.u32 4294901760, %v376_v41  ;;  %v15685_v58 = vand.u32 4294901760, %v13480_v5  ;;  %v15686_v5 = vand.u32 4294901760, %v13502_v25 }
 0x3d0   :  { %6745 = vmatpush.msrb.mxu1 %v6744_v34  ;;  %6863 = vmatpush.msra.mxu0 %v15682_v49  ;;  %v7024_v34 = vsub.f32 %v13692_v60, %v15684_v51  ;;  %v13760_v49 = vand.u32 4294901760, %v370_v33  ;;  %v364_v51 = vld [vmem:[#allocation5 + $0x980] sm:$0xff] }
 0x3d1   :  { %6747 = vmatmul.f32.vlgmr.msrb.gmra.mxu1 %v15683_v61  ;;  %6955 = vmatpush.msra.mxu2 %v13628_v0  ;;  %v7019_v2 = vand.u32 4294901760, %v7018_v10  ;;  %v7036_v10 = vsub.f32 %v13720_v56, %v7035_v37  ;;  %v13771_v63 = vsub.f32 %v376_v41, %v13747_v8  ;;  %v13776_v25 = vand.u32 4294901760, %v364_v51 }
 0x3d2   :  { %6914 = vmatpush.msra.mxu1 %v13407_v47  ;;  %7002 = vmatpush.msra.mxu3 %v7001_v15  ;;  %v7030_v47 = vsub.f32 %v13706_v22, %v15180_v42  ;;  %v7041_v15 = vand.u32 4294901760, %v13733_v29  ;;  %v15687_v42 = vand.u32 4294901760, %v13515_v14  ;;  %v13784_v41 = vsub.f32 %v370_v33, %v13760_v49 }
 0x3d3   :  { %6867 = vmatpush.msra.mxu0 %v15685_v58  ;;  %6957 = vmatpush.msra.mxu2 %v13633_v6  ;;  %v358_v58 = vld [vmem:[#allocation5 + $0x950] sm:$0xff]  ;;  %v15688_v14 = vand.u32 4294901760, %v13528_v11  ;;  %v15689_v33 = vand.u32 4294901760, %v13540_v17  ;;  %v13800_v11 = vsub.f32 %v364_v51, %v13776_v25  ;;  %v15690_v17 = vand.u32 4294901760, %v13553_v16 }
 0x3d4   :  { %6916 = vmatpush.msra.mxu1 %v13415_v7  ;;  %7008 = vmatpush.msra.mxu3 %v7007_v57  ;;  %v7025_v7 = vand.u32 4294901760, %v7024_v34  ;;  %v7047_v57 = vand.u32 4294901760, %v13745_v1  ;;  %v7053_v34 = vand.u32 4294901760, %v13758_v55 }
 0x3d5   :  { %6871 = vmatpush.msra.mxu0 %v15686_v5  ;;  %6959 = vmatpush.msra.mxu2 %v13646_v43  ;;  %v352_v5 = vld [vmem:[#allocation5 + $0x920] sm:$0xff]  ;;  %v7071_v16 = vand.u32 4294901760, %v13800_v11 }
 0x3d6   :  { %6918 = vmatpush.msra.mxu1 %v13423_v9  ;;  %7014 = vmatpush.msra.mxu3 %v7013_v48  ;;  %v7031_v9 = vand.u32 4294901760, %v7030_v47  ;;  %v7042_v48 = vsub.f32 %v13733_v29, %v7041_v15  ;;  %v7059_v47 = vand.u32 4294901760, %v13771_v63 }
 0x3d7   :  { %6875 = vmatpush.msra.mxu0 %v15687_v42  ;;  %6961 = vmatpush.msra.mxu2 %v13664_v20  ;;  %v13789_v42 = vand.u32 4294901760, %v358_v58 }
 0x3d8   :  { %6920 = vmatpush.msra.mxu1 %v13433_v27  ;;  %7020 = vmatpush.msra.mxu3 %v7019_v2  ;;  %v7037_v27 = vand.u32 4294901760, %v7036_v10  ;;  %v7048_v2 = vsub.f32 %v13745_v1, %v7047_v57  ;;  %v7065_v10 = vand.u32 4294901760, %v13784_v41 }
 0x3d9   :  { %6879 = vmatpush.msra.mxu0 %v15688_v14  ;;  %6963 = vmatpush.msra.mxu2 %v13680_v24  ;;  %v13802_v14 = vand.u32 4294901760, %v352_v5  ;;  %v13813_v51 = vsub.f32 %v358_v58, %v13789_v42 }
 0x3da   :  { %6922 = vmatpush.msra.mxu1 %v13441_v30  ;;  %7026 = vmatpush.msra.mxu3 %v7025_v7  ;;  %v7043_v30 = vand.u32 4294901760, %v7042_v48  ;;  %v7054_v7 = vsub.f32 %v13758_v55, %v7053_v34  ;;  %v15691_v48 = vand.u32 4294901760, %v13566_v35  ;;  %v7066_v58 = vsub.f32 %v13784_v41, %v7065_v10 }
 0x3db   :  { %6883 = vmatpush.msra.mxu0 %v15689_v33  ;;  %6965 = vmatpush.msra.mxu2 %v13694_v38  ;;  %v13824_v33 = vsub.f32 %v352_v5, %v13802_v14  ;;  %v7077_v35 = vand.u32 4294901760, %v13813_v51 }
 0x3dc   :  { %6924 = vmatpush.msra.mxu1 %v13452_v44  ;;  %7032 = vmatpush.msra.mxu3 %v7031_v9  ;;  %v7049_v44 = vand.u32 4294901760, %v7048_v2  ;;  %v7060_v9 = vsub.f32 %v13771_v63, %v7059_v47  ;;  %v15693_v2 = vand.u32 4294901760, %v13589_v32  ;;  %v15695_v32 = vand.u32 4294901760, %v13626_v12 }
 0x3dd   :  { %6887 = vmatpush.msra.mxu0 %v15690_v17  ;;  %6967 = vmatpush.msra.mxu2 %v13708_v45 }
 0x3de   :  { %6926 = vmatpush.msra.mxu1 %v13473_v23  ;;  %7038 = vmatpush.msra.mxu3 %v7037_v27  ;;  %v7055_v23 = vand.u32 4294901760, %v7054_v7  ;;  %v15692_v27 = vand.u32 4294901760, %v13577_v53  ;;  %v7061_v5 = vand.u32 4294901760, %v7060_v9  ;;  %v7083_v53 = vand.u32 4294901760, %v13824_v33  ;;  %v15699_v9 = vld [vmem:[#allocation29_spill] sm:$0xff] }
 0x3df   :  { %6891 = vmatpush.msra.mxu0 %v15691_v48  ;;  %6969 = vmatpush.msra.mxu2 %v13722_v19  ;;  %v15694_v7 = vand.u32 4294901760, %v13606_v40  ;;  %v15700_v48 = vld [vmem:[#allocation24_spill] sm:$0xff] }
 0x3e0   :  { %6928 = vmatpush.msra.mxu1 %v13487_v18  ;;  %7044 = vmatpush.msra.mxu3 %v7043_v30  ;;  %v7072_v18 = vsub.f32 %v13800_v11, %v7071_v16  ;;  %v7067_v30 = vand.u32 4294901760, %v7066_v58  ;;  %v7084_v40 = vsub.f32 %v13824_v33, %v7083_v53 }
 0x3e1   :  { %6895 = vmatpush.msra.mxu0 %v15692_v27  ;;  %6971 = vmatpush.msra.mxu2 %v13735_v13 }
 0x3e2   :  { %6930 = vmatpush.msra.mxu1 %v13499_v46  ;;  %7050 = vmatpush.msra.mxu3 %v7049_v44  ;;  %v7078_v46 = vsub.f32 %v13813_v51, %v7077_v35  ;;  %v7085_v12 = vand.u32 4294901760, %v7084_v40  ;;  %v15698_v44 = vand.u32 4294901760, %v13619_v4 }
 0x3e3   :  { %6899 = vmatpush.msra.mxu0 %v15693_v2  ;;  %6973 = vmatpush.msra.mxu2 %v13747_v8 }
 0x3e4   :  { %6932 = vmatpush.msra.mxu1 %v13512_v26  ;;  %7056 = vmatpush.msra.mxu3 %v7055_v23  ;;  %v7073_v26 = vand.u32 4294901760, %v7072_v18  ;;  %v7079_v17 = vand.u32 4294901760, %v7078_v46  ;;  %v15701_v23 = vand.u32 4294901760, %v13641_v28 }
 0x3e5   :  { %6903 = vmatpush.msra.mxu0 %v15694_v7  ;;  %6975 = vmatpush.msra.mxu2 %v13760_v49 }
 0x3e6   :  { %6934 = vmatpush.msra.mxu1 %v13524_v62  ;;  %7062 = vmatpush.msra.mxu3 %v7061_v5  ;;  %v15696_v62 = vld [vmem:[#allocation31_spill] sm:$0xff] }
 0x3e7   :  { %6907 = vmatpush.msra.mxu0 %v15695_v32  ;;  %6977 = vmatpush.msra.mxu2 %v13776_v25 }
 0x3e8   :  { %6936 = vmatpush.msra.mxu1 %v13536_v52  ;;  %7068 = vmatpush.msra.mxu3 %v7067_v30  ;;  %v15697_v52 = vld [vmem:[#allocation27_spill] sm:$0xff]  ;;  %v15708_v30 = vld [vmem:[#allocation26_spill] sm:$0xff] }
 0x3e9   :  { %6909 = vmatmul.f32.vlgmr.msra.gmra.mxu0 %v15683_v61  ;;  %6979 = vmatpush.msra.mxu2 %v13789_v42 }
 0x3ea   :  { %7094 = vmatpush.msrb.mxu0 %v13619_v4  ;;  %6938 = vmatpush.msra.mxu1 %v15696_v62  ;;  %v155_v4 = vld [vmem:[#allocation5 + $0x2f8] sm:$0xff] }
 0x3eb   :  { %7074 = vmatpush.msra.mxu3 %v7073_v26  ;;  %6981 = vmatpush.msra.mxu2 %v13802_v14  ;;  %v83_v62 = vld [vmem:[#allocation5 + $0xb8] sm:$0xff] }
 0x3ec   :  { %7097 = vmatpush.msrb.mxu0 %v13641_v28  ;;  %6940 = vmatpush.msra.mxu1 %v13562_v59  ;;  %v15702_v59 = vand.u32 4294901760, %v13652_v31  ;;  %v15703_v28 = vand.u32 4294901760, %v13660_v21 }
 0x3ed   :  { %7080 = vmatpush.msra.mxu3 %v7079_v17  ;;  %6987 = vmatmul.f32.vlgmr.msra.gmra.mxu2 %v15697_v52 }
 0x3ee   :  { %7100 = vmatpush.msrb.mxu0 %v13652_v31  ;;  %7188 = vmatpush.msrb.mxu2 %v15698_v44 }
 0x3ef   :  { %6942 = vmatpush.msra.mxu1 %v15699_v9  ;;  %7086 = vmatpush.msra.mxu3 %v7085_v12 }
 0x3f0   :  { %7088 = vmatmul.f32.vlgmr.msra.gmra.mxu3 %v15700_v48  ;;  %7103 = vmatpush.msrb.mxu0 %v13660_v21 }
 0x3f1   :  { %7192 = vmatpush.msrb.mxu2 %v15701_v23  ;;  %7255 = vmatpush.msrb.mxu3 %v13594_v3 }
 0x3f2   :  { %6944 = vmatpush.msra.mxu1 %v13600_v36  ;;  %7106 = vmatpush.msrb.mxu0 %v13672_v39  ;;  %v15704_v36 = vand.u32 4294901760, %v13672_v39 }
 0x3f3   :  { %6946 = vmatmul.f32.vlgmr.msra.gmra.mxu1 %v15683_v61  ;;  %7196 = vmatpush.msrb.mxu2 %v15702_v59 }
 0x3f4   :  { %7147 = vmatpush.msrb.mxu1 %v13594_v3  ;;  %7257 = vmatpush.msrb.mxu3 %v13613_v54  ;;  %v15705_v3 = vand.u32 4294901760, %v13692_v60 }
 0x3f5   :  { %7109 = vmatpush.msrb.mxu0 %v13692_v60  ;;  %7200 = vmatpush.msrb.mxu2 %v15703_v28  ;;  %v77_v28 = vld [vmem:[#allocation5 + $0x88] sm:$0xff] }
 0x3f6   :  { %7149 = vmatpush.msrb.mxu1 %v13613_v54  ;;  %7259 = vmatpush.msrb.mxu3 %v13628_v0  ;;  %v15706_v54 = vand.u32 4294901760, %v13706_v22 }
 0x3f7   :  { %7112 = vmatpush.msrb.mxu0 %v13706_v22  ;;  %7204 = vmatpush.msrb.mxu2 %v15704_v36 }
 0x3f8   :  { %7151 = vmatpush.msrb.mxu1 %v13628_v0  ;;  %7261 = vmatpush.msrb.mxu3 %v13633_v6  ;;  %v149_v0 = vld [vmem:[#allocation5 + $0x2c8] sm:$0xff] }
 0x3f9   :  { %7115 = vmatpush.msrb.mxu0 %v13720_v56  ;;  %7208 = vmatpush.msrb.mxu2 %v15705_v3 }
 0x3fa   :  { %7153 = vmatpush.msrb.mxu1 %v13633_v6  ;;  %7263 = vmatpush.msrb.mxu3 %v13646_v43  ;;  %v13923_v6 = vand.u32 4294901760, %v149_v0 }
 0x3fb   :  { %7118 = vmatpush.msrb.mxu0 %v13733_v29  ;;  %7212 = vmatpush.msrb.mxu2 %v15706_v54  ;;  %v119_v29 = vld [vmem:[#allocation5 + $0x1d8] sm:$0xff]  ;;  %v14051_v54 = vand.u32 4294901760, %v83_v62 }
 0x3fc   :  { %7155 = vmatpush.msrb.mxu1 %v13646_v43  ;;  %7265 = vmatpush.msrb.mxu3 %v13664_v20  ;;  %v137_v43 = vld [vmem:[#allocation5 + $0x268] sm:$0xff]  ;;  %v13943_v60 = vsub.f32 %v149_v0, %v13923_v6 }
 0x3fd   :  { %7121 = vmatpush.msrb.mxu0 %v13745_v1  ;;  %7216 = vmatpush.msrb.mxu2 %v7035_v37  ;;  %v13940_v39 = vand.u32 4294901760, %v137_v43 }
 0x3fe   :  { %7157 = vmatpush.msrb.mxu1 %v13664_v20  ;;  %7267 = vmatpush.msrb.mxu3 %v13680_v24  ;;  %v13916_v20 = vand.u32 4294901760, %v155_v4  ;;  %v15194_v1 = vand.u32 4294901760, %v13943_v60 }
 0x3ff   :  { %7124 = vmatpush.msrb.mxu0 %v13758_v55  ;;  %7220 = vmatpush.msrb.mxu2 %v7041_v15  ;;  %v113_v15 = vld [vmem:[#allocation5 + $0x1a8] sm:$0xff] }
 0x400   :  { %7159 = vmatpush.msrb.mxu1 %v13680_v24  ;;  %7269 = vmatpush.msrb.mxu3 %v13694_v38  ;;  %v143_v24 = vld [vmem:[#allocation5 + $0x298] sm:$0xff]  ;;  %v13933_v21 = vsub.f32 %v155_v4, %v13916_v20 }
 0x401   :  { %7127 = vmatpush.msrb.mxu0 %v13771_v63  ;;  %7224 = vmatpush.msrb.mxu2 %v7047_v57  ;;  %v13930_v31 = vand.u32 4294901760, %v143_v24 }
 0x402   :  { %7161 = vmatpush.msrb.mxu1 %v13694_v38  ;;  %7271 = vmatpush.msrb.mxu3 %v13708_v45  ;;  %v125_v38 = vld [vmem:[#allocation5 + $0x208] sm:$0xff] }
 0x403   :  { %7130 = vmatpush.msrb.mxu0 %v13784_v41  ;;  %7228 = vmatpush.msrb.mxu2 %v7053_v34  ;;  %v13954_v22 = vsub.f32 %v143_v24, %v13930_v31  ;;  %v13961_v37 = vand.u32 4294901760, %v125_v38  ;;  %v107_v34 = vld [vmem:[#allocation5 + $0x178] sm:$0xff]  ;;  %v13988_v41 = vand.u32 4294901760, %v113_v15 }
 0x404   :  { %7163 = vmatpush.msrb.mxu1 %v13708_v45  ;;  %7273 = vmatpush.msrb.mxu3 %v13722_v19  ;;  %v131_v45 = vld [vmem:[#allocation5 + $0x238] sm:$0xff] }
 0x405   :  { %7133 = vmatpush.msrb.mxu0 %v13800_v11  ;;  %7232 = vmatpush.msrb.mxu2 %v7059_v47  ;;  %v13950_v56 = vand.u32 4294901760, %v131_v45  ;;  %v15192_v57 = vand.u32 4294901760, %v13954_v22  ;;  %v13992_v11 = vsub.f32 %v125_v38, %v13961_v37  ;;  %v71_v24 = vld [vmem:[#allocation5 + $0x58] sm:$0xff]  ;;  %v14063_v38 = vand.u32 4294901760, %v77_v28 }
 0x406   :  { %7165 = vmatpush.msrb.mxu1 %v13722_v19  ;;  %7275 = vmatpush.msrb.mxu3 %v13735_v13  ;;  %v15707_v19 = vld [vmem:[#allocation25_spill] sm:$0xff] }
 0x407   :  { %7136 = vmatpush.msrb.mxu0 %v13813_v51  ;;  %7236 = vmatpush.msrb.mxu2 %v7065_v10  ;;  %v13979_v63 = vsub.f32 %v131_v45, %v13950_v56  ;;  %v101_v10 = vld [vmem:[#allocation5 + $0x148] sm:$0xff]  ;;  %v13996_v51 = vand.u32 4294901760, %v107_v34  ;;  %v15187_v18 = vand.u32 4294901760, %v13992_v11 }
 0x408   :  { %7167 = vmatpush.msrb.mxu1 %v13735_v13  ;;  %7277 = vmatpush.msrb.mxu3 %v13747_v8  ;;  %v15195_v13 = vand.u32 4294901760, %v13933_v21 }
 0x409   :  { %7139 = vmatpush.msrb.mxu0 %v13824_v33  ;;  %7240 = vmatpush.msrb.mxu2 %v7071_v16  ;;  %v7347_v33 = vsub.f32 %v13954_v22, %v15192_v57  ;;  %v15189_v58 = vand.u32 4294901760, %v13979_v63  ;;  %v14023_v7 = vsub.f32 %v107_v34, %v13996_v51  ;;  %v7365_v44 = vsub.f32 %v13992_v11, %v15187_v18  ;;  %v65_v34 = vld [vmem:[#allocation5 + $0x28] sm:$0xff] }
 0x40a   :  { %7169 = vmatpush.msrb.mxu1 %v13747_v8  ;;  %7279 = vmatpush.msrb.mxu3 %v13760_v49  ;;  %v13965_v8 = vsub.f32 %v137_v43, %v13940_v39  ;;  %v7335_v55 = vsub.f32 %v13933_v21, %v15195_v13 }
 0x40b   :  { %7142 = vmatmul.f32.vlgmr.msrb.gmra.mxu0 %v15707_v19  ;;  %7244 = vmatpush.msrb.mxu2 %v7077_v35  ;;  %v95_v35 = vld [vmem:[#allocation5 + $0x118] sm:$0xff]  ;;  %v7348_v46 = vand.u32 4294901760, %v7347_v33  ;;  %v7359_v32 = vsub.f32 %v13979_v63, %v15189_v58  ;;  %v15183_v59 = vand.u32 4294901760, %v14023_v7  ;;  %v7366_v43 = vand.u32 4294901760, %v7365_v44 }
 0x40c   :  { %7292 = vmatpush.msra.mxu0 %v13916_v20  ;;  %7171 = vmatpush.msrb.mxu1 %v13760_v49  ;;  %v13975_v49 = vand.u32 4294901760, %v119_v29  ;;  %v15190_v47 = vand.u32 4294901760, %v13965_v8  ;;  %v7336_v16 = vand.u32 4294901760, %v7335_v55  ;;  %v14029_v26 = vand.u32 4294901760, %v95_v35  ;;  %v239_v44 = vld [vmem:[#allocation5 + $0x598] sm:$0xff] }
 0x40d   :  { %7281 = vmatpush.msrb.mxu3 %v13776_v25  ;;  %7248 = vmatpush.msrb.mxu2 %v7083_v53  ;;  %v14018_v53 = vsub.f32 %v113_v15, %v13988_v41  ;;  %v7360_v36 = vand.u32 4294901760, %v7359_v32  ;;  %v251_v15 = vld [vmem:[#allocation5 + $0x5f8] sm:$0xff]  ;;  %v7383_v55 = vsub.f32 %v14023_v7, %v15183_v59  ;;  %v14078_v33 = vsub.f32 %v83_v62, %v14051_v54 }
 0x40e   :  { %7294 = vmatpush.msra.mxu0 %v13923_v6  ;;  %7173 = vmatpush.msrb.mxu1 %v13776_v25  ;;  %v7341_v25 = vsub.f32 %v13943_v60, %v15194_v1  ;;  %v14005_v27 = vsub.f32 %v119_v29, %v13975_v49  ;;  %v7353_v2 = vsub.f32 %v13965_v8, %v15190_v47  ;;  %v14119_v59 = vand.u32 4294901760, %v239_v44 }
 0x40f   :  { %7283 = vmatpush.msrb.mxu3 %v13789_v42  ;;  %7250 = vmatmul.f32.vlgmr.msrb.gmra.mxu2 %v15700_v48  ;;  %v15184_v23 = vand.u32 4294901760, %v14018_v53  ;;  %v14054_v4 = vsub.f32 %v95_v35, %v14029_v26  ;;  %v14092_v62 = vsub.f32 %v77_v28, %v14063_v38 }
 0x410   :  { %7296 = vmatpush.msra.mxu0 %v13930_v31  ;;  %7435 = vmatpush.msra.mxu2 %v13933_v21  ;;  %v7342_v5 = vand.u32 4294901760, %v7341_v25  ;;  %v15186_v40 = vand.u32 4294901760, %v14005_v27  ;;  %v7354_v12 = vand.u32 4294901760, %v7353_v2  ;;  %v245_v2 = vld [vmem:[#allocation5 + $0x5c8] sm:$0xff]  ;;  %v14144_v58 = vsub.f32 %v239_v44, %v14119_v59 }
 0x411   :  { %7175 = vmatpush.msrb.mxu1 %v13789_v42  ;;  %7285 = vmatpush.msrb.mxu3 %v13802_v14  ;;  %v14009_v42 = vand.u32 4294901760, %v101_v10  ;;  %v7377_v45 = vsub.f32 %v14018_v53, %v15184_v23  ;;  %v14104_v28 = vand.u32 4294901760, %v245_v2  ;;  %v227_v23 = vld [vmem:[#allocation5 + $0x538] sm:$0xff] }
 0x412   :  { %7287 = vmatmul.f32.vlgmr.msrb.gmra.mxu3 %v15700_v48  ;;  %7298 = vmatpush.msra.mxu0 %v13940_v39  ;;  %v7371_v3 = vsub.f32 %v14005_v27, %v15186_v40  ;;  %v14136_v18 = vand.u32 4294901760, %v227_v23 }
 0x413   :  { %7438 = vmatpush.msra.mxu2 %v13943_v60  ;;  %7488 = vmatpush.msra.mxu3 %v13916_v20  ;;  %v14035_v17 = vsub.f32 %v101_v10, %v14009_v42  ;;  %v14074_v10 = vand.u32 4294901760, %v71_v24 }
 0x414   :  { %7177 = vmatpush.msrb.mxu1 %v13802_v14  ;;  %7300 = vmatpush.msra.mxu0 %v13950_v56  ;;  %v89_v14 = vld [vmem:[#allocation5 + $0xe8] sm:$0xff]  ;;  %v7372_v25 = vand.u32 4294901760, %v7371_v3  ;;  %v15188_v3 = vand.u32 4294901760, %v14078_v33 }
 0x415   :  { %7181 = vmatmul.f32.vlgmr.msrb.gmra.mxu1 %v15708_v30  ;;  %7441 = vmatpush.msra.mxu2 %v13954_v22  ;;  %v14041_v9 = vand.u32 4294901760, %v89_v14  ;;  %v15182_v0 = vand.u32 4294901760, %v14035_v17  ;;  %v15709_v30 = vand.u32 4294901760, %v13933_v21  ;;  %v15711_v21 = vand.u32 4294901760, %v13943_v60 }
 0x416   :  { %7337 = vmatpush.msra.mxu1 %v7336_v16  ;;  %7490 = vmatpush.msra.mxu3 %v13923_v6  ;;  %v15181_v16 = vand.u32 4294901760, %v14054_v4  ;;  %v15713_v60 = vand.u32 4294901760, %v13954_v22  ;;  %v15715_v22 = vand.u32 4294901760, %v13965_v8 }
 0x417   :  { %7302 = vmatpush.msra.mxu0 %v13961_v37  ;;  %7444 = vmatpush.msra.mxu2 %v13965_v8  ;;  %v14066_v29 = vsub.f32 %v89_v14, %v14041_v9  ;;  %v7389_v35 = vsub.f32 %v14035_v17, %v15182_v0  ;;  %v7378_v14 = vand.u32 4294901760, %v7377_v45  ;;  %v233_v45 = vld [vmem:[#allocation5 + $0x568] sm:$0xff]  ;;  %v15717_v8 = vand.u32 4294901760, %v13979_v63 }
 0x418   :  { %7343 = vmatpush.msra.mxu1 %v7342_v5  ;;  %7492 = vmatpush.msra.mxu3 %v13930_v31  ;;  %v14085_v5 = vand.u32 4294901760, %v251_v15 }
 0x419   :  { %7304 = vmatpush.msra.mxu0 %v13975_v49  ;;  %7447 = vmatpush.msra.mxu2 %v13979_v63  ;;  %v15185_v32 = vand.u32 4294901760, %v14066_v29  ;;  %v15719_v63 = vand.u32 4294901760, %v13992_v11 }
 0x41a   :  { %7349 = vmatpush.msra.mxu1 %v7348_v46  ;;  %7494 = vmatpush.msra.mxu3 %v13940_v39  ;;  %v14088_v46 = vand.u32 4294901760, %v65_v34 }
 0x41b   :  { %7306 = vmatpush.msra.mxu0 %v13988_v41  ;;  %7450 = vmatpush.msra.mxu2 %v13992_v11  ;;  %v15720_v11 = vand.u32 4294901760, %v14005_v27 }
 0x41c   :  { %7355 = vmatpush.msra.mxu1 %v7354_v12  ;;  %7496 = vmatpush.msra.mxu3 %v13950_v56  ;;  %v7384_v12 = vand.u32 4294901760, %v7383_v55  ;;  %v7390_v55 = vand.u32 4294901760, %v7389_v35  ;;  %v14117_v0 = vsub.f32 %v65_v34, %v14088_v46 }
 0x41d   :  { %7308 = vmatpush.msra.mxu0 %v13996_v51  ;;  %7453 = vmatpush.msra.mxu2 %v14005_v27 }
 0x41e   :  { %7361 = vmatpush.msra.mxu1 %v7360_v36  ;;  %7498 = vmatpush.msra.mxu3 %v13961_v37  ;;  %v7395_v36 = vsub.f32 %v14054_v4, %v15181_v16  ;;  %v7401_v16 = vsub.f32 %v14066_v29, %v15185_v32  ;;  %v14131_v32 = vsub.f32 %v245_v2, %v14104_v28  ;;  %v15197_v2 = vand.u32 4294901760, %v14117_v0 }
 0x41f   :  { %7310 = vmatpush.msra.mxu0 %v14009_v42  ;;  %7456 = vmatpush.msra.mxu2 %v14018_v53 }
 0x420   :  { %7367 = vmatpush.msra.mxu1 %v7366_v43  ;;  %7500 = vmatpush.msra.mxu3 %v13975_v49  ;;  %v14102_v43 = vsub.f32 %v71_v24, %v14074_v10  ;;  %v15191_v24 = vand.u32 4294901760, %v14092_v62  ;;  %v7396_v35 = vand.u32 4294901760, %v7395_v36  ;;  %v7402_v36 = vand.u32 4294901760, %v7401_v16 }
 0x421   :  { %7312 = vmatpush.msra.mxu0 %v14029_v26  ;;  %7459 = vmatpush.msra.mxu2 %v14023_v7  ;;  %v7425_v1 = vsub.f32 %v14117_v0, %v15197_v2 }
 0x422   :  { %7373 = vmatpush.msra.mxu1 %v7372_v25  ;;  %7502 = vmatpush.msra.mxu3 %v13988_v41  ;;  %v14109_v25 = vsub.f32 %v251_v15, %v14085_v5  ;;  %v14123_v15 = vand.u32 4294901760, %v233_v45  ;;  %v15193_v34 = vand.u32 4294901760, %v14102_v43 }
 0x423   :  { %7314 = vmatpush.msra.mxu0 %v14041_v9  ;;  %7462 = vmatpush.msra.mxu2 %v14035_v17 }
 0x424   :  { %7379 = vmatpush.msra.mxu1 %v7378_v14  ;;  %7504 = vmatpush.msra.mxu3 %v13996_v51  ;;  %v7407_v14 = vsub.f32 %v14078_v33, %v15188_v3  ;;  %v15196_v40 = vand.u32 4294901760, %v14109_v25  ;;  %v7413_v3 = vsub.f32 %v14092_v62, %v15191_v24  ;;  %v14149_v47 = vsub.f32 %v233_v45, %v14123_v15 }
 0x425   :  { %7316 = vmatpush.msra.mxu0 %v14051_v54  ;;  %7465 = vmatpush.msra.mxu2 %v14054_v4  ;;  %v7419_v24 = vsub.f32 %v14102_v43, %v15193_v34 }
 0x426   :  { %7385 = vmatpush.msra.mxu1 %v7384_v12  ;;  %7506 = vmatpush.msra.mxu3 %v14009_v42  ;;  %v221_v12 = vld [vmem:[#allocation5 + $0x508] sm:$0xff]  ;;  %v7408_v16 = vand.u32 4294901760, %v7407_v14  ;;  %v7676_v45 = vsub.f32 %v14109_v25, %v15196_v40  ;;  %v7414_v34 = vand.u32 4294901760, %v7413_v3  ;;  %v203_v40 = vld [vmem:[#allocation5 + $0x478] sm:$0xff] }
 0x427   :  { %7318 = vmatpush.msra.mxu0 %v14063_v38  ;;  %7468 = vmatpush.msra.mxu2 %v14066_v29  ;;  %v14156_v44 = vand.u32 4294901760, %v221_v12  ;;  %v209_v14 = vld [vmem:[#allocation5 + $0x4a8] sm:$0xff]  ;;  %v7420_v3 = vand.u32 4294901760, %v7419_v24  ;;  %v7426_v24 = vand.u32 4294901760, %v7425_v1  ;;  %v14197_v52 = vand.u32 4294901760, %v203_v40 }
 0x428   :  { %7391 = vmatpush.msra.mxu1 %v7390_v55  ;;  %7508 = vmatpush.msra.mxu3 %v14029_v26  ;;  %v215_v55 = vld [vmem:[#allocation5 + $0x4d8] sm:$0xff]  ;;  %v14184_v19 = vand.u32 4294901760, %v209_v14 }
 0x429   :  { %7320 = vmatpush.msra.mxu0 %v14074_v10  ;;  %7471 = vmatpush.msra.mxu2 %v14078_v33  ;;  %v14171_v13 = vand.u32 4294901760, %v215_v55  ;;  %v14182_v57 = vsub.f32 %v221_v12, %v14156_v44 }
 0x42a   :  { %7397 = vmatpush.msra.mxu1 %v7396_v35  ;;  %7510 = vmatpush.msra.mxu3 %v14041_v9  ;;  %v14164_v35 = vsub.f32 %v227_v23, %v14136_v18  ;;  %v197_v23 = vld [vmem:[#allocation5 + $0x448] sm:$0xff] }
 0x42b   :  { %7322 = vmatpush.msra.mxu0 %v14088_v46  ;;  %7474 = vmatpush.msra.mxu2 %v14092_v62  ;;  %v14195_v48 = vsub.f32 %v215_v55, %v14171_v13  ;;  %v14208_v55 = vsub.f32 %v209_v14, %v14184_v19  ;;  %v14220_v14 = vsub.f32 %v203_v40, %v14197_v52 }
 0x42c   :  { %7403 = vmatpush.msra.mxu1 %v7402_v36  ;;  %7512 = vmatpush.msra.mxu3 %v14051_v54  ;;  %v15710_v36 = vand.u32 4294901760, %v14131_v32 }
 0x42d   :  { %7529 = vmatpush.msrb.mxu0 %v15709_v30  ;;  %7477 = vmatpush.msra.mxu2 %v14102_v43  ;;  %v7677_v30 = vand.u32 4294901760, %v7676_v45  ;;  %v15714_v45 = vand.u32 4294901760, %v14149_v47 }
 0x42e   :  { %7409 = vmatpush.msra.mxu1 %v7408_v16  ;;  %7514 = vmatpush.msra.mxu3 %v14063_v38  ;;  %v7682_v2 = vsub.f32 %v14131_v32, %v15710_v36  ;;  %v15712_v36 = vand.u32 4294901760, %v14144_v58  ;;  %v14210_v16 = vand.u32 4294901760, %v197_v23 }
 0x42f   :  { %7533 = vmatpush.msrb.mxu0 %v15711_v21  ;;  %7480 = vmatpush.msra.mxu2 %v14117_v0  ;;  %v191_v21 = vld [vmem:[#allocation5 + $0x418] sm:$0xff] }
 0x430   :  { %7415 = vmatpush.msra.mxu1 %v7414_v34  ;;  %7516 = vmatpush.msra.mxu3 %v14074_v10  ;;  %v7688_v12 = vsub.f32 %v14144_v58, %v15712_v36  ;;  %v7694_v34 = vsub.f32 %v14149_v47, %v15714_v45  ;;  %v7683_v1 = vand.u32 4294901760, %v7682_v2  ;;  %v15200_v36 = vand.u32 4294901760, %v14195_v48 }
 0x431   :  { %7537 = vmatpush.msrb.mxu0 %v15713_v60  ;;  %7633 = vmatpush.msrb.mxu2 %v14085_v5  ;;  %v15716_v60 = vand.u32 4294901760, %v14164_v35  ;;  %v14222_v61 = vand.u32 4294901760, %v191_v21  ;;  %v14233_v40 = vsub.f32 %v197_v23, %v14210_v16 }
 0x432   :  { %7421 = vmatpush.msra.mxu1 %v7420_v3  ;;  %7518 = vmatpush.msra.mxu3 %v14088_v46  ;;  %v185_v3 = vld [vmem:[#allocation5 + $0x3e8] sm:$0xff]  ;;  %v7689_v2 = vand.u32 4294901760, %v7688_v12  ;;  %v7717_v12 = vand.u32 4294901760, %v14208_v55 }
 0x433   :  { %7541 = vmatpush.msrb.mxu0 %v15715_v22  ;;  %7635 = vmatpush.msrb.mxu2 %v14104_v28  ;;  %v7700_v45 = vsub.f32 %v14164_v35, %v15716_v60  ;;  %v7695_v22 = vand.u32 4294901760, %v7694_v34  ;;  %v14235_v60 = vand.u32 4294901760, %v185_v3  ;;  %v7712_v34 = vsub.f32 %v14195_v48, %v15200_v36 }
 0x434   :  { %7678 = vmatpush.msrb.mxu3 %v7677_v30  ;;  %7427 = vmatpush.msra.mxu1 %v7426_v24  ;;  %v15718_v30 = vand.u32 4294901760, %v14182_v57  ;;  %v14246_v23 = vsub.f32 %v191_v21, %v14222_v61  ;;  %v15721_v36 = vand.u32 4294901760, %v14018_v53  ;;  %v15722_v53 = vand.u32 4294901760, %v14023_v7 }
 0x435   :  { %7545 = vmatpush.msrb.mxu0 %v15717_v8  ;;  %7637 = vmatpush.msrb.mxu2 %v14119_v59  ;;  %v14248_v8 = vand.u32 4294901760, %v179_v50  ;;  %v14259_v21 = vsub.f32 %v185_v3, %v14235_v60  ;;  %v7713_v27 = vand.u32 4294901760, %v7712_v34 }
 0x436   :  { %7596 = vmatpush.msrb.mxu1 %v13916_v20  ;;  %7684 = vmatpush.msrb.mxu3 %v7683_v1  ;;  %v7706_v24 = vsub.f32 %v14182_v57, %v15718_v30  ;;  %v7701_v20 = vand.u32 4294901760, %v7700_v45  ;;  %v7723_v1 = vand.u32 4294901760, %v14220_v14  ;;  %v173_v30 = vld [vmem:[#allocation5 + $0x388] sm:$0xff]  ;;  %v7718_v45 = vsub.f32 %v14208_v55, %v7717_v12 }
 0x437   :  { %7549 = vmatpush.msrb.mxu0 %v15719_v63  ;;  %7639 = vmatpush.msrb.mxu2 %v14123_v15  ;;  %v167_v63 = vld [vmem:[#allocation5 + $0x358] sm:$0xff]  ;;  %v14272_v3 = vsub.f32 %v179_v50, %v14248_v8  ;;  %v7741_v34 = vand.u32 4294901760, %v14259_v21  ;;  %v15723_v50 = vand.u32 4294901760, %v14035_v17  ;;  %v15724_v17 = vand.u32 4294901760, %v14054_v4 }
 0x438   :  { %7598 = vmatpush.msrb.mxu1 %v13923_v6  ;;  %7690 = vmatpush.msrb.mxu3 %v7689_v2  ;;  %v7707_v6 = vand.u32 4294901760, %v7706_v24  ;;  %v7729_v2 = vand.u32 4294901760, %v14233_v40  ;;  %v7735_v24 = vand.u32 4294901760, %v14246_v23 }
 0x439   :  { %7553 = vmatpush.msrb.mxu0 %v15720_v11  ;;  %7641 = vmatpush.msrb.mxu2 %v14136_v18  ;;  %v161_v11 = vld [vmem:[#allocation5 + $0x328] sm:$0xff] }
 0x43a   :  { %7600 = vmatpush.msrb.mxu1 %v13930_v31  ;;  %7696 = vmatpush.msrb.mxu3 %v7695_v22  ;;  %v14264_v31 = vand.u32 4294901760, %v173_v30  ;;  %v7724_v22 = vsub.f32 %v14220_v14, %v7723_v1 }
 0x43b   :  { %7557 = vmatpush.msrb.mxu0 %v15721_v36  ;;  %7643 = vmatpush.msrb.mxu2 %v14156_v44  ;;  %v7719_v36 = vand.u32 4294901760, %v7718_v45  ;;  %v7736_v45 = vsub.f32 %v14246_v23, %v7735_v24 }
 0x43c   :  { %7602 = vmatpush.msrb.mxu1 %v13940_v39  ;;  %7702 = vmatpush.msrb.mxu3 %v7701_v20  ;;  %v14277_v39 = vand.u32 4294901760, %v167_v63  ;;  %v7730_v20 = vsub.f32 %v14233_v40, %v7729_v2  ;;  %v14288_v7 = vsub.f32 %v173_v30, %v14264_v31 }
 0x43d   :  { %7561 = vmatpush.msrb.mxu0 %v15722_v53  ;;  %7645 = vmatpush.msrb.mxu2 %v14171_v13  ;;  %v7747_v53 = vand.u32 4294901760, %v14272_v3 }
 0x43e   :  { %7604 = vmatpush.msrb.mxu1 %v13950_v56  ;;  %7708 = vmatpush.msrb.mxu3 %v7707_v6  ;;  %v14290_v56 = vand.u32 4294901760, %v161_v11  ;;  %v7725_v6 = vand.u32 4294901760, %v7724_v22  ;;  %v7731_v30 = vand.u32 4294901760, %v7730_v20  ;;  %v15725_v22 = vand.u32 4294901760, %v14066_v29 }
 0x43f   :  { %7565 = vmatpush.msrb.mxu0 %v15723_v50  ;;  %7647 = vmatpush.msrb.mxu2 %v14184_v19  ;;  %v7753_v4 = vand.u32 4294901760, %v14288_v7  ;;  %v15726_v20 = vand.u32 4294901760, %v14078_v33 }
 0x440   :  { %7606 = vmatpush.msrb.mxu1 %v13961_v37  ;;  %7714 = vmatpush.msrb.mxu3 %v7713_v27  ;;  %v14301_v37 = vsub.f32 %v167_v63, %v14277_v39  ;;  %v7742_v27 = vsub.f32 %v14259_v21, %v7741_v34  ;;  %v7737_v63 = vand.u32 4294901760, %v7736_v45 }
 0x441   :  { %7569 = vmatpush.msrb.mxu0 %v15724_v17  ;;  %7649 = vmatpush.msrb.mxu2 %v14197_v52  ;;  %v7754_v50 = vsub.f32 %v14288_v7, %v7753_v4 }
 0x442   :  { %7608 = vmatpush.msrb.mxu1 %v13975_v49  ;;  %7720 = vmatpush.msrb.mxu3 %v7719_v36  ;;  %v14312_v49 = vsub.f32 %v161_v11, %v14290_v56  ;;  %v7748_v36 = vsub.f32 %v14272_v3, %v7747_v53  ;;  %v7743_v29 = vand.u32 4294901760, %v7742_v27  ;;  %v15727_v11 = vand.u32 4294901760, %v14092_v62  ;;  %v15735_v27 = vld [vmem:[#allocation13_spill] sm:$0xff] }
 0x443   :  { %7573 = vmatpush.msrb.mxu0 %v15725_v22  ;;  %7651 = vmatpush.msrb.mxu2 %v14210_v16  ;;  %v7755_v45 = vand.u32 4294901760, %v7754_v50 }
 0x444   :  { %7610 = vmatpush.msrb.mxu1 %v13988_v41  ;;  %7726 = vmatpush.msrb.mxu3 %v7725_v6  ;;  %v7759_v41 = vand.u32 4294901760, %v14301_v37  ;;  %v7765_v33 = vand.u32 4294901760, %v14312_v49  ;;  %v15728_v6 = vand.u32 4294901760, %v14102_v43 }
 0x445   :  { %7577 = vmatpush.msrb.mxu0 %v15726_v20  ;;  %7653 = vmatpush.msrb.mxu2 %v14222_v61 }
 0x446   :  { %7612 = vmatpush.msrb.mxu1 %v13996_v51  ;;  %7732 = vmatpush.msrb.mxu3 %v7731_v30  ;;  %v7749_v51 = vand.u32 4294901760, %v7748_v36  ;;  %v7760_v62 = vsub.f32 %v14301_v37, %v7759_v41  ;;  %v7766_v43 = vsub.f32 %v14312_v49, %v7765_v33  ;;  %v15733_v30 = vld [vmem:[#allocation15_spill] sm:$0xff] }
 0x447   :  { %7581 = vmatpush.msrb.mxu0 %v15727_v11  ;;  %7655 = vmatpush.msrb.mxu2 %v14235_v60 }
 0x448   :  { %7614 = vmatpush.msrb.mxu1 %v14009_v42  ;;  %7738 = vmatpush.msrb.mxu3 %v7737_v63  ;;  %v15729_v42 = vand.u32 4294901760, %v14117_v0  ;;  %v7761_v17 = vand.u32 4294901760, %v7760_v62  ;;  %v15731_v0 = vld [vmem:[#allocation14_spill] sm:$0xff] }
 0x449   :  { %7585 = vmatpush.msrb.mxu0 %v15728_v6  ;;  %7657 = vmatpush.msrb.mxu2 %v14248_v8  ;;  %v281_v6 = vld [vmem:[#allocation5 + $0x6e8] sm:$0xff] }
 0x44a   :  { %7616 = vmatpush.msrb.mxu1 %v14029_v26  ;;  %7744 = vmatpush.msrb.mxu3 %v7743_v29  ;;  %v15730_v26 = vld [vmem:[#allocation17_spill] sm:$0xff] }
 0x44b   :  { %7589 = vmatpush.msrb.mxu0 %v15729_v42  ;;  %7659 = vmatpush.msrb.mxu2 %v14264_v31 }
 0x44c   :  { %7618 = vmatpush.msrb.mxu1 %v14041_v9  ;;  %7750 = vmatpush.msrb.mxu3 %v7749_v51  ;;  %v7767_v9 = vand.u32 4294901760, %v7766_v43  ;;  %v15744_v51 = vld [vmem:[#allocation19_spill] sm:$0xff] }
 0x44d   :  { %7328 = vmatmul.f32.vlgmr.msra.gmra.mxu0 %v15730_v26  ;;  %7661 = vmatpush.msrb.mxu2 %v14277_v39 }
 0x44e   :  { %7620 = vmatpush.msrb.mxu1 %v14051_v54  ;;  %7776 = vmatpush.msra.mxu0 %v14109_v25  ;;  %v15732_v54 = vand.u32 4294901760, %v14109_v25  ;;  %v15736_v25 = vand.u32 4294901760, %v14144_v58 }
 0x44f   :  { %7756 = vmatpush.msrb.mxu3 %v7755_v45  ;;  %7663 = vmatpush.msrb.mxu2 %v14290_v56 }
 0x450   :  { %7622 = vmatpush.msrb.mxu1 %v14063_v38  ;;  %7779 = vmatpush.msra.mxu0 %v14131_v32  ;;  %v15734_v38 = vand.u32 4294901760, %v14131_v32 }
 0x451   :  { %7762 = vmatpush.msrb.mxu3 %v7761_v17  ;;  %7483 = vmatmul.f32.vlgmr.msra.gmra.mxu2 %v15731_v0  ;;  %v275_v17 = vld [vmem:[#allocation5 + $0x6b8] sm:$0xff]  ;;  %v14530_v0 = vand.u32 4294901760, %v281_v6 }
 0x452   :  { %7782 = vmatpush.msra.mxu0 %v14144_v58  ;;  %7870 = vmatpush.msra.mxu2 %v15732_v54  ;;  %v15739_v58 = vand.u32 4294901760, %v14164_v35 }
 0x453   :  { %7624 = vmatpush.msrb.mxu1 %v14074_v10  ;;  %7768 = vmatpush.msrb.mxu3 %v7767_v9  ;;  %v15737_v10 = vand.u32 4294901760, %v14149_v47 }
 0x454   :  { %7522 = vmatmul.f32.vlgmr.msra.gmra.mxu3 %v15733_v30  ;;  %7785 = vmatpush.msra.mxu0 %v14149_v47  ;;  %v15741_v47 = vand.u32 4294901760, %v14182_v57 }
 0x455   :  { %7874 = vmatpush.msra.mxu2 %v15734_v38  ;;  %7937 = vmatpush.msra.mxu3 %v14085_v5 }
 0x456   :  { %7626 = vmatpush.msrb.mxu1 %v14088_v46  ;;  %7788 = vmatpush.msra.mxu0 %v14164_v35  ;;  %v15738_v46 = vld [vmem:[#allocation12_spill] sm:$0xff] }
 0x457   :  { %7429 = vmatmul.f32.vlgmr.msra.gmra.mxu1 %v15735_v27  ;;  %7878 = vmatpush.msra.mxu2 %v15736_v25 }
 0x458   :  { %7829 = vmatpush.msra.mxu1 %v14085_v5  ;;  %7939 = vmatpush.msra.mxu3 %v14104_v28  ;;  %v15740_v5 = vld [vmem:[#allocation16_spill] sm:$0xff] }
 0x459   :  { %7791 = vmatpush.msra.mxu0 %v14182_v57  ;;  %7882 = vmatpush.msra.mxu2 %v15737_v10  ;;  %v347_v57 = vld [vmem:[#allocation5 + $0x8f8] sm:$0xff]  ;;  %v14542_v10 = vand.u32 4294901760, %v275_v17 }
 0x45a   :  { %7831 = vmatpush.msra.mxu1 %v14104_v28  ;;  %7941 = vmatpush.msra.mxu3 %v14119_v59 }
 0x45b   :  { %7669 = vmatmul.f32.vlgmr.msrb.gmra.mxu2 %v15738_v46  ;;  %7794 = vmatpush.msra.mxu0 %v14195_v48 }
 0x45c   :  { %7833 = vmatpush.msra.mxu1 %v14119_v59  ;;  %7886 = vmatpush.msra.mxu2 %v15739_v58  ;;  %v15742_v59 = vand.u32 4294901760, %v14195_v48  ;;  %v341_v48 = vld [vmem:[#allocation5 + $0x8c8] sm:$0xff] }
 0x45d   :  { %7943 = vmatpush.msra.mxu3 %v14123_v15  ;;  %7591 = vmatmul.f32.vlgmr.msrb.gmra.mxu0 %v15735_v27  ;;  %v14415_v32 = vand.u32 4294901760, %v341_v48 }
 0x45e   :  { %7770 = vmatmul.f32.vlgmr.msrb.gmra.mxu3 %v15740_v5  ;;  %7797 = vmatpush.msra.mxu0 %v14208_v55 }
 0x45f   :  { %7835 = vmatpush.msra.mxu1 %v14123_v15  ;;  %7890 = vmatpush.msra.mxu2 %v15741_v47  ;;  %v323_v15 = vld [vmem:[#allocation5 + $0x838] sm:$0xff]  ;;  %v14435_v35 = vsub.f32 %v341_v48, %v14415_v32  ;;  %v14558_v48 = vsub.f32 %v281_v6, %v14530_v0 }
 0x460   :  { %7945 = vmatpush.msra.mxu3 %v14136_v18  ;;  %7628 = vmatmul.f32.vlgmr.msrb.gmra.mxu1 %v15735_v27  ;;  %v14439_v55 = vand.u32 4294901760, %v323_v15  ;;  %v269_v27 = vld [vmem:[#allocation5 + $0x688] sm:$0xff] }
 0x461   :  { %7800 = vmatpush.msra.mxu0 %v14220_v14  ;;  %7837 = vmatpush.msra.mxu1 %v14136_v18  ;;  %v14408_v18 = vand.u32 4294901760, %v347_v57 }
 0x462   :  { %7894 = vmatpush.msra.mxu2 %v15742_v59  ;;  %7947 = vmatpush.msra.mxu3 %v14156_v44  ;;  %v14554_v59 = vand.u32 4294901760, %v269_v27 }
 0x463   :  { %7803 = vmatpush.msra.mxu0 %v14233_v40  ;;  %7839 = vmatpush.msra.mxu1 %v14156_v44 }
 0x464   :  { %7898 = vmatpush.msra.mxu2 %v7717_v12  ;;  %7949 = vmatpush.msra.mxu3 %v14171_v13  ;;  %v15743_v12 = vld [vmem:[#allocation18_spill] sm:$0xff] }
 0x465   :  { %7806 = vmatpush.msra.mxu0 %v14246_v23  ;;  %7841 = vmatpush.msra.mxu1 %v14171_v13  ;;  %v335_v13 = vld [vmem:[#allocation5 + $0x898] sm:$0xff] }
 0x466   :  { %7902 = vmatpush.msra.mxu2 %v7723_v1  ;;  %7951 = vmatpush.msra.mxu3 %v14184_v19  ;;  %v14422_v28 = vand.u32 4294901760, %v335_v13  ;;  %v311_v1 = vld [vmem:[#allocation5 + $0x7d8] sm:$0xff] }
 0x467   :  { %7809 = vmatpush.msra.mxu0 %v14259_v21  ;;  %7843 = vmatpush.msra.mxu1 %v14184_v19  ;;  %v329_v19 = vld [vmem:[#allocation5 + $0x868] sm:$0xff] }
 0x468   :  { %7906 = vmatpush.msra.mxu2 %v7729_v2  ;;  %7953 = vmatpush.msra.mxu3 %v14197_v52  ;;  %v14432_v44 = vand.u32 4294901760, %v329_v19  ;;  %v14446_v14 = vsub.f32 %v335_v13, %v14422_v28  ;;  %v14462_v2 = vsub.f32 %v323_v15, %v14439_v55  ;;  %v263_v13 = vld [vmem:[#allocation5 + $0x658] sm:$0xff] }
 0x469   :  { %7812 = vmatpush.msra.mxu0 %v14272_v3  ;;  %7845 = vmatpush.msra.mxu1 %v14197_v52  ;;  %v14425_v52 = vsub.f32 %v347_v57, %v14408_v18 }
 0x46a   :  { %7910 = vmatpush.msra.mxu2 %v7735_v24  ;;  %7955 = vmatpush.msra.mxu3 %v14210_v16  ;;  %v14457_v23 = vsub.f32 %v329_v19, %v14432_v44  ;;  %v14470_v24 = vand.u32 4294901760, %v311_v1  ;;  %v8028_v3 = vand.u32 4294901760, %v14446_v14  ;;  %v15213_v22 = vand.u32 4294901760, %v14462_v2 }
 0x46b   :  { %7815 = vmatpush.msra.mxu0 %v14288_v7  ;;  %7847 = vmatpush.msra.mxu1 %v14210_v16  ;;  %v317_v16 = vld [vmem:[#allocation5 + $0x808] sm:$0xff] }
 0x46c   :  { %7914 = vmatpush.msra.mxu2 %v7741_v34  ;;  %7957 = vmatpush.msra.mxu3 %v14222_v61  ;;  %v14450_v40 = vand.u32 4294901760, %v317_v16  ;;  %v299_v34 = vld [vmem:[#allocation5 + $0x778] sm:$0xff]  ;;  %v8029_v63 = vsub.f32 %v14446_v14, %v8028_v3  ;;  %v14497_v20 = vsub.f32 %v311_v1, %v14470_v24 }
 0x46d   :  { %7818 = vmatpush.msra.mxu0 %v14301_v37  ;;  %7849 = vmatpush.msra.mxu1 %v14222_v61  ;;  %v8016_v61 = vand.u32 4294901760, %v14425_v52  ;;  %v8034_v37 = vand.u32 4294901760, %v14457_v23  ;;  %v14494_v36 = vand.u32 4294901760, %v299_v34  ;;  %v443_v1 = vld [vmem:[#allocation5 + $0xbf8] sm:$0xff] }
 0x46e   :  { %7918 = vmatpush.msra.mxu2 %v7747_v53  ;;  %7959 = vmatpush.msra.mxu3 %v14235_v60  ;;  %v8030_v62 = vand.u32 4294901760, %v8029_v63  ;;  %v15210_v45 = vand.u32 4294901760, %v14497_v20  ;;  %v14584_v63 = vand.u32 4294901760, %v443_v1 }
 0x46f   :  { %7821 = vmatpush.msra.mxu0 %v14312_v49  ;;  %7851 = vmatpush.msra.mxu1 %v14235_v60  ;;  %v8022_v60 = vand.u32 4294901760, %v14435_v35  ;;  %v8017_v21 = vsub.f32 %v14425_v52, %v8016_v61  ;;  %v8035_v11 = vsub.f32 %v14457_v23, %v8034_v37  ;;  %v14522_v43 = vsub.f32 %v299_v34, %v14494_v36 }
 0x470   :  { %7922 = vmatpush.msra.mxu2 %v7753_v4  ;;  %7961 = vmatpush.msra.mxu3 %v14248_v8  ;;  %v293_v4 = vld [vmem:[#allocation5 + $0x748] sm:$0xff]  ;;  %v8053_v25 = vsub.f32 %v14497_v20, %v15210_v45  ;;  %v395_v45 = vld [vmem:[#allocation5 + $0xa78] sm:$0xff] }
 0x471   :  { %7824 = vmatmul.f32.vlgmr.msra.gmra.mxu0 %v15743_v12  ;;  %7853 = vmatpush.msra.mxu1 %v14248_v8  ;;  %v305_v8 = vld [vmem:[#allocation5 + $0x7a8] sm:$0xff]  ;;  %v8023_v7 = vsub.f32 %v14435_v35, %v8022_v60  ;;  %v8018_v49 = vand.u32 4294901760, %v8017_v21  ;;  %v14507_v50 = vand.u32 4294901760, %v293_v4  ;;  %v8036_v9 = vand.u32 4294901760, %v8035_v11 }
 0x472   :  { %7974 = vmatpush.msrb.mxu0 %v14408_v18  ;;  %7926 = vmatpush.msra.mxu2 %v7759_v41  ;;  %v14483_v53 = vand.u32 4294901760, %v305_v8  ;;  %v287_v41 = vld [vmem:[#allocation5 + $0x718] sm:$0xff]  ;;  %v15206_v46 = vand.u32 4294901760, %v14522_v43  ;;  %v8054_v19 = vand.u32 4294901760, %v8053_v25  ;;  %v14568_v12 = vsub.f32 %v275_v17, %v14542_v10  ;;  %v257_v21 = vld [vmem:[#allocation5 + $0x628] sm:$0xff] }
 0x473   :  { %7963 = vmatpush.msra.mxu3 %v14264_v31  ;;  %7855 = vmatpush.msra.mxu1 %v14264_v31  ;;  %v14476_v31 = vsub.f32 %v317_v16, %v14450_v40  ;;  %v8024_v29 = vand.u32 4294901760, %v8023_v7  ;;  %v14518_v42 = vand.u32 4294901760, %v287_v41  ;;  %v14534_v30 = vsub.f32 %v293_v4, %v14507_v50 }
 0x474   :  { %7976 = vmatpush.msrb.mxu0 %v14415_v32  ;;  %7930 = vmatpush.msra.mxu2 %v7765_v33  ;;  %v14510_v33 = vsub.f32 %v305_v8, %v14483_v53  ;;  %v8065_v15 = vsub.f32 %v14522_v43, %v15206_v46  ;;  %v14572_v8 = vand.u32 4294901760, %v263_v13  ;;  %v15202_v4 = vand.u32 4294901760, %v14558_v48  ;;  %v15745_v46 = vld [vmem:[#allocation23_spill] sm:$0xff] }
 0x475   :  { %7965 = vmatpush.msra.mxu3 %v14277_v39  ;;  %7932 = vmatmul.f32.vlgmr.msra.gmra.mxu2 %v15740_v5  ;;  %v14546_v58 = vsub.f32 %v287_v41, %v14518_v42  ;;  %v15205_v57 = vand.u32 4294901760, %v14534_v30  ;;  %v437_v41 = vld [vmem:[#allocation5 + $0xbc8] sm:$0xff]  ;;  %v14608_v25 = vsub.f32 %v443_v1, %v14584_v63 }
 0x476   :  { %7978 = vmatpush.msrb.mxu0 %v14422_v28  ;;  %8117 = vmatpush.msrb.mxu2 %v14425_v52  ;;  %v15208_v54 = vand.u32 4294901760, %v14510_v33  ;;  %v14596_v6 = vsub.f32 %v263_v13, %v14572_v8  ;;  %v8083_v17 = vsub.f32 %v14558_v48, %v15202_v4  ;;  %v413_v4 = vld [vmem:[#allocation5 + $0xb08] sm:$0xff] }
 0x477   :  { %7857 = vmatpush.msra.mxu1 %v14277_v39  ;;  %7967 = vmatpush.msra.mxu3 %v14290_v56  ;;  %v15212_v39 = vand.u32 4294901760, %v14476_v31  ;;  %v15204_v16 = vand.u32 4294901760, %v14546_v58  ;;  %v8071_v7 = vsub.f32 %v14534_v30, %v15205_v57 }
 0x478   :  { %7969 = vmatmul.f32.vlgmr.msra.gmra.mxu3 %v15740_v5  ;;  %7980 = vmatpush.msrb.mxu0 %v14432_v44  ;;  %v8059_v47 = vsub.f32 %v14510_v33, %v15208_v54  ;;  %v15207_v1 = vand.u32 4294901760, %v14596_v6  ;;  %v401_v54 = vld [vmem:[#allocation5 + $0xaa8] sm:$0xff] }
 0x479   :  { %8120 = vmatpush.msrb.mxu2 %v14435_v35  ;;  %8170 = vmatpush.msrb.mxu3 %v14408_v18  ;;  %v8047_v26 = vsub.f32 %v14476_v31, %v15212_v39  ;;  %v8077_v11 = vsub.f32 %v14546_v58, %v15204_v16 }
 0x47a   :  { %7859 = vmatpush.msra.mxu1 %v14290_v56  ;;  %7982 = vmatpush.msrb.mxu0 %v14439_v55  ;;  %v8041_v56 = vsub.f32 %v14462_v2, %v15213_v22  ;;  %v8060_v34 = vand.u32 4294901760, %v8059_v47  ;;  %v389_v22 = vld [vmem:[#allocation5 + $0xa48] sm:$0xff] }
 0x47b   :  { %7863 = vmatmul.f32.vlgmr.msra.gmra.mxu1 %v15744_v51  ;;  %8123 = vmatpush.msrb.mxu2 %v14446_v14  ;;  %v8048_v5 = vand.u32 4294901760, %v8047_v26  ;;  %v14590_v51 = vand.u32 4294901760, %v257_v21  ;;  %v8072_v26 = vand.u32 4294901760, %v8071_v7  ;;  %v8084_v7 = vand.u32 4294901760, %v8083_v17 }
 0x47c   :  { %8019 = vmatpush.msrb.mxu1 %v8018_v49  ;;  %8172 = vmatpush.msrb.mxu3 %v14415_v32  ;;  %v8042_v38 = vand.u32 4294901760, %v8041_v56  ;;  %v14580_v49 = vsub.f32 %v269_v27, %v14554_v59  ;;  %v15201_v56 = vand.u32 4294901760, %v14568_v12  ;;  %v425_v27 = vld [vmem:[#allocation5 + $0xb68] sm:$0xff] }
 0x47d   :  { %7984 = vmatpush.msrb.mxu0 %v14450_v40  ;;  %8126 = vmatpush.msrb.mxu2 %v14457_v23  ;;  %v14615_v13 = vsub.f32 %v257_v21, %v14590_v51  ;;  %v15748_v23 = vand.u32 4294901760, %v14462_v2 }
 0x47e   :  { %8025 = vmatpush.msrb.mxu1 %v8024_v29  ;;  %8174 = vmatpush.msrb.mxu3 %v14422_v28  ;;  %v8066_v29 = vand.u32 4294901760, %v8065_v15  ;;  %v8089_v47 = vsub.f32 %v14568_v12, %v15201_v56  ;;  %v419_v15 = vld [vmem:[#allocation5 + $0xb38] sm:$0xff] }
 0x47f   :  { %7986 = vmatpush.msrb.mxu0 %v14470_v24  ;;  %8129 = vmatpush.msrb.mxu2 %v14462_v2  ;;  %v14634_v56 = vand.u32 4294901760, %v419_v15  ;;  %v15211_v17 = vand.u32 4294901760, %v14615_v13 }
 0x480   :  { %8031 = vmatpush.msrb.mxu1 %v8030_v62  ;;  %8176 = vmatpush.msrb.mxu3 %v14432_v44  ;;  %v431_v62 = vld [vmem:[#allocation5 + $0xb98] sm:$0xff] }
 0x481   :  { %7988 = vmatpush.msrb.mxu0 %v14483_v53  ;;  %8132 = vmatpush.msrb.mxu2 %v14476_v31 }
 0x482   :  { %8037 = vmatpush.msrb.mxu1 %v8036_v9  ;;  %8178 = vmatpush.msrb.mxu3 %v14439_v55  ;;  %v15203_v9 = vand.u32 4294901760, %v14580_v49 }
 0x483   :  { %7990 = vmatpush.msrb.mxu0 %v14494_v36  ;;  %8135 = vmatpush.msrb.mxu2 %v14497_v20 }
 0x484   :  { %8043 = vmatpush.msrb.mxu1 %v8042_v38  ;;  %8180 = vmatpush.msrb.mxu3 %v14450_v40  ;;  %v14603_v38 = vand.u32 4294901760, %v437_v41  ;;  %v8095_v21 = vsub.f32 %v14580_v49, %v15203_v9 }
 0x485   :  { %7992 = vmatpush.msrb.mxu0 %v14507_v50  ;;  %8138 = vmatpush.msrb.mxu2 %v14510_v33 }
 0x486   :  { %8049 = vmatpush.msrb.mxu1 %v8048_v5  ;;  %8182 = vmatpush.msrb.mxu3 %v14470_v24  ;;  %v8078_v5 = vand.u32 4294901760, %v8077_v11  ;;  %v15209_v11 = vand.u32 4294901760, %v14608_v25 }
 0x487   :  { %7994 = vmatpush.msrb.mxu0 %v14518_v42  ;;  %8141 = vmatpush.msrb.mxu2 %v14522_v43 }
 0x488   :  { %8055 = vmatpush.msrb.mxu1 %v8054_v19  ;;  %8184 = vmatpush.msrb.mxu3 %v14483_v53  ;;  %v14617_v19 = vand.u32 4294901760, %v431_v62 }
 0x489   :  { %7996 = vmatpush.msrb.mxu0 %v14530_v0  ;;  %8144 = vmatpush.msrb.mxu2 %v14534_v30 }
 0x48a   :  { %8061 = vmatpush.msrb.mxu1 %v8060_v34  ;;  %8186 = vmatpush.msrb.mxu3 %v14494_v36  ;;  %v14622_v34 = vand.u32 4294901760, %v425_v27  ;;  %v14639_v9 = vsub.f32 %v431_v62, %v14617_v19  ;;  %v14651_v62 = vand.u32 4294901760, %v413_v4 }
 0x48b   :  { %7998 = vmatpush.msrb.mxu0 %v14542_v10  ;;  %8147 = vmatpush.msrb.mxu2 %v14546_v58 }
 0x48c   :  { %8067 = vmatpush.msrb.mxu1 %v8066_v29  ;;  %8188 = vmatpush.msrb.mxu3 %v14507_v50  ;;  %v14629_v29 = vsub.f32 %v437_v41, %v14603_v38  ;;  %v8101_v41 = vsub.f32 %v14596_v6, %v15207_v1  ;;  %v14647_v16 = vsub.f32 %v425_v27, %v14622_v34 }
 0x48d   :  { %8000 = vmatpush.msrb.mxu0 %v14554_v59  ;;  %8150 = vmatpush.msrb.mxu2 %v14558_v48  ;;  %v8358_v1 = vsub.f32 %v14608_v25, %v15209_v11  ;;  %v14659_v27 = vsub.f32 %v419_v15, %v14634_v56 }
 0x48e   :  { %8073 = vmatpush.msrb.mxu1 %v8072_v26  ;;  %8190 = vmatpush.msrb.mxu3 %v14518_v42  ;;  %v8090_v26 = vand.u32 4294901760, %v8089_v47  ;;  %v8096_v47 = vand.u32 4294901760, %v8095_v21  ;;  %v15216_v57 = vand.u32 4294901760, %v14629_v29  ;;  %v8102_v11 = vand.u32 4294901760, %v8101_v41 }
 0x48f   :  { %8002 = vmatpush.msrb.mxu0 %v14572_v8  ;;  %8153 = vmatpush.msrb.mxu2 %v14568_v12  ;;  %v15215_v15 = vand.u32 4294901760, %v14647_v16  ;;  %v8359_v41 = vand.u32 4294901760, %v8358_v1  ;;  %v15217_v39 = vand.u32 4294901760, %v14659_v27  ;;  %v15747_v1 = vld [vmem:[#allocation22_spill] sm:$0xff] }
 0x490   :  { %8079 = vmatpush.msrb.mxu1 %v8078_v5  ;;  %8192 = vmatpush.msrb.mxu3 %v14530_v0  ;;  %v407_v5 = vld [vmem:[#allocation5 + $0xad8] sm:$0xff]  ;;  %v8364_v52 = vsub.f32 %v14629_v29, %v15216_v57 }
 0x491   :  { %8004 = vmatpush.msrb.mxu0 %v14590_v51  ;;  %8156 = vmatpush.msrb.mxu2 %v14580_v49  ;;  %v14667_v21 = vand.u32 4294901760, %v407_v5  ;;  %v8376_v14 = vsub.f32 %v14647_v16, %v15215_v15  ;;  %v377_v15 = vld [vmem:[#allocation5 + $0x9e8] sm:$0xff]  ;;  %v15749_v57 = vld [vmem:[#allocation20_spill] sm:$0xff] }
 0x492   :  { %8085 = vmatpush.msrb.mxu1 %v8084_v7  ;;  %8194 = vmatpush.msrb.mxu3 %v14542_v10  ;;  %v8107_v7 = vsub.f32 %v14615_v13, %v15211_v17  ;;  %v15746_v17 = vld [vmem:[#allocation21_spill] sm:$0xff] }
 0x493   :  { %8010 = vmatmul.f32.vlgmr.msrb.gmra.mxu0 %v15745_v46  ;;  %8159 = vmatpush.msrb.mxu2 %v14596_v6  ;;  %v15214_v46 = vand.u32 4294901760, %v14639_v9 }
 0x494   :  { %8211 = vmatpush.msra.mxu0 %v8016_v61  ;;  %8091 = vmatpush.msrb.mxu1 %v8090_v26  ;;  %v14678_v61 = vsub.f32 %v413_v4, %v14651_v62  ;;  %v14680_v26 = vand.u32 4294901760, %v401_v54  ;;  %v8108_v35 = vand.u32 4294901760, %v8107_v7  ;;  %v14692_v4 = vsub.f32 %v407_v5, %v14667_v21  ;;  %v371_v7 = vld [vmem:[#allocation5 + $0x9b8] sm:$0xff] }
 0x495   :  { %8196 = vmatpush.msrb.mxu3 %v14554_v59  ;;  %8162 = vmatpush.msrb.mxu2 %v14615_v13 }
 0x496   :  { %8215 = vmatpush.msra.mxu0 %v8022_v60  ;;  %8097 = vmatpush.msrb.mxu1 %v8096_v47  ;;  %v8370_v60 = vsub.f32 %v14639_v9, %v15214_v46  ;;  %v14694_v47 = vand.u32 4294901760, %v395_v45  ;;  %v14705_v5 = vsub.f32 %v401_v54, %v14680_v26  ;;  %v14707_v46 = vand.u32 4294901760, %v389_v22 }
 0x497   :  { %8198 = vmatpush.msrb.mxu3 %v14572_v8  ;;  %8165 = vmatmul.f32.vlgmr.msrb.gmra.mxu2 %v15746_v17  ;;  %v8365_v17 = vand.u32 4294901760, %v8364_v52  ;;  %v15218_v52 = vand.u32 4294901760, %v14692_v4  ;;  %v15750_v2 = vand.u32 4294901760, %v14678_v61 }
 0x498   :  { %8219 = vmatpush.msra.mxu0 %v8028_v3  ;;  %8315 = vmatpush.msra.mxu2 %v14584_v63  ;;  %v383_v3 = vld [vmem:[#allocation5 + $0xa18] sm:$0xff]  ;;  %v14717_v54 = vsub.f32 %v395_v45, %v14694_v47  ;;  %v14729_v45 = vsub.f32 %v389_v22, %v14707_v46 }
 0x499   :  { %8103 = vmatpush.msrb.mxu1 %v8102_v11  ;;  %8200 = vmatpush.msrb.mxu3 %v14590_v51  ;;  %v8382_v11 = vsub.f32 %v14659_v27, %v15217_v39  ;;  %v15751_v39 = vand.u32 4294901760, %v14476_v31  ;;  %v15752_v31 = vand.u32 4294901760, %v14497_v20 }
 0x49a   :  { %8204 = vmatmul.f32.vlgmr.msrb.gmra.mxu3 %v15747_v1  ;;  %8223 = vmatpush.msra.mxu0 %v8034_v37  ;;  %v8371_v37 = vand.u32 4294901760, %v8370_v60  ;;  %v14719_v1 = vand.u32 4294901760, %v383_v3  ;;  %v365_v60 = vld [vmem:[#allocation5 + $0x988] sm:$0xff] }
 0x49b   :  { %8317 = vmatpush.msra.mxu2 %v14603_v38  ;;  %8360 = vmatpush.msra.mxu3 %v8359_v41  ;;  %v8377_v41 = vand.u32 4294901760, %v8376_v14  ;;  %v8383_v14 = vand.u32 4294901760, %v8382_v11  ;;  %v14760_v20 = vand.u32 4294901760, %v365_v60 }
 0x49c   :  { %8109 = vmatpush.msrb.mxu1 %v8108_v35  ;;  %8227 = vmatpush.msra.mxu0 %v15748_v23  ;;  %v8388_v35 = vsub.f32 %v14678_v61, %v15750_v2  ;;  %v14731_v23 = vand.u32 4294901760, %v377_v15  ;;  %v14742_v22 = vsub.f32 %v383_v3, %v14719_v1  ;;  %v14744_v2 = vand.u32 4294901760, %v371_v7 }
 0x49d   :  { %8111 = vmatmul.f32.vlgmr.msrb.gmra.mxu1 %v15749_v57  ;;  %8319 = vmatpush.msra.mxu2 %v14617_v19 }
 0x49e   :  { %8278 = vmatpush.msra.mxu1 %v14408_v18  ;;  %8366 = vmatpush.msra.mxu3 %v8365_v17  ;;  %v8394_v18 = vsub.f32 %v14692_v4, %v15218_v52  ;;  %v14755_v3 = vsub.f32 %v377_v15, %v14731_v23  ;;  %v359_v52 = vld [vmem:[#allocation5 + $0x958] sm:$0xff]  ;;  %v15754_v17 = vand.u32 4294901760, %v14510_v33  ;;  %v14768_v15 = vsub.f32 %v371_v7, %v14744_v2 }
 0x49f   :  { %8231 = vmatpush.msra.mxu0 %v15751_v39  ;;  %8321 = vmatpush.msra.mxu2 %v14622_v34  ;;  %v15753_v39 = vand.u32 4294901760, %v14705_v5  ;;  %v15756_v33 = vand.u32 4294901760, %v14522_v43  ;;  %v15757_v7 = vand.u32 4294901760, %v14534_v30  ;;  %v14784_v43 = vsub.f32 %v365_v60, %v14760_v20 }
 0x4a0   :  { %8280 = vmatpush.msra.mxu1 %v14415_v32  ;;  %8372 = vmatpush.msra.mxu3 %v8371_v37  ;;  %v8389_v32 = vand.u32 4294901760, %v8388_v35  ;;  %v8411_v37 = vand.u32 4294901760, %v14729_v45  ;;  %v15758_v30 = vand.u32 4294901760, %v14546_v58 }
 0x4a1   :  { %8235 = vmatpush.msra.mxu0 %v15752_v31  ;;  %8323 = vmatpush.msra.mxu2 %v14634_v56  ;;  %v8400_v11 = vsub.f32 %v14705_v5, %v15753_v39  ;;  %v8417_v31 = vand.u32 4294901760, %v14742_v22  ;;  %v353_v39 = vld [vmem:[#allocation5 + $0x928] sm:$0xff]  ;;  %v8435_v58 = vand.u32 4294901760, %v14784_v43 }
 0x4a2   :  { %8282 = vmatpush.msra.mxu1 %v14422_v28  ;;  %8378 = vmatpush.msra.mxu3 %v8377_v41  ;;  %v8395_v28 = vand.u32 4294901760, %v8394_v18  ;;  %v15755_v41 = vand.u32 4294901760, %v14717_v54  ;;  %v8423_v18 = vand.u32 4294901760, %v14755_v3 }
 0x4a3   :  { %8239 = vmatpush.msra.mxu0 %v15754_v17  ;;  %8325 = vmatpush.msra.mxu2 %v14651_v62  ;;  %v14773_v17 = vand.u32 4294901760, %v359_v52 }
 0x4a4   :  { %8284 = vmatpush.msra.mxu1 %v14432_v44  ;;  %8384 = vmatpush.msra.mxu3 %v8383_v14  ;;  %v8406_v35 = vsub.f32 %v14717_v54, %v15755_v41  ;;  %v8401_v44 = vand.u32 4294901760, %v8400_v11  ;;  %v8412_v14 = vsub.f32 %v14729_v45, %v8411_v37  ;;  %v14786_v41 = vand.u32 4294901760, %v353_v39 }
 0x4a5   :  { %8243 = vmatpush.msra.mxu0 %v15756_v33  ;;  %8327 = vmatpush.msra.mxu2 %v14667_v21  ;;  %v8429_v11 = vand.u32 4294901760, %v14768_v15  ;;  %v14797_v60 = vsub.f32 %v359_v52, %v14773_v17 }
 0x4a6   :  { %8286 = vmatpush.msra.mxu1 %v14439_v55  ;;  %8390 = vmatpush.msra.mxu3 %v8389_v32  ;;  %v8407_v55 = vand.u32 4294901760, %v8406_v35  ;;  %v8418_v32 = vsub.f32 %v14742_v22, %v8417_v31  ;;  %v15759_v35 = vand.u32 4294901760, %v14558_v48  ;;  %v14808_v33 = vsub.f32 %v353_v39, %v14786_v41 }
 0x4a7   :  { %8247 = vmatpush.msra.mxu0 %v15757_v7  ;;  %8329 = vmatpush.msra.mxu2 %v14680_v26  ;;  %v8430_v52 = vsub.f32 %v14768_v15, %v8429_v11  ;;  %v8441_v48 = vand.u32 4294901760, %v14797_v60 }
 0x4a8   :  { %8288 = vmatpush.msra.mxu1 %v14450_v40  ;;  %8396 = vmatpush.msra.mxu3 %v8395_v28  ;;  %v8413_v40 = vand.u32 4294901760, %v8412_v14  ;;  %v8424_v28 = vsub.f32 %v14755_v3, %v8423_v18  ;;  %v15761_v14 = vand.u32 4294901760, %v14580_v49  ;;  %v15763_v49 = vand.u32 4294901760, %v14615_v13 }
 0x4a9   :  { %8251 = vmatpush.msra.mxu0 %v15758_v30  ;;  %8331 = vmatpush.msra.mxu2 %v14694_v47  ;;  %v8431_v7 = vand.u32 4294901760, %v8430_v52  ;;  %v15765_v13 = vand.u32 4294901760, %v14608_v25  ;;  %v15767_v30 = vand.u32 4294901760, %v14629_v29 }
 0x4aa   :  { %8290 = vmatpush.msra.mxu1 %v14470_v24  ;;  %8402 = vmatpush.msra.mxu3 %v8401_v44  ;;  %v8419_v24 = vand.u32 4294901760, %v8418_v32  ;;  %v15760_v44 = vand.u32 4294901760, %v14568_v12  ;;  %v8425_v39 = vand.u32 4294901760, %v8424_v28  ;;  %v8447_v12 = vand.u32 4294901760, %v14808_v33 }
 0x4ab   :  { %8255 = vmatpush.msra.mxu0 %v15759_v35  ;;  %8333 = vmatpush.msra.mxu2 %v14707_v46 }
 0x4ac   :  { %8292 = vmatpush.msra.mxu1 %v14483_v53  ;;  %8408 = vmatpush.msra.mxu3 %v8407_v55  ;;  %v8436_v53 = vsub.f32 %v14784_v43, %v8435_v58  ;;  %v15762_v55 = vand.u32 4294901760, %v14596_v6  ;;  %v8448_v6 = vsub.f32 %v14808_v33, %v8447_v12 }
 0x4ad   :  { %8259 = vmatpush.msra.mxu0 %v15760_v44  ;;  %8335 = vmatpush.msra.mxu2 %v14719_v1 }
 0x4ae   :  { %8294 = vmatpush.msra.mxu1 %v14494_v36  ;;  %8414 = vmatpush.msra.mxu3 %v8413_v40  ;;  %v8442_v36 = vsub.f32 %v14797_v60, %v8441_v48 }
 0x4af   :  { %8263 = vmatpush.msra.mxu0 %v15761_v14  ;;  %8337 = vmatpush.msra.mxu2 %v14731_v23 }
 0x4b0   :  { %8296 = vmatpush.msra.mxu1 %v14507_v50  ;;  %8420 = vmatpush.msra.mxu3 %v8419_v24  ;;  %v8437_v50 = vand.u32 4294901760, %v8436_v53  ;;  %v8443_v32 = vand.u32 4294901760, %v8442_v36 }
 0x4b1   :  { %8267 = vmatpush.msra.mxu0 %v15762_v55  ;;  %8339 = vmatpush.msra.mxu2 %v14744_v2 }
 0x4b2   :  { %8298 = vmatpush.msra.mxu1 %v14518_v42  ;;  %8426 = vmatpush.msra.mxu3 %v8425_v39  ;;  %v8449_v42 = vand.u32 4294901760, %v8448_v6 }
 0x4b3   :  { %8271 = vmatpush.msra.mxu0 %v15763_v49  ;;  %8341 = vmatpush.msra.mxu2 %v14760_v20 }
 0x4b4   :  { %8300 = vmatpush.msra.mxu1 %v14530_v0  ;;  %8432 = vmatpush.msra.mxu3 %v8431_v7  ;;  %v15764_v0 = vld [vmem:[#allocation27_spill] sm:$0xff] }
 0x4b5   :  { %8273 = vmatmul.f32.vlgmr.msra.gmra.mxu0 %v15749_v57  ;;  %8343 = vmatpush.msra.mxu2 %v14773_v17 }
 0x4b6   :  { %8458 = vmatpush.msrb.mxu0 %v14608_v25  ;;  %8302 = vmatpush.msra.mxu1 %v14542_v10  ;;  %v15766_v10 = vld [vmem:[#allocation24_spill] sm:$0xff]  ;;  %v5965_v25 = vpop.f32.mrf.mxu0 }
 0x4b7   :  { %8438 = vmatpush.msra.mxu3 %v8437_v50  ;;  %8345 = vmatpush.msra.mxu2 %v14786_v41 }
 0x4b8   :  { %8461 = vmatpush.msrb.mxu0 %v14629_v29  ;;  %8304 = vmatpush.msra.mxu1 %v14554_v59  ;;  %v15768_v59 = vand.u32 4294901760, %v14639_v9 }
 0x4b9   :  { %8444 = vmatpush.msra.mxu3 %v8443_v32  ;;  %8351 = vmatmul.f32.vlgmr.msra.gmra.mxu2 %v15764_v0 }
 0x4ba   :  { %8464 = vmatpush.msrb.mxu0 %v14639_v9  ;;  %8552 = vmatpush.msrb.mxu2 %v15765_v13  ;;  %v15774_v9 = vand.u32 4294901760, %v14717_v54 }
 0x4bb   :  { %8306 = vmatpush.msra.mxu1 %v14572_v8  ;;  %8450 = vmatpush.msra.mxu3 %v8449_v42  ;;  %v15769_v8 = vand.u32 4294901760, %v14647_v16 }
 0x4bc   :  { %8452 = vmatmul.f32.vlgmr.msra.gmra.mxu3 %v15766_v10  ;;  %8467 = vmatpush.msrb.mxu0 %v14647_v16  ;;  %v15772_v16 = vand.u32 4294901760, %v14692_v4 }
 0x4bd   :  { %8556 = vmatpush.msrb.mxu2 %v15767_v30  ;;  %8619 = vmatpush.msrb.mxu3 %v14584_v63 }
 0x4be   :  { %8308 = vmatpush.msra.mxu1 %v14590_v51  ;;  %8470 = vmatpush.msrb.mxu0 %v14659_v27  ;;  %v15773_v51 = vand.u32 4294901760, %v14705_v5  ;;  %v6228_v29 = vpop.f32.mrf.mxu0 }
 0x4bf   :  { %8310 = vmatmul.f32.vlgmr.msra.gmra.mxu1 %v15749_v57  ;;  %8560 = vmatpush.msrb.mxu2 %v15768_v59  ;;  %v15770_v57 = vand.u32 4294901760, %v14659_v27 }
 0x4c0   :  { %8511 = vmatpush.msrb.mxu1 %v14584_v63  ;;  %8621 = vmatpush.msrb.mxu3 %v14603_v38  ;;  %v15771_v63 = vand.u32 4294901760, %v14678_v61 }
 0x4c1   :  { %8473 = vmatpush.msrb.mxu0 %v14678_v61  ;;  %8564 = vmatpush.msrb.mxu2 %v15769_v8 }
 0x4c2   :  { %8513 = vmatpush.msrb.mxu1 %v14603_v38  ;;  %8623 = vmatpush.msrb.mxu3 %v14617_v19  ;;  %v15776_v38 = vld [vmem:[#allocation26_spill] sm:$0xff] }
 0x4c3   :  { %8476 = vmatpush.msrb.mxu0 %v14692_v4  ;;  %8568 = vmatpush.msrb.mxu2 %v15770_v57 }
 0x4c4   :  { %8515 = vmatpush.msrb.mxu1 %v14617_v19  ;;  %8625 = vmatpush.msrb.mxu3 %v14622_v34  ;;  %v6066_v19 = vpop.f32.mrf.mxu1 }
 0x4c5   :  { %8479 = vmatpush.msrb.mxu0 %v14705_v5  ;;  %8572 = vmatpush.msrb.mxu2 %v15771_v63 }
 0x4c6   :  { %8517 = vmatpush.msrb.mxu1 %v14622_v34  ;;  %8627 = vmatpush.msrb.mxu3 %v14634_v56  ;;  %v6120_v34 = vpop.f32.mrf.mxu2 }
 0x4c7   :  { %8482 = vmatpush.msrb.mxu0 %v14717_v54  ;;  %8576 = vmatpush.msrb.mxu2 %v15772_v16 }
 0x4c8   :  { %8519 = vmatpush.msrb.mxu1 %v14634_v56  ;;  %8629 = vmatpush.msrb.mxu3 %v14651_v62  ;;  %v15775_v56 = vld [vmem:[#allocation25_spill] sm:$0xff] }
 0x4c9   :  { %8485 = vmatpush.msrb.mxu0 %v14729_v45  ;;  %8580 = vmatpush.msrb.mxu2 %v15773_v51 }
 0x4ca   :  { %8521 = vmatpush.msrb.mxu1 %v14651_v62  ;;  %8631 = vmatpush.msrb.mxu3 %v14667_v21  ;;  %v6159_v62 = vpop.f32.mrf.mxu3 }
 0x4cb   :  { %8488 = vmatpush.msrb.mxu0 %v14742_v22  ;;  %8584 = vmatpush.msrb.mxu2 %v15774_v9 }
 0x4cc   :  { %8523 = vmatpush.msrb.mxu1 %v14667_v21  ;;  %8633 = vmatpush.msrb.mxu3 %v14680_v26  ;;  %v6265_v27 = vpop.f32.mrf.mxu1  ;;  %v6461_v21 = vpop.f32.mrf.mxu0 }
 0x4cd   :  { %8491 = vmatpush.msrb.mxu0 %v14755_v3  ;;  %8588 = vmatpush.msrb.mxu2 %v8411_v37 }
 0x4ce   :  { %8525 = vmatpush.msrb.mxu1 %v14680_v26  ;;  %8635 = vmatpush.msrb.mxu3 %v14694_v47 }
 0x4cf   :  { %8494 = vmatpush.msrb.mxu0 %v14768_v15  ;;  %8592 = vmatpush.msrb.mxu2 %v8417_v31  ;;  %v8699_v31 = vld [vmem:[#allocation7] sm:$0x3f] }
 0x4d0   :  { %8527 = vmatpush.msrb.mxu1 %v14694_v47  ;;  %8637 = vmatpush.msrb.mxu3 %v14707_v46  ;;  %v450_v15 = vperm.slane %v8699_v31, 4 }
 0x4d1   :  { %8497 = vmatpush.msrb.mxu0 %v14784_v43  ;;  %8596 = vmatpush.msrb.mxu2 %v8423_v18 }
 0x4d2   :  { %8529 = vmatpush.msrb.mxu1 %v14707_v46  ;;  %8639 = vmatpush.msrb.mxu3 %v14719_v1  ;;  %v6306_v46 = vpop.f32.mrf.mxu2  ;;  %v6407_v61 = vpop.f32.mrf.mxu3 }
 0x4d3   :  { %8500 = vmatpush.msrb.mxu0 %v14797_v60  ;;  %8600 = vmatpush.msrb.mxu2 %v8429_v11 }
 0x4d4   :  { %8531 = vmatpush.msrb.mxu1 %v14719_v1  ;;  %8641 = vmatpush.msrb.mxu3 %v14731_v23  ;;  %v6500_v26 = vpop.f32.mrf.mxu1  ;;  %v6647_v47 = vpop.f32.mrf.mxu0 }
 0x4d5   :  { %8503 = vmatpush.msrb.mxu0 %v14808_v33  ;;  %8604 = vmatpush.msrb.mxu2 %v8435_v58 }
 0x4d6   :  { %8533 = vmatpush.msrb.mxu1 %v14731_v23  ;;  %8643 = vmatpush.msrb.mxu3 %v14744_v2 }
 0x4d7   :  { %8506 = vmatmul.f32.vlgmr.msrb.gmra.mxu0 %v15775_v56  ;;  %8608 = vmatpush.msrb.mxu2 %v8441_v48 }
 0x4d8   :  { %8535 = vmatpush.msrb.mxu1 %v14744_v2  ;;  %8645 = vmatpush.msrb.mxu3 %v14760_v20 }
 0x4d9   :  { %8612 = vmatpush.msrb.mxu2 %v8447_v12 }
 0x4da   :  { %8537 = vmatpush.msrb.mxu1 %v14760_v20  ;;  %8647 = vmatpush.msrb.mxu3 %v14773_v17  ;;  %v6569_v4 = vpop.f32.mrf.mxu2  ;;  %v6606_v5 = vpop.f32.mrf.mxu3 }
 0x4db   :  { %8614 = vmatmul.f32.vlgmr.msrb.gmra.mxu2 %v15766_v10 }
 0x4dc   :  { %8539 = vmatpush.msrb.mxu1 %v14773_v17  ;;  %8649 = vmatpush.msrb.mxu3 %v14786_v41  ;;  %v6748_v54 = vpop.f32.mrf.mxu1  ;;  %v6910_v45 = vpop.f32.mrf.mxu0  ;;  %v451_v17 = vperm.slane %v8699_v31, 5 }
 0x4dd   :  { %8651 = vmatmul.f32.vlgmr.msrb.gmra.mxu3 %v15766_v10 }
 0x4de   :  { %8541 = vmatpush.msrb.mxu1 %v14786_v41  ;;  %v5966_v41 = vadd.f32 %v5965_v25, %v450_v15 }
 0x4df   :  { %8545 = vmatmul.f32.vlgmr.msrb.gmra.mxu1 %v15776_v38 }
 0x4e0   :  { %v6067_v28 = vadd.f32 %v6066_v19, %v5966_v41 }
 0x4e2   :  { %v6802_v1 = vpop.f32.mrf.mxu2  ;;  %v6841_v23 = vpop.f32.mrf.mxu3  ;;  %v6121_v33 = vadd.f32 %v6120_v34, %v6067_v28 }
 0x4e4   :  { %v6947_v22 = vpop.f32.mrf.mxu1  ;;  %v14937_v37 = vpop.f32.mrf.mxu0  ;;  %v6160_v44 = vadd.f32 %v6159_v62, %v6121_v33 }
 0x4e6   :  { %v6229_v14 = vadd.f32 %v6228_v29, %v6160_v44 }
 0x4e8   :  { %v6266_v7 = vadd.f32 %v6265_v27, %v6229_v14 }
 0x4ea   :  { %v14935_v2 = vpop.f32.mrf.mxu2  ;;  %v14939_v3 = vpop.f32.mrf.mxu3  ;;  %v6307_v49 = vadd.f32 %v6306_v46, %v6266_v7 }
 0x4ec   :  { %v14941_v20 = vpop.f32.mrf.mxu1  ;;  %v7329_v43 = vpop.f32.mrf.mxu0  ;;  %v6408_v32 = vadd.f32 %v6407_v61, %v6307_v49 }
 0x4ed   :  { %v7330_v11 = vadd.f32 %v7329_v43, %v451_v17 }
 0x4ee   :  { %v6462_v0 = vadd.f32 %v6461_v21, %v6408_v32 }
 0x4f0   :  { %v6501_v30 = vadd.f32 %v6500_v26, %v6462_v0 }
 0x4f2   :  { %v14943_v18 = vpop.f32.mrf.mxu2  ;;  %v14945_v60 = vpop.f32.mrf.mxu3  ;;  %v6570_v63 = vadd.f32 %v6569_v4, %v6501_v30 }
 0x4f4   :  { %v7430_v40 = vpop.f32.mrf.mxu1  ;;  %v7592_v39 = vpop.f32.mrf.mxu0  ;;  %v6607_v9 = vadd.f32 %v6606_v5, %v6570_v63 }
 0x4f5   :  { %v7431_v35 = vadd.f32 %v7430_v40, %v7330_v11 }
 0x4f6   :  { %v6648_v38 = vadd.f32 %v6647_v47, %v6607_v9 }
 0x4f8   :  { %v6749_v34 = vadd.f32 %v6748_v54, %v6648_v38 }
 0x4fa   :  { %v7484_v58 = vpop.f32.mrf.mxu2  ;;  %v7523_v52 = vpop.f32.mrf.mxu3  ;;  %v6803_v46 = vadd.f32 %v6802_v1, %v6749_v34 }
 0x4fb   :  { %v7485_v24 = vadd.f32 %v7484_v58, %v7431_v35 }
 0x4fc   :  { %v7629_v12 = vpop.f32.mrf.mxu1  ;;  %v7825_v42 = vpop.f32.mrf.mxu0  ;;  %v6842_v31 = vadd.f32 %v6841_v23, %v6803_v46 }
 0x4fd   :  { %v7524_v48 = vadd.f32 %v7523_v52, %v7485_v24 }
 0x4fe   :  { %v6911_v15 = vadd.f32 %v6910_v45, %v6842_v31 }
 0x4ff   :  { %v7593_v53 = vadd.f32 %v7592_v39, %v7524_v48 }
 0x500   :  { %v6948_v4 = vadd.f32 %v6947_v22, %v6911_v15 }
 0x501   :  { %v7630_v55 = vadd.f32 %v7629_v12, %v7593_v53 }
 0x502   :  { %v7670_v36 = vpop.f32.mrf.mxu2  ;;  %v7771_v6 = vpop.f32.mrf.mxu3  ;;  %v6989_v47 = vadd.f32 %v14935_v2, %v6948_v4 }
 0x503   :  { %v7671_v50 = vadd.f32 %v7670_v36, %v7630_v55 }
 0x504   :  { %v7864_v10 = vpop.f32.mrf.mxu1  ;;  %v7090_v54 = vadd.f32 %v14939_v3, %v6989_v47 }
 0x505   :  { %v7772_v13 = vadd.f32 %v7771_v6, %v7671_v50 }
 0x506   :  { %v7144_v1 = vadd.f32 %v14937_v37, %v7090_v54 }
 0x507   :  { %v7826_v59 = vadd.f32 %v7825_v42, %v7772_v13 }
 0x508   :  { %v7183_v23 = vadd.f32 %v14941_v20, %v7144_v1 }
 0x509   :  { %v7865_v8 = vadd.f32 %v7864_v10, %v7826_v59 }
 0x50a   :  { %v7933_v57 = vpop.f32.mrf.mxu2  ;;  %v7970_v51 = vpop.f32.mrf.mxu3  ;;  %v7252_v22 = vadd.f32 %v14943_v18, %v7183_v23 }
 0x50b   :  { %v7934_v16 = vadd.f32 %v7933_v57, %v7865_v8 }
 0x50c   :  { %v7289_v2 = vadd.f32 %v14945_v60, %v7252_v22 }
 0x50d   :  { %v7971_v25 = vadd.f32 %v7970_v51, %v7934_v16 }
 0x510   :  { %v8011_v56 = vpop.f32.mrf.mxu0 }
 0x511   :  { %v8012_v29 = vadd.f32 %v8011_v56, %v7971_v25 }
 0x51a   :  { %v8112_v19 = vpop.f32.mrf.mxu1  ;;  %v8166_v27 = vpop.f32.mrf.mxu2 }
 0x51b   :  { %v8113_v62 = vadd.f32 %v8112_v19, %v8012_v29 }
 0x51d   :  { %v8167_v21 = vadd.f32 %v8166_v27, %v8113_v62  ;;  %v8205_v61 = vpop.f32.mrf.mxu3 }
 0x51f   :  { %v8206_v17 = vadd.f32 %v8205_v61, %v8167_v21 }
 0x532   :  { %v8274_v26 = vpop.f32.mrf.mxu0 }
 0x533   :  { %v8275_v41 = vadd.f32 %v8274_v26, %v8206_v17 }
 0x53c   :  { %v8311_v43 = vpop.f32.mrf.mxu1  ;;  %v8352_v5 = vpop.f32.mrf.mxu2 }
 0x53d   :  { %v8312_v11 = vadd.f32 %v8311_v43, %v8275_v41 }
 0x53f   :  { %v8353_v40 = vadd.f32 %v8352_v5, %v8312_v11  ;;  %v8453_v28 = vpop.f32.mrf.mxu3 }
 0x541   :  { %v8454_v58 = vadd.f32 %v8453_v28, %v8353_v40 }
 0x554   :  { %v8507_v35 = vpop.f32.mrf.mxu0 }
 0x555   :  { %v8508_v33 = vadd.f32 %v8507_v35, %v8454_v58 }
 0x55c   :  { %v8546_v45 = vpop.f32.mrf.mxu1 }
 0x55d   :  { %v8547_v24 = vadd.f32 %v8546_v45, %v8508_v33 }
 0x55e   :  { %v8615_v52 = vpop.f32.mrf.mxu2 }
 0x55f   :  { %v8616_v44 = vadd.f32 %v8615_v52, %v8547_v24 }
 0x560   :  { %v8652_v48 = vpop.f32.mrf.mxu3 }
 0x561   :  { %v8653_v39 = vadd.f32 %v8652_v48, %v8616_v44 }
 0x563   :  { %v8663_v37 = vrot.slane %v8653_v39, 4 }
 0x565   :  { %v8667_v3 = vsel %vm8664_vm0, %v7289_v2, %v8663_v37 }
 0x566   :  { %8673 = vst [vmem:[#allocation8 + $0x10] sm:$0xff] %v8667_v3 }
 0x567   :  { %8684 = dma.vmem_to_hbm [thread:$0]  %s8680_s2, 384, %s8682_s30, [#allocation4]  }
 0x568   :  { %8800 = dma.done.wait [#allocation4], 384  }
 0x569   :  { %8801 = vsyncadd [#allocation4], 4294966912 }
 0x56a   :  { %8689 = vsyncpa [#allocation3], 1 }
 0x56b   :  { %8690 = vsyncpa [#allocation6], 1 }
 0x56c   :  { %8691 = vsyncpa [#allocation4], 1 }

</bundles_post_ra>
